<compile_context>
chip_gen: v7x
topology: tpu7x:2x2x1
jax: 0.10.0
libtpu: 0.0.40
codegen_flags: <defaults>
</compile_context>

<pallas_src>
import functools

import jax
import jax.numpy as jnp
from jax.experimental import pallas as pl
from jax.experimental.pallas import tpu as pltpu


def _round_up(x, m):
    return (x + m - 1) // m * m


def _pick_vmem_limit():
    # Leave headroom below physical VMEM (64 MiB on v7x, 128 MiB on v5e/v6e).
    try:
        cap = int(pltpu.get_tpu_info().vmem_capacity_bytes)
    except Exception:
        cap = 64 * 1024 * 1024
    return int(min(cap * 3 // 4, 100 * 1024 * 1024))


def _bilstm_kernel(nvc_ref, lens_ref, pinit_ref, xf_ref, xb_ref,
                   wif_ref, wib_ref, whf_ref, whb_ref, bf_ref, bb_ref,
                   out_ref,
                   gxf_s, gxb_s, h_f, c_f, h_b, c_b,
                   *, hidden_pad, time_block, emb_pad, batch_block):
    Hp = hidden_pad
    TB = time_block
    Ep = emb_pad
    BB = batch_block

    b_idx = pl.program_id(0)               # batch block (parallel)
    c = pl.program_id(1)                   # time chunk (arbitrary, innermost)
    nvc = nvc_ref[b_idx]                   # valid time chunks for this block

    @pl.when(c == 0)
    def _init():
        h_f[...] = jnp.zeros_like(h_f)
        c_f[...] = jnp.zeros_like(c_f)
        h_b[...] = jnp.zeros_like(h_b)
        c_b[...] = jnp.zeros_like(c_b)
        # 0 for rows shorter than max(lengths) (PyTorch zero padding joins the
        # max), -inf for the longest rows (no padding in their pooled window).
        out_ref[...] = jnp.broadcast_to(pinit_ref[...], out_ref.shape)

    @pl.when(c < nvc)                      # skip fully padded trailing chunks
    def _compute():
        lens = lens_ref[...]               # (BB, 1) int32
        w_hh_f = whf_ref[...]              # (Hp, 4Hp) bf16, VMEM resident
        w_hh_b = whb_ref[...]

        # Fused input projections for the whole chunk: M = TB*BB on the MXU.
        gxf_s[...] = (jnp.dot(xf_ref[...].reshape(TB * BB, Ep), wif_ref[...],
                              preferred_element_type=jnp.float32)
                      + bf_ref[...]).reshape(TB, BB, 4 * Hp)
        gxb_s[...] = (jnp.dot(xb_ref[...].reshape(TB * BB, Ep), wib_ref[...],
                              preferred_element_type=jnp.float32)
                      + bb_ref[...]).reshape(TB, BB, 4 * Hp)

        # Backward direction consumes chunk (nvc-1-c): both directions finish
        # after nvc grid steps; the index_map mirrors this choice for the DMA.
        cb_chunk = jnp.maximum(nvc - 1 - c, 0)
        t0_f = c * TB                      # global time offset, forward chunk
        t0_b = cb_chunk * TB               # global time offset, backward chunk

        def cell(gx, h_bf, c_state, w_hh):
            # gx already holds x @ W_ih + (b_ih + b_hh); add recurrent term.
            gates = jnp.dot(h_bf, w_hh, preferred_element_type=jnp.float32) + gx
            i = jax.nn.sigmoid(gates[:, 0 * Hp:1 * Hp])   # lane-tile slices
            f = jax.nn.sigmoid(gates[:, 1 * Hp:2 * Hp])
            g = jnp.tanh(gates[:, 2 * Hp:3 * Hp])
            o = jax.nn.sigmoid(gates[:, 3 * Hp:4 * Hp])
            c_new = f * c_state + i * g
            h_new = o * jnp.tanh(c_new)
            return h_new, c_new

        def body(tt, carry):
            hf, hf_bf, cf, hb, hb_bf, cb, mxf, mxb = carry

            # Both directions issued back-to-back -> independent MXU/EUP chains.
            hf_n, cf_n = cell(gxf_s[tt], hf_bf, cf, w_hh_f)
            hb_n, cb_n = cell(gxb_s[TB - 1 - tt], hb_bf, cb, w_hh_b)

            # One explicit (BB, Hp) broadcast per direction, reused 4x below.
            m_f = jnp.broadcast_to(t0_f + tt < lens, (BB, Hp))
            m_b = jnp.broadcast_to(t0_b + (TB - 1 - tt) < lens, (BB, Hp))

            hf = jnp.where(m_f, hf_n, hf)
            cf = jnp.where(m_f, cf_n, cf)
            hf_bf = jnp.where(m_f, hf_n.astype(jnp.bfloat16), hf_bf)
            mxf = jnp.where(m_f, jnp.maximum(mxf, hf_n), mxf)

            hb = jnp.where(m_b, hb_n, hb)
            cb = jnp.where(m_b, cb_n, cb)
            hb_bf = jnp.where(m_b, hb_n.astype(jnp.bfloat16), hb_bf)
            mxb = jnp.where(m_b, jnp.maximum(mxb, hb_n), mxb)
            return hf, hf_bf, cf, hb, hb_bf, cb, mxf, mxb

        carry0 = (h_f[...], h_f[...].astype(jnp.bfloat16), c_f[...],
                  h_b[...], h_b[...].astype(jnp.bfloat16), c_b[...],
                  out_ref[:, :Hp], out_ref[:, Hp:])
        hf, _, cf, hb, _, cb, mxf, mxb = jax.lax.fori_loop(
            0, TB, body, carry0, unroll=True)

        h_f[...] = hf
        c_f[...] = cf
        h_b[...] = hb
        c_b[...] = cb
        out_ref[:, :Hp] = mxf              # max pool accumulates in-place
        out_ref[:, Hp:] = mxb


def bilstm_sentence_encoder(sentence, lengths, embedding, params,
                            *, time_block=16, batch_block=None):
    """sentence: (B, S) int32 token ids; lengths: (B,) int32; embedding: (V, E).

    params (PyTorch weights, pre-transposed/combined):
      wif/wib: (E, 4H) = W_ih.T   whf/whb: (H, 4H) = W_hh.T
      bf/bb:   (1, 4H) = b_ih + b_hh        (gate order i, f, g, o)
    Returns (B, 2H) float32, matching BiLstmSentenceEncoder.forward.
    """
    B, S = sentence.shape
    E = embedding.shape[1]
    H = params["whf"].shape[0]

    Hp = _round_up(H, 128)                 # lane-aligned gates
    Ep = _round_up(E, 8)                   # sublane-aligned contraction dim
    if batch_block is None:
        BB = min(_round_up(max(B, 8), 8), 32)   # >=2 blocks once B > 32 (v7x)
    else:
        BB = _round_up(batch_block, 8)
    Bp = _round_up(max(B, BB), BB)
    TB = time_block
    Sp = _round_up(S, TB)
    n_chunks = Sp // TB
    n_bblocks = Bp // BB

    def pad_gates(w, rows_to=None):
        # (rows, 4H) -> (rows_pad, 4*Hp); gate k placed at columns [k*Hp, ...).
        rows = w.shape[0]
        w = w.reshape(rows, 4, H)
        w = jnp.pad(w, ((0, (rows_to or rows) - rows), (0, 0), (0, Hp - H)))
        return w.reshape(-1, 4 * Hp)

    wif = pad_gates(params["wif"], rows_to=Ep).astype(jnp.bfloat16)   # (Ep, 4Hp)
    wib = pad_gates(params["wib"], rows_to=Ep).astype(jnp.bfloat16)
    whf = pad_gates(params["whf"], rows_to=Hp).astype(jnp.bfloat16)   # (Hp, 4Hp)
    whb = pad_gates(params["whb"], rows_to=Hp).astype(jnp.bfloat16)
    bf = pad_gates(params["bf"]).astype(jnp.float32)                  # (1, 4Hp)
    bb = pad_gates(params["bb"]).astype(jnp.float32)

    # ---- plain-XLA glue: embedding gather + padding (no pre-gate tensors) ----
    lengths = lengths.astype(jnp.int32)
    max_len = jnp.max(lengths)                                        # device scalar
    embeds = embedding[sentence].astype(jnp.float32)                  # (B, S, E)
    x = jnp.transpose(embeds, (1, 0, 2))                              # (S, B, E)
    x = jnp.pad(x, ((0, Sp - S), (0, Bp - B), (0, Ep - E))).astype(jnp.bfloat16)

    lens_p = jnp.pad(lengths, (0, Bp - B)).reshape(Bp, 1)             # pad rows: len 0
    pool_init = jnp.where(lens_p < max_len, 0.0, -jnp.inf).astype(jnp.float32)

    # Per-batch-block valid time-chunk counts (scalar prefetch -> SMEM): drives
    # the data-dependent backward chunk index and lets the kernel skip padded
    # chunks entirely.
    block_max = jnp.max(lens_p.reshape(n_bblocks, BB), axis=1)
    nvc = jnp.minimum((block_max + TB - 1) // TB, n_chunks).astype(jnp.int32)

    def const_spec(shape):
        # Constant index map -> single-buffered, VMEM-resident weight/bias.
        return pl.BlockSpec(shape, lambda b, c, nvc_ref: (0, 0),
                            pipeline_mode=pl.Buffered(1))

    grid_spec = pltpu.PrefetchScalarGridSpec(
        num_scalar_prefetch=1,
        grid=(n_bblocks, n_chunks),                                   # (batch, time)
        in_specs=[
            pl.BlockSpec((BB, 1), lambda b, c, nvc_ref: (b, 0)),      # lengths
            pl.BlockSpec((BB, 1), lambda b, c, nvc_ref: (b, 0)),      # pool init
            pl.BlockSpec((TB, BB, Ep),
                         lambda b, c, nvc_ref: (c, b, 0)),            # fwd x chunk
            pl.BlockSpec((TB, BB, Ep),
                         lambda b, c, nvc_ref:
                         (jnp.maximum(nvc_ref[b] - 1 - c, 0), b, 0)), # bwd x chunk
            const_spec((Ep, 4 * Hp)),                                 # W_ih fwd
            const_spec((Ep, 4 * Hp)),                                 # W_ih bwd
            const_spec((Hp, 4 * Hp)),                                 # W_hh fwd
            const_spec((Hp, 4 * Hp)),                                 # W_hh bwd
            const_spec((1, 4 * Hp)),                                  # bias fwd
            const_spec((1, 4 * Hp)),                                  # bias bwd
        ],
        out_specs=pl.BlockSpec((BB, 2 * Hp), lambda b, c, nvc_ref: (b, 0)),
        scratch_shapes=[
            pltpu.VMEM((TB, BB, 4 * Hp), jnp.float32),                # fwd pre-gates
            pltpu.VMEM((TB, BB, 4 * Hp), jnp.float32),                # bwd pre-gates
            pltpu.VMEM((BB, Hp), jnp.float32),                        # h_f
            pltpu.VMEM((BB, Hp), jnp.float32),                        # c_f
            pltpu.VMEM((BB, Hp), jnp.float32),                        # h_b
            pltpu.VMEM((BB, Hp), jnp.float32),                        # c_b
        ],
    )

    pooled = pl.pallas_call(
        functools.partial(_bilstm_kernel, hidden_pad=Hp, time_block=TB,
                          emb_pad=Ep, batch_block=BB),
        grid_spec=grid_spec,
        out_shape=jax.ShapeDtypeStruct((Bp, 2 * Hp), jnp.float32),
        compiler_params=pltpu.CompilerParams(
            dimension_semantics=("parallel", "arbitrary"),
            vmem_limit_bytes=_pick_vmem_limit(),
        ),
    )(nvc, lens_p, pool_init, x, x, wif, wib, whf, whb, bf, bb)

    # PyTorch bidirectional layout: [forward ; backward] on the feature dim.
    return jnp.concatenate([pooled[:B, :H], pooled[:B, Hp:Hp + H]], axis=-1)


def _reference_bilstm_maxpool(sentence, lengths, embedding, params):
    """Pure-JAX f32 reference reproducing the PyTorch module semantics."""
    B, S = sentence.shape
    H = params["whf"].shape[0]
    x = embedding[sentence].astype(jnp.float32)                       # (B, S, E)
    max_len = jnp.max(lengths)

    def run(wi, wh, b, ts):
        def cell(carry, t):
            h, c = carry
            gates = x[:, t, :] @ wi + h @ wh + b
            i = jax.nn.sigmoid(gates[:, 0 * H:1 * H])
            f = jax.nn.sigmoid(gates[:, 1 * H:2 * H])
            g = jnp.tanh(gates[:, 2 * H:3 * H])
            o = jax.nn.sigmoid(gates[:, 3 * H:4 * H])
            c_new = f * c + i * g
            h_new = o * jnp.tanh(c_new)
            valid = (t < lengths)[:, None]
            h = jnp.where(valid, h_new, h)
            c = jnp.where(valid, c_new, c)
            return (h, c), jnp.where(valid, h_new, 0.0)               # pad rows -> 0
        init = (jnp.zeros((B, H), jnp.float32), jnp.zeros((B, H), jnp.float32))
        _, outs = jax.lax.scan(cell, init, ts)
        return outs                                                   # processing order

    out_f = run(params["wif"], params["whf"], params["bf"], jnp.arange(S))
    out_b = run(params["wib"], params["whb"], params["bb"],
                jnp.arange(S - 1, -1, -1))[::-1]
    out = jnp.concatenate([out_f, out_b], axis=-1)                    # (S, B, 2H)
    out = jnp.where((jnp.arange(S) < max_len)[:, None, None], out, -jnp.inf)
    return jnp.max(out, axis=0)                                       # (B, 2H)


if __name__ == "__main__":
    vocab_size, embedding_dim, hidden_dim = 20, 32, 32
    B, S = 2, 12

    key = jax.random.PRNGKey(0)
    keys = jax.random.split(key, 10)

    # Deterministic synthetic "word_vec_matrix" and LSTM params
    # (PyTorch LSTM init: U(-1/sqrt(H), 1/sqrt(H))).
    word_vec_matrix = jax.random.normal(keys[0], (vocab_size, embedding_dim),
                                        jnp.float32)
    bound = 1.0 / (hidden_dim ** 0.5)

    def u(k, shape):
        return jax.random.uniform(k, shape, jnp.float32, -bound, bound)

    w_ih_f = u(keys[1], (4 * hidden_dim, embedding_dim))
    w_hh_f = u(keys[2], (4 * hidden_dim, hidden_dim))
    b_ih_f = u(keys[3], (4 * hidden_dim,))
    b_hh_f = u(keys[4], (4 * hidden_dim,))
    w_ih_b = u(keys[5], (4 * hidden_dim, embedding_dim))
    w_hh_b = u(keys[6], (4 * hidden_dim, hidden_dim))
    b_ih_b = u(keys[7], (4 * hidden_dim,))
    b_hh_b = u(keys[8], (4 * hidden_dim,))

    params = dict(
        wif=w_ih_f.T, whf=w_hh_f.T, bf=(b_ih_f + b_hh_f).reshape(1, -1),
        wib=w_ih_b.T, whb=w_hh_b.T, bb=(b_ih_b + b_hh_b).reshape(1, -1),
    )

    sentence = jax.random.randint(keys[9], (B, S), 0, vocab_size, dtype=jnp.int32)
    lengths = jnp.array([8, 5], dtype=jnp.int32)   # variable lengths; max_len = 8

    encode = jax.jit(bilstm_sentence_encoder)      # no host syncs -> fully jittable
    out = encode(sentence, lengths, word_vec_matrix, params)
    jax.block_until_ready(out)
    assert out.shape == (B, 2 * hidden_dim) and out.dtype == jnp.float32

    ref = _reference_bilstm_maxpool(sentence, lengths, word_vec_matrix, params)
    assert bool(jnp.allclose(out, ref, atol=5e-2, rtol=5e-2)), (
        "max abs err = %f" % float(jnp.max(jnp.abs(out - ref))))
    print("KERNEL_OK")
</pallas_src>

<mosaic_0001>
module attributes {stable_mosaic.version = 11 : i64} {
  func.func @_bilstm_kernel(%arg0: i32, %arg1: i32, %arg2: memref<1xi32, #tpu.memory_space<smem>>, %arg3: memref<8x1xi32, #tpu.memory_space<vmem>>, %arg4: memref<8x1xf32, #tpu.memory_space<vmem>>, %arg5: memref<16x8x32xbf16, #tpu.memory_space<vmem>>, %arg6: memref<16x8x32xbf16, #tpu.memory_space<vmem>>, %arg7: memref<32x512xbf16, #tpu.memory_space<vmem>>, %arg8: memref<32x512xbf16, #tpu.memory_space<vmem>>, %arg9: memref<128x512xbf16, #tpu.memory_space<vmem>>, %arg10: memref<128x512xbf16, #tpu.memory_space<vmem>>, %arg11: memref<1x512xf32, #tpu.memory_space<vmem>>, %arg12: memref<1x512xf32, #tpu.memory_space<vmem>>, %arg13: memref<8x256xf32, #tpu.memory_space<vmem>>, %arg14: memref<16x8x512xf32, #tpu.memory_space<vmem>>, %arg15: memref<16x8x512xf32, #tpu.memory_space<vmem>>, %arg16: memref<8x128xf32, #tpu.memory_space<vmem>>, %arg17: memref<8x128xf32, #tpu.memory_space<vmem>>, %arg18: memref<8x128xf32, #tpu.memory_space<vmem>>, %arg19: memref<8x128xf32, #tpu.memory_space<vmem>>) attributes {dimension_semantics = [#tpu.dimension_semantics<parallel>, #tpu.dimension_semantics<arbitrary>], iteration_bounds = array<i64: 1, 1>, scalar_prefetch = 1 : i64, scratch_operands = 6 : i64, tpu.core_type = #tpu.core_type<tc>, window_params = [{transform_indices = @transform_0, window_bounds = array<i64: 8, 1>}, {transform_indices = @transform_1, window_bounds = array<i64: 8, 1>}, {transform_indices = @transform_2, window_bounds = array<i64: 16, 8, 32>}, {transform_indices = @transform_3, window_bounds = array<i64: 16, 8, 32>}, {pipeline_mode = #tpu.pipeline_mode<synchronous>, transform_indices = @transform_4, window_bounds = array<i64: 32, 512>}, {pipeline_mode = #tpu.pipeline_mode<synchronous>, transform_indices = @transform_5, window_bounds = array<i64: 32, 512>}, {pipeline_mode = #tpu.pipeline_mode<synchronous>, transform_indices = @transform_6, window_bounds = array<i64: 128, 512>}, {pipeline_mode = #tpu.pipeline_mode<synchronous>, transform_indices = @transform_7, window_bounds = array<i64: 128, 512>}, {pipeline_mode = #tpu.pipeline_mode<synchronous>, transform_indices = @transform_8, window_bounds = array<i64: 1, 512>}, {pipeline_mode = #tpu.pipeline_mode<synchronous>, transform_indices = @transform_9, window_bounds = array<i64: 1, 512>}, {transform_indices = @transform_10, window_bounds = array<i64: 8, 256>}]} {
    %0 = arith.index_cast %arg0 : i32 to index
    %1 = memref.load %arg2[%0] : memref<1xi32, #tpu.memory_space<smem>>
    %c0_i32 = arith.constant 0 : i32
    %2 = arith.cmpi eq, %arg1, %c0_i32 : i32
    %3 = arith.extui %2 : i1 to i32
    %c0_i32_0 = arith.constant 0 : i32
    %4 = arith.cmpi ne, %3, %c0_i32_0 : i32
    scf.if %4 {
      %cst = arith.constant 0.000000e+00 : f32
      %8 = vector.broadcast %cst : f32 to vector<8x128xf32>
      %c0 = arith.constant 0 : index
      %c0_2 = arith.constant 0 : index
      %9 = vector.load %arg16[%c0, %c0_2] : memref<8x128xf32, #tpu.memory_space<vmem>>, vector<8x128xf32>
      tpu.vector_store %arg16[%c0, %c0_2], %8 {strides = array<i32>} : memref<8x128xf32, #tpu.memory_space<vmem>>, vector<8x128xf32>,
      %cst_3 = arith.constant 0.000000e+00 : f32
      %10 = vector.broadcast %cst_3 : f32 to vector<8x128xf32>
      %c0_4 = arith.constant 0 : index
      %c0_5 = arith.constant 0 : index
      %11 = vector.load %arg17[%c0_4, %c0_5] : memref<8x128xf32, #tpu.memory_space<vmem>>, vector<8x128xf32>
      tpu.vector_store %arg17[%c0_4, %c0_5], %10 {strides = array<i32>} : memref<8x128xf32, #tpu.memory_space<vmem>>, vector<8x128xf32>,
      %cst_6 = arith.constant 0.000000e+00 : f32
      %12 = vector.broadcast %cst_6 : f32 to vector<8x128xf32>
      %c0_7 = arith.constant 0 : index
      %c0_8 = arith.constant 0 : index
      %13 = vector.load %arg18[%c0_7, %c0_8] : memref<8x128xf32, #tpu.memory_space<vmem>>, vector<8x128xf32>
      tpu.vector_store %arg18[%c0_7, %c0_8], %12 {strides = array<i32>} : memref<8x128xf32, #tpu.memory_space<vmem>>, vector<8x128xf32>,
      %cst_9 = arith.constant 0.000000e+00 : f32
      %14 = vector.broadcast %cst_9 : f32 to vector<8x128xf32>
      %c0_10 = arith.constant 0 : index
      %c0_11 = arith.constant 0 : index
      %15 = vector.load %arg19[%c0_10, %c0_11] : memref<8x128xf32, #tpu.memory_space<vmem>>, vector<8x128xf32>
      tpu.vector_store %arg19[%c0_10, %c0_11], %14 {strides = array<i32>} : memref<8x128xf32, #tpu.memory_space<vmem>>, vector<8x128xf32>,
      %c0_12 = arith.constant 0 : index
      %c0_13 = arith.constant 0 : index
      %16 = vector.load %arg4[%c0_12, %c0_13] : memref<8x1xf32, #tpu.memory_space<vmem>>, vector<8x1xf32>
      %17 = vector.shape_cast %16 : vector<8x1xf32> to vector<8x1xf32>
      %18 = vector.broadcast %17 : vector<8x1xf32> to vector<8x256xf32>
      %c0_14 = arith.constant 0 : index
      %c0_15 = arith.constant 0 : index
      %19 = vector.load %arg13[%c0_14, %c0_15] : memref<8x256xf32, #tpu.memory_space<vmem>>, vector<8x256xf32>
      tpu.vector_store %arg13[%c0_14, %c0_15], %18 {strides = array<i32>} : memref<8x256xf32, #tpu.memory_space<vmem>>, vector<8x256xf32>,
    } else {
    }
    %5 = arith.cmpi slt, %arg1, %1 : i32
    %6 = arith.extui %5 : i1 to i32
    %c0_i32_1 = arith.constant 0 : i32
    %7 = arith.cmpi ne, %6, %c0_i32_1 : i32
    scf.if %7 {
      %c0 = arith.constant 0 : index
      %c0_2 = arith.constant 0 : index
      %8 = vector.load %arg3[%c0, %c0_2] : memref<8x1xi32, #tpu.memory_space<vmem>>, vector<8x1xi32>
      %c0_3 = arith.constant 0 : index
      %c0_4 = arith.constant 0 : index
      %9 = vector.load %arg9[%c0_3, %c0_4] : memref<128x512xbf16, #tpu.memory_space<vmem>>, vector<128x512xbf16>
      %c0_5 = arith.constant 0 : index
      %c0_6 = arith.constant 0 : index
      %10 = vector.load %arg10[%c0_5, %c0_6] : memref<128x512xbf16, #tpu.memory_space<vmem>>, vector<128x512xbf16>
      %c0_7 = arith.constant 0 : index
      %c0_8 = arith.constant 0 : index
      %c0_9 = arith.constant 0 : index
      %11 = vector.load %arg5[%c0_7, %c0_8, %c0_9] : memref<16x8x32xbf16, #tpu.memory_space<vmem>>, vector<16x8x32xbf16>
      %12 = vector.shape_cast %11 : vector<16x8x32xbf16> to vector<128x32xbf16>
      %c0_10 = arith.constant 0 : index
      %c0_11 = arith.constant 0 : index
      %13 = vector.load %arg7[%c0_10, %c0_11] : memref<32x512xbf16, #tpu.memory_space<vmem>>, vector<32x512xbf16>
      %cst = arith.constant dense<0.000000e+00> : vector<128x512xf32>
      %14 = tpu.matmul %12, %13, %cst {dimension_numbers = #tpu.dot_dimension_numbers<[1], [0], [0], [1], [0, 0, 1, 1], [], []>} : vector<128x32xbf16>, vector<32x512xbf16>, vector<128x512xf32> -> vector<128x512xf32>
      %c0_12 = arith.constant 0 : index
      %c0_13 = arith.constant 0 : index
      %15 = vector.load %arg11[%c0_12, %c0_13] : memref<1x512xf32, #tpu.memory_space<vmem>>, vector<1x512xf32>
      %16 = vector.broadcast %15 : vector<1x512xf32> to vector<128x512xf32>
      %17 = arith.addf %14, %16 : vector<128x512xf32>
      %18 = vector.shape_cast %17 : vector<128x512xf32> to vector<16x8x512xf32>
      %c0_14 = arith.constant 0 : index
      %c0_15 = arith.constant 0 : index
      %c0_16 = arith.constant 0 : index
      %19 = vector.load %arg14[%c0_14, %c0_15, %c0_16] : memref<16x8x512xf32, #tpu.memory_space<vmem>>, vector<16x8x512xf32>
      tpu.vector_store %arg14[%c0_14, %c0_15, %c0_16], %18 {strides = array<i32>} : memref<16x8x512xf32, #tpu.memory_space<vmem>>, vector<16x8x512xf32>,
      %c0_17 = arith.constant 0 : index
      %c0_18 = arith.constant 0 : index
      %c0_19 = arith.constant 0 : index
      %20 = vector.load %arg6[%c0_17, %c0_18, %c0_19] : memref<16x8x32xbf16, #tpu.memory_space<vmem>>, vector<16x8x32xbf16>
      %21 = vector.shape_cast %20 : vector<16x8x32xbf16> to vector<128x32xbf16>
      %c0_20 = arith.constant 0 : index
      %c0_21 = arith.constant 0 : index
      %22 = vector.load %arg8[%c0_20, %c0_21] : memref<32x512xbf16, #tpu.memory_space<vmem>>, vector<32x512xbf16>
      %cst_22 = arith.constant dense<0.000000e+00> : vector<128x512xf32>
      %23 = tpu.matmul %21, %22, %cst_22 {dimension_numbers = #tpu.dot_dimension_numbers<[1], [0], [0], [1], [0, 0, 1, 1], [], []>} : vector<128x32xbf16>, vector<32x512xbf16>, vector<128x512xf32> -> vector<128x512xf32>
      %c0_23 = arith.constant 0 : index
      %c0_24 = arith.constant 0 : index
      %24 = vector.load %arg12[%c0_23, %c0_24] : memref<1x512xf32, #tpu.memory_space<vmem>>, vector<1x512xf32>
      %25 = vector.broadcast %24 : vector<1x512xf32> to vector<128x512xf32>
      %26 = arith.addf %23, %25 : vector<128x512xf32>
      %27 = vector.shape_cast %26 : vector<128x512xf32> to vector<16x8x512xf32>
      %c0_25 = arith.constant 0 : index
      %c0_26 = arith.constant 0 : index
      %c0_27 = arith.constant 0 : index
      %28 = vector.load %arg15[%c0_25, %c0_26, %c0_27] : memref<16x8x512xf32, #tpu.memory_space<vmem>>, vector<16x8x512xf32>
      tpu.vector_store %arg15[%c0_25, %c0_26, %c0_27], %27 {strides = array<i32>} : memref<16x8x512xf32, #tpu.memory_space<vmem>>, vector<16x8x512xf32>,
      %c1_i32 = arith.constant 1 : i32
      %29 = arith.subi %1, %c1_i32 : i32
      %30 = arith.subi %29, %arg1 : i32
      %c0_i32_28 = arith.constant 0 : i32
      %31 = arith.maxsi %30, %c0_i32_28 : i32
      %c16_i32 = arith.constant 16 : i32
      %32 = arith.muli %arg1, %c16_i32 : i32
      %c16_i32_29 = arith.constant 16 : i32
      %33 = arith.muli %31, %c16_i32_29 : i32
      %c0_30 = arith.constant 0 : index
      %c0_31 = arith.constant 0 : index
      %34 = vector.load %arg16[%c0_30, %c0_31] : memref<8x128xf32, #tpu.memory_space<vmem>>, vector<8x128xf32>
      %c0_32 = arith.constant 0 : index
      %c0_33 = arith.constant 0 : index
      %35 = vector.load %arg16[%c0_32, %c0_33] : memref<8x128xf32, #tpu.memory_space<vmem>>, vector<8x128xf32>
      %36 = arith.truncf %35 : vector<8x128xf32> to vector<8x128xbf16>
      %c0_34 = arith.constant 0 : index
      %c0_35 = arith.constant 0 : index
      %37 = vector.load %arg17[%c0_34, %c0_35] : memref<8x128xf32, #tpu.memory_space<vmem>>, vector<8x128xf32>
      %c0_36 = arith.constant 0 : index
      %c0_37 = arith.constant 0 : index
      %38 = vector.load %arg18[%c0_36, %c0_37] : memref<8x128xf32, #tpu.memory_space<vmem>>, vector<8x128xf32>
      %c0_38 = arith.constant 0 : index
      %c0_39 = arith.constant 0 : index
      %39 = vector.load %arg18[%c0_38, %c0_39] : memref<8x128xf32, #tpu.memory_space<vmem>>, vector<8x128xf32>
      %40 = arith.truncf %39 : vector<8x128xf32> to vector<8x128xbf16>
      %c0_40 = arith.constant 0 : index
      %c0_41 = arith.constant 0 : index
      %41 = vector.load %arg19[%c0_40, %c0_41] : memref<8x128xf32, #tpu.memory_space<vmem>>, vector<8x128xf32>
      %c0_42 = arith.constant 0 : index
      %c0_43 = arith.constant 0 : index
      %42 = vector.load %arg13[%c0_42, %c0_43] : memref<8x256xf32, #tpu.memory_space<vmem>>, vector<8x128xf32>
      %c0_44 = arith.constant 0 : index
      %c128 = arith.constant 128 : index
      %43 = vector.load %arg13[%c0_44, %c128] : memref<8x256xf32, #tpu.memory_space<vmem>>, vector<8x128xf32>
      %c0_i32_45 = arith.constant 0 : i32
      %44 = arith.index_cast %c0_i32_45 : i32 to index
      %c0_46 = arith.constant 0 : index
      %c0_47 = arith.constant 0 : index
      %45 = vector.load %arg14[%44, %c0_46, %c0_47] : memref<16x8x512xf32, #tpu.memory_space<vmem>>, vector<1x8x512xf32>
      %46 = vector.shape_cast %45 : vector<1x8x512xf32> to vector<8x512xf32>
      %cst_48 = arith.constant dense<0.000000e+00> : vector<8x512xf32>
      %47 = tpu.matmul %36, %9, %cst_48 {dimension_numbers = #tpu.dot_dimension_numbers<[1], [0], [0], [1], [0, 0, 1, 1], [], []>} : vector<8x128xbf16>, vector<128x512xbf16>, vector<8x512xf32> -> vector<8x512xf32>
      %48 = arith.addf %47, %46 : vector<8x512xf32>
      %49 = vector.extract_strided_slice %48 {offsets = [0, 0], sizes = [8, 128], strides = [1, 1]} : vector<8x512xf32> to vector<8x128xf32>
      %50 = arith.negf %49 : vector<8x128xf32>
      %51 = math.exp %50 : vector<8x128xf32>
      %cst_49 = arith.constant 1.000000e+00 : f32
      %52 = vector.broadcast %cst_49 : f32 to vector<8x128xf32>
      %53 = arith.addf %52, %51 : vector<8x128xf32>
      %54 = arith.divf %52, %53 : vector<8x128xf32>
      %55 = vector.extract_strided_slice %48 {offsets = [0, 128], sizes = [8, 128], strides = [1, 1]} : vector<8x512xf32> to vector<8x128xf32>
      %56 = arith.negf %55 : vector<8x128xf32>
      %57 = math.exp %56 : vector<8x128xf32>
      %cst_50 = arith.constant 1.000000e+00 : f32
      %58 = vector.broadcast %cst_50 : f32 to vector<8x128xf32>
      %59 = arith.addf %58, %57 : vector<8x128xf32>
      %60 = arith.divf %58, %59 : vector<8x128xf32>
      %61 = vector.extract_strided_slice %48 {offsets = [0, 256], sizes = [8, 128], strides = [1, 1]} : vector<8x512xf32> to vector<8x128xf32>
      %62 = math.tanh %61 : vector<8x128xf32>
      %63 = vector.extract_strided_slice %48 {offsets = [0, 384], sizes = [8, 128], strides = [1, 1]} : vector<8x512xf32> to vector<8x128xf32>
      %64 = arith.negf %63 : vector<8x128xf32>
      %65 = math.exp %64 : vector<8x128xf32>
      %cst_51 = arith.constant 1.000000e+00 : f32
      %66 = vector.broadcast %cst_51 : f32 to vector<8x128xf32>
      %67 = arith.addf %66, %65 : vector<8x128xf32>
      %68 = arith.divf %66, %67 : vector<8x128xf32>
      %69 = arith.mulf %60, %37 : vector<8x128xf32>
      %70 = arith.mulf %54, %62 : vector<8x128xf32>
      %71 = arith.addf %69, %70 : vector<8x128xf32>
      %72 = math.tanh %71 : vector<8x128xf32>
      %73 = arith.mulf %68, %72 : vector<8x128xf32>
      %c15_i32 = arith.constant 15 : i32
      %74 = arith.subi %c15_i32, %c0_i32_45 : i32
      %75 = arith.index_cast %74 : i32 to index
      %c0_52 = arith.constant 0 : index
      %c0_53 = arith.constant 0 : index
      %76 = vector.load %arg15[%75, %c0_52, %c0_53] : memref<16x8x512xf32, #tpu.memory_space<vmem>>, vector<1x8x512xf32>
      %77 = vector.shape_cast %76 : vector<1x8x512xf32> to vector<8x512xf32>
      %cst_54 = arith.constant dense<0.000000e+00> : vector<8x512xf32>
      %78 = tpu.matmul %40, %10, %cst_54 {dimension_numbers = #tpu.dot_dimension_numbers<[1], [0], [0], [1], [0, 0, 1, 1], [], []>} : vector<8x128xbf16>, vector<128x512xbf16>, vector<8x512xf32> -> vector<8x512xf32>
      %79 = arith.addf %78, %77 : vector<8x512xf32>
      %80 = vector.extract_strided_slice %79 {offsets = [0, 0], sizes = [8, 128], strides = [1, 1]} : vector<8x512xf32> to vector<8x128xf32>
      %81 = arith.negf %80 : vector<8x128xf32>
      %82 = math.exp %81 : vector<8x128xf32>
      %cst_55 = arith.constant 1.000000e+00 : f32
      %83 = vector.broadcast %cst_55 : f32 to vector<8x128xf32>
      %84 = arith.addf %83, %82 : vector<8x128xf32>
      %85 = arith.divf %83, %84 : vector<8x128xf32>
      %86 = vector.extract_strided_slice %79 {offsets = [0, 128], sizes = [8, 128], strides = [1, 1]} : vector<8x512xf32> to vector<8x128xf32>
      %87 = arith.negf %86 : vector<8x128xf32>
      %88 = math.exp %87 : vector<8x128xf32>
      %cst_56 = arith.constant 1.000000e+00 : f32
      %89 = vector.broadcast %cst_56 : f32 to vector<8x128xf32>
      %90 = arith.addf %89, %88 : vector<8x128xf32>
      %91 = arith.divf %89, %90 : vector<8x128xf32>
      %92 = vector.extract_strided_slice %79 {offsets = [0, 256], sizes = [8, 128], strides = [1, 1]} : vector<8x512xf32> to vector<8x128xf32>
      %93 = math.tanh %92 : vector<8x128xf32>
      %94 = vector.extract_strided_slice %79 {offsets = [0, 384], sizes = [8, 128], strides = [1, 1]} : vector<8x512xf32> to vector<8x128xf32>
      %95 = arith.negf %94 : vector<8x128xf32>
      %96 = math.exp %95 : vector<8x128xf32>
      %cst_57 = arith.constant 1.000000e+00 : f32
      %97 = vector.broadcast %cst_57 : f32 to vector<8x128xf32>
      %98 = arith.addf %97, %96 : vector<8x128xf32>
      %99 = arith.divf %97, %98 : vector<8x128xf32>
      %100 = arith.mulf %91, %41 : vector<8x128xf32>
      %101 = arith.mulf %85, %93 : vector<8x128xf32>
      %102 = arith.addf %100, %101 : vector<8x128xf32>
      %103 = math.tanh %102 : vector<8x128xf32>
      %104 = arith.mulf %99, %103 : vector<8x128xf32>
      %105 = arith.addi %32, %c0_i32_45 : i32
      %106 = vector.broadcast %105 : i32 to vector<8x1xi32>
      %107 = arith.cmpi slt, %106, %8 : vector<8x1xi32>
      %108 = vector.shape_cast %107 : vector<8x1xi1> to vector<8x1xi1>
      %109 = vector.broadcast %108 : vector<8x1xi1> to vector<8x128xi1>
      %c15_i32_58 = arith.constant 15 : i32
      %110 = arith.subi %c15_i32_58, %c0_i32_45 : i32
      %111 = arith.addi %33, %110 : i32
      %112 = vector.broadcast %111 : i32 to vector<8x1xi32>
      %113 = arith.cmpi slt, %112, %8 : vector<8x1xi32>
      %114 = vector.shape_cast %113 : vector<8x1xi1> to vector<8x1xi1>
      %115 = vector.broadcast %114 : vector<8x1xi1> to vector<8x128xi1>
      %116 = arith.select %109, %73, %34 : vector<8x128xi1>, vector<8x128xf32>
      %117 = arith.select %109, %71, %37 : vector<8x128xi1>, vector<8x128xf32>
      %118 = arith.truncf %73 : vector<8x128xf32> to vector<8x128xbf16>
      %119 = arith.select %109, %118, %36 : vector<8x128xi1>, vector<8x128xbf16>
      %120 = arith.maximumf %42, %73 : vector<8x128xf32>
      %121 = arith.select %109, %120, %42 : vector<8x128xi1>, vector<8x128xf32>
      %122 = arith.select %115, %104, %38 : vector<8x128xi1>, vector<8x128xf32>
      %123 = arith.select %115, %102, %41 : vector<8x128xi1>, vector<8x128xf32>
      %124 = arith.truncf %104 : vector<8x128xf32> to vector<8x128xbf16>
      %125 = arith.select %115, %124, %40 : vector<8x128xi1>, vector<8x128xbf16>
      %126 = arith.maximumf %43, %104 : vector<8x128xf32>
      %127 = arith.select %115, %126, %43 : vector<8x128xi1>, vector<8x128xf32>
      %c1_i32_59 = arith.constant 1 : i32
      %128 = arith.index_cast %c1_i32_59 : i32 to index
      %c0_60 = arith.constant 0 : index
      %c0_61 = arith.constant 0 : index
      %129 = vector.load %arg14[%128, %c0_60, %c0_61] : memref<16x8x512xf32, #tpu.memory_space<vmem>>, vector<1x8x512xf32>
      %130 = vector.shape_cast %129 : vector<1x8x512xf32> to vector<8x512xf32>
      %cst_62 = arith.constant dense<0.000000e+00> : vector<8x512xf32>
      %131 = tpu.matmul %119, %9, %cst_62 {dimension_numbers = #tpu.dot_dimension_numbers<[1], [0], [0], [1], [0, 0, 1, 1], [], []>} : vector<8x128xbf16>, vector<128x512xbf16>, vector<8x512xf32> -> vector<8x512xf32>
      %132 = arith.addf %131, %130 : vector<8x512xf32>
      %133 = vector.extract_strided_slice %132 {offsets = [0, 0], sizes = [8, 128], strides = [1, 1]} : vector<8x512xf32> to vector<8x128xf32>
      %134 = arith.negf %133 : vector<8x128xf32>
      %135 = math.exp %134 : vector<8x128xf32>
      %cst_63 = arith.constant 1.000000e+00 : f32
      %136 = vector.broadcast %cst_63 : f32 to vector<8x128xf32>
      %137 = arith.addf %136, %135 : vector<8x128xf32>
      %138 = arith.divf %136, %137 : vector<8x128xf32>
      %139 = vector.extract_strided_slice %132 {offsets = [0, 128], sizes = [8, 128], strides = [1, 1]} : vector<8x512xf32> to vector<8x128xf32>
      %140 = arith.negf %139 : vector<8x128xf32>
      %141 = math.exp %140 : vector<8x128xf32>
      %cst_64 = arith.constant 1.000000e+00 : f32
      %142 = vector.broadcast %cst_64 : f32 to vector<8x128xf32>
      %143 = arith.addf %142, %141 : vector<8x128xf32>
      %144 = arith.divf %142, %143 : vector<8x128xf32>
      %145 = vector.extract_strided_slice %132 {offsets = [0, 256], sizes = [8, 128], strides = [1, 1]} : vector<8x512xf32> to vector<8x128xf32>
      %146 = math.tanh %145 : vector<8x128xf32>
      %147 = vector.extract_strided_slice %132 {offsets = [0, 384], sizes = [8, 128], strides = [1, 1]} : vector<8x512xf32> to vector<8x128xf32>
      %148 = arith.negf %147 : vector<8x128xf32>
      %149 = math.exp %148 : vector<8x128xf32>
      %cst_65 = arith.constant 1.000000e+00 : f32
      %150 = vector.broadcast %cst_65 : f32 to vector<8x128xf32>
      %151 = arith.addf %150, %149 : vector<8x128xf32>
      %152 = arith.divf %150, %151 : vector<8x128xf32>
      %153 = arith.mulf %144, %117 : vector<8x128xf32>
      %154 = arith.mulf %138, %146 : vector<8x128xf32>
      %155 = arith.addf %153, %154 : vector<8x128xf32>
      %156 = math.tanh %155 : vector<8x128xf32>
      %157 = arith.mulf %152, %156 : vector<8x128xf32>
      %c15_i32_66 = arith.constant 15 : i32
      %158 = arith.subi %c15_i32_66, %c1_i32_59 : i32
      %159 = arith.index_cast %158 : i32 to index
      %c0_67 = arith.constant 0 : index
      %c0_68 = arith.constant 0 : index
      %160 = vector.load %arg15[%159, %c0_67, %c0_68] : memref<16x8x512xf32, #tpu.memory_space<vmem>>, vector<1x8x512xf32>
      %161 = vector.shape_cast %160 : vector<1x8x512xf32> to vector<8x512xf32>
      %cst_69 = arith.constant dense<0.000000e+00> : vector<8x512xf32>
      %162 = tpu.matmul %125, %10, %cst_69 {dimension_numbers = #tpu.dot_dimension_numbers<[1], [0], [0], [1], [0, 0, 1, 1], [], []>} : vector<8x128xbf16>, vector<128x512xbf16>, vector<8x512xf32> -> vector<8x512xf32>
      %163 = arith.addf %162, %161 : vector<8x512xf32>
      %164 = vector.extract_strided_slice %163 {offsets = [0, 0], sizes = [8, 128], strides = [1, 1]} : vector<8x512xf32> to vector<8x128xf32>
      %165 = arith.negf %164 : vector<8x128xf32>
      %166 = math.exp %165 : vector<8x128xf32>
      %cst_70 = arith.constant 1.000000e+00 : f32
      %167 = vector.broadcast %cst_70 : f32 to vector<8x128xf32>
      %168 = arith.addf %167, %166 : vector<8x128xf32>
      %169 = arith.divf %167, %168 : vector<8x128xf32>
      %170 = vector.extract_strided_slice %163 {offsets = [0, 128], sizes = [8, 128], strides = [1, 1]} : vector<8x512xf32> to vector<8x128xf32>
      %171 = arith.negf %170 : vector<8x128xf32>
      %172 = math.exp %171 : vector<8x128xf32>
      %cst_71 = arith.constant 1.000000e+00 : f32
      %173 = vector.broadcast %cst_71 : f32 to vector<8x128xf32>
      %174 = arith.addf %173, %172 : vector<8x128xf32>
      %175 = arith.divf %173, %174 : vector<8x128xf32>
      %176 = vector.extract_strided_slice %163 {offsets = [0, 256], sizes = [8, 128], strides = [1, 1]} : vector<8x512xf32> to vector<8x128xf32>
      %177 = math.tanh %176 : vector<8x128xf32>
      %178 = vector.extract_strided_slice %163 {offsets = [0, 384], sizes = [8, 128], strides = [1, 1]} : vector<8x512xf32> to vector<8x128xf32>
      %179 = arith.negf %178 : vector<8x128xf32>
      %180 = math.exp %179 : vector<8x128xf32>
      %cst_72 = arith.constant 1.000000e+00 : f32
      %181 = vector.broadcast %cst_72 : f32 to vector<8x128xf32>
      %182 = arith.addf %181, %180 : vector<8x128xf32>
      %183 = arith.divf %181, %182 : vector<8x128xf32>
      %184 = arith.mulf %175, %123 : vector<8x128xf32>
      %185 = arith.mulf %169, %177 : vector<8x128xf32>
      %186 = arith.addf %184, %185 : vector<8x128xf32>
      %187 = math.tanh %186 : vector<8x128xf32>
      %188 = arith.mulf %183, %187 : vector<8x128xf32>
      %189 = arith.addi %32, %c1_i32_59 : i32
      %190 = vector.broadcast %189 : i32 to vector<8x1xi32>
      %191 = arith.cmpi slt, %190, %8 : vector<8x1xi32>
      %192 = vector.shape_cast %191 : vector<8x1xi1> to vector<8x1xi1>
      %193 = vector.broadcast %192 : vector<8x1xi1> to vector<8x128xi1>
      %c15_i32_73 = arith.constant 15 : i32
      %194 = arith.subi %c15_i32_73, %c1_i32_59 : i32
      %195 = arith.addi %33, %194 : i32
      %196 = vector.broadcast %195 : i32 to vector<8x1xi32>
      %197 = arith.cmpi slt, %196, %8 : vector<8x1xi32>
      %198 = vector.shape_cast %197 : vector<8x1xi1> to vector<8x1xi1>
      %199 = vector.broadcast %198 : vector<8x1xi1> to vector<8x128xi1>
      %200 = arith.select %193, %157, %116 : vector<8x128xi1>, vector<8x128xf32>
      %201 = arith.select %193, %155, %117 : vector<8x128xi1>, vector<8x128xf32>
      %202 = arith.truncf %157 : vector<8x128xf32> to vector<8x128xbf16>
      %203 = arith.select %193, %202, %119 : vector<8x128xi1>, vector<8x128xbf16>
      %204 = arith.maximumf %121, %157 : vector<8x128xf32>
      %205 = arith.select %193, %204, %121 : vector<8x128xi1>, vector<8x128xf32>
      %206 = arith.select %199, %188, %122 : vector<8x128xi1>, vector<8x128xf32>
      %207 = arith.select %199, %186, %123 : vector<8x128xi1>, vector<8x128xf32>
      %208 = arith.truncf %188 : vector<8x128xf32> to vector<8x128xbf16>
      %209 = arith.select %199, %208, %125 : vector<8x128xi1>, vector<8x128xbf16>
      %210 = arith.maximumf %127, %188 : vector<8x128xf32>
      %211 = arith.select %199, %210, %127 : vector<8x128xi1>, vector<8x128xf32>
      %c2_i32 = arith.constant 2 : i32
      %212 = arith.index_cast %c2_i32 : i32 to index
      %c0_74 = arith.constant 0 : index
      %c0_75 = arith.constant 0 : index
      %213 = vector.load %arg14[%212, %c0_74, %c0_75] : memref<16x8x512xf32, #tpu.memory_space<vmem>>, vector<1x8x512xf32>
      %214 = vector.shape_cast %213 : vector<1x8x512xf32> to vector<8x512xf32>
      %cst_76 = arith.constant dense<0.000000e+00> : vector<8x512xf32>
      %215 = tpu.matmul %203, %9, %cst_76 {dimension_numbers = #tpu.dot_dimension_numbers<[1], [0], [0], [1], [0, 0, 1, 1], [], []>} : vector<8x128xbf16>, vector<128x512xbf16>, vector<8x512xf32> -> vector<8x512xf32>
      %216 = arith.addf %215, %214 : vector<8x512xf32>
      %217 = vector.extract_strided_slice %216 {offsets = [0, 0], sizes = [8, 128], strides = [1, 1]} : vector<8x512xf32> to vector<8x128xf32>
      %218 = arith.negf %217 : vector<8x128xf32>
      %219 = math.exp %218 : vector<8x128xf32>
      %cst_77 = arith.constant 1.000000e+00 : f32
      %220 = vector.broadcast %cst_77 : f32 to vector<8x128xf32>
      %221 = arith.addf %220, %219 : vector<8x128xf32>
      %222 = arith.divf %220, %221 : vector<8x128xf32>
      %223 = vector.extract_strided_slice %216 {offsets = [0, 128], sizes = [8, 128], strides = [1, 1]} : vector<8x512xf32> to vector<8x128xf32>
      %224 = arith.negf %223 : vector<8x128xf32>
      %225 = math.exp %224 : vector<8x128xf32>
      %cst_78 = arith.constant 1.000000e+00 : f32
      %226 = vector.broadcast %cst_78 : f32 to vector<8x128xf32>
      %227 = arith.addf %226, %225 : vector<8x128xf32>
      %228 = arith.divf %226, %227 : vector<8x128xf32>
      %229 = vector.extract_strided_slice %216 {offsets = [0, 256], sizes = [8, 128], strides = [1, 1]} : vector<8x512xf32> to vector<8x128xf32>
      %230 = math.tanh %229 : vector<8x128xf32>
      %231 = vector.extract_strided_slice %216 {offsets = [0, 384], sizes = [8, 128], strides = [1, 1]} : vector<8x512xf32> to vector<8x128xf32>
      %232 = arith.negf %231 : vector<8x128xf32>
      %233 = math.exp %232 : vector<8x128xf32>
      %cst_79 = arith.constant 1.000000e+00 : f32
      %234 = vector.broadcast %cst_79 : f32 to vector<8x128xf32>
      %235 = arith.addf %234, %233 : vector<8x128xf32>
      %236 = arith.divf %234, %235 : vector<8x128xf32>
      %237 = arith.mulf %228, %201 : vector<8x128xf32>
      %238 = arith.mulf %222, %230 : vector<8x128xf32>
      %239 = arith.addf %237, %238 : vector<8x128xf32>
      %240 = math.tanh %239 : vector<8x128xf32>
      %241 = arith.mulf %236, %240 : vector<8x128xf32>
      %c15_i32_80 = arith.constant 15 : i32
      %242 = arith.subi %c15_i32_80, %c2_i32 : i32
      %243 = arith.index_cast %242 : i32 to index
      %c0_81 = arith.constant 0 : index
      %c0_82 = arith.constant 0 : index
      %244 = vector.load %arg15[%243, %c0_81, %c0_82] : memref<16x8x512xf32, #tpu.memory_space<vmem>>, vector<1x8x512xf32>
      %245 = vector.shape_cast %244 : vector<1x8x512xf32> to vector<8x512xf32>
      %cst_83 = arith.constant dense<0.000000e+00> : vector<8x512xf32>
      %246 = tpu.matmul %209, %10, %cst_83 {dimension_numbers = #tpu.dot_dimension_numbers<[1], [0], [0], [1], [0, 0, 1, 1], [], []>} : vector<8x128xbf16>, vector<128x512xbf16>, vector<8x512xf32> -> vector<8x512xf32>
      %247 = arith.addf %246, %245 : vector<8x512xf32>
      %248 = vector.extract_strided_slice %247 {offsets = [0, 0], sizes = [8, 128], strides = [1, 1]} : vector<8x512xf32> to vector<8x128xf32>
      %249 = arith.negf %248 : vector<8x128xf32>
      %250 = math.exp %249 : vector<8x128xf32>
      %cst_84 = arith.constant 1.000000e+00 : f32
      %251 = vector.broadcast %cst_84 : f32 to vector<8x128xf32>
      %252 = arith.addf %251, %250 : vector<8x128xf32>
      %253 = arith.divf %251, %252 : vector<8x128xf32>
      %254 = vector.extract_strided_slice %247 {offsets = [0, 128], sizes = [8, 128], strides = [1, 1]} : vector<8x512xf32> to vector<8x128xf32>
      %255 = arith.negf %254 : vector<8x128xf32>
      %256 = math.exp %255 : vector<8x128xf32>
      %cst_85 = arith.constant 1.000000e+00 : f32
      %257 = vector.broadcast %cst_85 : f32 to vector<8x128xf32>
      %258 = arith.addf %257, %256 : vector<8x128xf32>
      %259 = arith.divf %257, %258 : vector<8x128xf32>
      %260 = vector.extract_strided_slice %247 {offsets = [0, 256], sizes = [8, 128], strides = [1, 1]} : vector<8x512xf32> to vector<8x128xf32>
      %261 = math.tanh %260 : vector<8x128xf32>
      %262 = vector.extract_strided_slice %247 {offsets = [0, 384], sizes = [8, 128], strides = [1, 1]} : vector<8x512xf32> to vector<8x128xf32>
      %263 = arith.negf %262 : vector<8x128xf32>
      %264 = math.exp %263 : vector<8x128xf32>
      %cst_86 = arith.constant 1.000000e+00 : f32
      %265 = vector.broadcast %cst_86 : f32 to vector<8x128xf32>
      %266 = arith.addf %265, %264 : vector<8x128xf32>
      %267 = arith.divf %265, %266 : vector<8x128xf32>
      %268 = arith.mulf %259, %207 : vector<8x128xf32>
      %269 = arith.mulf %253, %261 : vector<8x128xf32>
      %270 = arith.addf %268, %269 : vector<8x128xf32>
      %271 = math.tanh %270 : vector<8x128xf32>
      %272 = arith.mulf %267, %271 : vector<8x128xf32>
      %273 = arith.addi %32, %c2_i32 : i32
      %274 = vector.broadcast %273 : i32 to vector<8x1xi32>
      %275 = arith.cmpi slt, %274, %8 : vector<8x1xi32>
      %276 = vector.shape_cast %275 : vector<8x1xi1> to vector<8x1xi1>
      %277 = vector.broadcast %276 : vector<8x1xi1> to vector<8x128xi1>
      %c15_i32_87 = arith.constant 15 : i32
      %278 = arith.subi %c15_i32_87, %c2_i32 : i32
      %279 = arith.addi %33, %278 : i32
      %280 = vector.broadcast %279 : i32 to vector<8x1xi32>
      %281 = arith.cmpi slt, %280, %8 : vector<8x1xi32>
      %282 = vector.shape_cast %281 : vector<8x1xi1> to vector<8x1xi1>
      %283 = vector.broadcast %282 : vector<8x1xi1> to vector<8x128xi1>
      %284 = arith.select %277, %241, %200 : vector<8x128xi1>, vector<8x128xf32>
      %285 = arith.select %277, %239, %201 : vector<8x128xi1>, vector<8x128xf32>
      %286 = arith.truncf %241 : vector<8x128xf32> to vector<8x128xbf16>
      %287 = arith.select %277, %286, %203 : vector<8x128xi1>, vector<8x128xbf16>
      %288 = arith.maximumf %205, %241 : vector<8x128xf32>
      %289 = arith.select %277, %288, %205 : vector<8x128xi1>, vector<8x128xf32>
      %290 = arith.select %283, %272, %206 : vector<8x128xi1>, vector<8x128xf32>
      %291 = arith.select %283, %270, %207 : vector<8x128xi1>, vector<8x128xf32>
      %292 = arith.truncf %272 : vector<8x128xf32> to vector<8x128xbf16>
      %293 = arith.select %283, %292, %209 : vector<8x128xi1>, vector<8x128xbf16>
      %294 = arith.maximumf %211, %272 : vector<8x128xf32>
      %295 = arith.select %283, %294, %211 : vector<8x128xi1>, vector<8x128xf32>
      %c3_i32 = arith.constant 3 : i32
      %296 = arith.index_cast %c3_i32 : i32 to index
      %c0_88 = arith.constant 0 : index
      %c0_89 = arith.constant 0 : index
      %297 = vector.load %arg14[%296, %c0_88, %c0_89] : memref<16x8x512xf32, #tpu.memory_space<vmem>>, vector<1x8x512xf32>
      %298 = vector.shape_cast %297 : vector<1x8x512xf32> to vector<8x512xf32>
      %cst_90 = arith.constant dense<0.000000e+00> : vector<8x512xf32>
      %299 = tpu.matmul %287, %9, %cst_90 {dimension_numbers = #tpu.dot_dimension_numbers<[1], [0], [0], [1], [0, 0, 1, 1], [], []>} : vector<8x128xbf16>, vector<128x512xbf16>, vector<8x512xf32> -> vector<8x512xf32>
      %300 = arith.addf %299, %298 : vector<8x512xf32>
      %301 = vector.extract_strided_slice %300 {offsets = [0, 0], sizes = [8, 128], strides = [1, 1]} : vector<8x512xf32> to vector<8x128xf32>
      %302 = arith.negf %301 : vector<8x128xf32>
      %303 = math.exp %302 : vector<8x128xf32>
      %cst_91 = arith.constant 1.000000e+00 : f32
      %304 = vector.broadcast %cst_91 : f32 to vector<8x128xf32>
      %305 = arith.addf %304, %303 : vector<8x128xf32>
      %306 = arith.divf %304, %305 : vector<8x128xf32>
      %307 = vector.extract_strided_slice %300 {offsets = [0, 128], sizes = [8, 128], strides = [1, 1]} : vector<8x512xf32> to vector<8x128xf32>
      %308 = arith.negf %307 : vector<8x128xf32>
      %309 = math.exp %308 : vector<8x128xf32>
      %cst_92 = arith.constant 1.000000e+00 : f32
      %310 = vector.broadcast %cst_92 : f32 to vector<8x128xf32>
      %311 = arith.addf %310, %309 : vector<8x128xf32>
      %312 = arith.divf %310, %311 : vector<8x128xf32>
      %313 = vector.extract_strided_slice %300 {offsets = [0, 256], sizes = [8, 128], strides = [1, 1]} : vector<8x512xf32> to vector<8x128xf32>
      %314 = math.tanh %313 : vector<8x128xf32>
      %315 = vector.extract_strided_slice %300 {offsets = [0, 384], sizes = [8, 128], strides = [1, 1]} : vector<8x512xf32> to vector<8x128xf32>
      %316 = arith.negf %315 : vector<8x128xf32>
      %317 = math.exp %316 : vector<8x128xf32>
      %cst_93 = arith.constant 1.000000e+00 : f32
      %318 = vector.broadcast %cst_93 : f32 to vector<8x128xf32>
      %319 = arith.addf %318, %317 : vector<8x128xf32>
      %320 = arith.divf %318, %319 : vector<8x128xf32>
      %321 = arith.mulf %312, %285 : vector<8x128xf32>
      %322 = arith.mulf %306, %314 : vector<8x128xf32>
      %323 = arith.addf %321, %322 : vector<8x128xf32>
      %324 = math.tanh %323 : vector<8x128xf32>
      %325 = arith.mulf %320, %324 : vector<8x128xf32>
      %c15_i32_94 = arith.constant 15 : i32
      %326 = arith.subi %c15_i32_94, %c3_i32 : i32
      %327 = arith.index_cast %326 : i32 to index
      %c0_95 = arith.constant 0 : index
      %c0_96 = arith.constant 0 : index
      %328 = vector.load %arg15[%327, %c0_95, %c0_96] : memref<16x8x512xf32, #tpu.memory_space<vmem>>, vector<1x8x512xf32>
      %329 = vector.shape_cast %328 : vector<1x8x512xf32> to vector<8x512xf32>
      %cst_97 = arith.constant dense<0.000000e+00> : vector<8x512xf32>
      %330 = tpu.matmul %293, %10, %cst_97 {dimension_numbers = #tpu.dot_dimension_numbers<[1], [0], [0], [1], [0, 0, 1, 1], [], []>} : vector<8x128xbf16>, vector<128x512xbf16>, vector<8x512xf32> -> vector<8x512xf32>
      %331 = arith.addf %330, %329 : vector<8x512xf32>
      %332 = vector.extract_strided_slice %331 {offsets = [0, 0], sizes = [8, 128], strides = [1, 1]} : vector<8x512xf32> to vector<8x128xf32>
      %333 = arith.negf %332 : vector<8x128xf32>
      %334 = math.exp %333 : vector<8x128xf32>
      %cst_98 = arith.constant 1.000000e+00 : f32
      %335 = vector.broadcast %cst_98 : f32 to vector<8x128xf32>
      %336 = arith.addf %335, %334 : vector<8x128xf32>
      %337 = arith.divf %335, %336 : vector<8x128xf32>
      %338 = vector.extract_strided_slice %331 {offsets = [0, 128], sizes = [8, 128], strides = [1, 1]} : vector<8x512xf32> to vector<8x128xf32>
      %339 = arith.negf %338 : vector<8x128xf32>
      %340 = math.exp %339 : vector<8x128xf32>
      %cst_99 = arith.constant 1.000000e+00 : f32
      %341 = vector.broadcast %cst_99 : f32 to vector<8x128xf32>
      %342 = arith.addf %341, %340 : vector<8x128xf32>
      %343 = arith.divf %341, %342 : vector<8x128xf32>
      %344 = vector.extract_strided_slice %331 {offsets = [0, 256], sizes = [8, 128], strides = [1, 1]} : vector<8x512xf32> to vector<8x128xf32>
      %345 = math.tanh %344 : vector<8x128xf32>
      %346 = vector.extract_strided_slice %331 {offsets = [0, 384], sizes = [8, 128], strides = [1, 1]} : vector<8x512xf32> to vector<8x128xf32>
      %347 = arith.negf %346 : vector<8x128xf32>
      %348 = math.exp %347 : vector<8x128xf32>
      %cst_100 = arith.constant 1.000000e+00 : f32
      %349 = vector.broadcast %cst_100 : f32 to vector<8x128xf32>
      %350 = arith.addf %349, %348 : vector<8x128xf32>
      %351 = arith.divf %349, %350 : vector<8x128xf32>
      %352 = arith.mulf %343, %291 : vector<8x128xf32>
      %353 = arith.mulf %337, %345 : vector<8x128xf32>
      %354 = arith.addf %352, %353 : vector<8x128xf32>
      %355 = math.tanh %354 : vector<8x128xf32>
      %356 = arith.mulf %351, %355 : vector<8x128xf32>
      %357 = arith.addi %32, %c3_i32 : i32
      %358 = vector.broadcast %357 : i32 to vector<8x1xi32>
      %359 = arith.cmpi slt, %358, %8 : vector<8x1xi32>
      %360 = vector.shape_cast %359 : vector<8x1xi1> to vector<8x1xi1>
      %361 = vector.broadcast %360 : vector<8x1xi1> to vector<8x128xi1>
      %c15_i32_101 = arith.constant 15 : i32
      %362 = arith.subi %c15_i32_101, %c3_i32 : i32
      %363 = arith.addi %33, %362 : i32
      %364 = vector.broadcast %363 : i32 to vector<8x1xi32>
      %365 = arith.cmpi slt, %364, %8 : vector<8x1xi32>
      %366 = vector.shape_cast %365 : vector<8x1xi1> to vector<8x1xi1>
      %367 = vector.broadcast %366 : vector<8x1xi1> to vector<8x128xi1>
      %368 = arith.select %361, %325, %284 : vector<8x128xi1>, vector<8x128xf32>
      %369 = arith.select %361, %323, %285 : vector<8x128xi1>, vector<8x128xf32>
      %370 = arith.truncf %325 : vector<8x128xf32> to vector<8x128xbf16>
      %371 = arith.select %361, %370, %287 : vector<8x128xi1>, vector<8x128xbf16>
      %372 = arith.maximumf %289, %325 : vector<8x128xf32>
      %373 = arith.select %361, %372, %289 : vector<8x128xi1>, vector<8x128xf32>
      %374 = arith.select %367, %356, %290 : vector<8x128xi1>, vector<8x128xf32>
      %375 = arith.select %367, %354, %291 : vector<8x128xi1>, vector<8x128xf32>
      %376 = arith.truncf %356 : vector<8x128xf32> to vector<8x128xbf16>
      %377 = arith.select %367, %376, %293 : vector<8x128xi1>, vector<8x128xbf16>
      %378 = arith.maximumf %295, %356 : vector<8x128xf32>
      %379 = arith.select %367, %378, %295 : vector<8x128xi1>, vector<8x128xf32>
      %c4_i32 = arith.constant 4 : i32
      %380 = arith.index_cast %c4_i32 : i32 to index
      %c0_102 = arith.constant 0 : index
      %c0_103 = arith.constant 0 : index
      %381 = vector.load %arg14[%380, %c0_102, %c0_103] : memref<16x8x512xf32, #tpu.memory_space<vmem>>, vector<1x8x512xf32>
      %382 = vector.shape_cast %381 : vector<1x8x512xf32> to vector<8x512xf32>
      %cst_104 = arith.constant dense<0.000000e+00> : vector<8x512xf32>
      %383 = tpu.matmul %371, %9, %cst_104 {dimension_numbers = #tpu.dot_dimension_numbers<[1], [0], [0], [1], [0, 0, 1, 1], [], []>} : vector<8x128xbf16>, vector<128x512xbf16>, vector<8x512xf32> -> vector<8x512xf32>
      %384 = arith.addf %383, %382 : vector<8x512xf32>
      %385 = vector.extract_strided_slice %384 {offsets = [0, 0], sizes = [8, 128], strides = [1, 1]} : vector<8x512xf32> to vector<8x128xf32>
      %386 = arith.negf %385 : vector<8x128xf32>
      %387 = math.exp %386 : vector<8x128xf32>
      %cst_105 = arith.constant 1.000000e+00 : f32
      %388 = vector.broadcast %cst_105 : f32 to vector<8x128xf32>
      %389 = arith.addf %388, %387 : vector<8x128xf32>
      %390 = arith.divf %388, %389 : vector<8x128xf32>
      %391 = vector.extract_strided_slice %384 {offsets = [0, 128], sizes = [8, 128], strides = [1, 1]} : vector<8x512xf32> to vector<8x128xf32>
      %392 = arith.negf %391 : vector<8x128xf32>
      %393 = math.exp %392 : vector<8x128xf32>
      %cst_106 = arith.constant 1.000000e+00 : f32
      %394 = vector.broadcast %cst_106 : f32 to vector<8x128xf32>
      %395 = arith.addf %394, %393 : vector<8x128xf32>
      %396 = arith.divf %394, %395 : vector<8x128xf32>
      %397 = vector.extract_strided_slice %384 {offsets = [0, 256], sizes = [8, 128], strides = [1, 1]} : vector<8x512xf32> to vector<8x128xf32>
      %398 = math.tanh %397 : vector<8x128xf32>
      %399 = vector.extract_strided_slice %384 {offsets = [0, 384], sizes = [8, 128], strides = [1, 1]} : vector<8x512xf32> to vector<8x128xf32>
      %400 = arith.negf %399 : vector<8x128xf32>
      %401 = math.exp %400 : vector<8x128xf32>
      %cst_107 = arith.constant 1.000000e+00 : f32
      %402 = vector.broadcast %cst_107 : f32 to vector<8x128xf32>
      %403 = arith.addf %402, %401 : vector<8x128xf32>
      %404 = arith.divf %402, %403 : vector<8x128xf32>
      %405 = arith.mulf %396, %369 : vector<8x128xf32>
      %406 = arith.mulf %390, %398 : vector<8x128xf32>
      %407 = arith.addf %405, %406 : vector<8x128xf32>
      %408 = math.tanh %407 : vector<8x128xf32>
      %409 = arith.mulf %404, %408 : vector<8x128xf32>
      %c15_i32_108 = arith.constant 15 : i32
      %410 = arith.subi %c15_i32_108, %c4_i32 : i32
      %411 = arith.index_cast %410 : i32 to index
      %c0_109 = arith.constant 0 : index
      %c0_110 = arith.constant 0 : index
      %412 = vector.load %arg15[%411, %c0_109, %c0_110] : memref<16x8x512xf32, #tpu.memory_space<vmem>>, vector<1x8x512xf32>
      %413 = vector.shape_cast %412 : vector<1x8x512xf32> to vector<8x512xf32>
      %cst_111 = arith.constant dense<0.000000e+00> : vector<8x512xf32>
      %414 = tpu.matmul %377, %10, %cst_111 {dimension_numbers = #tpu.dot_dimension_numbers<[1], [0], [0], [1], [0, 0, 1, 1], [], []>} : vector<8x128xbf16>, vector<128x512xbf16>, vector<8x512xf32> -> vector<8x512xf32>
      %415 = arith.addf %414, %413 : vector<8x512xf32>
      %416 = vector.extract_strided_slice %415 {offsets = [0, 0], sizes = [8, 128], strides = [1, 1]} : vector<8x512xf32> to vector<8x128xf32>
      %417 = arith.negf %416 : vector<8x128xf32>
      %418 = math.exp %417 : vector<8x128xf32>
      %cst_112 = arith.constant 1.000000e+00 : f32
      %419 = vector.broadcast %cst_112 : f32 to vector<8x128xf32>
      %420 = arith.addf %419, %418 : vector<8x128xf32>
      %421 = arith.divf %419, %420 : vector<8x128xf32>
      %422 = vector.extract_strided_slice %415 {offsets = [0, 128], sizes = [8, 128], strides = [1, 1]} : vector<8x512xf32> to vector<8x128xf32>
      %423 = arith.negf %422 : vector<8x128xf32>
      %424 = math.exp %423 : vector<8x128xf32>
      %cst_113 = arith.constant 1.000000e+00 : f32
      %425 = vector.broadcast %cst_113 : f32 to vector<8x128xf32>
      %426 = arith.addf %425, %424 : vector<8x128xf32>
      %427 = arith.divf %425, %426 : vector<8x128xf32>
      %428 = vector.extract_strided_slice %415 {offsets = [0, 256], sizes = [8, 128], strides = [1, 1]} : vector<8x512xf32> to vector<8x128xf32>
      %429 = math.tanh %428 : vector<8x128xf32>
      %430 = vector.extract_strided_slice %415 {offsets = [0, 384], sizes = [8, 128], strides = [1, 1]} : vector<8x512xf32> to vector<8x128xf32>
      %431 = arith.negf %430 : vector<8x128xf32>
      %432 = math.exp %431 : vector<8x128xf32>
      %cst_114 = arith.constant 1.000000e+00 : f32
      %433 = vector.broadcast %cst_114 : f32 to vector<8x128xf32>
      %434 = arith.addf %433, %432 : vector<8x128xf32>
      %435 = arith.divf %433, %434 : vector<8x128xf32>
      %436 = arith.mulf %427, %375 : vector<8x128xf32>
      %437 = arith.mulf %421, %429 : vector<8x128xf32>
      %438 = arith.addf %436, %437 : vector<8x128xf32>
      %439 = math.tanh %438 : vector<8x128xf32>
      %440 = arith.mulf %435, %439 : vector<8x128xf32>
      %441 = arith.addi %32, %c4_i32 : i32
      %442 = vector.broadcast %441 : i32 to vector<8x1xi32>
      %443 = arith.cmpi slt, %442, %8 : vector<8x1xi32>
      %444 = vector.shape_cast %443 : vector<8x1xi1> to vector<8x1xi1>
      %445 = vector.broadcast %444 : vector<8x1xi1> to vector<8x128xi1>
      %c15_i32_115 = arith.constant 15 : i32
      %446 = arith.subi %c15_i32_115, %c4_i32 : i32
      %447 = arith.addi %33, %446 : i32
      %448 = vector.broadcast %447 : i32 to vector<8x1xi32>
      %449 = arith.cmpi slt, %448, %8 : vector<8x1xi32>
      %450 = vector.shape_cast %449 : vector<8x1xi1> to vector<8x1xi1>
      %451 = vector.broadcast %450 : vector<8x1xi1> to vector<8x128xi1>
      %452 = arith.select %445, %409, %368 : vector<8x128xi1>, vector<8x128xf32>
      %453 = arith.select %445, %407, %369 : vector<8x128xi1>, vector<8x128xf32>
      %454 = arith.truncf %409 : vector<8x128xf32> to vector<8x128xbf16>
      %455 = arith.select %445, %454, %371 : vector<8x128xi1>, vector<8x128xbf16>
      %456 = arith.maximumf %373, %409 : vector<8x128xf32>
      %457 = arith.select %445, %456, %373 : vector<8x128xi1>, vector<8x128xf32>
      %458 = arith.select %451, %440, %374 : vector<8x128xi1>, vector<8x128xf32>
      %459 = arith.select %451, %438, %375 : vector<8x128xi1>, vector<8x128xf32>
      %460 = arith.truncf %440 : vector<8x128xf32> to vector<8x128xbf16>
      %461 = arith.select %451, %460, %377 : vector<8x128xi1>, vector<8x128xbf16>
      %462 = arith.maximumf %379, %440 : vector<8x128xf32>
      %463 = arith.select %451, %462, %379 : vector<8x128xi1>, vector<8x128xf32>
      %c5_i32 = arith.constant 5 : i32
      %464 = arith.index_cast %c5_i32 : i32 to index
      %c0_116 = arith.constant 0 : index
      %c0_117 = arith.constant 0 : index
      %465 = vector.load %arg14[%464, %c0_116, %c0_117] : memref<16x8x512xf32, #tpu.memory_space<vmem>>, vector<1x8x512xf32>
      %466 = vector.shape_cast %465 : vector<1x8x512xf32> to vector<8x512xf32>
      %cst_118 = arith.constant dense<0.000000e+00> : vector<8x512xf32>
      %467 = tpu.matmul %455, %9, %cst_118 {dimension_numbers = #tpu.dot_dimension_numbers<[1], [0], [0], [1], [0, 0, 1, 1], [], []>} : vector<8x128xbf16>, vector<128x512xbf16>, vector<8x512xf32> -> vector<8x512xf32>
      %468 = arith.addf %467, %466 : vector<8x512xf32>
      %469 = vector.extract_strided_slice %468 {offsets = [0, 0], sizes = [8, 128], strides = [1, 1]} : vector<8x512xf32> to vector<8x128xf32>
      %470 = arith.negf %469 : vector<8x128xf32>
      %471 = math.exp %470 : vector<8x128xf32>
      %cst_119 = arith.constant 1.000000e+00 : f32
      %472 = vector.broadcast %cst_119 : f32 to vector<8x128xf32>
      %473 = arith.addf %472, %471 : vector<8x128xf32>
      %474 = arith.divf %472, %473 : vector<8x128xf32>
      %475 = vector.extract_strided_slice %468 {offsets = [0, 128], sizes = [8, 128], strides = [1, 1]} : vector<8x512xf32> to vector<8x128xf32>
      %476 = arith.negf %475 : vector<8x128xf32>
      %477 = math.exp %476 : vector<8x128xf32>
      %cst_120 = arith.constant 1.000000e+00 : f32
      %478 = vector.broadcast %cst_120 : f32 to vector<8x128xf32>
      %479 = arith.addf %478, %477 : vector<8x128xf32>
      %480 = arith.divf %478, %479 : vector<8x128xf32>
      %481 = vector.extract_strided_slice %468 {offsets = [0, 256], sizes = [8, 128], strides = [1, 1]} : vector<8x512xf32> to vector<8x128xf32>
      %482 = math.tanh %481 : vector<8x128xf32>
      %483 = vector.extract_strided_slice %468 {offsets = [0, 384], sizes = [8, 128], strides = [1, 1]} : vector<8x512xf32> to vector<8x128xf32>
      %484 = arith.negf %483 : vector<8x128xf32>
      %485 = math.exp %484 : vector<8x128xf32>
      %cst_121 = arith.constant 1.000000e+00 : f32
      %486 = vector.broadcast %cst_121 : f32 to vector<8x128xf32>
      %487 = arith.addf %486, %485 : vector<8x128xf32>
      %488 = arith.divf %486, %487 : vector<8x128xf32>
      %489 = arith.mulf %480, %453 : vector<8x128xf32>
      %490 = arith.mulf %474, %482 : vector<8x128xf32>
      %491 = arith.addf %489, %490 : vector<8x128xf32>
      %492 = math.tanh %491 : vector<8x128xf32>
      %493 = arith.mulf %488, %492 : vector<8x128xf32>
      %c15_i32_122 = arith.constant 15 : i32
      %494 = arith.subi %c15_i32_122, %c5_i32 : i32
      %495 = arith.index_cast %494 : i32 to index
      %c0_123 = arith.constant 0 : index
      %c0_124 = arith.constant 0 : index
      %496 = vector.load %arg15[%495, %c0_123, %c0_124] : memref<16x8x512xf32, #tpu.memory_space<vmem>>, vector<1x8x512xf32>
      %497 = vector.shape_cast %496 : vector<1x8x512xf32> to vector<8x512xf32>
      %cst_125 = arith.constant dense<0.000000e+00> : vector<8x512xf32>
      %498 = tpu.matmul %461, %10, %cst_125 {dimension_numbers = #tpu.dot_dimension_numbers<[1], [0], [0], [1], [0, 0, 1, 1], [], []>} : vector<8x128xbf16>, vector<128x512xbf16>, vector<8x512xf32> -> vector<8x512xf32>
      %499 = arith.addf %498, %497 : vector<8x512xf32>
      %500 = vector.extract_strided_slice %499 {offsets = [0, 0], sizes = [8, 128], strides = [1, 1]} : vector<8x512xf32> to vector<8x128xf32>
      %501 = arith.negf %500 : vector<8x128xf32>
      %502 = math.exp %501 : vector<8x128xf32>
      %cst_126 = arith.constant 1.000000e+00 : f32
      %503 = vector.broadcast %cst_126 : f32 to vector<8x128xf32>
      %504 = arith.addf %503, %502 : vector<8x128xf32>
      %505 = arith.divf %503, %504 : vector<8x128xf32>
      %506 = vector.extract_strided_slice %499 {offsets = [0, 128], sizes = [8, 128], strides = [1, 1]} : vector<8x512xf32> to vector<8x128xf32>
      %507 = arith.negf %506 : vector<8x128xf32>
      %508 = math.exp %507 : vector<8x128xf32>
      %cst_127 = arith.constant 1.000000e+00 : f32
      %509 = vector.broadcast %cst_127 : f32 to vector<8x128xf32>
      %510 = arith.addf %509, %508 : vector<8x128xf32>
      %511 = arith.divf %509, %510 : vector<8x128xf32>
      %512 = vector.extract_strided_slice %499 {offsets = [0, 256], sizes = [8, 128], strides = [1, 1]} : vector<8x512xf32> to vector<8x128xf32>
      %513 = math.tanh %512 : vector<8x128xf32>
      %514 = vector.extract_strided_slice %499 {offsets = [0, 384], sizes = [8, 128], strides = [1, 1]} : vector<8x512xf32> to vector<8x128xf32>
      %515 = arith.negf %514 : vector<8x128xf32>
      %516 = math.exp %515 : vector<8x128xf32>
      %cst_128 = arith.constant 1.000000e+00 : f32
      %517 = vector.broadcast %cst_128 : f32 to vector<8x128xf32>
      %518 = arith.addf %517, %516 : vector<8x128xf32>
      %519 = arith.divf %517, %518 : vector<8x128xf32>
      %520 = arith.mulf %511, %459 : vector<8x128xf32>
      %521 = arith.mulf %505, %513 : vector<8x128xf32>
      %522 = arith.addf %520, %521 : vector<8x128xf32>
      %523 = math.tanh %522 : vector<8x128xf32>
      %524 = arith.mulf %519, %523 : vector<8x128xf32>
      %525 = arith.addi %32, %c5_i32 : i32
      %526 = vector.broadcast %525 : i32 to vector<8x1xi32>
      %527 = arith.cmpi slt, %526, %8 : vector<8x1xi32>
      %528 = vector.shape_cast %527 : vector<8x1xi1> to vector<8x1xi1>
      %529 = vector.broadcast %528 : vector<8x1xi1> to vector<8x128xi1>
      %c15_i32_129 = arith.constant 15 : i32
      %530 = arith.subi %c15_i32_129, %c5_i32 : i32
      %531 = arith.addi %33, %530 : i32
      %532 = vector.broadcast %531 : i32 to vector<8x1xi32>
      %533 = arith.cmpi slt, %532, %8 : vector<8x1xi32>
      %534 = vector.shape_cast %533 : vector<8x1xi1> to vector<8x1xi1>
      %535 = vector.broadcast %534 : vector<8x1xi1> to vector<8x128xi1>
      %536 = arith.select %529, %493, %452 : vector<8x128xi1>, vector<8x128xf32>
      %537 = arith.select %529, %491, %453 : vector<8x128xi1>, vector<8x128xf32>
      %538 = arith.truncf %493 : vector<8x128xf32> to vector<8x128xbf16>
      %539 = arith.select %529, %538, %455 : vector<8x128xi1>, vector<8x128xbf16>
      %540 = arith.maximumf %457, %493 : vector<8x128xf32>
      %541 = arith.select %529, %540, %457 : vector<8x128xi1>, vector<8x128xf32>
      %542 = arith.select %535, %524, %458 : vector<8x128xi1>, vector<8x128xf32>
      %543 = arith.select %535, %522, %459 : vector<8x128xi1>, vector<8x128xf32>
      %544 = arith.truncf %524 : vector<8x128xf32> to vector<8x128xbf16>
      %545 = arith.select %535, %544, %461 : vector<8x128xi1>, vector<8x128xbf16>
      %546 = arith.maximumf %463, %524 : vector<8x128xf32>
      %547 = arith.select %535, %546, %463 : vector<8x128xi1>, vector<8x128xf32>
      %c6_i32 = arith.constant 6 : i32
      %548 = arith.index_cast %c6_i32 : i32 to index
      %c0_130 = arith.constant 0 : index
      %c0_131 = arith.constant 0 : index
      %549 = vector.load %arg14[%548, %c0_130, %c0_131] : memref<16x8x512xf32, #tpu.memory_space<vmem>>, vector<1x8x512xf32>
      %550 = vector.shape_cast %549 : vector<1x8x512xf32> to vector<8x512xf32>
      %cst_132 = arith.constant dense<0.000000e+00> : vector<8x512xf32>
      %551 = tpu.matmul %539, %9, %cst_132 {dimension_numbers = #tpu.dot_dimension_numbers<[1], [0], [0], [1], [0, 0, 1, 1], [], []>} : vector<8x128xbf16>, vector<128x512xbf16>, vector<8x512xf32> -> vector<8x512xf32>
      %552 = arith.addf %551, %550 : vector<8x512xf32>
      %553 = vector.extract_strided_slice %552 {offsets = [0, 0], sizes = [8, 128], strides = [1, 1]} : vector<8x512xf32> to vector<8x128xf32>
      %554 = arith.negf %553 : vector<8x128xf32>
      %555 = math.exp %554 : vector<8x128xf32>
      %cst_133 = arith.constant 1.000000e+00 : f32
      %556 = vector.broadcast %cst_133 : f32 to vector<8x128xf32>
      %557 = arith.addf %556, %555 : vector<8x128xf32>
      %558 = arith.divf %556, %557 : vector<8x128xf32>
      %559 = vector.extract_strided_slice %552 {offsets = [0, 128], sizes = [8, 128], strides = [1, 1]} : vector<8x512xf32> to vector<8x128xf32>
      %560 = arith.negf %559 : vector<8x128xf32>
      %561 = math.exp %560 : vector<8x128xf32>
      %cst_134 = arith.constant 1.000000e+00 : f32
      %562 = vector.broadcast %cst_134 : f32 to vector<8x128xf32>
      %563 = arith.addf %562, %561 : vector<8x128xf32>
      %564 = arith.divf %562, %563 : vector<8x128xf32>
      %565 = vector.extract_strided_slice %552 {offsets = [0, 256], sizes = [8, 128], strides = [1, 1]} : vector<8x512xf32> to vector<8x128xf32>
      %566 = math.tanh %565 : vector<8x128xf32>
      %567 = vector.extract_strided_slice %552 {offsets = [0, 384], sizes = [8, 128], strides = [1, 1]} : vector<8x512xf32> to vector<8x128xf32>
      %568 = arith.negf %567 : vector<8x128xf32>
      %569 = math.exp %568 : vector<8x128xf32>
      %cst_135 = arith.constant 1.000000e+00 : f32
      %570 = vector.broadcast %cst_135 : f32 to vector<8x128xf32>
      %571 = arith.addf %570, %569 : vector<8x128xf32>
      %572 = arith.divf %570, %571 : vector<8x128xf32>
      %573 = arith.mulf %564, %537 : vector<8x128xf32>
      %574 = arith.mulf %558, %566 : vector<8x128xf32>
      %575 = arith.addf %573, %574 : vector<8x128xf32>
      %576 = math.tanh %575 : vector<8x128xf32>
      %577 = arith.mulf %572, %576 : vector<8x128xf32>
      %c15_i32_136 = arith.constant 15 : i32
      %578 = arith.subi %c15_i32_136, %c6_i32 : i32
      %579 = arith.index_cast %578 : i32 to index
      %c0_137 = arith.constant 0 : index
      %c0_138 = arith.constant 0 : index
      %580 = vector.load %arg15[%579, %c0_137, %c0_138] : memref<16x8x512xf32, #tpu.memory_space<vmem>>, vector<1x8x512xf32>
      %581 = vector.shape_cast %580 : vector<1x8x512xf32> to vector<8x512xf32>
      %cst_139 = arith.constant dense<0.000000e+00> : vector<8x512xf32>
      %582 = tpu.matmul %545, %10, %cst_139 {dimension_numbers = #tpu.dot_dimension_numbers<[1], [0], [0], [1], [0, 0, 1, 1], [], []>} : vector<8x128xbf16>, vector<128x512xbf16>, vector<8x512xf32> -> vector<8x512xf32>
      %583 = arith.addf %582, %581 : vector<8x512xf32>
      %584 = vector.extract_strided_slice %583 {offsets = [0, 0], sizes = [8, 128], strides = [1, 1]} : vector<8x512xf32> to vector<8x128xf32>
      %585 = arith.negf %584 : vector<8x128xf32>
      %586 = math.exp %585 : vector<8x128xf32>
      %cst_140 = arith.constant 1.000000e+00 : f32
      %587 = vector.broadcast %cst_140 : f32 to vector<8x128xf32>
      %588 = arith.addf %587, %586 : vector<8x128xf32>
      %589 = arith.divf %587, %588 : vector<8x128xf32>
      %590 = vector.extract_strided_slice %583 {offsets = [0, 128], sizes = [8, 128], strides = [1, 1]} : vector<8x512xf32> to vector<8x128xf32>
      %591 = arith.negf %590 : vector<8x128xf32>
      %592 = math.exp %591 : vector<8x128xf32>
      %cst_141 = arith.constant 1.000000e+00 : f32
      %593 = vector.broadcast %cst_141 : f32 to vector<8x128xf32>
      %594 = arith.addf %593, %592 : vector<8x128xf32>
      %595 = arith.divf %593, %594 : vector<8x128xf32>
      %596 = vector.extract_strided_slice %583 {offsets = [0, 256], sizes = [8, 128], strides = [1, 1]} : vector<8x512xf32> to vector<8x128xf32>
      %597 = math.tanh %596 : vector<8x128xf32>
      %598 = vector.extract_strided_slice %583 {offsets = [0, 384], sizes = [8, 128], strides = [1, 1]} : vector<8x512xf32> to vector<8x128xf32>
      %599 = arith.negf %598 : vector<8x128xf32>
      %600 = math.exp %599 : vector<8x128xf32>
      %cst_142 = arith.constant 1.000000e+00 : f32
      %601 = vector.broadcast %cst_142 : f32 to vector<8x128xf32>
      %602 = arith.addf %601, %600 : vector<8x128xf32>
      %603 = arith.divf %601, %602 : vector<8x128xf32>
      %604 = arith.mulf %595, %543 : vector<8x128xf32>
      %605 = arith.mulf %589, %597 : vector<8x128xf32>
      %606 = arith.addf %604, %605 : vector<8x128xf32>
      %607 = math.tanh %606 : vector<8x128xf32>
      %608 = arith.mulf %603, %607 : vector<8x128xf32>
      %609 = arith.addi %32, %c6_i32 : i32
      %610 = vector.broadcast %609 : i32 to vector<8x1xi32>
      %611 = arith.cmpi slt, %610, %8 : vector<8x1xi32>
      %612 = vector.shape_cast %611 : vector<8x1xi1> to vector<8x1xi1>
      %613 = vector.broadcast %612 : vector<8x1xi1> to vector<8x128xi1>
      %c15_i32_143 = arith.constant 15 : i32
      %614 = arith.subi %c15_i32_143, %c6_i32 : i32
      %615 = arith.addi %33, %614 : i32
      %616 = vector.broadcast %615 : i32 to vector<8x1xi32>
      %617 = arith.cmpi slt, %616, %8 : vector<8x1xi32>
      %618 = vector.shape_cast %617 : vector<8x1xi1> to vector<8x1xi1>
      %619 = vector.broadcast %618 : vector<8x1xi1> to vector<8x128xi1>
      %620 = arith.select %613, %577, %536 : vector<8x128xi1>, vector<8x128xf32>
      %621 = arith.select %613, %575, %537 : vector<8x128xi1>, vector<8x128xf32>
      %622 = arith.truncf %577 : vector<8x128xf32> to vector<8x128xbf16>
      %623 = arith.select %613, %622, %539 : vector<8x128xi1>, vector<8x128xbf16>
      %624 = arith.maximumf %541, %577 : vector<8x128xf32>
      %625 = arith.select %613, %624, %541 : vector<8x128xi1>, vector<8x128xf32>
      %626 = arith.select %619, %608, %542 : vector<8x128xi1>, vector<8x128xf32>
      %627 = arith.select %619, %606, %543 : vector<8x128xi1>, vector<8x128xf32>
      %628 = arith.truncf %608 : vector<8x128xf32> to vector<8x128xbf16>
      %629 = arith.select %619, %628, %545 : vector<8x128xi1>, vector<8x128xbf16>
      %630 = arith.maximumf %547, %608 : vector<8x128xf32>
      %631 = arith.select %619, %630, %547 : vector<8x128xi1>, vector<8x128xf32>
      %c7_i32 = arith.constant 7 : i32
      %632 = arith.index_cast %c7_i32 : i32 to index
      %c0_144 = arith.constant 0 : index
      %c0_145 = arith.constant 0 : index
      %633 = vector.load %arg14[%632, %c0_144, %c0_145] : memref<16x8x512xf32, #tpu.memory_space<vmem>>, vector<1x8x512xf32>
      %634 = vector.shape_cast %633 : vector<1x8x512xf32> to vector<8x512xf32>
      %cst_146 = arith.constant dense<0.000000e+00> : vector<8x512xf32>
      %635 = tpu.matmul %623, %9, %cst_146 {dimension_numbers = #tpu.dot_dimension_numbers<[1], [0], [0], [1], [0, 0, 1, 1], [], []>} : vector<8x128xbf16>, vector<128x512xbf16>, vector<8x512xf32> -> vector<8x512xf32>
      %636 = arith.addf %635, %634 : vector<8x512xf32>
      %637 = vector.extract_strided_slice %636 {offsets = [0, 0], sizes = [8, 128], strides = [1, 1]} : vector<8x512xf32> to vector<8x128xf32>
      %638 = arith.negf %637 : vector<8x128xf32>
      %639 = math.exp %638 : vector<8x128xf32>
      %cst_147 = arith.constant 1.000000e+00 : f32
      %640 = vector.broadcast %cst_147 : f32 to vector<8x128xf32>
      %641 = arith.addf %640, %639 : vector<8x128xf32>
      %642 = arith.divf %640, %641 : vector<8x128xf32>
      %643 = vector.extract_strided_slice %636 {offsets = [0, 128], sizes = [8, 128], strides = [1, 1]} : vector<8x512xf32> to vector<8x128xf32>
      %644 = arith.negf %643 : vector<8x128xf32>
      %645 = math.exp %644 : vector<8x128xf32>
      %cst_148 = arith.constant 1.000000e+00 : f32
      %646 = vector.broadcast %cst_148 : f32 to vector<8x128xf32>
      %647 = arith.addf %646, %645 : vector<8x128xf32>
      %648 = arith.divf %646, %647 : vector<8x128xf32>
      %649 = vector.extract_strided_slice %636 {offsets = [0, 256], sizes = [8, 128], strides = [1, 1]} : vector<8x512xf32> to vector<8x128xf32>
      %650 = math.tanh %649 : vector<8x128xf32>
      %651 = vector.extract_strided_slice %636 {offsets = [0, 384], sizes = [8, 128], strides = [1, 1]} : vector<8x512xf32> to vector<8x128xf32>
      %652 = arith.negf %651 : vector<8x128xf32>
      %653 = math.exp %652 : vector<8x128xf32>
      %cst_149 = arith.constant 1.000000e+00 : f32
      %654 = vector.broadcast %cst_149 : f32 to vector<8x128xf32>
      %655 = arith.addf %654, %653 : vector<8x128xf32>
      %656 = arith.divf %654, %655 : vector<8x128xf32>
      %657 = arith.mulf %648, %621 : vector<8x128xf32>
      %658 = arith.mulf %642, %650 : vector<8x128xf32>
      %659 = arith.addf %657, %658 : vector<8x128xf32>
      %660 = math.tanh %659 : vector<8x128xf32>
      %661 = arith.mulf %656, %660 : vector<8x128xf32>
      %c15_i32_150 = arith.constant 15 : i32
      %662 = arith.subi %c15_i32_150, %c7_i32 : i32
      %663 = arith.index_cast %662 : i32 to index
      %c0_151 = arith.constant 0 : index
      %c0_152 = arith.constant 0 : index
      %664 = vector.load %arg15[%663, %c0_151, %c0_152] : memref<16x8x512xf32, #tpu.memory_space<vmem>>, vector<1x8x512xf32>
      %665 = vector.shape_cast %664 : vector<1x8x512xf32> to vector<8x512xf32>
      %cst_153 = arith.constant dense<0.000000e+00> : vector<8x512xf32>
      %666 = tpu.matmul %629, %10, %cst_153 {dimension_numbers = #tpu.dot_dimension_numbers<[1], [0], [0], [1], [0, 0, 1, 1], [], []>} : vector<8x128xbf16>, vector<128x512xbf16>, vector<8x512xf32> -> vector<8x512xf32>
      %667 = arith.addf %666, %665 : vector<8x512xf32>
      %668 = vector.extract_strided_slice %667 {offsets = [0, 0], sizes = [8, 128], strides = [1, 1]} : vector<8x512xf32> to vector<8x128xf32>
      %669 = arith.negf %668 : vector<8x128xf32>
      %670 = math.exp %669 : vector<8x128xf32>
      %cst_154 = arith.constant 1.000000e+00 : f32
      %671 = vector.broadcast %cst_154 : f32 to vector<8x128xf32>
      %672 = arith.addf %671, %670 : vector<8x128xf32>
      %673 = arith.divf %671, %672 : vector<8x128xf32>
      %674 = vector.extract_strided_slice %667 {offsets = [0, 128], sizes = [8, 128], strides = [1, 1]} : vector<8x512xf32> to vector<8x128xf32>
      %675 = arith.negf %674 : vector<8x128xf32>
      %676 = math.exp %675 : vector<8x128xf32>
      %cst_155 = arith.constant 1.000000e+00 : f32
      %677 = vector.broadcast %cst_155 : f32 to vector<8x128xf32>
      %678 = arith.addf %677, %676 : vector<8x128xf32>
      %679 = arith.divf %677, %678 : vector<8x128xf32>
      %680 = vector.extract_strided_slice %667 {offsets = [0, 256], sizes = [8, 128], strides = [1, 1]} : vector<8x512xf32> to vector<8x128xf32>
      %681 = math.tanh %680 : vector<8x128xf32>
      %682 = vector.extract_strided_slice %667 {offsets = [0, 384], sizes = [8, 128], strides = [1, 1]} : vector<8x512xf32> to vector<8x128xf32>
      %683 = arith.negf %682 : vector<8x128xf32>
      %684 = math.exp %683 : vector<8x128xf32>
      %cst_156 = arith.constant 1.000000e+00 : f32
      %685 = vector.broadcast %cst_156 : f32 to vector<8x128xf32>
      %686 = arith.addf %685, %684 : vector<8x128xf32>
      %687 = arith.divf %685, %686 : vector<8x128xf32>
      %688 = arith.mulf %679, %627 : vector<8x128xf32>
      %689 = arith.mulf %673, %681 : vector<8x128xf32>
      %690 = arith.addf %688, %689 : vector<8x128xf32>
      %691 = math.tanh %690 : vector<8x128xf32>
      %692 = arith.mulf %687, %691 : vector<8x128xf32>
      %693 = arith.addi %32, %c7_i32 : i32
      %694 = vector.broadcast %693 : i32 to vector<8x1xi32>
      %695 = arith.cmpi slt, %694, %8 : vector<8x1xi32>
      %696 = vector.shape_cast %695 : vector<8x1xi1> to vector<8x1xi1>
      %697 = vector.broadcast %696 : vector<8x1xi1> to vector<8x128xi1>
      %c15_i32_157 = arith.constant 15 : i32
      %698 = arith.subi %c15_i32_157, %c7_i32 : i32
      %699 = arith.addi %33, %698 : i32
      %700 = vector.broadcast %699 : i32 to vector<8x1xi32>
      %701 = arith.cmpi slt, %700, %8 : vector<8x1xi32>
      %702 = vector.shape_cast %701 : vector<8x1xi1> to vector<8x1xi1>
      %703 = vector.broadcast %702 : vector<8x1xi1> to vector<8x128xi1>
      %704 = arith.select %697, %661, %620 : vector<8x128xi1>, vector<8x128xf32>
      %705 = arith.select %697, %659, %621 : vector<8x128xi1>, vector<8x128xf32>
      %706 = arith.truncf %661 : vector<8x128xf32> to vector<8x128xbf16>
      %707 = arith.select %697, %706, %623 : vector<8x128xi1>, vector<8x128xbf16>
      %708 = arith.maximumf %625, %661 : vector<8x128xf32>
      %709 = arith.select %697, %708, %625 : vector<8x128xi1>, vector<8x128xf32>
      %710 = arith.select %703, %692, %626 : vector<8x128xi1>, vector<8x128xf32>
      %711 = arith.select %703, %690, %627 : vector<8x128xi1>, vector<8x128xf32>
      %712 = arith.truncf %692 : vector<8x128xf32> to vector<8x128xbf16>
      %713 = arith.select %703, %712, %629 : vector<8x128xi1>, vector<8x128xbf16>
      %714 = arith.maximumf %631, %692 : vector<8x128xf32>
      %715 = arith.select %703, %714, %631 : vector<8x128xi1>, vector<8x128xf32>
      %c8_i32 = arith.constant 8 : i32
      %716 = arith.index_cast %c8_i32 : i32 to index
      %c0_158 = arith.constant 0 : index
      %c0_159 = arith.constant 0 : index
      %717 = vector.load %arg14[%716, %c0_158, %c0_159] : memref<16x8x512xf32, #tpu.memory_space<vmem>>, vector<1x8x512xf32>
      %718 = vector.shape_cast %717 : vector<1x8x512xf32> to vector<8x512xf32>
      %cst_160 = arith.constant dense<0.000000e+00> : vector<8x512xf32>
      %719 = tpu.matmul %707, %9, %cst_160 {dimension_numbers = #tpu.dot_dimension_numbers<[1], [0], [0], [1], [0, 0, 1, 1], [], []>} : vector<8x128xbf16>, vector<128x512xbf16>, vector<8x512xf32> -> vector<8x512xf32>
      %720 = arith.addf %719, %718 : vector<8x512xf32>
      %721 = vector.extract_strided_slice %720 {offsets = [0, 0], sizes = [8, 128], strides = [1, 1]} : vector<8x512xf32> to vector<8x128xf32>
      %722 = arith.negf %721 : vector<8x128xf32>
      %723 = math.exp %722 : vector<8x128xf32>
      %cst_161 = arith.constant 1.000000e+00 : f32
      %724 = vector.broadcast %cst_161 : f32 to vector<8x128xf32>
      %725 = arith.addf %724, %723 : vector<8x128xf32>
      %726 = arith.divf %724, %725 : vector<8x128xf32>
      %727 = vector.extract_strided_slice %720 {offsets = [0, 128], sizes = [8, 128], strides = [1, 1]} : vector<8x512xf32> to vector<8x128xf32>
      %728 = arith.negf %727 : vector<8x128xf32>
      %729 = math.exp %728 : vector<8x128xf32>
      %cst_162 = arith.constant 1.000000e+00 : f32
      %730 = vector.broadcast %cst_162 : f32 to vector<8x128xf32>
      %731 = arith.addf %730, %729 : vector<8x128xf32>
      %732 = arith.divf %730, %731 : vector<8x128xf32>
      %733 = vector.extract_strided_slice %720 {offsets = [0, 256], sizes = [8, 128], strides = [1, 1]} : vector<8x512xf32> to vector<8x128xf32>
      %734 = math.tanh %733 : vector<8x128xf32>
      %735 = vector.extract_strided_slice %720 {offsets = [0, 384], sizes = [8, 128], strides = [1, 1]} : vector<8x512xf32> to vector<8x128xf32>
      %736 = arith.negf %735 : vector<8x128xf32>
      %737 = math.exp %736 : vector<8x128xf32>
      %cst_163 = arith.constant 1.000000e+00 : f32
      %738 = vector.broadcast %cst_163 : f32 to vector<8x128xf32>
      %739 = arith.addf %738, %737 : vector<8x128xf32>
      %740 = arith.divf %738, %739 : vector<8x128xf32>
      %741 = arith.mulf %732, %705 : vector<8x128xf32>
      %742 = arith.mulf %726, %734 : vector<8x128xf32>
      %743 = arith.addf %741, %742 : vector<8x128xf32>
      %744 = math.tanh %743 : vector<8x128xf32>
      %745 = arith.mulf %740, %744 : vector<8x128xf32>
      %c15_i32_164 = arith.constant 15 : i32
      %746 = arith.subi %c15_i32_164, %c8_i32 : i32
      %747 = arith.index_cast %746 : i32 to index
      %c0_165 = arith.constant 0 : index
      %c0_166 = arith.constant 0 : index
      %748 = vector.load %arg15[%747, %c0_165, %c0_166] : memref<16x8x512xf32, #tpu.memory_space<vmem>>, vector<1x8x512xf32>
      %749 = vector.shape_cast %748 : vector<1x8x512xf32> to vector<8x512xf32>
      %cst_167 = arith.constant dense<0.000000e+00> : vector<8x512xf32>
      %750 = tpu.matmul %713, %10, %cst_167 {dimension_numbers = #tpu.dot_dimension_numbers<[1], [0], [0], [1], [0, 0, 1, 1], [], []>} : vector<8x128xbf16>, vector<128x512xbf16>, vector<8x512xf32> -> vector<8x512xf32>
      %751 = arith.addf %750, %749 : vector<8x512xf32>
      %752 = vector.extract_strided_slice %751 {offsets = [0, 0], sizes = [8, 128], strides = [1, 1]} : vector<8x512xf32> to vector<8x128xf32>
      %753 = arith.negf %752 : vector<8x128xf32>
      %754 = math.exp %753 : vector<8x128xf32>
      %cst_168 = arith.constant 1.000000e+00 : f32
      %755 = vector.broadcast %cst_168 : f32 to vector<8x128xf32>
      %756 = arith.addf %755, %754 : vector<8x128xf32>
      %757 = arith.divf %755, %756 : vector<8x128xf32>
      %758 = vector.extract_strided_slice %751 {offsets = [0, 128], sizes = [8, 128], strides = [1, 1]} : vector<8x512xf32> to vector<8x128xf32>
      %759 = arith.negf %758 : vector<8x128xf32>
      %760 = math.exp %759 : vector<8x128xf32>
      %cst_169 = arith.constant 1.000000e+00 : f32
      %761 = vector.broadcast %cst_169 : f32 to vector<8x128xf32>
      %762 = arith.addf %761, %760 : vector<8x128xf32>
      %763 = arith.divf %761, %762 : vector<8x128xf32>
      %764 = vector.extract_strided_slice %751 {offsets = [0, 256], sizes = [8, 128], strides = [1, 1]} : vector<8x512xf32> to vector<8x128xf32>
      %765 = math.tanh %764 : vector<8x128xf32>
      %766 = vector.extract_strided_slice %751 {offsets = [0, 384], sizes = [8, 128], strides = [1, 1]} : vector<8x512xf32> to vector<8x128xf32>
      %767 = arith.negf %766 : vector<8x128xf32>
      %768 = math.exp %767 : vector<8x128xf32>
      %cst_170 = arith.constant 1.000000e+00 : f32
      %769 = vector.broadcast %cst_170 : f32 to vector<8x128xf32>
      %770 = arith.addf %769, %768 : vector<8x128xf32>
      %771 = arith.divf %769, %770 : vector<8x128xf32>
      %772 = arith.mulf %763, %711 : vector<8x128xf32>
      %773 = arith.mulf %757, %765 : vector<8x128xf32>
      %774 = arith.addf %772, %773 : vector<8x128xf32>
      %775 = math.tanh %774 : vector<8x128xf32>
      %776 = arith.mulf %771, %775 : vector<8x128xf32>
      %777 = arith.addi %32, %c8_i32 : i32
      %778 = vector.broadcast %777 : i32 to vector<8x1xi32>
      %779 = arith.cmpi slt, %778, %8 : vector<8x1xi32>
      %780 = vector.shape_cast %779 : vector<8x1xi1> to vector<8x1xi1>
      %781 = vector.broadcast %780 : vector<8x1xi1> to vector<8x128xi1>
      %c15_i32_171 = arith.constant 15 : i32
      %782 = arith.subi %c15_i32_171, %c8_i32 : i32
      %783 = arith.addi %33, %782 : i32
      %784 = vector.broadcast %783 : i32 to vector<8x1xi32>
      %785 = arith.cmpi slt, %784, %8 : vector<8x1xi32>
      %786 = vector.shape_cast %785 : vector<8x1xi1> to vector<8x1xi1>
      %787 = vector.broadcast %786 : vector<8x1xi1> to vector<8x128xi1>
      %788 = arith.select %781, %745, %704 : vector<8x128xi1>, vector<8x128xf32>
      %789 = arith.select %781, %743, %705 : vector<8x128xi1>, vector<8x128xf32>
      %790 = arith.truncf %745 : vector<8x128xf32> to vector<8x128xbf16>
      %791 = arith.select %781, %790, %707 : vector<8x128xi1>, vector<8x128xbf16>
      %792 = arith.maximumf %709, %745 : vector<8x128xf32>
      %793 = arith.select %781, %792, %709 : vector<8x128xi1>, vector<8x128xf32>
      %794 = arith.select %787, %776, %710 : vector<8x128xi1>, vector<8x128xf32>
      %795 = arith.select %787, %774, %711 : vector<8x128xi1>, vector<8x128xf32>
      %796 = arith.truncf %776 : vector<8x128xf32> to vector<8x128xbf16>
      %797 = arith.select %787, %796, %713 : vector<8x128xi1>, vector<8x128xbf16>
      %798 = arith.maximumf %715, %776 : vector<8x128xf32>
      %799 = arith.select %787, %798, %715 : vector<8x128xi1>, vector<8x128xf32>
      %c9_i32 = arith.constant 9 : i32
      %800 = arith.index_cast %c9_i32 : i32 to index
      %c0_172 = arith.constant 0 : index
      %c0_173 = arith.constant 0 : index
      %801 = vector.load %arg14[%800, %c0_172, %c0_173] : memref<16x8x512xf32, #tpu.memory_space<vmem>>, vector<1x8x512xf32>
      %802 = vector.shape_cast %801 : vector<1x8x512xf32> to vector<8x512xf32>
      %cst_174 = arith.constant dense<0.000000e+00> : vector<8x512xf32>
      %803 = tpu.matmul %791, %9, %cst_174 {dimension_numbers = #tpu.dot_dimension_numbers<[1], [0], [0], [1], [0, 0, 1, 1], [], []>} : vector<8x128xbf16>, vector<128x512xbf16>, vector<8x512xf32> -> vector<8x512xf32>
      %804 = arith.addf %803, %802 : vector<8x512xf32>
      %805 = vector.extract_strided_slice %804 {offsets = [0, 0], sizes = [8, 128], strides = [1, 1]} : vector<8x512xf32> to vector<8x128xf32>
      %806 = arith.negf %805 : vector<8x128xf32>
      %807 = math.exp %806 : vector<8x128xf32>
      %cst_175 = arith.constant 1.000000e+00 : f32
      %808 = vector.broadcast %cst_175 : f32 to vector<8x128xf32>
      %809 = arith.addf %808, %807 : vector<8x128xf32>
      %810 = arith.divf %808, %809 : vector<8x128xf32>
      %811 = vector.extract_strided_slice %804 {offsets = [0, 128], sizes = [8, 128], strides = [1, 1]} : vector<8x512xf32> to vector<8x128xf32>
      %812 = arith.negf %811 : vector<8x128xf32>
      %813 = math.exp %812 : vector<8x128xf32>
      %cst_176 = arith.constant 1.000000e+00 : f32
      %814 = vector.broadcast %cst_176 : f32 to vector<8x128xf32>
      %815 = arith.addf %814, %813 : vector<8x128xf32>
      %816 = arith.divf %814, %815 : vector<8x128xf32>
      %817 = vector.extract_strided_slice %804 {offsets = [0, 256], sizes = [8, 128], strides = [1, 1]} : vector<8x512xf32> to vector<8x128xf32>
      %818 = math.tanh %817 : vector<8x128xf32>
      %819 = vector.extract_strided_slice %804 {offsets = [0, 384], sizes = [8, 128], strides = [1, 1]} : vector<8x512xf32> to vector<8x128xf32>
      %820 = arith.negf %819 : vector<8x128xf32>
      %821 = math.exp %820 : vector<8x128xf32>
      %cst_177 = arith.constant 1.000000e+00 : f32
      %822 = vector.broadcast %cst_177 : f32 to vector<8x128xf32>
      %823 = arith.addf %822, %821 : vector<8x128xf32>
      %824 = arith.divf %822, %823 : vector<8x128xf32>
      %825 = arith.mulf %816, %789 : vector<8x128xf32>
      %826 = arith.mulf %810, %818 : vector<8x128xf32>
      %827 = arith.addf %825, %826 : vector<8x128xf32>
      %828 = math.tanh %827 : vector<8x128xf32>
      %829 = arith.mulf %824, %828 : vector<8x128xf32>
      %c15_i32_178 = arith.constant 15 : i32
      %830 = arith.subi %c15_i32_178, %c9_i32 : i32
      %831 = arith.index_cast %830 : i32 to index
      %c0_179 = arith.constant 0 : index
      %c0_180 = arith.constant 0 : index
      %832 = vector.load %arg15[%831, %c0_179, %c0_180] : memref<16x8x512xf32, #tpu.memory_space<vmem>>, vector<1x8x512xf32>
      %833 = vector.shape_cast %832 : vector<1x8x512xf32> to vector<8x512xf32>
      %cst_181 = arith.constant dense<0.000000e+00> : vector<8x512xf32>
      %834 = tpu.matmul %797, %10, %cst_181 {dimension_numbers = #tpu.dot_dimension_numbers<[1], [0], [0], [1], [0, 0, 1, 1], [], []>} : vector<8x128xbf16>, vector<128x512xbf16>, vector<8x512xf32> -> vector<8x512xf32>
      %835 = arith.addf %834, %833 : vector<8x512xf32>
      %836 = vector.extract_strided_slice %835 {offsets = [0, 0], sizes = [8, 128], strides = [1, 1]} : vector<8x512xf32> to vector<8x128xf32>
      %837 = arith.negf %836 : vector<8x128xf32>
      %838 = math.exp %837 : vector<8x128xf32>
      %cst_182 = arith.constant 1.000000e+00 : f32
      %839 = vector.broadcast %cst_182 : f32 to vector<8x128xf32>
      %840 = arith.addf %839, %838 : vector<8x128xf32>
      %841 = arith.divf %839, %840 : vector<8x128xf32>
      %842 = vector.extract_strided_slice %835 {offsets = [0, 128], sizes = [8, 128], strides = [1, 1]} : vector<8x512xf32> to vector<8x128xf32>
      %843 = arith.negf %842 : vector<8x128xf32>
      %844 = math.exp %843 : vector<8x128xf32>
      %cst_183 = arith.constant 1.000000e+00 : f32
      %845 = vector.broadcast %cst_183 : f32 to vector<8x128xf32>
      %846 = arith.addf %845, %844 : vector<8x128xf32>
      %847 = arith.divf %845, %846 : vector<8x128xf32>
      %848 = vector.extract_strided_slice %835 {offsets = [0, 256], sizes = [8, 128], strides = [1, 1]} : vector<8x512xf32> to vector<8x128xf32>
      %849 = math.tanh %848 : vector<8x128xf32>
      %850 = vector.extract_strided_slice %835 {offsets = [0, 384], sizes = [8, 128], strides = [1, 1]} : vector<8x512xf32> to vector<8x128xf32>
      %851 = arith.negf %850 : vector<8x128xf32>
      %852 = math.exp %851 : vector<8x128xf32>
      %cst_184 = arith.constant 1.000000e+00 : f32
      %853 = vector.broadcast %cst_184 : f32 to vector<8x128xf32>
      %854 = arith.addf %853, %852 : vector<8x128xf32>
      %855 = arith.divf %853, %854 : vector<8x128xf32>
      %856 = arith.mulf %847, %795 : vector<8x128xf32>
      %857 = arith.mulf %841, %849 : vector<8x128xf32>
      %858 = arith.addf %856, %857 : vector<8x128xf32>
      %859 = math.tanh %858 : vector<8x128xf32>
      %860 = arith.mulf %855, %859 : vector<8x128xf32>
      %861 = arith.addi %32, %c9_i32 : i32
      %862 = vector.broadcast %861 : i32 to vector<8x1xi32>
      %863 = arith.cmpi slt, %862, %8 : vector<8x1xi32>
      %864 = vector.shape_cast %863 : vector<8x1xi1> to vector<8x1xi1>
      %865 = vector.broadcast %864 : vector<8x1xi1> to vector<8x128xi1>
      %c15_i32_185 = arith.constant 15 : i32
      %866 = arith.subi %c15_i32_185, %c9_i32 : i32
      %867 = arith.addi %33, %866 : i32
      %868 = vector.broadcast %867 : i32 to vector<8x1xi32>
      %869 = arith.cmpi slt, %868, %8 : vector<8x1xi32>
      %870 = vector.shape_cast %869 : vector<8x1xi1> to vector<8x1xi1>
      %871 = vector.broadcast %870 : vector<8x1xi1> to vector<8x128xi1>
      %872 = arith.select %865, %829, %788 : vector<8x128xi1>, vector<8x128xf32>
      %873 = arith.select %865, %827, %789 : vector<8x128xi1>, vector<8x128xf32>
      %874 = arith.truncf %829 : vector<8x128xf32> to vector<8x128xbf16>
      %875 = arith.select %865, %874, %791 : vector<8x128xi1>, vector<8x128xbf16>
      %876 = arith.maximumf %793, %829 : vector<8x128xf32>
      %877 = arith.select %865, %876, %793 : vector<8x128xi1>, vector<8x128xf32>
      %878 = arith.select %871, %860, %794 : vector<8x128xi1>, vector<8x128xf32>
      %879 = arith.select %871, %858, %795 : vector<8x128xi1>, vector<8x128xf32>
      %880 = arith.truncf %860 : vector<8x128xf32> to vector<8x128xbf16>
      %881 = arith.select %871, %880, %797 : vector<8x128xi1>, vector<8x128xbf16>
      %882 = arith.maximumf %799, %860 : vector<8x128xf32>
      %883 = arith.select %871, %882, %799 : vector<8x128xi1>, vector<8x128xf32>
      %c10_i32 = arith.constant 10 : i32
      %884 = arith.index_cast %c10_i32 : i32 to index
      %c0_186 = arith.constant 0 : index
      %c0_187 = arith.constant 0 : index
      %885 = vector.load %arg14[%884, %c0_186, %c0_187] : memref<16x8x512xf32, #tpu.memory_space<vmem>>, vector<1x8x512xf32>
      %886 = vector.shape_cast %885 : vector<1x8x512xf32> to vector<8x512xf32>
      %cst_188 = arith.constant dense<0.000000e+00> : vector<8x512xf32>
      %887 = tpu.matmul %875, %9, %cst_188 {dimension_numbers = #tpu.dot_dimension_numbers<[1], [0], [0], [1], [0, 0, 1, 1], [], []>} : vector<8x128xbf16>, vector<128x512xbf16>, vector<8x512xf32> -> vector<8x512xf32>
      %888 = arith.addf %887, %886 : vector<8x512xf32>
      %889 = vector.extract_strided_slice %888 {offsets = [0, 0], sizes = [8, 128], strides = [1, 1]} : vector<8x512xf32> to vector<8x128xf32>
      %890 = arith.negf %889 : vector<8x128xf32>
      %891 = math.exp %890 : vector<8x128xf32>
      %cst_189 = arith.constant 1.000000e+00 : f32
      %892 = vector.broadcast %cst_189 : f32 to vector<8x128xf32>
      %893 = arith.addf %892, %891 : vector<8x128xf32>
      %894 = arith.divf %892, %893 : vector<8x128xf32>
      %895 = vector.extract_strided_slice %888 {offsets = [0, 128], sizes = [8, 128], strides = [1, 1]} : vector<8x512xf32> to vector<8x128xf32>
      %896 = arith.negf %895 : vector<8x128xf32>
      %897 = math.exp %896 : vector<8x128xf32>
      %cst_190 = arith.constant 1.000000e+00 : f32
      %898 = vector.broadcast %cst_190 : f32 to vector<8x128xf32>
      %899 = arith.addf %898, %897 : vector<8x128xf32>
      %900 = arith.divf %898, %899 : vector<8x128xf32>
      %901 = vector.extract_strided_slice %888 {offsets = [0, 256], sizes = [8, 128], strides = [1, 1]} : vector<8x512xf32> to vector<8x128xf32>
      %902 = math.tanh %901 : vector<8x128xf32>
      %903 = vector.extract_strided_slice %888 {offsets = [0, 384], sizes = [8, 128], strides = [1, 1]} : vector<8x512xf32> to vector<8x128xf32>
      %904 = arith.negf %903 : vector<8x128xf32>
      %905 = math.exp %904 : vector<8x128xf32>
      %cst_191 = arith.constant 1.000000e+00 : f32
      %906 = vector.broadcast %cst_191 : f32 to vector<8x128xf32>
      %907 = arith.addf %906, %905 : vector<8x128xf32>
      %908 = arith.divf %906, %907 : vector<8x128xf32>
      %909 = arith.mulf %900, %873 : vector<8x128xf32>
      %910 = arith.mulf %894, %902 : vector<8x128xf32>
      %911 = arith.addf %909, %910 : vector<8x128xf32>
      %912 = math.tanh %911 : vector<8x128xf32>
      %913 = arith.mulf %908, %912 : vector<8x128xf32>
      %c15_i32_192 = arith.constant 15 : i32
      %914 = arith.subi %c15_i32_192, %c10_i32 : i32
      %915 = arith.index_cast %914 : i32 to index
      %c0_193 = arith.constant 0 : index
      %c0_194 = arith.constant 0 : index
      %916 = vector.load %arg15[%915, %c0_193, %c0_194] : memref<16x8x512xf32, #tpu.memory_space<vmem>>, vector<1x8x512xf32>
      %917 = vector.shape_cast %916 : vector<1x8x512xf32> to vector<8x512xf32>
      %cst_195 = arith.constant dense<0.000000e+00> : vector<8x512xf32>
      %918 = tpu.matmul %881, %10, %cst_195 {dimension_numbers = #tpu.dot_dimension_numbers<[1], [0], [0], [1], [0, 0, 1, 1], [], []>} : vector<8x128xbf16>, vector<128x512xbf16>, vector<8x512xf32> -> vector<8x512xf32>
      %919 = arith.addf %918, %917 : vector<8x512xf32>
      %920 = vector.extract_strided_slice %919 {offsets = [0, 0], sizes = [8, 128], strides = [1, 1]} : vector<8x512xf32> to vector<8x128xf32>
      %921 = arith.negf %920 : vector<8x128xf32>
      %922 = math.exp %921 : vector<8x128xf32>
      %cst_196 = arith.constant 1.000000e+00 : f32
      %923 = vector.broadcast %cst_196 : f32 to vector<8x128xf32>
      %924 = arith.addf %923, %922 : vector<8x128xf32>
      %925 = arith.divf %923, %924 : vector<8x128xf32>
      %926 = vector.extract_strided_slice %919 {offsets = [0, 128], sizes = [8, 128], strides = [1, 1]} : vector<8x512xf32> to vector<8x128xf32>
      %927 = arith.negf %926 : vector<8x128xf32>
      %928 = math.exp %927 : vector<8x128xf32>
      %cst_197 = arith.constant 1.000000e+00 : f32
      %929 = vector.broadcast %cst_197 : f32 to vector<8x128xf32>
      %930 = arith.addf %929, %928 : vector<8x128xf32>
      %931 = arith.divf %929, %930 : vector<8x128xf32>
      %932 = vector.extract_strided_slice %919 {offsets = [0, 256], sizes = [8, 128], strides = [1, 1]} : vector<8x512xf32> to vector<8x128xf32>
      %933 = math.tanh %932 : vector<8x128xf32>
      %934 = vector.extract_strided_slice %919 {offsets = [0, 384], sizes = [8, 128], strides = [1, 1]} : vector<8x512xf32> to vector<8x128xf32>
      %935 = arith.negf %934 : vector<8x128xf32>
      %936 = math.exp %935 : vector<8x128xf32>
      %cst_198 = arith.constant 1.000000e+00 : f32
      %937 = vector.broadcast %cst_198 : f32 to vector<8x128xf32>
      %938 = arith.addf %937, %936 : vector<8x128xf32>
      %939 = arith.divf %937, %938 : vector<8x128xf32>
      %940 = arith.mulf %931, %879 : vector<8x128xf32>
      %941 = arith.mulf %925, %933 : vector<8x128xf32>
      %942 = arith.addf %940, %941 : vector<8x128xf32>
      %943 = math.tanh %942 : vector<8x128xf32>
      %944 = arith.mulf %939, %943 : vector<8x128xf32>
      %945 = arith.addi %32, %c10_i32 : i32
      %946 = vector.broadcast %945 : i32 to vector<8x1xi32>
      %947 = arith.cmpi slt, %946, %8 : vector<8x1xi32>
      %948 = vector.shape_cast %947 : vector<8x1xi1> to vector<8x1xi1>
      %949 = vector.broadcast %948 : vector<8x1xi1> to vector<8x128xi1>
      %c15_i32_199 = arith.constant 15 : i32
      %950 = arith.subi %c15_i32_199, %c10_i32 : i32
      %951 = arith.addi %33, %950 : i32
      %952 = vector.broadcast %951 : i32 to vector<8x1xi32>
      %953 = arith.cmpi slt, %952, %8 : vector<8x1xi32>
      %954 = vector.shape_cast %953 : vector<8x1xi1> to vector<8x1xi1>
      %955 = vector.broadcast %954 : vector<8x1xi1> to vector<8x128xi1>
      %956 = arith.select %949, %913, %872 : vector<8x128xi1>, vector<8x128xf32>
      %957 = arith.select %949, %911, %873 : vector<8x128xi1>, vector<8x128xf32>
      %958 = arith.truncf %913 : vector<8x128xf32> to vector<8x128xbf16>
      %959 = arith.select %949, %958, %875 : vector<8x128xi1>, vector<8x128xbf16>
      %960 = arith.maximumf %877, %913 : vector<8x128xf32>
      %961 = arith.select %949, %960, %877 : vector<8x128xi1>, vector<8x128xf32>
      %962 = arith.select %955, %944, %878 : vector<8x128xi1>, vector<8x128xf32>
      %963 = arith.select %955, %942, %879 : vector<8x128xi1>, vector<8x128xf32>
      %964 = arith.truncf %944 : vector<8x128xf32> to vector<8x128xbf16>
      %965 = arith.select %955, %964, %881 : vector<8x128xi1>, vector<8x128xbf16>
      %966 = arith.maximumf %883, %944 : vector<8x128xf32>
      %967 = arith.select %955, %966, %883 : vector<8x128xi1>, vector<8x128xf32>
      %c11_i32 = arith.constant 11 : i32
      %968 = arith.index_cast %c11_i32 : i32 to index
      %c0_200 = arith.constant 0 : index
      %c0_201 = arith.constant 0 : index
      %969 = vector.load %arg14[%968, %c0_200, %c0_201] : memref<16x8x512xf32, #tpu.memory_space<vmem>>, vector<1x8x512xf32>
      %970 = vector.shape_cast %969 : vector<1x8x512xf32> to vector<8x512xf32>
      %cst_202 = arith.constant dense<0.000000e+00> : vector<8x512xf32>
      %971 = tpu.matmul %959, %9, %cst_202 {dimension_numbers = #tpu.dot_dimension_numbers<[1], [0], [0], [1], [0, 0, 1, 1], [], []>} : vector<8x128xbf16>, vector<128x512xbf16>, vector<8x512xf32> -> vector<8x512xf32>
      %972 = arith.addf %971, %970 : vector<8x512xf32>
      %973 = vector.extract_strided_slice %972 {offsets = [0, 0], sizes = [8, 128], strides = [1, 1]} : vector<8x512xf32> to vector<8x128xf32>
      %974 = arith.negf %973 : vector<8x128xf32>
      %975 = math.exp %974 : vector<8x128xf32>
      %cst_203 = arith.constant 1.000000e+00 : f32
      %976 = vector.broadcast %cst_203 : f32 to vector<8x128xf32>
      %977 = arith.addf %976, %975 : vector<8x128xf32>
      %978 = arith.divf %976, %977 : vector<8x128xf32>
      %979 = vector.extract_strided_slice %972 {offsets = [0, 128], sizes = [8, 128], strides = [1, 1]} : vector<8x512xf32> to vector<8x128xf32>
      %980 = arith.negf %979 : vector<8x128xf32>
      %981 = math.exp %980 : vector<8x128xf32>
      %cst_204 = arith.constant 1.000000e+00 : f32
      %982 = vector.broadcast %cst_204 : f32 to vector<8x128xf32>
      %983 = arith.addf %982, %981 : vector<8x128xf32>
      %984 = arith.divf %982, %983 : vector<8x128xf32>
      %985 = vector.extract_strided_slice %972 {offsets = [0, 256], sizes = [8, 128], strides = [1, 1]} : vector<8x512xf32> to vector<8x128xf32>
      %986 = math.tanh %985 : vector<8x128xf32>
      %987 = vector.extract_strided_slice %972 {offsets = [0, 384], sizes = [8, 128], strides = [1, 1]} : vector<8x512xf32> to vector<8x128xf32>
      %988 = arith.negf %987 : vector<8x128xf32>
      %989 = math.exp %988 : vector<8x128xf32>
      %cst_205 = arith.constant 1.000000e+00 : f32
      %990 = vector.broadcast %cst_205 : f32 to vector<8x128xf32>
      %991 = arith.addf %990, %989 : vector<8x128xf32>
      %992 = arith.divf %990, %991 : vector<8x128xf32>
      %993 = arith.mulf %984, %957 : vector<8x128xf32>
      %994 = arith.mulf %978, %986 : vector<8x128xf32>
      %995 = arith.addf %993, %994 : vector<8x128xf32>
      %996 = math.tanh %995 : vector<8x128xf32>
      %997 = arith.mulf %992, %996 : vector<8x128xf32>
      %c15_i32_206 = arith.constant 15 : i32
      %998 = arith.subi %c15_i32_206, %c11_i32 : i32
      %999 = arith.index_cast %998 : i32 to index
      %c0_207 = arith.constant 0 : index
      %c0_208 = arith.constant 0 : index
      %1000 = vector.load %arg15[%999, %c0_207, %c0_208] : memref<16x8x512xf32, #tpu.memory_space<vmem>>, vector<1x8x512xf32>
      %1001 = vector.shape_cast %1000 : vector<1x8x512xf32> to vector<8x512xf32>
      %cst_209 = arith.constant dense<0.000000e+00> : vector<8x512xf32>
      %1002 = tpu.matmul %965, %10, %cst_209 {dimension_numbers = #tpu.dot_dimension_numbers<[1], [0], [0], [1], [0, 0, 1, 1], [], []>} : vector<8x128xbf16>, vector<128x512xbf16>, vector<8x512xf32> -> vector<8x512xf32>
      %1003 = arith.addf %1002, %1001 : vector<8x512xf32>
      %1004 = vector.extract_strided_slice %1003 {offsets = [0, 0], sizes = [8, 128], strides = [1, 1]} : vector<8x512xf32> to vector<8x128xf32>
      %1005 = arith.negf %1004 : vector<8x128xf32>
      %1006 = math.exp %1005 : vector<8x128xf32>
      %cst_210 = arith.constant 1.000000e+00 : f32
      %1007 = vector.broadcast %cst_210 : f32 to vector<8x128xf32>
      %1008 = arith.addf %1007, %1006 : vector<8x128xf32>
      %1009 = arith.divf %1007, %1008 : vector<8x128xf32>
      %1010 = vector.extract_strided_slice %1003 {offsets = [0, 128], sizes = [8, 128], strides = [1, 1]} : vector<8x512xf32> to vector<8x128xf32>
      %1011 = arith.negf %1010 : vector<8x128xf32>
      %1012 = math.exp %1011 : vector<8x128xf32>
      %cst_211 = arith.constant 1.000000e+00 : f32
      %1013 = vector.broadcast %cst_211 : f32 to vector<8x128xf32>
      %1014 = arith.addf %1013, %1012 : vector<8x128xf32>
      %1015 = arith.divf %1013, %1014 : vector<8x128xf32>
      %1016 = vector.extract_strided_slice %1003 {offsets = [0, 256], sizes = [8, 128], strides = [1, 1]} : vector<8x512xf32> to vector<8x128xf32>
      %1017 = math.tanh %1016 : vector<8x128xf32>
      %1018 = vector.extract_strided_slice %1003 {offsets = [0, 384], sizes = [8, 128], strides = [1, 1]} : vector<8x512xf32> to vector<8x128xf32>
      %1019 = arith.negf %1018 : vector<8x128xf32>
      %1020 = math.exp %1019 : vector<8x128xf32>
      %cst_212 = arith.constant 1.000000e+00 : f32
      %1021 = vector.broadcast %cst_212 : f32 to vector<8x128xf32>
      %1022 = arith.addf %1021, %1020 : vector<8x128xf32>
      %1023 = arith.divf %1021, %1022 : vector<8x128xf32>
      %1024 = arith.mulf %1015, %963 : vector<8x128xf32>
      %1025 = arith.mulf %1009, %1017 : vector<8x128xf32>
      %1026 = arith.addf %1024, %1025 : vector<8x128xf32>
      %1027 = math.tanh %1026 : vector<8x128xf32>
      %1028 = arith.mulf %1023, %1027 : vector<8x128xf32>
      %1029 = arith.addi %32, %c11_i32 : i32
      %1030 = vector.broadcast %1029 : i32 to vector<8x1xi32>
      %1031 = arith.cmpi slt, %1030, %8 : vector<8x1xi32>
      %1032 = vector.shape_cast %1031 : vector<8x1xi1> to vector<8x1xi1>
      %1033 = vector.broadcast %1032 : vector<8x1xi1> to vector<8x128xi1>
      %c15_i32_213 = arith.constant 15 : i32
      %1034 = arith.subi %c15_i32_213, %c11_i32 : i32
      %1035 = arith.addi %33, %1034 : i32
      %1036 = vector.broadcast %1035 : i32 to vector<8x1xi32>
      %1037 = arith.cmpi slt, %1036, %8 : vector<8x1xi32>
      %1038 = vector.shape_cast %1037 : vector<8x1xi1> to vector<8x1xi1>
      %1039 = vector.broadcast %1038 : vector<8x1xi1> to vector<8x128xi1>
      %1040 = arith.select %1033, %997, %956 : vector<8x128xi1>, vector<8x128xf32>
      %1041 = arith.select %1033, %995, %957 : vector<8x128xi1>, vector<8x128xf32>
      %1042 = arith.truncf %997 : vector<8x128xf32> to vector<8x128xbf16>
      %1043 = arith.select %1033, %1042, %959 : vector<8x128xi1>, vector<8x128xbf16>
      %1044 = arith.maximumf %961, %997 : vector<8x128xf32>
      %1045 = arith.select %1033, %1044, %961 : vector<8x128xi1>, vector<8x128xf32>
      %1046 = arith.select %1039, %1028, %962 : vector<8x128xi1>, vector<8x128xf32>
      %1047 = arith.select %1039, %1026, %963 : vector<8x128xi1>, vector<8x128xf32>
      %1048 = arith.truncf %1028 : vector<8x128xf32> to vector<8x128xbf16>
      %1049 = arith.select %1039, %1048, %965 : vector<8x128xi1>, vector<8x128xbf16>
      %1050 = arith.maximumf %967, %1028 : vector<8x128xf32>
      %1051 = arith.select %1039, %1050, %967 : vector<8x128xi1>, vector<8x128xf32>
      %c12_i32 = arith.constant 12 : i32
      %1052 = arith.index_cast %c12_i32 : i32 to index
      %c0_214 = arith.constant 0 : index
      %c0_215 = arith.constant 0 : index
      %1053 = vector.load %arg14[%1052, %c0_214, %c0_215] : memref<16x8x512xf32, #tpu.memory_space<vmem>>, vector<1x8x512xf32>
      %1054 = vector.shape_cast %1053 : vector<1x8x512xf32> to vector<8x512xf32>
      %cst_216 = arith.constant dense<0.000000e+00> : vector<8x512xf32>
      %1055 = tpu.matmul %1043, %9, %cst_216 {dimension_numbers = #tpu.dot_dimension_numbers<[1], [0], [0], [1], [0, 0, 1, 1], [], []>} : vector<8x128xbf16>, vector<128x512xbf16>, vector<8x512xf32> -> vector<8x512xf32>
      %1056 = arith.addf %1055, %1054 : vector<8x512xf32>
      %1057 = vector.extract_strided_slice %1056 {offsets = [0, 0], sizes = [8, 128], strides = [1, 1]} : vector<8x512xf32> to vector<8x128xf32>
      %1058 = arith.negf %1057 : vector<8x128xf32>
      %1059 = math.exp %1058 : vector<8x128xf32>
      %cst_217 = arith.constant 1.000000e+00 : f32
      %1060 = vector.broadcast %cst_217 : f32 to vector<8x128xf32>
      %1061 = arith.addf %1060, %1059 : vector<8x128xf32>
      %1062 = arith.divf %1060, %1061 : vector<8x128xf32>
      %1063 = vector.extract_strided_slice %1056 {offsets = [0, 128], sizes = [8, 128], strides = [1, 1]} : vector<8x512xf32> to vector<8x128xf32>
      %1064 = arith.negf %1063 : vector<8x128xf32>
      %1065 = math.exp %1064 : vector<8x128xf32>
      %cst_218 = arith.constant 1.000000e+00 : f32
      %1066 = vector.broadcast %cst_218 : f32 to vector<8x128xf32>
      %1067 = arith.addf %1066, %1065 : vector<8x128xf32>
      %1068 = arith.divf %1066, %1067 : vector<8x128xf32>
      %1069 = vector.extract_strided_slice %1056 {offsets = [0, 256], sizes = [8, 128], strides = [1, 1]} : vector<8x512xf32> to vector<8x128xf32>
      %1070 = math.tanh %1069 : vector<8x128xf32>
      %1071 = vector.extract_strided_slice %1056 {offsets = [0, 384], sizes = [8, 128], strides = [1, 1]} : vector<8x512xf32> to vector<8x128xf32>
      %1072 = arith.negf %1071 : vector<8x128xf32>
      %1073 = math.exp %1072 : vector<8x128xf32>
      %cst_219 = arith.constant 1.000000e+00 : f32
      %1074 = vector.broadcast %cst_219 : f32 to vector<8x128xf32>
      %1075 = arith.addf %1074, %1073 : vector<8x128xf32>
      %1076 = arith.divf %1074, %1075 : vector<8x128xf32>
      %1077 = arith.mulf %1068, %1041 : vector<8x128xf32>
      %1078 = arith.mulf %1062, %1070 : vector<8x128xf32>
      %1079 = arith.addf %1077, %1078 : vector<8x128xf32>
      %1080 = math.tanh %1079 : vector<8x128xf32>
      %1081 = arith.mulf %1076, %1080 : vector<8x128xf32>
      %c15_i32_220 = arith.constant 15 : i32
      %1082 = arith.subi %c15_i32_220, %c12_i32 : i32
      %1083 = arith.index_cast %1082 : i32 to index
      %c0_221 = arith.constant 0 : index
      %c0_222 = arith.constant 0 : index
      %1084 = vector.load %arg15[%1083, %c0_221, %c0_222] : memref<16x8x512xf32, #tpu.memory_space<vmem>>, vector<1x8x512xf32>
      %1085 = vector.shape_cast %1084 : vector<1x8x512xf32> to vector<8x512xf32>
      %cst_223 = arith.constant dense<0.000000e+00> : vector<8x512xf32>
      %1086 = tpu.matmul %1049, %10, %cst_223 {dimension_numbers = #tpu.dot_dimension_numbers<[1], [0], [0], [1], [0, 0, 1, 1], [], []>} : vector<8x128xbf16>, vector<128x512xbf16>, vector<8x512xf32> -> vector<8x512xf32>
      %1087 = arith.addf %1086, %1085 : vector<8x512xf32>
      %1088 = vector.extract_strided_slice %1087 {offsets = [0, 0], sizes = [8, 128], strides = [1, 1]} : vector<8x512xf32> to vector<8x128xf32>
      %1089 = arith.negf %1088 : vector<8x128xf32>
      %1090 = math.exp %1089 : vector<8x128xf32>
      %cst_224 = arith.constant 1.000000e+00 : f32
      %1091 = vector.broadcast %cst_224 : f32 to vector<8x128xf32>
      %1092 = arith.addf %1091, %1090 : vector<8x128xf32>
      %1093 = arith.divf %1091, %1092 : vector<8x128xf32>
      %1094 = vector.extract_strided_slice %1087 {offsets = [0, 128], sizes = [8, 128], strides = [1, 1]} : vector<8x512xf32> to vector<8x128xf32>
      %1095 = arith.negf %1094 : vector<8x128xf32>
      %1096 = math.exp %1095 : vector<8x128xf32>
      %cst_225 = arith.constant 1.000000e+00 : f32
      %1097 = vector.broadcast %cst_225 : f32 to vector<8x128xf32>
      %1098 = arith.addf %1097, %1096 : vector<8x128xf32>
      %1099 = arith.divf %1097, %1098 : vector<8x128xf32>
      %1100 = vector.extract_strided_slice %1087 {offsets = [0, 256], sizes = [8, 128], strides = [1, 1]} : vector<8x512xf32> to vector<8x128xf32>
      %1101 = math.tanh %1100 : vector<8x128xf32>
      %1102 = vector.extract_strided_slice %1087 {offsets = [0, 384], sizes = [8, 128], strides = [1, 1]} : vector<8x512xf32> to vector<8x128xf32>
      %1103 = arith.negf %1102 : vector<8x128xf32>
      %1104 = math.exp %1103 : vector<8x128xf32>
      %cst_226 = arith.constant 1.000000e+00 : f32
      %1105 = vector.broadcast %cst_226 : f32 to vector<8x128xf32>
      %1106 = arith.addf %1105, %1104 : vector<8x128xf32>
      %1107 = arith.divf %1105, %1106 : vector<8x128xf32>
      %1108 = arith.mulf %1099, %1047 : vector<8x128xf32>
      %1109 = arith.mulf %1093, %1101 : vector<8x128xf32>
      %1110 = arith.addf %1108, %1109 : vector<8x128xf32>
      %1111 = math.tanh %1110 : vector<8x128xf32>
      %1112 = arith.mulf %1107, %1111 : vector<8x128xf32>
      %1113 = arith.addi %32, %c12_i32 : i32
      %1114 = vector.broadcast %1113 : i32 to vector<8x1xi32>
      %1115 = arith.cmpi slt, %1114, %8 : vector<8x1xi32>
      %1116 = vector.shape_cast %1115 : vector<8x1xi1> to vector<8x1xi1>
      %1117 = vector.broadcast %1116 : vector<8x1xi1> to vector<8x128xi1>
      %c15_i32_227 = arith.constant 15 : i32
      %1118 = arith.subi %c15_i32_227, %c12_i32 : i32
      %1119 = arith.addi %33, %1118 : i32
      %1120 = vector.broadcast %1119 : i32 to vector<8x1xi32>
      %1121 = arith.cmpi slt, %1120, %8 : vector<8x1xi32>
      %1122 = vector.shape_cast %1121 : vector<8x1xi1> to vector<8x1xi1>
      %1123 = vector.broadcast %1122 : vector<8x1xi1> to vector<8x128xi1>
      %1124 = arith.select %1117, %1081, %1040 : vector<8x128xi1>, vector<8x128xf32>
      %1125 = arith.select %1117, %1079, %1041 : vector<8x128xi1>, vector<8x128xf32>
      %1126 = arith.truncf %1081 : vector<8x128xf32> to vector<8x128xbf16>
      %1127 = arith.select %1117, %1126, %1043 : vector<8x128xi1>, vector<8x128xbf16>
      %1128 = arith.maximumf %1045, %1081 : vector<8x128xf32>
      %1129 = arith.select %1117, %1128, %1045 : vector<8x128xi1>, vector<8x128xf32>
      %1130 = arith.select %1123, %1112, %1046 : vector<8x128xi1>, vector<8x128xf32>
      %1131 = arith.select %1123, %1110, %1047 : vector<8x128xi1>, vector<8x128xf32>
      %1132 = arith.truncf %1112 : vector<8x128xf32> to vector<8x128xbf16>
      %1133 = arith.select %1123, %1132, %1049 : vector<8x128xi1>, vector<8x128xbf16>
      %1134 = arith.maximumf %1051, %1112 : vector<8x128xf32>
      %1135 = arith.select %1123, %1134, %1051 : vector<8x128xi1>, vector<8x128xf32>
      %c13_i32 = arith.constant 13 : i32
      %1136 = arith.index_cast %c13_i32 : i32 to index
      %c0_228 = arith.constant 0 : index
      %c0_229 = arith.constant 0 : index
      %1137 = vector.load %arg14[%1136, %c0_228, %c0_229] : memref<16x8x512xf32, #tpu.memory_space<vmem>>, vector<1x8x512xf32>
      %1138 = vector.shape_cast %1137 : vector<1x8x512xf32> to vector<8x512xf32>
      %cst_230 = arith.constant dense<0.000000e+00> : vector<8x512xf32>
      %1139 = tpu.matmul %1127, %9, %cst_230 {dimension_numbers = #tpu.dot_dimension_numbers<[1], [0], [0], [1], [0, 0, 1, 1], [], []>} : vector<8x128xbf16>, vector<128x512xbf16>, vector<8x512xf32> -> vector<8x512xf32>
      %1140 = arith.addf %1139, %1138 : vector<8x512xf32>
      %1141 = vector.extract_strided_slice %1140 {offsets = [0, 0], sizes = [8, 128], strides = [1, 1]} : vector<8x512xf32> to vector<8x128xf32>
      %1142 = arith.negf %1141 : vector<8x128xf32>
      %1143 = math.exp %1142 : vector<8x128xf32>
      %cst_231 = arith.constant 1.000000e+00 : f32
      %1144 = vector.broadcast %cst_231 : f32 to vector<8x128xf32>
      %1145 = arith.addf %1144, %1143 : vector<8x128xf32>
      %1146 = arith.divf %1144, %1145 : vector<8x128xf32>
      %1147 = vector.extract_strided_slice %1140 {offsets = [0, 128], sizes = [8, 128], strides = [1, 1]} : vector<8x512xf32> to vector<8x128xf32>
      %1148 = arith.negf %1147 : vector<8x128xf32>
      %1149 = math.exp %1148 : vector<8x128xf32>
      %cst_232 = arith.constant 1.000000e+00 : f32
      %1150 = vector.broadcast %cst_232 : f32 to vector<8x128xf32>
      %1151 = arith.addf %1150, %1149 : vector<8x128xf32>
      %1152 = arith.divf %1150, %1151 : vector<8x128xf32>
      %1153 = vector.extract_strided_slice %1140 {offsets = [0, 256], sizes = [8, 128], strides = [1, 1]} : vector<8x512xf32> to vector<8x128xf32>
      %1154 = math.tanh %1153 : vector<8x128xf32>
      %1155 = vector.extract_strided_slice %1140 {offsets = [0, 384], sizes = [8, 128], strides = [1, 1]} : vector<8x512xf32> to vector<8x128xf32>
      %1156 = arith.negf %1155 : vector<8x128xf32>
      %1157 = math.exp %1156 : vector<8x128xf32>
      %cst_233 = arith.constant 1.000000e+00 : f32
      %1158 = vector.broadcast %cst_233 : f32 to vector<8x128xf32>
      %1159 = arith.addf %1158, %1157 : vector<8x128xf32>
      %1160 = arith.divf %1158, %1159 : vector<8x128xf32>
      %1161 = arith.mulf %1152, %1125 : vector<8x128xf32>
      %1162 = arith.mulf %1146, %1154 : vector<8x128xf32>
      %1163 = arith.addf %1161, %1162 : vector<8x128xf32>
      %1164 = math.tanh %1163 : vector<8x128xf32>
      %1165 = arith.mulf %1160, %1164 : vector<8x128xf32>
      %c15_i32_234 = arith.constant 15 : i32
      %1166 = arith.subi %c15_i32_234, %c13_i32 : i32
      %1167 = arith.index_cast %1166 : i32 to index
      %c0_235 = arith.constant 0 : index
      %c0_236 = arith.constant 0 : index
      %1168 = vector.load %arg15[%1167, %c0_235, %c0_236] : memref<16x8x512xf32, #tpu.memory_space<vmem>>, vector<1x8x512xf32>
      %1169 = vector.shape_cast %1168 : vector<1x8x512xf32> to vector<8x512xf32>
      %cst_237 = arith.constant dense<0.000000e+00> : vector<8x512xf32>
      %1170 = tpu.matmul %1133, %10, %cst_237 {dimension_numbers = #tpu.dot_dimension_numbers<[1], [0], [0], [1], [0, 0, 1, 1], [], []>} : vector<8x128xbf16>, vector<128x512xbf16>, vector<8x512xf32> -> vector<8x512xf32>
      %1171 = arith.addf %1170, %1169 : vector<8x512xf32>
      %1172 = vector.extract_strided_slice %1171 {offsets = [0, 0], sizes = [8, 128], strides = [1, 1]} : vector<8x512xf32> to vector<8x128xf32>
      %1173 = arith.negf %1172 : vector<8x128xf32>
      %1174 = math.exp %1173 : vector<8x128xf32>
      %cst_238 = arith.constant 1.000000e+00 : f32
      %1175 = vector.broadcast %cst_238 : f32 to vector<8x128xf32>
      %1176 = arith.addf %1175, %1174 : vector<8x128xf32>
      %1177 = arith.divf %1175, %1176 : vector<8x128xf32>
      %1178 = vector.extract_strided_slice %1171 {offsets = [0, 128], sizes = [8, 128], strides = [1, 1]} : vector<8x512xf32> to vector<8x128xf32>
      %1179 = arith.negf %1178 : vector<8x128xf32>
      %1180 = math.exp %1179 : vector<8x128xf32>
      %cst_239 = arith.constant 1.000000e+00 : f32
      %1181 = vector.broadcast %cst_239 : f32 to vector<8x128xf32>
      %1182 = arith.addf %1181, %1180 : vector<8x128xf32>
      %1183 = arith.divf %1181, %1182 : vector<8x128xf32>
      %1184 = vector.extract_strided_slice %1171 {offsets = [0, 256], sizes = [8, 128], strides = [1, 1]} : vector<8x512xf32> to vector<8x128xf32>
      %1185 = math.tanh %1184 : vector<8x128xf32>
      %1186 = vector.extract_strided_slice %1171 {offsets = [0, 384], sizes = [8, 128], strides = [1, 1]} : vector<8x512xf32> to vector<8x128xf32>
      %1187 = arith.negf %1186 : vector<8x128xf32>
      %1188 = math.exp %1187 : vector<8x128xf32>
      %cst_240 = arith.constant 1.000000e+00 : f32
      %1189 = vector.broadcast %cst_240 : f32 to vector<8x128xf32>
      %1190 = arith.addf %1189, %1188 : vector<8x128xf32>
      %1191 = arith.divf %1189, %1190 : vector<8x128xf32>
      %1192 = arith.mulf %1183, %1131 : vector<8x128xf32>
      %1193 = arith.mulf %1177, %1185 : vector<8x128xf32>
      %1194 = arith.addf %1192, %1193 : vector<8x128xf32>
      %1195 = math.tanh %1194 : vector<8x128xf32>
      %1196 = arith.mulf %1191, %1195 : vector<8x128xf32>
      %1197 = arith.addi %32, %c13_i32 : i32
      %1198 = vector.broadcast %1197 : i32 to vector<8x1xi32>
      %1199 = arith.cmpi slt, %1198, %8 : vector<8x1xi32>
      %1200 = vector.shape_cast %1199 : vector<8x1xi1> to vector<8x1xi1>
      %1201 = vector.broadcast %1200 : vector<8x1xi1> to vector<8x128xi1>
      %c15_i32_241 = arith.constant 15 : i32
      %1202 = arith.subi %c15_i32_241, %c13_i32 : i32
      %1203 = arith.addi %33, %1202 : i32
      %1204 = vector.broadcast %1203 : i32 to vector<8x1xi32>
      %1205 = arith.cmpi slt, %1204, %8 : vector<8x1xi32>
      %1206 = vector.shape_cast %1205 : vector<8x1xi1> to vector<8x1xi1>
      %1207 = vector.broadcast %1206 : vector<8x1xi1> to vector<8x128xi1>
      %1208 = arith.select %1201, %1165, %1124 : vector<8x128xi1>, vector<8x128xf32>
      %1209 = arith.select %1201, %1163, %1125 : vector<8x128xi1>, vector<8x128xf32>
      %1210 = arith.truncf %1165 : vector<8x128xf32> to vector<8x128xbf16>
      %1211 = arith.select %1201, %1210, %1127 : vector<8x128xi1>, vector<8x128xbf16>
      %1212 = arith.maximumf %1129, %1165 : vector<8x128xf32>
      %1213 = arith.select %1201, %1212, %1129 : vector<8x128xi1>, vector<8x128xf32>
      %1214 = arith.select %1207, %1196, %1130 : vector<8x128xi1>, vector<8x128xf32>
      %1215 = arith.select %1207, %1194, %1131 : vector<8x128xi1>, vector<8x128xf32>
      %1216 = arith.truncf %1196 : vector<8x128xf32> to vector<8x128xbf16>
      %1217 = arith.select %1207, %1216, %1133 : vector<8x128xi1>, vector<8x128xbf16>
      %1218 = arith.maximumf %1135, %1196 : vector<8x128xf32>
      %1219 = arith.select %1207, %1218, %1135 : vector<8x128xi1>, vector<8x128xf32>
      %c14_i32 = arith.constant 14 : i32
      %1220 = arith.index_cast %c14_i32 : i32 to index
      %c0_242 = arith.constant 0 : index
      %c0_243 = arith.constant 0 : index
      %1221 = vector.load %arg14[%1220, %c0_242, %c0_243] : memref<16x8x512xf32, #tpu.memory_space<vmem>>, vector<1x8x512xf32>
      %1222 = vector.shape_cast %1221 : vector<1x8x512xf32> to vector<8x512xf32>
      %cst_244 = arith.constant dense<0.000000e+00> : vector<8x512xf32>
      %1223 = tpu.matmul %1211, %9, %cst_244 {dimension_numbers = #tpu.dot_dimension_numbers<[1], [0], [0], [1], [0, 0, 1, 1], [], []>} : vector<8x128xbf16>, vector<128x512xbf16>, vector<8x512xf32> -> vector<8x512xf32>
      %1224 = arith.addf %1223, %1222 : vector<8x512xf32>
      %1225 = vector.extract_strided_slice %1224 {offsets = [0, 0], sizes = [8, 128], strides = [1, 1]} : vector<8x512xf32> to vector<8x128xf32>
      %1226 = arith.negf %1225 : vector<8x128xf32>
      %1227 = math.exp %1226 : vector<8x128xf32>
      %cst_245 = arith.constant 1.000000e+00 : f32
      %1228 = vector.broadcast %cst_245 : f32 to vector<8x128xf32>
      %1229 = arith.addf %1228, %1227 : vector<8x128xf32>
      %1230 = arith.divf %1228, %1229 : vector<8x128xf32>
      %1231 = vector.extract_strided_slice %1224 {offsets = [0, 128], sizes = [8, 128], strides = [1, 1]} : vector<8x512xf32> to vector<8x128xf32>
      %1232 = arith.negf %1231 : vector<8x128xf32>
      %1233 = math.exp %1232 : vector<8x128xf32>
      %cst_246 = arith.constant 1.000000e+00 : f32
      %1234 = vector.broadcast %cst_246 : f32 to vector<8x128xf32>
      %1235 = arith.addf %1234, %1233 : vector<8x128xf32>
      %1236 = arith.divf %1234, %1235 : vector<8x128xf32>
      %1237 = vector.extract_strided_slice %1224 {offsets = [0, 256], sizes = [8, 128], strides = [1, 1]} : vector<8x512xf32> to vector<8x128xf32>
      %1238 = math.tanh %1237 : vector<8x128xf32>
      %1239 = vector.extract_strided_slice %1224 {offsets = [0, 384], sizes = [8, 128], strides = [1, 1]} : vector<8x512xf32> to vector<8x128xf32>
      %1240 = arith.negf %1239 : vector<8x128xf32>
      %1241 = math.exp %1240 : vector<8x128xf32>
      %cst_247 = arith.constant 1.000000e+00 : f32
      %1242 = vector.broadcast %cst_247 : f32 to vector<8x128xf32>
      %1243 = arith.addf %1242, %1241 : vector<8x128xf32>
      %1244 = arith.divf %1242, %1243 : vector<8x128xf32>
      %1245 = arith.mulf %1236, %1209 : vector<8x128xf32>
      %1246 = arith.mulf %1230, %1238 : vector<8x128xf32>
      %1247 = arith.addf %1245, %1246 : vector<8x128xf32>
      %1248 = math.tanh %1247 : vector<8x128xf32>
      %1249 = arith.mulf %1244, %1248 : vector<8x128xf32>
      %c15_i32_248 = arith.constant 15 : i32
      %1250 = arith.subi %c15_i32_248, %c14_i32 : i32
      %1251 = arith.index_cast %1250 : i32 to index
      %c0_249 = arith.constant 0 : index
      %c0_250 = arith.constant 0 : index
      %1252 = vector.load %arg15[%1251, %c0_249, %c0_250] : memref<16x8x512xf32, #tpu.memory_space<vmem>>, vector<1x8x512xf32>
      %1253 = vector.shape_cast %1252 : vector<1x8x512xf32> to vector<8x512xf32>
      %cst_251 = arith.constant dense<0.000000e+00> : vector<8x512xf32>
      %1254 = tpu.matmul %1217, %10, %cst_251 {dimension_numbers = #tpu.dot_dimension_numbers<[1], [0], [0], [1], [0, 0, 1, 1], [], []>} : vector<8x128xbf16>, vector<128x512xbf16>, vector<8x512xf32> -> vector<8x512xf32>
      %1255 = arith.addf %1254, %1253 : vector<8x512xf32>
      %1256 = vector.extract_strided_slice %1255 {offsets = [0, 0], sizes = [8, 128], strides = [1, 1]} : vector<8x512xf32> to vector<8x128xf32>
      %1257 = arith.negf %1256 : vector<8x128xf32>
      %1258 = math.exp %1257 : vector<8x128xf32>
      %cst_252 = arith.constant 1.000000e+00 : f32
      %1259 = vector.broadcast %cst_252 : f32 to vector<8x128xf32>
      %1260 = arith.addf %1259, %1258 : vector<8x128xf32>
      %1261 = arith.divf %1259, %1260 : vector<8x128xf32>
      %1262 = vector.extract_strided_slice %1255 {offsets = [0, 128], sizes = [8, 128], strides = [1, 1]} : vector<8x512xf32> to vector<8x128xf32>
      %1263 = arith.negf %1262 : vector<8x128xf32>
      %1264 = math.exp %1263 : vector<8x128xf32>
      %cst_253 = arith.constant 1.000000e+00 : f32
      %1265 = vector.broadcast %cst_253 : f32 to vector<8x128xf32>
      %1266 = arith.addf %1265, %1264 : vector<8x128xf32>
      %1267 = arith.divf %1265, %1266 : vector<8x128xf32>
      %1268 = vector.extract_strided_slice %1255 {offsets = [0, 256], sizes = [8, 128], strides = [1, 1]} : vector<8x512xf32> to vector<8x128xf32>
      %1269 = math.tanh %1268 : vector<8x128xf32>
      %1270 = vector.extract_strided_slice %1255 {offsets = [0, 384], sizes = [8, 128], strides = [1, 1]} : vector<8x512xf32> to vector<8x128xf32>
      %1271 = arith.negf %1270 : vector<8x128xf32>
      %1272 = math.exp %1271 : vector<8x128xf32>
      %cst_254 = arith.constant 1.000000e+00 : f32
      %1273 = vector.broadcast %cst_254 : f32 to vector<8x128xf32>
      %1274 = arith.addf %1273, %1272 : vector<8x128xf32>
      %1275 = arith.divf %1273, %1274 : vector<8x128xf32>
      %1276 = arith.mulf %1267, %1215 : vector<8x128xf32>
      %1277 = arith.mulf %1261, %1269 : vector<8x128xf32>
      %1278 = arith.addf %1276, %1277 : vector<8x128xf32>
      %1279 = math.tanh %1278 : vector<8x128xf32>
      %1280 = arith.mulf %1275, %1279 : vector<8x128xf32>
      %1281 = arith.addi %32, %c14_i32 : i32
      %1282 = vector.broadcast %1281 : i32 to vector<8x1xi32>
      %1283 = arith.cmpi slt, %1282, %8 : vector<8x1xi32>
      %1284 = vector.shape_cast %1283 : vector<8x1xi1> to vector<8x1xi1>
      %1285 = vector.broadcast %1284 : vector<8x1xi1> to vector<8x128xi1>
      %c15_i32_255 = arith.constant 15 : i32
      %1286 = arith.subi %c15_i32_255, %c14_i32 : i32
      %1287 = arith.addi %33, %1286 : i32
      %1288 = vector.broadcast %1287 : i32 to vector<8x1xi32>
      %1289 = arith.cmpi slt, %1288, %8 : vector<8x1xi32>
      %1290 = vector.shape_cast %1289 : vector<8x1xi1> to vector<8x1xi1>
      %1291 = vector.broadcast %1290 : vector<8x1xi1> to vector<8x128xi1>
      %1292 = arith.select %1285, %1249, %1208 : vector<8x128xi1>, vector<8x128xf32>
      %1293 = arith.select %1285, %1247, %1209 : vector<8x128xi1>, vector<8x128xf32>
      %1294 = arith.truncf %1249 : vector<8x128xf32> to vector<8x128xbf16>
      %1295 = arith.select %1285, %1294, %1211 : vector<8x128xi1>, vector<8x128xbf16>
      %1296 = arith.maximumf %1213, %1249 : vector<8x128xf32>
      %1297 = arith.select %1285, %1296, %1213 : vector<8x128xi1>, vector<8x128xf32>
      %1298 = arith.select %1291, %1280, %1214 : vector<8x128xi1>, vector<8x128xf32>
      %1299 = arith.select %1291, %1278, %1215 : vector<8x128xi1>, vector<8x128xf32>
      %1300 = arith.truncf %1280 : vector<8x128xf32> to vector<8x128xbf16>
      %1301 = arith.select %1291, %1300, %1217 : vector<8x128xi1>, vector<8x128xbf16>
      %1302 = arith.maximumf %1219, %1280 : vector<8x128xf32>
      %1303 = arith.select %1291, %1302, %1219 : vector<8x128xi1>, vector<8x128xf32>
      %c15_i32_256 = arith.constant 15 : i32
      %1304 = arith.index_cast %c15_i32_256 : i32 to index
      %c0_257 = arith.constant 0 : index
      %c0_258 = arith.constant 0 : index
      %1305 = vector.load %arg14[%1304, %c0_257, %c0_258] : memref<16x8x512xf32, #tpu.memory_space<vmem>>, vector<1x8x512xf32>
      %1306 = vector.shape_cast %1305 : vector<1x8x512xf32> to vector<8x512xf32>
      %cst_259 = arith.constant dense<0.000000e+00> : vector<8x512xf32>
      %1307 = tpu.matmul %1295, %9, %cst_259 {dimension_numbers = #tpu.dot_dimension_numbers<[1], [0], [0], [1], [0, 0, 1, 1], [], []>} : vector<8x128xbf16>, vector<128x512xbf16>, vector<8x512xf32> -> vector<8x512xf32>
      %1308 = arith.addf %1307, %1306 : vector<8x512xf32>
      %1309 = vector.extract_strided_slice %1308 {offsets = [0, 0], sizes = [8, 128], strides = [1, 1]} : vector<8x512xf32> to vector<8x128xf32>
      %1310 = arith.negf %1309 : vector<8x128xf32>
      %1311 = math.exp %1310 : vector<8x128xf32>
      %cst_260 = arith.constant 1.000000e+00 : f32
      %1312 = vector.broadcast %cst_260 : f32 to vector<8x128xf32>
      %1313 = arith.addf %1312, %1311 : vector<8x128xf32>
      %1314 = arith.divf %1312, %1313 : vector<8x128xf32>
      %1315 = vector.extract_strided_slice %1308 {offsets = [0, 128], sizes = [8, 128], strides = [1, 1]} : vector<8x512xf32> to vector<8x128xf32>
      %1316 = arith.negf %1315 : vector<8x128xf32>
      %1317 = math.exp %1316 : vector<8x128xf32>
      %cst_261 = arith.constant 1.000000e+00 : f32
      %1318 = vector.broadcast %cst_261 : f32 to vector<8x128xf32>
      %1319 = arith.addf %1318, %1317 : vector<8x128xf32>
      %1320 = arith.divf %1318, %1319 : vector<8x128xf32>
      %1321 = vector.extract_strided_slice %1308 {offsets = [0, 256], sizes = [8, 128], strides = [1, 1]} : vector<8x512xf32> to vector<8x128xf32>
      %1322 = math.tanh %1321 : vector<8x128xf32>
      %1323 = vector.extract_strided_slice %1308 {offsets = [0, 384], sizes = [8, 128], strides = [1, 1]} : vector<8x512xf32> to vector<8x128xf32>
      %1324 = arith.negf %1323 : vector<8x128xf32>
      %1325 = math.exp %1324 : vector<8x128xf32>
      %cst_262 = arith.constant 1.000000e+00 : f32
      %1326 = vector.broadcast %cst_262 : f32 to vector<8x128xf32>
      %1327 = arith.addf %1326, %1325 : vector<8x128xf32>
      %1328 = arith.divf %1326, %1327 : vector<8x128xf32>
      %1329 = arith.mulf %1320, %1293 : vector<8x128xf32>
      %1330 = arith.mulf %1314, %1322 : vector<8x128xf32>
      %1331 = arith.addf %1329, %1330 : vector<8x128xf32>
      %1332 = math.tanh %1331 : vector<8x128xf32>
      %1333 = arith.mulf %1328, %1332 : vector<8x128xf32>
      %c15_i32_263 = arith.constant 15 : i32
      %1334 = arith.subi %c15_i32_263, %c15_i32_256 : i32
      %1335 = arith.index_cast %1334 : i32 to index
      %c0_264 = arith.constant 0 : index
      %c0_265 = arith.constant 0 : index
      %1336 = vector.load %arg15[%1335, %c0_264, %c0_265] : memref<16x8x512xf32, #tpu.memory_space<vmem>>, vector<1x8x512xf32>
      %1337 = vector.shape_cast %1336 : vector<1x8x512xf32> to vector<8x512xf32>
      %cst_266 = arith.constant dense<0.000000e+00> : vector<8x512xf32>
      %1338 = tpu.matmul %1301, %10, %cst_266 {dimension_numbers = #tpu.dot_dimension_numbers<[1], [0], [0], [1], [0, 0, 1, 1], [], []>} : vector<8x128xbf16>, vector<128x512xbf16>, vector<8x512xf32> -> vector<8x512xf32>
      %1339 = arith.addf %1338, %1337 : vector<8x512xf32>
      %1340 = vector.extract_strided_slice %1339 {offsets = [0, 0], sizes = [8, 128], strides = [1, 1]} : vector<8x512xf32> to vector<8x128xf32>
      %1341 = arith.negf %1340 : vector<8x128xf32>
      %1342 = math.exp %1341 : vector<8x128xf32>
      %cst_267 = arith.constant 1.000000e+00 : f32
      %1343 = vector.broadcast %cst_267 : f32 to vector<8x128xf32>
      %1344 = arith.addf %1343, %1342 : vector<8x128xf32>
      %1345 = arith.divf %1343, %1344 : vector<8x128xf32>
      %1346 = vector.extract_strided_slice %1339 {offsets = [0, 128], sizes = [8, 128], strides = [1, 1]} : vector<8x512xf32> to vector<8x128xf32>
      %1347 = arith.negf %1346 : vector<8x128xf32>
      %1348 = math.exp %1347 : vector<8x128xf32>
      %cst_268 = arith.constant 1.000000e+00 : f32
      %1349 = vector.broadcast %cst_268 : f32 to vector<8x128xf32>
      %1350 = arith.addf %1349, %1348 : vector<8x128xf32>
      %1351 = arith.divf %1349, %1350 : vector<8x128xf32>
      %1352 = vector.extract_strided_slice %1339 {offsets = [0, 256], sizes = [8, 128], strides = [1, 1]} : vector<8x512xf32> to vector<8x128xf32>
      %1353 = math.tanh %1352 : vector<8x128xf32>
      %1354 = vector.extract_strided_slice %1339 {offsets = [0, 384], sizes = [8, 128], strides = [1, 1]} : vector<8x512xf32> to vector<8x128xf32>
      %1355 = arith.negf %1354 : vector<8x128xf32>
      %1356 = math.exp %1355 : vector<8x128xf32>
      %cst_269 = arith.constant 1.000000e+00 : f32
      %1357 = vector.broadcast %cst_269 : f32 to vector<8x128xf32>
      %1358 = arith.addf %1357, %1356 : vector<8x128xf32>
      %1359 = arith.divf %1357, %1358 : vector<8x128xf32>
      %1360 = arith.mulf %1351, %1299 : vector<8x128xf32>
      %1361 = arith.mulf %1345, %1353 : vector<8x128xf32>
      %1362 = arith.addf %1360, %1361 : vector<8x128xf32>
      %1363 = math.tanh %1362 : vector<8x128xf32>
      %1364 = arith.mulf %1359, %1363 : vector<8x128xf32>
      %1365 = arith.addi %32, %c15_i32_256 : i32
      %1366 = vector.broadcast %1365 : i32 to vector<8x1xi32>
      %1367 = arith.cmpi slt, %1366, %8 : vector<8x1xi32>
      %1368 = vector.shape_cast %1367 : vector<8x1xi1> to vector<8x1xi1>
      %1369 = vector.broadcast %1368 : vector<8x1xi1> to vector<8x128xi1>
      %c15_i32_270 = arith.constant 15 : i32
      %1370 = arith.subi %c15_i32_270, %c15_i32_256 : i32
      %1371 = arith.addi %33, %1370 : i32
      %1372 = vector.broadcast %1371 : i32 to vector<8x1xi32>
      %1373 = arith.cmpi slt, %1372, %8 : vector<8x1xi32>
      %1374 = vector.shape_cast %1373 : vector<8x1xi1> to vector<8x1xi1>
      %1375 = vector.broadcast %1374 : vector<8x1xi1> to vector<8x128xi1>
      %1376 = arith.select %1369, %1333, %1292 : vector<8x128xi1>, vector<8x128xf32>
      %1377 = arith.select %1369, %1331, %1293 : vector<8x128xi1>, vector<8x128xf32>
      %1378 = arith.truncf %1333 : vector<8x128xf32> to vector<8x128xbf16>
      %1379 = arith.select %1369, %1378, %1295 : vector<8x128xi1>, vector<8x128xbf16>
      %1380 = arith.maximumf %1297, %1333 : vector<8x128xf32>
      %1381 = arith.select %1369, %1380, %1297 : vector<8x128xi1>, vector<8x128xf32>
      %1382 = arith.select %1375, %1364, %1298 : vector<8x128xi1>, vector<8x128xf32>
      %1383 = arith.select %1375, %1362, %1299 : vector<8x128xi1>, vector<8x128xf32>
      %1384 = arith.truncf %1364 : vector<8x128xf32> to vector<8x128xbf16>
      %1385 = arith.select %1375, %1384, %1301 : vector<8x128xi1>, vector<8x128xbf16>
      %1386 = arith.maximumf %1303, %1364 : vector<8x128xf32>
      %1387 = arith.select %1375, %1386, %1303 : vector<8x128xi1>, vector<8x128xf32>
      %c16_i32_271 = arith.constant 16 : i32
      %c0_272 = arith.constant 0 : index
      %c0_273 = arith.constant 0 : index
      %1388 = vector.load %arg16[%c0_272, %c0_273] : memref<8x128xf32, #tpu.memory_space<vmem>>, vector<8x128xf32>
      tpu.vector_store %arg16[%c0_272, %c0_273], %1376 {strides = array<i32>} : memref<8x128xf32, #tpu.memory_space<vmem>>, vector<8x128xf32>,
      %c0_274 = arith.constant 0 : index
      %c0_275 = arith.constant 0 : index
      %1389 = vector.load %arg17[%c0_274, %c0_275] : memref<8x128xf32, #tpu.memory_space<vmem>>, vector<8x128xf32>
      tpu.vector_store %arg17[%c0_274, %c0_275], %1377 {strides = array<i32>} : memref<8x128xf32, #tpu.memory_space<vmem>>, vector<8x128xf32>,
      %c0_276 = arith.constant 0 : index
      %c0_277 = arith.constant 0 : index
      %1390 = vector.load %arg18[%c0_276, %c0_277] : memref<8x128xf32, #tpu.memory_space<vmem>>, vector<8x128xf32>
      tpu.vector_store %arg18[%c0_276, %c0_277], %1382 {strides = array<i32>} : memref<8x128xf32, #tpu.memory_space<vmem>>, vector<8x128xf32>,
      %c0_278 = arith.constant 0 : index
      %c0_279 = arith.constant 0 : index
      %1391 = vector.load %arg19[%c0_278, %c0_279] : memref<8x128xf32, #tpu.memory_space<vmem>>, vector<8x128xf32>
      tpu.vector_store %arg19[%c0_278, %c0_279], %1383 {strides = array<i32>} : memref<8x128xf32, #tpu.memory_space<vmem>>, vector<8x128xf32>,
      %c0_280 = arith.constant 0 : index
      %c0_281 = arith.constant 0 : index
      %1392 = vector.load %arg13[%c0_280, %c0_281] : memref<8x256xf32, #tpu.memory_space<vmem>>, vector<8x128xf32>
      tpu.vector_store %arg13[%c0_280, %c0_281], %1381 {strides = array<i32>} : memref<8x256xf32, #tpu.memory_space<vmem>>, vector<8x128xf32>,
      %c0_282 = arith.constant 0 : index
      %c128_283 = arith.constant 128 : index
      %1393 = vector.load %arg13[%c0_282, %c128_283] : memref<8x256xf32, #tpu.memory_space<vmem>>, vector<8x128xf32>
      tpu.vector_store %arg13[%c0_282, %c128_283], %1387 {strides = array<i32>} : memref<8x256xf32, #tpu.memory_space<vmem>>, vector<8x128xf32>,
    } else {
    }
    return
  }
  func.func @transform_0(%arg0: i32, %arg1: i32, %arg2: memref<1xi32, #tpu.memory_space<smem>>) -> (i32, i32) {
    %c0_i32 = arith.constant 0 : i32
    %c0_i32_0 = arith.constant 0 : i32
    return %arg0, %c0_i32 : i32, i32
  }
  func.func @transform_1(%arg0: i32, %arg1: i32, %arg2: memref<1xi32, #tpu.memory_space<smem>>) -> (i32, i32) {
    %c0_i32 = arith.constant 0 : i32
    %c0_i32_0 = arith.constant 0 : i32
    return %arg0, %c0_i32 : i32, i32
  }
  func.func @transform_2(%arg0: i32, %arg1: i32, %arg2: memref<1xi32, #tpu.memory_space<smem>>) -> (i32, i32, i32) {
    %c0_i32 = arith.constant 0 : i32
    %c0_i32_0 = arith.constant 0 : i32
    return %arg1, %arg0, %c0_i32 : i32, i32, i32
  }
  func.func @transform_3(%arg0: i32, %arg1: i32, %arg2: memref<1xi32, #tpu.memory_space<smem>>) -> (i32, i32, i32) {
    %0 = arith.index_cast %arg0 : i32 to index
    %1 = memref.load %arg2[%0] : memref<1xi32, #tpu.memory_space<smem>>
    %c1_i32 = arith.constant 1 : i32
    %2 = arith.subi %1, %c1_i32 : i32
    %3 = arith.subi %2, %arg1 : i32
    %c0_i32 = arith.constant 0 : i32
    %4 = arith.maxsi %3, %c0_i32 : i32
    %c0_i32_0 = arith.constant 0 : i32
    %c0_i32_1 = arith.constant 0 : i32
    return %4, %arg0, %c0_i32_0 : i32, i32, i32
  }
  func.func @transform_4(%arg0: i32, %arg1: i32, %arg2: memref<1xi32, #tpu.memory_space<smem>>) -> (i32, i32) {
    %c0_i32 = arith.constant 0 : i32
    %c0_i32_0 = arith.constant 0 : i32
    %c0_i32_1 = arith.constant 0 : i32
    return %c0_i32, %c0_i32_0 : i32, i32
  }
  func.func @transform_5(%arg0: i32, %arg1: i32, %arg2: memref<1xi32, #tpu.memory_space<smem>>) -> (i32, i32) {
    %c0_i32 = arith.constant 0 : i32
    %c0_i32_0 = arith.constant 0 : i32
    %c0_i32_1 = arith.constant 0 : i32
    return %c0_i32, %c0_i32_0 : i32, i32
  }
  func.func @transform_6(%arg0: i32, %arg1: i32, %arg2: memref<1xi32, #tpu.memory_space<smem>>) -> (i32, i32) {
    %c0_i32 = arith.constant 0 : i32
    %c0_i32_0 = arith.constant 0 : i32
    %c0_i32_1 = arith.constant 0 : i32
    return %c0_i32, %c0_i32_0 : i32, i32
  }
  func.func @transform_7(%arg0: i32, %arg1: i32, %arg2: memref<1xi32, #tpu.memory_space<smem>>) -> (i32, i32) {
    %c0_i32 = arith.constant 0 : i32
    %c0_i32_0 = arith.constant 0 : i32
    %c0_i32_1 = arith.constant 0 : i32
    return %c0_i32, %c0_i32_0 : i32, i32
  }
  func.func @transform_8(%arg0: i32, %arg1: i32, %arg2: memref<1xi32, #tpu.memory_space<smem>>) -> (i32, i32) {
    %c0_i32 = arith.constant 0 : i32
    %c0_i32_0 = arith.constant 0 : i32
    %c0_i32_1 = arith.constant 0 : i32
    return %c0_i32, %c0_i32_0 : i32, i32
  }
  func.func @transform_9(%arg0: i32, %arg1: i32, %arg2: memref<1xi32, #tpu.memory_space<smem>>) -> (i32, i32) {
    %c0_i32 = arith.constant 0 : i32
    %c0_i32_0 = arith.constant 0 : i32
    %c0_i32_1 = arith.constant 0 : i32
    return %c0_i32, %c0_i32_0 : i32, i32
  }
  func.func @transform_10(%arg0: i32, %arg1: i32, %arg2: memref<1xi32, #tpu.memory_space<smem>>) -> (i32, i32) {
    %c0_i32 = arith.constant 0 : i32
    %c0_i32_0 = arith.constant 0 : i32
    return %arg0, %c0_i32 : i32, i32
  }
}

</mosaic_0001>

<bundles_post_ra>
// kernel: bilstm_sentence_encoder.1
= control target key start
LH: loop header
LB: loop body
LE: loop exit
PB: predicated region body
PF: predicated region fallthrough
CT: control target
= control target key end

     0   :  { %v6579_v0 = vmov 0   ;;  %v6580_v2 = vmov 0.0   ;;  %s10715_s2 = inlined_call_operand.vmem [shape: f32[8,1], index: 2, kind: input, shape index: {}]   ;;  %s10716_s0 = inlined_call_operand.<no memory space> [shape: s32[1], index: 0, kind: input, shape index: {}]   ;;  %s10717_s1 = inlined_call_operand.vmem [shape: s32[8,1], index: 1, kind: input, shape index: {}]   ;;  %s10718_s3 = inlined_call_operand.vmem [shape: bf16[16,8,32], index: 3, kind: input, shape index: {}, may-alias: {3,4}]   ;;  %s10719_s5 = inlined_call_operand.vmem [shape: bf16[32,512], index: 5, kind: input, shape index: {}]   ;;  %s10720_s6 = inlined_call_operand.vmem [shape: bf16[32,512], index: 6, kind: input, shape index: {}]   ;;  %s10721_s7 = inlined_call_operand.vmem [shape: bf16[128,512], index: 7, kind: input, shape index: {}]   ;;  %s10722_s8 = inlined_call_operand.vmem [shape: bf16[128,512], index: 8, kind: input, shape index: {}]   ;;  %s10723_s9 = inlined_call_operand.vmem [shape: f32[1,512], index: 9, kind: input, shape index: {}]   ;;  %s10724_s10 = inlined_call_operand.vmem [shape: f32[1,512], index: 10, kind: input, shape index: {}]   ;;  %s10725_s4 = inlined_call_operand.vmem [shape: bf16[16,8,32], index: 4, kind: input, shape index: {}, may-alias: {3,4}]   ;;  %s10726_s11 = inlined_call_operand.vmem [shape: f32[8,256], index: 11, kind: output, shape index: {}]  }
   0x1   :  { %5669 = vset.pattern.permute.xlu0 %v6579_v0  ;;  %v89_v1 = vld [vmem:[%s10715_s2] sm:$0xff]  ;;  %s5419_s21 = sadd.s32 4294967295, %s10716_s0  ;;  %85 = vst [vmem:[#allocation4] sm:$0xff] %v6580_v2  ;;  %86 = vst [vmem:[#allocation5] sm:$0xff] %v6580_v2  ;;  %p5423_p2 = scmp.le.s32.totalorder %s10716_s0, 0 }
   0x2   :  { %92 = vperm.xlu0 %5669, %v89_v1   ;;  %p66_p0 = scmp.gt.s32.totalorder %s5419_s21, 0  ;;  %87 = vst [vmem:[#allocation6] sm:$0xff] %v6580_v2  ;;  %88 = vst [vmem:[#allocation7] sm:$0xff] %v6580_v2 }
   0x4   :  { %s11633_s21 = smov (!%p66_p0, %s5419_s21), 0 }
   0x5   :  { %s6648_s22 = sshll.u32 %s11633_s21, 4 }
   0x6   :  { %p69_p1 = scmp.lt.s32.totalorder %s6648_s22, 15 }
   0x8   :  { %s70_s23 = scalar_select %p69_p1, %s6648_s22, 15 }
   0xa   :  { %s5421_s24 = sshll.u32 %s70_s23, 2 }
   0xb   :  { %s6655_s26 = scalar_lea.vmem %s10725_s4, %s5421_s24 }
  0x7c   :  { %100 = sbr.rel (%p5423_p2) target bundleno = 4479 (0x117f), region = 49 }
  0x81   :  { %v93_v3 = vpop.permute.xlu0 %92 }
  0x82   :  { %95 = vst [vmem:[%s10726_s11] sm:$0xff] %v93_v3  ;;  %96 = vst [vmem:[%s10726_s11 + $0x8] sm:$0xff] %v93_v3 }
  0x83   :  { %v5672_v4 = vld [vmem:[%s10719_s5 + $0x4] ss:$16 sps:$4 sm:$0xff]   ;;  %v5674_v5 = vld [vmem:[%s10719_s5 + $0xc] ss:$16 sps:$4 sm:$0xff]   ;;  %v10727_v6 = vmov 0   ;;  %vm292_vm0 = vcmask 261120  }
  0x84   :  { %349 = vmatprep.mubr.bf16.mxu0 %v10727_v6  ;;  %462 = vmatprep.mubr.bf16.mxu1 %v10727_v6  ;;  %v5676_v7 = vld [vmem:[%s10719_s5] ss:$16 sps:$4 sm:$0xff]   ;;  %v5677_v8 = vld [vmem:[%s10719_s5 + $0x8] ss:$16 sps:$4 sm:$0xff]   ;;  %v5678_v9 = vld [vmem:[%s10719_s5 + $0x24] ss:$16 sps:$4 sm:$0xff]  }
  0x85   :  { %317 = vmatprep.subr.bf16.mxu0 %v5672_v4  ;;  %5670 = vset.pattern.permute.xlu0 %v10727_v6  ;;  %v5680_v10 = vld [vmem:[%s10719_s5 + $0x2c] ss:$16 sps:$4 sm:$0xff]   ;;  %v5682_v11 = vld [vmem:[%s10719_s5 + $0x20] ss:$16 sps:$4 sm:$0xff]   ;;  %v5683_v12 = vld [vmem:[%s10719_s5 + $0x28] ss:$16 sps:$4 sm:$0xff]  }
  0x86   :  { %430 = vmatprep.subr.bf16.mxu1 %v5674_v5  ;;  %5671 = vset.pattern.permute.xlu1 %v10727_v6  ;;  %v5684_v13 = vld [vmem:[%s10718_s3] sm:$0xff]   ;;  %v5691_v16 = vld [vmem:[%s10720_s6 + $0xc] ss:$16 sps:$4 sm:$0xff]   ;;  %v5689_v17 = vld [vmem:[%s10720_s6 + $0x8] ss:$16 sps:$4 sm:$0xff]   ;;  %s1609_s21 = sadd.s32 15, %s6648_s22 }
  0x87   :  { %318 = vmatpush1.bf16.msra.mxu0 %v5676_v7  ;;  %431 = vmatpush1.bf16.msra.mxu1 %v5677_v8  ;;  %v5687_v14 = vld [vmem:[%s10720_s6 + $0x4] ss:$16 sps:$4 sm:$0xff]   ;;  %v5685_v15 = vld [vmem:[%s10720_s6] ss:$16 sps:$4 sm:$0xff]   ;;  %v5688_v20 = vld [vmem:[%s10718_s3 + $0x8] sm:$0xff]   ;;  %v1610_v31 = vstv %s1609_s21  ;;  %s2113_s13 = sadd.s32 13, %s6648_s22 }
  0x88   :  { %319 = vmatprep.subr.bf16.mxu0 %v5678_v9  ;;  %432 = vmatprep.subr.bf16.mxu1 %v5680_v10  ;;  %v5695_v18 = vld [vmem:[%s10720_s6 + $0x20] ss:$16 sps:$4 sm:$0xff]   ;;  %v5697_v19 = vld [vmem:[%s10720_s6 + $0x24] ss:$16 sps:$4 sm:$0xff]   ;;  %v5701_v21 = vld [vmem:[%s10720_s6 + $0x2c] ss:$16 sps:$4 sm:$0xff]  }
  0x89   :  { %v5699_v22 = vld [vmem:[%s10720_s6 + $0x28] ss:$16 sps:$4 sm:$0xff]   ;;  %v6735_v23 = vld [vmem:[%s10721_s7 + $0x4] ss:$16 sps:$4 sm:$0xff]   ;;  %v6744_v25 = vld [vmem:[%s10721_s7 + $0xc] ss:$16 sps:$4 sm:$0xff]  }
  0x8a   :  { %v5692_v24 = vld [vmem:[%s10718_s3 + $0x10] sm:$0xff]   ;;  %v5693_v26 = vld [vmem:[%s10718_s3 + $0x18] sm:$0xff]   ;;  %v5694_v27 = vld [vmem:[%s10718_s3 + $0x20] sm:$0xff]   ;;  %s2365_s14 = sadd.s32 12, %s6648_s22  ;;  %s2617_s15 = sadd.s32 11, %s6648_s22 }
  0x8b   :  { %320 = vmatpush1.bf16.msra.mxu0 %v5682_v11  ;;  %433 = vmatpush1.bf16.msra.mxu1 %v5683_v12  ;;  %v5698_v28 = vld [vmem:[%s10718_s3 + $0x28] sm:$0xff]   ;;  %v5702_v29 = vld [vmem:[%s10718_s3 + $0x30] sm:$0xff]   ;;  %v5703_v30 = vld [vmem:[%s10718_s3 + $0x38] sm:$0xff]   ;;  %s2869_s4 = sadd.s32 10, %s6648_s22  ;;  %s3121_s16 = sadd.s32 9, %s6648_s22 }
  0x8c   :  { %757 = vmatprep.subr.bf16.mxu0 %v5687_v14  ;;  %870 = vmatprep.subr.bf16.mxu1 %v5691_v16  ;;  %v6790_v32 = vld [vmem:[%s10717_s1] sm:$0xff]  ;;  %v6809_v37 = vld [vmem:[%s10721_s7 + $0x8] ss:$16 sps:$4 sm:$0xff]   ;;  %v6816_v38 = vld [vmem:[%s10721_s7 + $0x2c] ss:$16 sps:$4 sm:$0xff]   ;;  %s3373_s5 = sadd.s32 8, %s6648_s22 }
  0x8d   :  { %v5704_v33 = vld [vmem:[%s6655_s26] sm:$0xff]   ;;  %vm5560_vm1 = vcmp.gt.s32.totalorder %v6790_v32, 0  ;;  %vm1611_vm2 = vcmp.lt.s32.totalorder %v1610_v31, %v6790_v32  ;;  %vm5574_vm3 = vcmp.gt.s32.totalorder %v6790_v32, 2  ;;  %v6838_v42 = vld [vmem:[%s10721_s7 + $0x28] ss:$16 sps:$4 sm:$0xff]   ;;  %v5714_v53 = vld [vmem:[%s6655_s26 + $0x10] sm:$0xff]  }
  0x8e   :  { %5440 = vmatmul.mubr.msk.bf16.vlgmr.msra.gmra.mrb[0].mxu0 %vm292_vm0, %v5684_v13  ;;  %5448 = vmatmul.mubr.msk.bf16.vlgmr.msra.gmra.mrb[0].mxu1 %vm292_vm0, %v5684_v13  ;;  %v6797_v34 = vld [vmem:[%s10721_s7] ss:$16 sps:$4 sm:$0xff]   ;;  %v1604_v35 = vsel %vm5560_vm1, 1, %v10727_v6  ;;  %v6804_v36 = vld [vmem:[%s10721_s7 + $0x24] ss:$16 sps:$4 sm:$0xff]   ;;  %v1612_v39 = vsel %vm1611_vm2, 1, %v10727_v6 }
  0x8f   :  { %758 = vmatpush1.bf16.msra.mxu0 %v5685_v15  ;;  %359 = vmatprep.mubr.bf16.mxu0 %v10727_v6  ;;  %v6824_v40 = vld [vmem:[%s10721_s7 + $0x20] ss:$16 sps:$4 sm:$0xff]   ;;  %v6832_v41 = vld [vmem:[%s10721_s7 + $0x44] ss:$16 sps:$4 sm:$0xff]   ;;  %v5708_v43 = vld [vmem:[%s6655_s26 + $0x8] sm:$0xff]   ;;  %v2108_v44 = vsel %vm5574_vm3, 1, %v10727_v6 }
  0x90   :  { %472 = vmatprep.mubr.bf16.mxu1 %v10727_v6  ;;  %871 = vmatpush1.bf16.msra.mxu1 %v5689_v17  ;;  %v6848_v45 = vld [vmem:[%s10721_s7 + $0x40] ss:$16 sps:$4 sm:$0xff]   ;;  %v6853_v46 = vld [vmem:[%s10721_s7 + $0x4c] ss:$16 sps:$4 sm:$0xff]   ;;  %v6858_v47 = vld [vmem:[%s10721_s7 + $0x64] ss:$16 sps:$4 sm:$0xff]  }
  0x91   :  { %759 = vmatprep.subr.bf16.mxu0 %v5697_v19  ;;  %872 = vmatprep.subr.bf16.mxu1 %v5701_v21  ;;  %v6864_v48 = vld [vmem:[%s10721_s7 + $0x48] ss:$16 sps:$4 sm:$0xff]   ;;  %v6871_v49 = vld [vmem:[%s10721_s7 + $0x6c] ss:$16 sps:$4 sm:$0xff]   ;;  %v6879_v50 = vld [vmem:[%s10721_s7 + $0x60] ss:$16 sps:$4 sm:$0xff]  }
  0x92   :  { %1606 = vperm.xlu0 %5670, %v1604_v35   ;;  %v6886_v51 = vld [vmem:[%s10721_s7 + $0x84] ss:$16 sps:$4 sm:$0xff]   ;;  %v6892_v52 = vld [vmem:[%s10721_s7 + $0x68] ss:$16 sps:$4 sm:$0xff]   ;;  %v6900_v54 = vld [vmem:[%s10721_s7 + $0x80] ss:$16 sps:$4 sm:$0xff]  }
  0x93   :  { %760 = vmatpush1.bf16.msra.mxu0 %v5695_v18  ;;  %v6905_v55 = vld [vmem:[%s10721_s7 + $0x8c] ss:$16 sps:$4 sm:$0xff]   ;;  %v6911_v56 = vld [vmem:[%s10721_s7 + $0xa4] ss:$16 sps:$4 sm:$0xff]   ;;  %v6917_v57 = vld [vmem:[%s10721_s7 + $0x88] ss:$16 sps:$4 sm:$0xff]  }
  0x94   :  { %873 = vmatpush1.bf16.msra.mxu1 %v5699_v22  ;;  %1225 = vmatprep.subr.bf16.mxu0 %v6735_v23  ;;  %v6924_v58 = vld [vmem:[%s10721_s7 + $0xac] ss:$16 sps:$4 sm:$0xff]   ;;  %vm5581_vm4 = vcmp.gt.s32.totalorder %v6790_v32, 3  ;;  %v6933_v59 = vld [vmem:[%s10721_s7 + $0xa0] ss:$16 sps:$4 sm:$0xff]   ;;  %vm5588_vm5 = vcmp.gt.s32.totalorder %v6790_v32, 4 }
  0x95   :  { %1266 = vmatprep.subr.bf16.mxu1 %v6744_v25  ;;  %v2360_v60 = vsel %vm5581_vm4, 1, %v10727_v6  ;;  %v6941_v61 = vld [vmem:[%s10721_s7 + $0xc4] ss:$16 sps:$4 sm:$0xff]   ;;  %v6947_v62 = vld [vmem:[%s10721_s7 + $0xa8] ss:$16 sps:$4 sm:$0xff]   ;;  %v2612_v5 = vsel %vm5588_vm5, 1, %v10727_v6 }
  0x96   :  { %5441 = vmatmul.mubr.msk.bf16.gmra.mrb[4].mxu0 %vm292_vm0, %v5688_v20  ;;  %5449 = vmatmul.mubr.msk.bf16.gmra.mrb[4].mxu1 %vm292_vm0, %v5688_v20  ;;  %v5721_v63 = vld [vmem:[%s6655_s26 + $0x18] sm:$0xff]   ;;  %v6955_v0 = vld [vmem:[%s10721_s7 + $0xc0] ss:$16 sps:$4 sm:$0xff]   ;;  %v6968_v2 = vld [vmem:[%s10721_s7 + $0xe4] ss:$16 sps:$4 sm:$0xff]   ;;  %vm5595_vm6 = vcmp.gt.s32.totalorder %v6790_v32, 5 }
  0x97   :  { %369 = vmatprep.mubr.bf16.mxu0 %v10727_v6  ;;  %482 = vmatprep.mubr.bf16.mxu1 %v10727_v6  ;;  %v6960_v1 = vld [vmem:[%s10721_s7 + $0xcc] ss:$16 sps:$4 sm:$0xff]   ;;  %v6973_v3 = vld [vmem:[%s10721_s7 + $0xc8] ss:$16 sps:$4 sm:$0xff]   ;;  %v6990_v7 = vld [vmem:[%s10721_s7 + $0xe0] ss:$16 sps:$4 sm:$0xff]  }
  0x98   :  { %1614 = vperm.xlu0 %5670, %v1612_v39   ;;  %v6980_v4 = vld [vmem:[%s10721_s7 + $0xec] ss:$16 sps:$4 sm:$0xff]   ;;  %v6997_v8 = vld [vmem:[%s10721_s7 + $0xe8] ss:$16 sps:$4 sm:$0xff]   ;;  %v7002_v9 = vld [vmem:[%s10722_s8 + $0x4] ss:$16 sps:$4 sm:$0xff]  }
  0x99   :  { %v5728_v10 = vld [vmem:[%s6655_s26 + $0x20] sm:$0xff]   ;;  %v7011_v11 = vld [vmem:[%s10722_s8 + $0xc] ss:$16 sps:$4 sm:$0xff]   ;;  %v2864_v12 = vsel %vm5595_vm6, 1, %v10727_v6  ;;  %vm5602_vm7 = vcmp.gt.s32.totalorder %v6790_v32, 6  ;;  %vm5609_vm8 = vcmp.gt.s32.totalorder %v6790_v32, 7 }
  0x9a   :  { %v3116_v13 = vsel %vm5602_vm7, 1, %v10727_v6  ;;  %v5735_v14 = vld [vmem:[%s6655_s26 + $0x28] sm:$0xff]   ;;  %v3368_v15 = vsel %vm5609_vm8, 1, %v10727_v6  ;;  %vm5616_vm9 = vcmp.gt.s32.totalorder %v6790_v32, 8  ;;  %v5742_v17 = vld [vmem:[%s6655_s26 + $0x30] sm:$0xff]   ;;  %vm5623_vm10 = vcmp.gt.s32.totalorder %v6790_v32, 9 }
  0x9b   :  { %v3620_v16 = vsel %vm5616_vm9, 1, %v10727_v6  ;;  %v3872_v18 = vsel %vm5623_vm10, 1, %v10727_v6  ;;  %vm5630_vm11 = vcmp.gt.s32.totalorder %v6790_v32, 10  ;;  %v5752_v20 = vld [vmem:[%s6655_s26 + $0x38] sm:$0xff]   ;;  %vm5637_vm12 = vcmp.gt.s32.totalorder %v6790_v32, 11  ;;  %v1053_v22 = vld [vmem:[#allocation4] sm:$0xff] }
  0x9c   :  { %2110 = vperm.xlu0 %5670, %v2108_v44   ;;  %v4124_v19 = vsel %vm5630_vm11, 1, %v10727_v6  ;;  %v4376_v21 = vsel %vm5637_vm12, 1, %v10727_v6  ;;  %vm5644_vm13 = vcmp.gt.s32.totalorder %v6790_v32, 12  ;;  %vm5651_vm14 = vcmp.gt.s32.totalorder %v6790_v32, 13  ;;  %v5770_v31 = vld [vmem:[%s10722_s8 + $0x20] ss:$16 sps:$4 sm:$0xff]  }
  0x9d   :  { %v4880_v35 = vsel %vm5651_vm14, 1, %v10727_v6  ;;  %v5772_v39 = vld [vmem:[%s10722_s8 + $0x44] ss:$16 sps:$4 sm:$0xff]   ;;  %vm5658_vm15 = vcmp.gt.s32.totalorder %v6790_v32, 14  ;;  %v5776_v44 = vld [vmem:[%s10722_s8 + $0x40] ss:$16 sps:$4 sm:$0xff]  }
  0x9e   :  { %5442 = vmatmul.mubr.msk.bf16.gmra.mrb[8].mxu0 %vm292_vm0, %v5692_v24  ;;  %5450 = vmatmul.mubr.msk.bf16.gmra.mrb[8].mxu1 %vm292_vm0, %v5692_v24  ;;  %v4628_v24 = vsel %vm5644_vm13, 1, %v10727_v6  ;;  %vm5567_vm1 = vcmp.gt.s32.totalorder %v6790_v32, 1  ;;  %s3625_s17 = sadd.s32 7, %s6648_s22  ;;  %s4129_s26 = sadd.s32 5, %s6648_s22 }
  0x9f   :  { %379 = vmatprep.mubr.bf16.mxu0 %v10727_v6  ;;  %492 = vmatprep.mubr.bf16.mxu1 %v10727_v6  ;;  %s4381_s19 = sadd.s32 4, %s6648_s22  ;;  %s4633_s20 = sadd.s32 3, %s6648_s22 }
  0xa0   :  { %2362 = vperm.xlu0 %5670, %v2360_v60   ;;  %v5132_v60 = vsel %vm5658_vm15, 1, %v10727_v6  ;;  %s4885_s21 = sadd.s32 2, %s6648_s22  ;;  %s5137_s23 = sadd.s32 1, %s6648_s22 }
  0xa4   :  { %2614 = vperm.xlu0 %5670, %v2612_v5   ;;  %v5780_v5 = vld [vmem:[%s10722_s8 + $0x6c] ss:$16 sps:$4 sm:$0xff]  }
  0xa6   :  { %5443 = vmatmul.mubr.msk.bf16.gmra.mrb[12].mxu0 %vm292_vm0, %v5693_v26  ;;  %5451 = vmatmul.mubr.msk.bf16.gmra.mrb[12].mxu1 %vm292_vm0, %v5693_v26  ;;  %v7050_v26 = vpack.c.bf16 %v1053_v22, %v1053_v22  ;;  %v5796_v22 = vld [vmem:[%s10722_s8 + $0xc4] ss:$16 sps:$4 sm:$0xff]  }
  0xa7   :  { %389 = vmatprep.mubr.bf16.mxu0 %v10727_v6  ;;  %502 = vmatprep.mubr.bf16.mxu1 %v10727_v6 }
  0xa8   :  { %2866 = vperm.xlu0 %5670, %v2864_v12   ;;  %v5783_v12 = vld [vmem:[%s10722_s8 + $0x68] ss:$16 sps:$4 sm:$0xff]  }
  0xac   :  { %3118 = vperm.xlu0 %5670, %v3116_v13  }
  0xae   :  { %5444 = vmatmul.mubr.msk.bf16.gmra.mrb[16].mxu0 %vm292_vm0, %v5694_v27  ;;  %5452 = vmatmul.mubr.msk.bf16.gmra.mrb[16].mxu1 %vm292_vm0, %v5694_v27  ;;  %v5764_v27 = vld [vmem:[%s10722_s8] ss:$16 sps:$4 sm:$0xff]  }
  0xaf   :  { %399 = vmatprep.mubr.bf16.mxu0 %v10727_v6  ;;  %512 = vmatprep.mubr.bf16.mxu1 %v10727_v6 }
  0xb0   :  { %3370 = vperm.xlu0 %5670, %v3368_v15   ;;  %v5786_v15 = vld [vmem:[%s10722_s8 + $0x8c] ss:$16 sps:$4 sm:$0xff]  }
  0xb4   :  { %3622 = vperm.xlu0 %5670, %v3620_v16   ;;  %v5788_v16 = vld [vmem:[%s10722_s8 + $0x80] ss:$16 sps:$4 sm:$0xff]  }
  0xb6   :  { %5445 = vmatmul.mubr.msk.bf16.gmra.mrb[20].mxu0 %vm292_vm0, %v5698_v28  ;;  %5453 = vmatmul.mubr.msk.bf16.gmra.mrb[20].mxu1 %vm292_vm0, %v5698_v28  ;;  %v5765_v28 = vld [vmem:[%s10722_s8 + $0x8] ss:$16 sps:$4 sm:$0xff]  }
  0xb7   :  { %409 = vmatprep.mubr.bf16.mxu0 %v10727_v6  ;;  %522 = vmatprep.mubr.bf16.mxu1 %v10727_v6 }
  0xb8   :  { %3874 = vperm.xlu0 %5670, %v3872_v18   ;;  %v5790_v18 = vld [vmem:[%s10722_s8 + $0xa4] ss:$16 sps:$4 sm:$0xff]  }
  0xbc   :  { %4126 = vperm.xlu0 %5670, %v4124_v19   ;;  %v5792_v19 = vld [vmem:[%s10722_s8 + $0xac] ss:$16 sps:$4 sm:$0xff]  }
  0xbe   :  { %5446 = vmatmul.mubr.msk.bf16.gmra.mrb[24].mxu0 %vm292_vm0, %v5702_v29  ;;  %5454 = vmatmul.mubr.msk.bf16.gmra.mrb[24].mxu1 %vm292_vm0, %v5702_v29  ;;  %v5766_v29 = vld [vmem:[%s10722_s8 + $0x24] ss:$16 sps:$4 sm:$0xff]  }
  0xbf   :  { %419 = vmatprep.mubr.bf16.mxu0 %v10727_v6  ;;  %532 = vmatprep.mubr.bf16.mxu1 %v10727_v6 }
  0xc0   :  { %4378 = vperm.xlu0 %5670, %v4376_v21   ;;  %v5795_v21 = vld [vmem:[%s10722_s8 + $0xa8] ss:$16 sps:$4 sm:$0xff]  }
  0xc4   :  { %4630 = vperm.xlu0 %5670, %v4628_v24   ;;  %v5798_v24 = vld [vmem:[%s10722_s8 + $0xcc] ss:$16 sps:$4 sm:$0xff]  }
  0xc6   :  { %5447 = vmatmul.mubr.msk.bf16.gmra.mrb[28].mxu0 %vm292_vm0, %v5703_v30  ;;  %5455 = vmatmul.mubr.msk.bf16.gmra.mrb[28].mxu1 %vm292_vm0, %v5703_v30  ;;  %v5768_v30 = vld [vmem:[%s10722_s8 + $0x2c] ss:$16 sps:$4 sm:$0xff]  }
  0xc7   :  { %789 = vmatprep.mubr.bf16.mxu0 %v10727_v6  ;;  %902 = vmatprep.mubr.bf16.mxu1 %v10727_v6 }
  0xc8   :  { %4882 = vperm.xlu0 %5670, %v4880_v35   ;;  %v1056_v35 = vld [vmem:[#allocation6] sm:$0xff] }
  0xcc   :  { %5134 = vperm.xlu0 %5670, %v5132_v60  }
  0xce   :  { %5472 = vmatmul.mubr.msk.bf16.vlgmr.msra.gmra.mrb[32].mxu0 %vm292_vm0, %v5704_v33  ;;  %5480 = vmatmul.mubr.msk.bf16.vlgmr.msra.gmra.mrb[32].mxu1 %vm292_vm0, %v5704_v33  ;;  %v5771_v33 = vld [vmem:[%s10722_s8 + $0x28] ss:$16 sps:$4 sm:$0xff]  }
  0xcf   :  { %1226 = vmatpush1.bf16.msra.mxu0 %v6797_v34  ;;  %799 = vmatprep.mubr.bf16.mxu0 %v10727_v6 }
  0xd0   :  { %912 = vmatprep.mubr.bf16.mxu1 %v10727_v6  ;;  %1227 = vmatprep.subr.bf16.mxu0 %v6804_v36 }
  0xd1   :  { %1267 = vmatpush1.bf16.msra.mxu1 %v6809_v37 }
  0xd2   :  { %1268 = vmatprep.subr.bf16.mxu1 %v6816_v38 }
  0xd3   :  { %1228 = vmatpush1.bf16.msra.mxu0 %v6824_v40 }
  0xd4   :  { %1229 = vmatprep.subr.bf16.mxu0 %v6832_v41 }
  0xd5   :  { %1269 = vmatpush1.bf16.msra.mxu1 %v6838_v42 }
  0xd6   :  { %5473 = vmatmul.mubr.msk.bf16.gmra.mrb[36].mxu0 %vm292_vm0, %v5708_v43  ;;  %5481 = vmatmul.mubr.msk.bf16.gmra.mrb[36].mxu1 %vm292_vm0, %v5708_v43  ;;  %v5774_v43 = vld [vmem:[%s10722_s8 + $0x4c] ss:$16 sps:$4 sm:$0xff]  }
  0xd7   :  { %809 = vmatprep.mubr.bf16.mxu0 %v10727_v6  ;;  %922 = vmatprep.mubr.bf16.mxu1 %v10727_v6 }
  0xd8   :  { %1230 = vmatpush1.bf16.msra.mxu0 %v6848_v45  ;;  %1270 = vmatprep.subr.bf16.mxu1 %v6853_v46 }
  0xd9   :  { %1231 = vmatprep.subr.bf16.mxu0 %v6858_v47  ;;  %1271 = vmatpush1.bf16.msra.mxu1 %v6864_v48 }
  0xda   :  { %1272 = vmatprep.subr.bf16.mxu1 %v6871_v49 }
  0xdc   :  { %1232 = vmatpush1.bf16.msra.mxu0 %v6879_v50 }
  0xdd   :  { %1233 = vmatprep.subr.bf16.mxu0 %v6886_v51  ;;  %1273 = vmatpush1.bf16.msra.mxu1 %v6892_v52 }
  0xde   :  { %5474 = vmatmul.mubr.msk.bf16.gmra.mrb[40].mxu0 %vm292_vm0, %v5714_v53  ;;  %5482 = vmatmul.mubr.msk.bf16.gmra.mrb[40].mxu1 %vm292_vm0, %v5714_v53  ;;  %v5777_v53 = vld [vmem:[%s10722_s8 + $0x48] ss:$16 sps:$4 sm:$0xff]  }
  0xdf   :  { %819 = vmatprep.mubr.bf16.mxu0 %v10727_v6  ;;  %932 = vmatprep.mubr.bf16.mxu1 %v10727_v6 }
  0xe0   :  { %1234 = vmatpush1.bf16.msra.mxu0 %v6900_v54  ;;  %1274 = vmatprep.subr.bf16.mxu1 %v6905_v55 }
  0xe1   :  { %1235 = vmatprep.subr.bf16.mxu0 %v6911_v56  ;;  %1275 = vmatpush1.bf16.msra.mxu1 %v6917_v57 }
  0xe2   :  { %1276 = vmatprep.subr.bf16.mxu1 %v6924_v58 }
  0xe4   :  { %1236 = vmatpush1.bf16.msra.mxu0 %v6933_v59 }
  0xe5   :  { %1237 = vmatprep.subr.bf16.mxu0 %v6941_v61  ;;  %1277 = vmatpush1.bf16.msra.mxu1 %v6947_v62 }
  0xe6   :  { %5475 = vmatmul.mubr.msk.bf16.gmra.mrb[44].mxu0 %vm292_vm0, %v5721_v63  ;;  %5483 = vmatmul.mubr.msk.bf16.gmra.mrb[44].mxu1 %vm292_vm0, %v5721_v63  ;;  %v5778_v63 = vld [vmem:[%s10722_s8 + $0x64] ss:$16 sps:$4 sm:$0xff]  }
  0xe7   :  { %829 = vmatprep.mubr.bf16.mxu0 %v10727_v6  ;;  %942 = vmatprep.mubr.bf16.mxu1 %v10727_v6 }
  0xe8   :  { %1238 = vmatpush1.bf16.msra.mxu0 %v6955_v0  ;;  %1278 = vmatprep.subr.bf16.mxu1 %v6960_v1 }
  0xe9   :  { %1239 = vmatprep.subr.bf16.mxu0 %v6968_v2  ;;  %1279 = vmatpush1.bf16.msra.mxu1 %v6973_v3 }
  0xea   :  { %1280 = vmatprep.subr.bf16.mxu1 %v6980_v4 }
  0xec   :  { %1240 = vmatpush1.bf16.msra.mxu0 %v6990_v7 }
  0xed   :  { %1281 = vmatpush1.bf16.msra.mxu1 %v6997_v8  ;;  %1496 = vmatprep.subr.bf16.mxu0 %v7002_v9 }
  0xee   :  { %5476 = vmatmul.mubr.msk.bf16.gmra.mrb[48].mxu0 %vm292_vm0, %v5728_v10  ;;  %5484 = vmatmul.mubr.msk.bf16.gmra.mrb[48].mxu1 %vm292_vm0, %v5728_v10  ;;  %v5782_v10 = vld [vmem:[%s10722_s8 + $0x60] ss:$16 sps:$4 sm:$0xff]  }
  0xef   :  { %839 = vmatprep.mubr.bf16.mxu0 %v10727_v6  ;;  %952 = vmatprep.mubr.bf16.mxu1 %v10727_v6 }
  0xf0   :  { %1537 = vmatprep.subr.bf16.mxu1 %v7011_v11 }
  0xf6   :  { %5477 = vmatmul.mubr.msk.bf16.gmra.mrb[52].mxu0 %vm292_vm0, %v5735_v14  ;;  %5485 = vmatmul.mubr.msk.bf16.gmra.mrb[52].mxu1 %vm292_vm0, %v5735_v14  ;;  %v5784_v14 = vld [vmem:[%s10722_s8 + $0x84] ss:$16 sps:$4 sm:$0xff]  }
  0xf7   :  { %849 = vmatprep.mubr.bf16.mxu0 %v10727_v6  ;;  %962 = vmatprep.mubr.bf16.mxu1 %v10727_v6 }
  0xfe   :  { %5478 = vmatmul.mubr.msk.bf16.gmra.mrb[56].mxu0 %vm292_vm0, %v5742_v17  ;;  %5486 = vmatmul.mubr.msk.bf16.gmra.mrb[56].mxu1 %vm292_vm0, %v5742_v17  ;;  %v5789_v17 = vld [vmem:[%s10722_s8 + $0x88] ss:$16 sps:$4 sm:$0xff]  }
  0xff   :  { %859 = vmatprep.mubr.bf16.mxu0 %v10727_v6  ;;  %972 = vmatprep.mubr.bf16.mxu1 %v10727_v6 }
 0x106   :  { %5479 = vmatmul.mubr.msk.bf16.gmra.mrb[60].mxu0 %vm292_vm0, %v5752_v20  ;;  %5487 = vmatmul.mubr.msk.bf16.gmra.mrb[60].mxu1 %vm292_vm0, %v5752_v20  ;;  %vm5665_vm0 = vcmp.gt.s32.totalorder %v6790_v32, 15  ;;  %v5794_v20 = vld [vmem:[%s10722_s8 + $0xa0] ss:$16 sps:$4 sm:$0xff]  }
 0x107   :  { %1257 = vmatprep.mubr.bf16.mxu0 %v10727_v6  ;;  %1298 = vmatprep.mubr.bf16.mxu1 %v10727_v6  ;;  %v5383_v13 = vsel %vm5665_vm0, 1, %v10727_v6 }
 0x108   :  { %5385 = vperm.xlu0 %5670, %v5383_v13  }
 0x10e   :  { %1258 = vmatmul.mubr.bf16.vlgmr.msra.gmra.mrb[64].mxu0 %v7050_v26  ;;  %1299 = vmatmul.mubr.bf16.vlgmr.msra.gmra.mrb[64].mxu1 %v7050_v26 }
 0x10f   :  { %1497 = vmatpush1.bf16.msra.mxu0 %v5764_v27  ;;  %1538 = vmatpush1.bf16.msra.mxu1 %v5765_v28  ;;  %v5800_v27 = vld [vmem:[%s10722_s8 + $0xc0] ss:$16 sps:$4 sm:$0xff]   ;;  %v5801_v28 = vld [vmem:[%s10722_s8 + $0xc8] ss:$16 sps:$4 sm:$0xff]  }
 0x110   :  { %1498 = vmatprep.subr.bf16.mxu0 %v5766_v29  ;;  %1539 = vmatprep.subr.bf16.mxu1 %v5768_v30  ;;  %v5802_v29 = vld [vmem:[%s10722_s8 + $0xe4] ss:$16 sps:$4 sm:$0xff]   ;;  %v5804_v30 = vld [vmem:[%s10722_s8 + $0xec] ss:$16 sps:$4 sm:$0xff]  }
 0x111   :  { %1528 = vmatprep.mubr.bf16.mxu0 %v10727_v6  ;;  %1569 = vmatprep.mubr.bf16.mxu1 %v10727_v6 }
 0x113   :  { %1499 = vmatpush1.bf16.msra.mxu0 %v5770_v31  ;;  %1540 = vmatpush1.bf16.msra.mxu1 %v5771_v33  ;;  %v5806_v31 = vld [vmem:[%s10722_s8 + $0xe0] ss:$16 sps:$4 sm:$0xff]   ;;  %v5807_v33 = vld [vmem:[%s10722_s8 + $0xe8] ss:$16 sps:$4 sm:$0xff]  }
 0x114   :  { %1500 = vmatprep.subr.bf16.mxu0 %v5772_v39  ;;  %1541 = vmatprep.subr.bf16.mxu1 %v5774_v43  ;;  %v7152_v39 = vpack.c.bf16 %v1056_v35, %v1056_v35 }
 0x117   :  { %1501 = vmatpush1.bf16.msra.mxu0 %v5776_v44  ;;  %1542 = vmatpush1.bf16.msra.mxu1 %v5777_v53 }
 0x118   :  { %1502 = vmatprep.subr.bf16.mxu0 %v5778_v63  ;;  %1543 = vmatprep.subr.bf16.mxu1 %v5780_v5 }
 0x11b   :  { %1503 = vmatpush1.bf16.msra.mxu0 %v5782_v10  ;;  %1544 = vmatpush1.bf16.msra.mxu1 %v5783_v12 }
 0x11c   :  { %1504 = vmatprep.subr.bf16.mxu0 %v5784_v14  ;;  %1545 = vmatprep.subr.bf16.mxu1 %v5786_v15 }
 0x11f   :  { %1505 = vmatpush1.bf16.msra.mxu0 %v5788_v16  ;;  %1546 = vmatpush1.bf16.msra.mxu1 %v5789_v17 }
 0x120   :  { %1506 = vmatprep.subr.bf16.mxu0 %v5790_v18  ;;  %1547 = vmatprep.subr.bf16.mxu1 %v5792_v19 }
 0x123   :  { %1507 = vmatpush1.bf16.msra.mxu0 %v5794_v20  ;;  %1548 = vmatpush1.bf16.msra.mxu1 %v5795_v21 }
 0x124   :  { %1508 = vmatprep.subr.bf16.mxu0 %v5796_v22  ;;  %1549 = vmatprep.subr.bf16.mxu1 %v5798_v24 }
 0x127   :  { %1509 = vmatpush1.bf16.msra.mxu0 %v5800_v27  ;;  %1550 = vmatpush1.bf16.msra.mxu1 %v5801_v28 }
 0x128   :  { %1510 = vmatprep.subr.bf16.mxu0 %v5802_v29  ;;  %1551 = vmatprep.subr.bf16.mxu1 %v5804_v30 }
 0x12b   :  { %1511 = vmatpush1.bf16.msra.mxu0 %v5806_v31  ;;  %1552 = vmatpush1.bf16.msra.mxu1 %v5807_v33 }
 0x12c   :  { %1636 = vmatprep.subr.bf16.mxu0 %v6735_v23  ;;  %1677 = vmatprep.subr.bf16.mxu1 %v6744_v25  ;;  %v192_v23 = vlaneseq }
 0x12e   :  { %1529 = vmatmul.mubr.bf16.vlgmr.msra.gmra.mrb[68].mxu0 %v7152_v39  ;;  %1570 = vmatmul.mubr.bf16.vlgmr.msra.gmra.mrb[68].mxu1 %v7152_v39  ;;  %v7192_v25 = vshrl.u32 %v192_v23, 7 }
 0x12f   :  { %1637 = vmatpush1.bf16.msra.mxu0 %v6797_v34  ;;  %1678 = vmatpush1.bf16.msra.mxu1 %v6809_v37 }
 0x130   :  { %1638 = vmatprep.subr.bf16.mxu0 %v6804_v36  ;;  %1679 = vmatprep.subr.bf16.mxu1 %v6816_v38  ;;  %v10731_v34 = vsub.s32 2, %v7192_v25  ;;  %v10729_v36 = vsub.s32 3, %v7192_v25  ;;  %v10732_v37 = vsub.s32 0, %v7192_v25  ;;  %v190_v38 = vld [vmem:[%s10723_s9] sm:$0xf] }
 0x131   :  { %1668 = vmatprep.mubr.bf16.mxu0 %v10727_v6  ;;  %1709 = vmatprep.mubr.bf16.mxu1 %v10727_v6 }
 0x133   :  { %1639 = vmatpush1.bf16.msra.mxu0 %v6824_v40  ;;  %1680 = vmatpush1.bf16.msra.mxu1 %v6838_v42  ;;  %v10730_v40 = vsub.s32 1, %v7192_v25 }
 0x134   :  { %1640 = vmatprep.subr.bf16.mxu0 %v6832_v41  ;;  %1681 = vmatprep.subr.bf16.mxu1 %v6853_v46  ;;  %v7203_v41 = vrot.slane %v190_v38, %v10731_v34  ;;  %v7211_v46 = vrot.slane %v190_v38, %v10729_v36 }
 0x137   :  { %1641 = vmatpush1.bf16.msra.mxu0 %v6848_v45  ;;  %1682 = vmatpush1.bf16.msra.mxu1 %v6864_v48 }
 0x138   :  { %1642 = vmatprep.subr.bf16.mxu0 %v6858_v47  ;;  %1683 = vmatprep.subr.bf16.mxu1 %v6871_v49  ;;  %v7215_v47 = vrot.slane %v190_v38, %v10732_v37 }
 0x13b   :  { %1643 = vmatpush1.bf16.msra.mxu0 %v6879_v50  ;;  %1684 = vmatpush1.bf16.msra.mxu1 %v6892_v52  ;;  %v7223_v50 = vrot.slane %v190_v38, %v10730_v40 }
 0x13c   :  { %1644 = vmatprep.subr.bf16.mxu0 %v6886_v51  ;;  %1685 = vmatprep.subr.bf16.mxu1 %v6905_v55 }
 0x13f   :  { %1645 = vmatpush1.bf16.msra.mxu0 %v6900_v54  ;;  %1686 = vmatpush1.bf16.msra.mxu1 %v6917_v57 }
 0x140   :  { %1646 = vmatprep.subr.bf16.mxu0 %v6911_v56  ;;  %1687 = vmatprep.subr.bf16.mxu1 %v6924_v58 }
 0x143   :  { %1647 = vmatpush1.bf16.msra.mxu0 %v6933_v59  ;;  %1688 = vmatpush1.bf16.msra.mxu1 %v6947_v62 }
 0x144   :  { %1648 = vmatprep.subr.bf16.mxu0 %v6941_v61  ;;  %1689 = vmatprep.subr.bf16.mxu1 %v6960_v1 }
 0x147   :  { %1649 = vmatpush1.bf16.msra.mxu0 %v6955_v0  ;;  %1690 = vmatpush1.bf16.msra.mxu1 %v6973_v3 }
 0x148   :  { %1650 = vmatprep.subr.bf16.mxu0 %v6968_v2  ;;  %1691 = vmatprep.subr.bf16.mxu1 %v6980_v4 }
 0x14b   :  { %1651 = vmatpush1.bf16.msra.mxu0 %v6990_v7  ;;  %1692 = vmatpush1.bf16.msra.mxu1 %v6997_v8 }
 0x14c   :  { %1747 = vmatprep.subr.bf16.mxu0 %v7002_v9  ;;  %1788 = vmatprep.subr.bf16.mxu1 %v7011_v11 }
 0x161   :  { %v7205_v42 = vpop.f32.mrb[0].mxu0  ;;  %v7207_v45 = vpop.f32.mrb[0].mxu1 }
 0x162   :  { %v7217_v48 = vpop.f32.mrb[1].mxu0  ;;  %v7219_v49 = vpop.f32.mrb[1].mxu1 }
 0x163   :  { %v355_v51 = vpop.f32.mrb[2].mxu0  ;;  %v468_v52 = vpop.f32.mrb[2].mxu1 }
 0x164   :  { %v7226_v54 = vadd.f32 %v355_v51, %v7215_v47  ;;  %v357_v55 = vpop.f32.mrb[3].mxu0  ;;  %v7229_v56 = vadd.f32 %v468_v52, %v7203_v41  ;;  %v470_v57 = vpop.f32.mrb[3].mxu1 }
 0x165   :  { %v7232_v58 = vadd.f32 %v357_v55, %v7223_v50  ;;  %v7235_v59 = vadd.f32 %v470_v57, %v7211_v46 }
 0x169   :  { %v361_v61 = vpop.f32.mrb[4].mxu0  ;;  %v474_v62 = vpop.f32.mrb[4].mxu1 }
 0x16a   :  { %v7238_v0 = vadd.f32 %v361_v61, %v7215_v47  ;;  %v363_v1 = vpop.f32.mrb[5].mxu0  ;;  %v7241_v2 = vadd.f32 %v474_v62, %v7203_v41  ;;  %v476_v3 = vpop.f32.mrb[5].mxu1 }
 0x16b   :  { %v7244_v4 = vadd.f32 %v363_v1, %v7223_v50  ;;  %v365_v7 = vpop.f32.mrb[6].mxu0  ;;  %v7247_v8 = vadd.f32 %v476_v3, %v7211_v46  ;;  %v478_v9 = vpop.f32.mrb[6].mxu1 }
 0x16c   :  { %10959 = vst [vmem:[#allocation10_spill] sm:$0xff] %v7238_v0  ;;  %10960 = vst [vmem:[#allocation11_spill] sm:$0xff] %v7241_v2  ;;  %v7250_v11 = vadd.f32 %v365_v7, %v7215_v47  ;;  %v367_v43 = vpop.f32.mrb[7].mxu0  ;;  %v7253_v44 = vadd.f32 %v478_v9, %v7203_v41  ;;  %v480_v53 = vpop.f32.mrb[7].mxu1  ;;  %v7981_v2 = vld [vmem:[%s10721_s7 + $0x6c] ss:$16 sps:$4 sm:$0xff]  }
 0x16d   :  { %10961 = vst [vmem:[#allocation12_spill] sm:$0xff] %v7244_v4  ;;  %10962 = vst [vmem:[#allocation13_spill] sm:$0xff] %v7247_v8  ;;  %v7256_v60 = vadd.f32 %v367_v43, %v7223_v50  ;;  %v7259_v63 = vadd.f32 %v480_v53, %v7211_v46  ;;  %v7969_v8 = vld [vmem:[%s10721_s7 + $0x48] ss:$16 sps:$4 sm:$0xff]   ;;  %v7975_v4 = vld [vmem:[%s10721_s7 + $0x64] ss:$16 sps:$4 sm:$0xff]  }
 0x16e   :  { %10963 = vst [vmem:[#allocation14_spill] sm:$0xff] %v7250_v11  ;;  %10964 = vst [vmem:[#allocation15_spill] sm:$0xff] %v7253_v44  ;;  %v7919_v44 = vld [vmem:[%s10721_s7 + $0x8] ss:$16 sps:$4 sm:$0xff]   ;;  %v7939_v11 = vld [vmem:[%s10721_s7 + $0x20] ss:$16 sps:$4 sm:$0xff]  }
 0x16f   :  { %10965 = vst [vmem:[#allocation16_spill] sm:$0xff] %v7256_v60  ;;  %10966 = vst [vmem:[#allocation17_spill] sm:$0xff] %v7259_v63  ;;  %v7913_v60 = vld [vmem:[%s10721_s7] ss:$16 sps:$4 sm:$0xff]  }
 0x170   :  { %11080 = vst [vmem:[#allocation126_spill] sm:$0xff] %v7913_v60  ;;  %11081 = vst [vmem:[#allocation127_spill] sm:$0xff] %v7919_v44  ;;  %v7987_v0 = vld [vmem:[%s10721_s7 + $0x60] ss:$16 sps:$4 sm:$0xff]  }
 0x171   :  { %v371_v5 = vpop.f32.mrb[8].mxu0  ;;  %v484_v10 = vpop.f32.mrb[8].mxu1  ;;  %11084 = vst [vmem:[#allocation130_spill] sm:$0xff] %v7939_v11  ;;  %11089 = vst [vmem:[#allocation135_spill] sm:$0xff] %v7969_v8 }
 0x172   :  { %v7262_v12 = vadd.f32 %v371_v5, %v7215_v47  ;;  %v373_v13 = vpop.f32.mrb[9].mxu0  ;;  %v7265_v14 = vadd.f32 %v484_v10, %v7203_v41  ;;  %v486_v15 = vpop.f32.mrb[9].mxu1  ;;  %11090 = vst [vmem:[#allocation136_spill] sm:$0xff] %v7975_v4  ;;  %11091 = vst [vmem:[#allocation137_spill] sm:$0xff] %v7981_v2 }
 0x173   :  { %v7268_v16 = vadd.f32 %v373_v13, %v7223_v50  ;;  %v375_v17 = vpop.f32.mrb[10].mxu0  ;;  %v7271_v18 = vadd.f32 %v486_v15, %v7211_v46  ;;  %v488_v19 = vpop.f32.mrb[10].mxu1  ;;  %11092 = vst [vmem:[#allocation138_spill] sm:$0xff] %v7987_v0 }
 0x174   :  { %10967 = vst [vmem:[#allocation18_spill] sm:$0xff] %v7262_v12  ;;  %10968 = vst [vmem:[#allocation19_spill] sm:$0xff] %v7265_v14  ;;  %v7274_v20 = vadd.f32 %v375_v17, %v7215_v47  ;;  %v377_v21 = vpop.f32.mrb[11].mxu0  ;;  %v7277_v22 = vadd.f32 %v488_v19, %v7203_v41  ;;  %v490_v24 = vpop.f32.mrb[11].mxu1  ;;  %v7864_v14 = vld [vmem:[%s10722_s8 + $0xe4] ss:$16 sps:$4 sm:$0xff]  }
 0x175   :  { %10969 = vst [vmem:[#allocation20_spill] sm:$0xff] %v7268_v16  ;;  %10970 = vst [vmem:[#allocation21_spill] sm:$0xff] %v7271_v18  ;;  %v7280_v27 = vadd.f32 %v377_v21, %v7223_v50  ;;  %v7283_v28 = vadd.f32 %v490_v24, %v7211_v46  ;;  %v7870_v12 = vld [vmem:[%s10722_s8 + $0xec] ss:$16 sps:$4 sm:$0xff]  }
 0x176   :  { %10971 = vst [vmem:[#allocation22_spill] sm:$0xff] %v7274_v20  ;;  %10972 = vst [vmem:[#allocation23_spill] sm:$0xff] %v7277_v22 }
 0x177   :  { %10973 = vst [vmem:[#allocation24_spill] sm:$0xff] %v7280_v27  ;;  %10974 = vst [vmem:[#allocation25_spill] sm:$0xff] %v7283_v28 }
 0x179   :  { %v381_v29 = vpop.f32.mrb[12].mxu0  ;;  %v494_v30 = vpop.f32.mrb[12].mxu1 }
 0x17a   :  { %v7286_v31 = vadd.f32 %v381_v29, %v7215_v47  ;;  %v383_v33 = vpop.f32.mrb[13].mxu0  ;;  %v7289_v35 = vadd.f32 %v494_v30, %v7203_v41  ;;  %v496_v23 = vpop.f32.mrb[13].mxu1 }
 0x17b   :  { %v7292_v38 = vadd.f32 %v383_v33, %v7223_v50  ;;  %v385_v51 = vpop.f32.mrb[14].mxu0  ;;  %v7295_v52 = vadd.f32 %v496_v23, %v7211_v46  ;;  %v498_v55 = vpop.f32.mrb[14].mxu1 }
 0x17c   :  { %10975 = vst [vmem:[#allocation26_spill] sm:$0xff] %v7286_v31  ;;  %10976 = vst [vmem:[#allocation27_spill] sm:$0xff] %v7289_v35  ;;  %v7298_v57 = vadd.f32 %v385_v51, %v7215_v47  ;;  %v387_v61 = vpop.f32.mrb[15].mxu0  ;;  %v7301_v62 = vadd.f32 %v498_v55, %v7203_v41  ;;  %v500_v1 = vpop.f32.mrb[15].mxu1 }
 0x17d   :  { %10977 = vst [vmem:[#allocation28_spill] sm:$0xff] %v7292_v38  ;;  %10978 = vst [vmem:[#allocation29_spill] sm:$0xff] %v7295_v52  ;;  %v7304_v3 = vadd.f32 %v387_v61, %v7223_v50  ;;  %v7307_v7 = vadd.f32 %v500_v1, %v7211_v46 }
 0x17e   :  { %10979 = vst [vmem:[#allocation30_spill] sm:$0xff] %v7298_v57  ;;  %10980 = vst [vmem:[#allocation31_spill] sm:$0xff] %v7301_v62 }
 0x17f   :  { %10981 = vst [vmem:[#allocation32_spill] sm:$0xff] %v7304_v3  ;;  %10982 = vst [vmem:[#allocation33_spill] sm:$0xff] %v7307_v7 }
 0x181   :  { %v391_v9 = vpop.f32.mrb[16].mxu0  ;;  %v504_v43 = vpop.f32.mrb[16].mxu1 }
 0x182   :  { %v7310_v53 = vadd.f32 %v391_v9, %v7215_v47  ;;  %v393_v5 = vpop.f32.mrb[17].mxu0  ;;  %v7313_v10 = vadd.f32 %v504_v43, %v7203_v41  ;;  %v506_v13 = vpop.f32.mrb[17].mxu1 }
 0x183   :  { %v7316_v15 = vadd.f32 %v393_v5, %v7223_v50  ;;  %v395_v17 = vpop.f32.mrb[18].mxu0  ;;  %v7319_v19 = vadd.f32 %v506_v13, %v7211_v46  ;;  %v508_v21 = vpop.f32.mrb[18].mxu1 }
 0x184   :  { %10983 = vst [vmem:[#allocation34_spill] sm:$0xff] %v7310_v53  ;;  %10984 = vst [vmem:[#allocation35_spill] sm:$0xff] %v7313_v10  ;;  %v7322_v24 = vadd.f32 %v395_v17, %v7215_v47  ;;  %v397_v29 = vpop.f32.mrb[19].mxu0  ;;  %v7325_v30 = vadd.f32 %v508_v21, %v7203_v41  ;;  %v510_v33 = vpop.f32.mrb[19].mxu1 }
 0x185   :  { %10985 = vst [vmem:[#allocation36_spill] sm:$0xff] %v7316_v15  ;;  %10986 = vst [vmem:[#allocation37_spill] sm:$0xff] %v7319_v19  ;;  %v7328_v23 = vadd.f32 %v397_v29, %v7223_v50  ;;  %v7331_v51 = vadd.f32 %v510_v33, %v7211_v46 }
 0x186   :  { %10987 = vst [vmem:[#allocation38_spill] sm:$0xff] %v7322_v24  ;;  %10988 = vst [vmem:[#allocation39_spill] sm:$0xff] %v7325_v30 }
 0x187   :  { %10989 = vst [vmem:[#allocation40_spill] sm:$0xff] %v7328_v23  ;;  %10990 = vst [vmem:[#allocation41_spill] sm:$0xff] %v7331_v51  ;;  %v2618_v51 = vstv %s2617_s15 }
 0x188   :  { %vm2619_vm5 = vcmp.lt.s32.totalorder %v2618_v51, %v6790_v32 }
 0x189   :  { %v401_v55 = vpop.f32.mrb[20].mxu0  ;;  %v514_v61 = vpop.f32.mrb[20].mxu1 }
 0x18a   :  { %v7334_v1 = vadd.f32 %v401_v55, %v7215_v47  ;;  %v403_v9 = vpop.f32.mrb[21].mxu0  ;;  %v7337_v43 = vadd.f32 %v514_v61, %v7203_v41  ;;  %v516_v5 = vpop.f32.mrb[21].mxu1 }
 0x18b   :  { %v7340_v13 = vadd.f32 %v403_v9, %v7223_v50  ;;  %v405_v17 = vpop.f32.mrb[22].mxu0  ;;  %v7343_v21 = vadd.f32 %v516_v5, %v7211_v46  ;;  %v518_v29 = vpop.f32.mrb[22].mxu1 }
 0x18c   :  { %10991 = vst [vmem:[#allocation42_spill] sm:$0xff] %v7334_v1  ;;  %10992 = vst [vmem:[#allocation43_spill] sm:$0xff] %v7337_v43  ;;  %v7346_v33 = vadd.f32 %v405_v17, %v7215_v47  ;;  %v407_v6 = vpop.f32.mrb[23].mxu0  ;;  %v7349_v55 = vadd.f32 %v518_v29, %v7203_v41  ;;  %v520_v36 = vpop.f32.mrb[23].mxu1 }
 0x18d   :  { %10993 = vst [vmem:[#allocation44_spill] sm:$0xff] %v7340_v13  ;;  %10994 = vst [vmem:[#allocation45_spill] sm:$0xff] %v7343_v21  ;;  %v7352_v61 = vadd.f32 %v407_v6, %v7223_v50  ;;  %v7355_v40 = vadd.f32 %v520_v36, %v7211_v46 }
 0x18e   :  { %10995 = vst [vmem:[#allocation46_spill] sm:$0xff] %v7346_v33  ;;  %10996 = vst [vmem:[#allocation47_spill] sm:$0xff] %v7349_v55 }
 0x18f   :  { %10997 = vst [vmem:[#allocation48_spill] sm:$0xff] %v7352_v61  ;;  %10998 = vst [vmem:[#allocation49_spill] sm:$0xff] %v7355_v40 }
 0x191   :  { %v411_v9 = vpop.f32.mrb[24].mxu0  ;;  %v524_v34 = vpop.f32.mrb[24].mxu1 }
 0x192   :  { %v7358_v5 = vadd.f32 %v411_v9, %v7215_v47  ;;  %v413_v37 = vpop.f32.mrb[25].mxu0  ;;  %v7361_v17 = vadd.f32 %v524_v34, %v7203_v41  ;;  %v526_v33 = vpop.f32.mrb[25].mxu1 }
 0x193   :  { %v7364_v29 = vadd.f32 %v413_v37, %v7223_v50  ;;  %v415_v55 = vpop.f32.mrb[26].mxu0  ;;  %v7367_v6 = vadd.f32 %v526_v33, %v7211_v46  ;;  %v528_v61 = vpop.f32.mrb[26].mxu1 }
 0x194   :  { %10999 = vst [vmem:[#allocation50_spill] sm:$0xff] %v7358_v5  ;;  %11000 = vst [vmem:[#allocation51_spill] sm:$0xff] %v7361_v17  ;;  %v7370_v36 = vadd.f32 %v415_v55, %v7215_v47  ;;  %v417_v40 = vpop.f32.mrb[27].mxu0  ;;  %v7373_v9 = vadd.f32 %v528_v61, %v7203_v41  ;;  %v530_v5 = vpop.f32.mrb[27].mxu1 }
 0x195   :  { %11001 = vst [vmem:[#allocation52_spill] sm:$0xff] %v7364_v29  ;;  %11002 = vst [vmem:[#allocation53_spill] sm:$0xff] %v7367_v6  ;;  %v7376_v34 = vadd.f32 %v417_v40, %v7223_v50  ;;  %v7379_v17 = vadd.f32 %v530_v5, %v7211_v46  ;;  %v631_v40 = vld [vmem:[%s10724_s10] sm:$0xf]  ;;  %s1861_s10 = sadd.s32 14, %s6648_s22 }
 0x196   :  { %11003 = vst [vmem:[#allocation54_spill] sm:$0xff] %v7370_v36  ;;  %11004 = vst [vmem:[#allocation55_spill] sm:$0xff] %v7373_v9 }
 0x197   :  { %11005 = vst [vmem:[#allocation56_spill] sm:$0xff] %v7376_v34  ;;  %11006 = vst [vmem:[#allocation57_spill] sm:$0xff] %v7379_v17  ;;  %v11015_v34 = vsub.s32 0, %v7192_v25 }
 0x199   :  { %v421_v37 = vpop.f32.mrb[28].mxu0  ;;  %v534_v29 = vpop.f32.mrb[28].mxu1  ;;  %v7410_v21 = vrot.slane %v631_v40, %v11015_v34 }
 0x19a   :  { %v7382_v33 = vadd.f32 %v421_v37, %v7215_v47  ;;  %v423_v6 = vpop.f32.mrb[29].mxu0  ;;  %v7385_v55 = vadd.f32 %v534_v29, %v7203_v41  ;;  %v536_v36 = vpop.f32.mrb[29].mxu1 }
 0x19b   :  { %v7388_v61 = vadd.f32 %v423_v6, %v7223_v50  ;;  %v425_v9 = vpop.f32.mrb[30].mxu0  ;;  %v7394_v5 = vadd.f32 %v536_v36, %v7211_v46  ;;  %v538_v17 = vpop.f32.mrb[30].mxu1  ;;  %v11016_v36 = vsub.s32 2, %v7192_v25 }
 0x19c   :  { %11007 = vst [vmem:[#allocation58_spill] sm:$0xff] %v7382_v33  ;;  %11008 = vst [vmem:[#allocation59_spill] sm:$0xff] %v7385_v55  ;;  %v7397_v37 = vadd.f32 %v425_v9, %v7215_v47  ;;  %v427_v33 = vpop.f32.mrb[31].mxu0  ;;  %v7400_v29 = vadd.f32 %v538_v17, %v7203_v41  ;;  %v540_v55 = vpop.f32.mrb[31].mxu1  ;;  %v11017_v9 = vsub.s32 1, %v7192_v25  ;;  %v11018_v17 = vsub.s32 3, %v7192_v25 }
 0x19d   :  { %11009 = vst [vmem:[#allocation60_spill] sm:$0xff] %v7388_v61  ;;  %11010 = vst [vmem:[#allocation61_spill] sm:$0xff] %v7394_v5  ;;  %v7403_v6 = vadd.f32 %v427_v33, %v7223_v50  ;;  %v7406_v61 = vadd.f32 %v540_v55, %v7211_v46  ;;  %v7414_v5 = vrot.slane %v631_v40, %v11016_v36 }
 0x19e   :  { %11011 = vst [vmem:[#allocation62_spill] sm:$0xff] %v7397_v37  ;;  %11012 = vst [vmem:[#allocation63_spill] sm:$0xff] %v7400_v29  ;;  %v7418_v37 = vrot.slane %v631_v40, %v11017_v9  ;;  %v7422_v29 = vrot.slane %v631_v40, %v11018_v17 }
 0x19f   :  { %11013 = vst [vmem:[#allocation64_spill] sm:$0xff] %v7403_v6  ;;  %11014 = vst [vmem:[#allocation65_spill] sm:$0xff] %v7406_v61 }
 0x1a1   :  { %v791_v33 = vpop.f32.mrb[32].mxu0  ;;  %v904_v6 = vpop.f32.mrb[32].mxu1 }
 0x1a2   :  { %v7425_v55 = vadd.f32 %v791_v33, %v7410_v21  ;;  %v793_v61 = vpop.f32.mrb[33].mxu0  ;;  %v7428_v34 = vadd.f32 %v904_v6, %v7414_v5  ;;  %v906_v13 = vpop.f32.mrb[33].mxu1 }
 0x1a3   :  { %v7431_v36 = vadd.f32 %v793_v61, %v7418_v37  ;;  %v795_v43 = vpop.f32.mrb[34].mxu0  ;;  %v7434_v9 = vadd.f32 %v906_v13, %v7422_v29  ;;  %v908_v25 = vpop.f32.mrb[34].mxu1 }
 0x1a4   :  { %11019 = vst [vmem:[#allocation66_spill] sm:$0xff] %v7425_v55  ;;  %11020 = vst [vmem:[#allocation67_spill] sm:$0xff] %v7428_v34  ;;  %v7437_v40 = vadd.f32 %v795_v43, %v7410_v21  ;;  %v797_v17 = vpop.f32.mrb[35].mxu0  ;;  %v7440_v33 = vadd.f32 %v908_v25, %v7414_v5  ;;  %v910_v55 = vpop.f32.mrb[35].mxu1 }
 0x1a5   :  { %11021 = vst [vmem:[#allocation68_spill] sm:$0xff] %v7431_v36  ;;  %11022 = vst [vmem:[#allocation69_spill] sm:$0xff] %v7434_v9  ;;  %v7443_v6 = vadd.f32 %v797_v17, %v7418_v37  ;;  %v7446_v34 = vadd.f32 %v910_v55, %v7422_v29 }
 0x1a6   :  { %11023 = vst [vmem:[#allocation70_spill] sm:$0xff] %v7437_v40  ;;  %11024 = vst [vmem:[#allocation71_spill] sm:$0xff] %v7440_v33 }
 0x1a7   :  { %11025 = vst [vmem:[#allocation72_spill] sm:$0xff] %v7443_v6  ;;  %11026 = vst [vmem:[#allocation73_spill] sm:$0xff] %v7446_v34 }
 0x1a9   :  { %v801_v61 = vpop.f32.mrb[36].mxu0  ;;  %v914_v36 = vpop.f32.mrb[36].mxu1 }
 0x1aa   :  { %v7449_v13 = vadd.f32 %v801_v61, %v7410_v21  ;;  %v803_v9 = vpop.f32.mrb[37].mxu0  ;;  %v7452_v43 = vadd.f32 %v914_v36, %v7414_v5  ;;  %v916_v40 = vpop.f32.mrb[37].mxu1 }
 0x1ab   :  { %v7455_v25 = vadd.f32 %v803_v9, %v7418_v37  ;;  %v805_v33 = vpop.f32.mrb[38].mxu0  ;;  %v7458_v17 = vadd.f32 %v916_v40, %v7422_v29  ;;  %v918_v6 = vpop.f32.mrb[38].mxu1 }
 0x1ac   :  { %11027 = vst [vmem:[#allocation74_spill] sm:$0xff] %v7449_v13  ;;  %11028 = vst [vmem:[#allocation75_spill] sm:$0xff] %v7452_v43  ;;  %v7461_v55 = vadd.f32 %v805_v33, %v7410_v21  ;;  %v807_v34 = vpop.f32.mrb[39].mxu0  ;;  %v7464_v61 = vadd.f32 %v918_v6, %v7414_v5  ;;  %v920_v36 = vpop.f32.mrb[39].mxu1 }
 0x1ad   :  { %11029 = vst [vmem:[#allocation76_spill] sm:$0xff] %v7455_v25  ;;  %11030 = vst [vmem:[#allocation77_spill] sm:$0xff] %v7458_v17  ;;  %v7467_v43 = vadd.f32 %v807_v34, %v7418_v37  ;;  %v7470_v9 = vadd.f32 %v920_v36, %v7422_v29 }
 0x1ae   :  { %11031 = vst [vmem:[#allocation78_spill] sm:$0xff] %v7461_v55  ;;  %11032 = vst [vmem:[#allocation79_spill] sm:$0xff] %v7464_v61 }
 0x1af   :  { %11033 = vst [vmem:[#allocation80_spill] sm:$0xff] %v7467_v43  ;;  %11034 = vst [vmem:[#allocation81_spill] sm:$0xff] %v7470_v9  ;;  %v11041_v43 = vmov 0  }
 0x1b1   :  { %v811_v25 = vpop.f32.mrb[40].mxu0  ;;  %v924_v40 = vpop.f32.mrb[40].mxu1 }
 0x1b2   :  { %v7473_v17 = vadd.f32 %v811_v25, %v7410_v21  ;;  %v813_v33 = vpop.f32.mrb[41].mxu0  ;;  %v7476_v13 = vadd.f32 %v924_v40, %v7414_v5  ;;  %v926_v55 = vpop.f32.mrb[41].mxu1 }
 0x1b3   :  { %v7479_v6 = vadd.f32 %v813_v33, %v7418_v37  ;;  %v815_v61 = vpop.f32.mrb[42].mxu0  ;;  %v7482_v34 = vadd.f32 %v926_v55, %v7422_v29  ;;  %v928_v36 = vpop.f32.mrb[42].mxu1 }
 0x1b4   :  { %11035 = vst [vmem:[#allocation82_spill] sm:$0xff] %v7473_v17  ;;  %11036 = vst [vmem:[#allocation83_spill] sm:$0xff] %v7476_v13  ;;  %v7488_v25 = vadd.f32 %v815_v61, %v7410_v21  ;;  %v817_v9 = vpop.f32.mrb[43].mxu0  ;;  %v7491_v40 = vadd.f32 %v928_v36, %v7414_v5  ;;  %v930_v33 = vpop.f32.mrb[43].mxu1  ;;  %v1862_v13 = vstv %s1861_s10  ;;  %v2114_v61 = vstv %s2113_s13 }
 0x1b5   :  { %11037 = vst [vmem:[#allocation84_spill] sm:$0xff] %v7479_v6  ;;  %11038 = vst [vmem:[#allocation85_spill] sm:$0xff] %v7482_v34  ;;  %v1856_v6 = vsel %vm5567_vm1, 1, %v11041_v43  ;;  %v7495_v55 = vadd.f32 %v817_v9, %v7418_v37  ;;  %v7498_v34 = vadd.f32 %v930_v33, %v7422_v29  ;;  %vm1863_vm2 = vcmp.lt.s32.totalorder %v1862_v13, %v6790_v32 }
 0x1b6   :  { %11039 = vst [vmem:[#allocation86_spill] sm:$0xff] %v7488_v25  ;;  %11040 = vst [vmem:[#allocation87_spill] sm:$0xff] %v7491_v40  ;;  %1858 = vperm.xlu1 %5671, %v1856_v6   ;;  %v1864_v17 = vsel %vm1863_vm2, 1, %v11041_v43  ;;  %vm2115_vm3 = vcmp.lt.s32.totalorder %v2114_v61, %v6790_v32  ;;  %v2366_v36 = vstv %s2365_s14 }
 0x1b7   :  { %11042 = vst [vmem:[#allocation88_spill] sm:$0xff] %v7495_v55  ;;  %11043 = vst [vmem:[#allocation89_spill] sm:$0xff] %v7498_v34  ;;  %v2116_v6 = vsel %vm2115_vm3, 1, %v11041_v43  ;;  %vm2367_vm4 = vcmp.lt.s32.totalorder %v2366_v36, %v6790_v32 }
 0x1b8   :  { %v2368_v36 = vsel %vm2367_vm4, 1, %v11041_v43 }
 0x1b9   :  { %v821_v40 = vpop.f32.mrb[44].mxu0  ;;  %v934_v25 = vpop.f32.mrb[44].mxu1 }
 0x1ba   :  { %1866 = vperm.xlu1 %5671, %v1864_v17   ;;  %v7506_v9 = vadd.f32 %v821_v40, %v7410_v21  ;;  %v823_v55 = vpop.f32.mrb[45].mxu0  ;;  %v7509_v33 = vadd.f32 %v934_v25, %v7414_v5  ;;  %v936_v13 = vpop.f32.mrb[45].mxu1 }
 0x1bb   :  { %v7513_v34 = vadd.f32 %v823_v55, %v7418_v37  ;;  %v825_v61 = vpop.f32.mrb[46].mxu0  ;;  %v7516_v1 = vadd.f32 %v936_v13, %v7422_v29  ;;  %v938_v17 = vpop.f32.mrb[46].mxu1  ;;  %v2870_v13 = vstv %s2869_s4 }
 0x1bc   :  { %11044 = vst [vmem:[#allocation90_spill] sm:$0xff] %v7506_v9  ;;  %11045 = vst [vmem:[#allocation91_spill] sm:$0xff] %v7509_v33  ;;  %v7520_v40 = vadd.f32 %v825_v61, %v7410_v21  ;;  %v827_v25 = vpop.f32.mrb[47].mxu0  ;;  %v7523_v33 = vadd.f32 %v938_v17, %v7414_v5  ;;  %v940_v9 = vpop.f32.mrb[47].mxu1  ;;  %vm2871_vm6 = vcmp.lt.s32.totalorder %v2870_v13, %v6790_v32 }
 0x1bd   :  { %11046 = vst [vmem:[#allocation92_spill] sm:$0xff] %v7513_v34  ;;  %11047 = vst [vmem:[#allocation93_spill] sm:$0xff] %v7516_v1  ;;  %v7526_v55 = vadd.f32 %v827_v25, %v7418_v37  ;;  %v7529_v34 = vadd.f32 %v940_v9, %v7422_v29  ;;  %v2872_v13 = vsel %vm2871_vm6, 1, %v11041_v43 }
 0x1be   :  { %11048 = vst [vmem:[#allocation94_spill] sm:$0xff] %v7520_v40  ;;  %11049 = vst [vmem:[#allocation95_spill] sm:$0xff] %v7523_v33  ;;  %2118 = vperm.xlu1 %5671, %v2116_v6   ;;  %v2620_v6 = vsel %vm2619_vm5, 1, %v11041_v43  ;;  %v3122_v33 = vstv %s3121_s16 }
 0x1bf   :  { %11050 = vst [vmem:[#allocation96_spill] sm:$0xff] %v7526_v55  ;;  %11051 = vst [vmem:[#allocation97_spill] sm:$0xff] %v7529_v34  ;;  %vm3123_vm7 = vcmp.lt.s32.totalorder %v3122_v33, %v6790_v32 }
 0x1c1   :  { %v831_v61 = vpop.f32.mrb[48].mxu0  ;;  %v944_v1 = vpop.f32.mrb[48].mxu1 }
 0x1c2   :  { %2370 = vperm.xlu1 %5671, %v2368_v36   ;;  %v7536_v17 = vadd.f32 %v831_v61, %v7410_v21  ;;  %v833_v23 = vpop.f32.mrb[49].mxu0  ;;  %v7539_v25 = vadd.f32 %v944_v1, %v7414_v5  ;;  %v946_v9 = vpop.f32.mrb[49].mxu1 }
 0x1c3   :  { %v7543_v30 = vadd.f32 %v833_v23, %v7418_v37  ;;  %v835_v51 = vpop.f32.mrb[50].mxu0  ;;  %v7546_v24 = vadd.f32 %v946_v9, %v7422_v29  ;;  %v948_v36 = vpop.f32.mrb[50].mxu1  ;;  %v3374_v9 = vstv %s3373_s5 }
 0x1c4   :  { %11052 = vst [vmem:[#allocation98_spill] sm:$0xff] %v7536_v17  ;;  %11053 = vst [vmem:[#allocation99_spill] sm:$0xff] %v7539_v25  ;;  %v7550_v61 = vadd.f32 %v835_v51, %v7410_v21  ;;  %v837_v1 = vpop.f32.mrb[51].mxu0  ;;  %v7553_v34 = vadd.f32 %v948_v36, %v7414_v5  ;;  %v950_v55 = vpop.f32.mrb[51].mxu1 }
 0x1c5   :  { %11054 = vst [vmem:[#allocation100_spill] sm:$0xff] %v7543_v30  ;;  %11055 = vst [vmem:[#allocation101_spill] sm:$0xff] %v7546_v24  ;;  %v7556_v23 = vadd.f32 %v837_v1, %v7418_v37  ;;  %v7559_v40 = vadd.f32 %v950_v55, %v7422_v29  ;;  %v3626_v30 = vstv %s3625_s17 }
 0x1c6   :  { %11056 = vst [vmem:[#allocation102_spill] sm:$0xff] %v7550_v61  ;;  %11057 = vst [vmem:[#allocation103_spill] sm:$0xff] %v7553_v34  ;;  %2622 = vperm.xlu1 %5671, %v2620_v6   ;;  %v3124_v6 = vsel %vm3123_vm7, 1, %v11041_v43  ;;  %v4130_v34 = vstv %s4129_s26 }
 0x1c7   :  { %11058 = vst [vmem:[#allocation104_spill] sm:$0xff] %v7556_v23  ;;  %11059 = vst [vmem:[#allocation105_spill] sm:$0xff] %v7559_v40 }
 0x1c9   :  { %v841_v51 = vpop.f32.mrb[52].mxu0  ;;  %v954_v19 = vpop.f32.mrb[52].mxu1 }
 0x1ca   :  { %2874 = vperm.xlu1 %5671, %v2872_v13   ;;  %v7566_v36 = vadd.f32 %v841_v51, %v7410_v21  ;;  %v843_v15 = vpop.f32.mrb[53].mxu0  ;;  %v7569_v1 = vadd.f32 %v954_v19, %v7414_v5  ;;  %v956_v55 = vpop.f32.mrb[53].mxu1  ;;  %v7581_v51 = vld [vmem:[%s10717_s1] sm:$0xff]  ;;  %s3877_s1 = sadd.s32 6, %s6648_s22 }
 0x1cb   :  { %v7573_v10 = vadd.f32 %v843_v15, %v7418_v37  ;;  %v845_v32 = vpop.f32.mrb[54].mxu0  ;;  %v7576_v33 = vadd.f32 %v956_v55, %v7422_v29  ;;  %v958_v13 = vpop.f32.mrb[54].mxu1  ;;  %vm3375_vm8 = vcmp.lt.s32.totalorder %v3374_v9, %v7581_v51  ;;  %vm3627_vm9 = vcmp.lt.s32.totalorder %v3626_v30, %v7581_v51 }
 0x1cc   :  { %11060 = vst [vmem:[#allocation106_spill] sm:$0xff] %v7566_v36  ;;  %11061 = vst [vmem:[#allocation107_spill] sm:$0xff] %v7569_v1  ;;  %v7585_v19 = vadd.f32 %v845_v32, %v7410_v21  ;;  %v847_v53 = vpop.f32.mrb[55].mxu0  ;;  %v7588_v15 = vadd.f32 %v958_v13, %v7414_v5  ;;  %v960_v24 = vpop.f32.mrb[55].mxu1  ;;  %v3376_v9 = vsel %vm3375_vm8, 1, %v11041_v43  ;;  %v3878_v32 = vstv %s3877_s1 }
 0x1cd   :  { %11062 = vst [vmem:[#allocation108_spill] sm:$0xff] %v7573_v10  ;;  %11063 = vst [vmem:[#allocation109_spill] sm:$0xff] %v7576_v33  ;;  %v7591_v55 = vadd.f32 %v847_v53, %v7418_v37  ;;  %v7594_v25 = vadd.f32 %v960_v24, %v7422_v29  ;;  %vm3879_vm10 = vcmp.lt.s32.totalorder %v3878_v32, %v7581_v51  ;;  %v4886_v1 = vstv %s4885_s21 }
 0x1ce   :  { %11064 = vst [vmem:[#allocation110_spill] sm:$0xff] %v7585_v19  ;;  %11065 = vst [vmem:[#allocation111_spill] sm:$0xff] %v7588_v15  ;;  %3126 = vperm.xlu1 %5671, %v3124_v6   ;;  %v3628_v6 = vsel %vm3627_vm9, 1, %v11041_v43  ;;  %v3880_v32 = vsel %vm3879_vm10, 1, %v11041_v43  ;;  %vm4131_vm11 = vcmp.lt.s32.totalorder %v4130_v34, %v7581_v51  ;;  %v467_v36 = vadd.f32 %v7219_v49, %v7211_v46  ;;  %v7850_v15 = vld [vmem:[%s10722_s8 + $0xc0] ss:$16 sps:$4 sm:$0xff]  }
 0x1cf   :  { %11066 = vst [vmem:[#allocation112_spill] sm:$0xff] %v7591_v55  ;;  %11067 = vst [vmem:[#allocation113_spill] sm:$0xff] %v7594_v25  ;;  %vm4887_vm14 = vcmp.lt.s32.totalorder %v4886_v1, %v7581_v51  ;;  %v5138_v49 = vstv %s5137_s23  ;;  %v7856_v19 = vld [vmem:[%s10722_s8 + $0xc8] ss:$16 sps:$4 sm:$0xff]  }
 0x1d0   :  { %vm5139_vm15 = vcmp.lt.s32.totalorder %v5138_v49, %v7581_v51 }
 0x1d1   :  { %v851_v17 = vpop.f32.mrb[56].mxu0  ;;  %v964_v7 = vpop.f32.mrb[56].mxu1 }
 0x1d2   :  { %3378 = vperm.xlu1 %5671, %v3376_v9   ;;  %v7601_v13 = vadd.f32 %v851_v17, %v7410_v21  ;;  %v853_v3 = vpop.f32.mrb[57].mxu0  ;;  %v7604_v53 = vadd.f32 %v964_v7, %v7414_v5  ;;  %v966_v24 = vpop.f32.mrb[57].mxu1 }
 0x1d3   :  { %v7608_v62 = vadd.f32 %v853_v3, %v7418_v37  ;;  %v855_v30 = vpop.f32.mrb[58].mxu0  ;;  %v7611_v57 = vadd.f32 %v966_v24, %v7422_v29  ;;  %v968_v9 = vpop.f32.mrb[58].mxu1  ;;  %v4382_v24 = vstv %s4381_s19 }
 0x1d4   :  { %11068 = vst [vmem:[#allocation114_spill] sm:$0xff] %v7601_v13  ;;  %11069 = vst [vmem:[#allocation115_spill] sm:$0xff] %v7604_v53  ;;  %v7615_v17 = vadd.f32 %v855_v30, %v7410_v21  ;;  %v857_v7 = vpop.f32.mrb[59].mxu0  ;;  %v7618_v40 = vadd.f32 %v968_v9, %v7414_v5  ;;  %v970_v23 = vpop.f32.mrb[59].mxu1  ;;  %vm4383_vm12 = vcmp.lt.s32.totalorder %v4382_v24, %v7581_v51  ;;  %v7885_v53 = vld [vmem:[%s10722_s8 + $0xe8] ss:$16 sps:$4 sm:$0xff]  }
 0x1d5   :  { %11070 = vst [vmem:[#allocation116_spill] sm:$0xff] %v7608_v62  ;;  %11071 = vst [vmem:[#allocation117_spill] sm:$0xff] %v7611_v57  ;;  %v7621_v3 = vadd.f32 %v857_v7, %v7418_v37  ;;  %v7624_v61 = vadd.f32 %v970_v23, %v7422_v29  ;;  %v4384_v10 = vsel %vm4383_vm12, 1, %v11041_v43  ;;  %v354_v24 = vadd.f32 %v7217_v48, %v7223_v50  ;;  %v7879_v62 = vld [vmem:[%s10722_s8 + $0xe0] ss:$16 sps:$4 sm:$0xff]  }
 0x1d6   :  { %11072 = vst [vmem:[#allocation118_spill] sm:$0xff] %v7615_v17  ;;  %11073 = vst [vmem:[#allocation119_spill] sm:$0xff] %v7618_v40  ;;  %3630 = vperm.xlu1 %5671, %v3628_v6   ;;  %v4132_v6 = vsel %vm4131_vm11, 1, %v11041_v43  ;;  %v7957_v40 = vld [vmem:[%s10721_s7 + $0x4c] ss:$16 sps:$4 sm:$0xff]  }
 0x1d7   :  { %11074 = vst [vmem:[#allocation120_spill] sm:$0xff] %v7621_v3  ;;  %11075 = vst [vmem:[#allocation121_spill] sm:$0xff] %v7624_v61  ;;  %v7945_v61 = vld [vmem:[%s10721_s7 + $0x28] ss:$16 sps:$4 sm:$0xff]   ;;  %v7951_v3 = vld [vmem:[%s10721_s7 + $0x44] ss:$16 sps:$4 sm:$0xff]  }
 0x1d8   :  { %11076 = vst [vmem:[#allocation122_spill] sm:$0xff] %v7885_v53  ;;  %11085 = vst [vmem:[#allocation131_spill] sm:$0xff] %v7945_v61  ;;  %v7963_v17 = vld [vmem:[%s10721_s7 + $0x40] ss:$16 sps:$4 sm:$0xff]  }
 0x1d9   :  { %v861_v30 = vpop.f32.mrb[60].mxu0  ;;  %v974_v52 = vpop.f32.mrb[60].mxu1  ;;  %11086 = vst [vmem:[#allocation132_spill] sm:$0xff] %v7951_v3  ;;  %11087 = vst [vmem:[#allocation133_spill] sm:$0xff] %v7957_v40 }
 0x1da   :  { %3882 = vperm.xlu1 %5671, %v3880_v32   ;;  %v7631_v9 = vadd.f32 %v861_v30, %v7410_v21  ;;  %v863_v7 = vpop.f32.mrb[61].mxu0  ;;  %v7634_v38 = vadd.f32 %v974_v52, %v7414_v5  ;;  %v976_v23 = vpop.f32.mrb[61].mxu1  ;;  %v4634_v52 = vstv %s4633_s20  ;;  %11088 = vst [vmem:[#allocation134_spill] sm:$0xff] %v7963_v17 }
 0x1db   :  { %v7638_v35 = vadd.f32 %v863_v7, %v7418_v37  ;;  %v7640_v34 = vpop.f32.mrb[62].mxu0  ;;  %v7643_v31 = vadd.f32 %v976_v23, %v7422_v29  ;;  %v7645_v32 = vpop.f32.mrb[62].mxu1  ;;  %vm4635_vm13 = vcmp.lt.s32.totalorder %v4634_v52, %v7581_v51  ;;  %v352_v7 = vadd.f32 %v7205_v42, %v7215_v47 }
 0x1dc   :  { %v867_v30 = vpop.f32.mrb[63].mxu0  ;;  %v980_v33 = vpop.f32.mrb[63].mxu1  ;;  %v465_v23 = vadd.f32 %v7207_v45, %v7203_v41  ;;  %v4636_v42 = vsel %vm4635_vm13, 1, %v11041_v43 }
 0x1de   :  { %4134 = vperm.xlu1 %5671, %v4132_v6  }
 0x1e1   :  { %v1259_v28 = vpop.f32.mrb[64].mxu0  ;;  %v1300_v6 = vpop.f32.mrb[64].mxu1 }
 0x1e2   :  { %4386 = vperm.xlu1 %5671, %v4384_v10   ;;  %v1260_v27 = vadd.f32 %v1259_v28, %v352_v7  ;;  %v1301_v22 = vadd.f32 %v1300_v6, %v465_v23  ;;  %v1261_v52 = vpop.f32.mrb[65].mxu0  ;;  %v1302_v20 = vpop.f32.mrb[65].mxu1  ;;  %v4888_v28 = vsel %vm4887_vm14, 1, %v11041_v43  ;;  %v5388_v10 = vstv %s6648_s22  ;;  %v7668_v6 = vld [vmem:[#allocation5] sm:$0xff] }
 0x1e3   :  { %v1262_v47 = vadd.f32 %v1261_v52, %v354_v24  ;;  %v1303_v41 = vadd.f32 %v1302_v20, %v467_v36  ;;  %v1263_v45 = vpop.f32.mrb[66].mxu0  ;;  %v1304_v25 = vpop.f32.mrb[66].mxu1  ;;  %v5140_v20 = vsel %vm5139_vm15, 1, %v11041_v43  ;;  %vm5389_vm0 = vcmp.lt.s32.totalorder %v5388_v10, %v7581_v51 }
 0x1e4   :  { %v5522_v48 = vmul.f32 -1.442695, %v1260_v27  ;;  %v1264_v50 = vpop.f32.mrb[67].mxu0  ;;  %v1305_v46 = vpop.f32.mrb[67].mxu1  ;;  %v5390_v27 = vsel %vm5389_vm0, 1, %v11041_v43  ;;  %v866_v45 = vadd.f32 %v7640_v34, %v7410_v21 }
 0x1e5   :  { %v5523_v55 = vmul.f32 -1.442695, %v1262_v47  ;;  %v5524_v25 = vmul.f32 -1.442695, %v1303_v41  ;;  %v981_v50 = vadd.f32 %v980_v33, %v7422_v29 }
 0x1e6   :  { %4638 = vperm.xlu1 %5671, %v4636_v42   ;;  %5808 = vpow2.f32 %v5522_v48  ;;  %v979_v48 = vadd.f32 %v7645_v32, %v7414_v5 }
 0x1e7   :  { %5810 = vpow2.f32 %v5523_v55 }
 0x1e8   :  { %5812 = vpow2.f32 %v5524_v25 }
 0x1e9   :  { %5814 = vtanh.f32 %v1301_v22  ;;  %v868_v22 = vadd.f32 %v867_v30, %v7418_v37 }
 0x1ea   :  { %4890 = vperm.xlu1 %5671, %v4888_v28  }
 0x1ee   :  { %5142 = vperm.xlu1 %5671, %v5140_v20  }
 0x1f0   :  { %v5809_v36 = vpop.eup %5808 }
 0x1f1   :  { %v5811_v1 = vpop.eup %5810  ;;  %v1310_v7 = vadd.f32 1.0, %v5809_v36 }
 0x1f2   :  { %5392 = vperm.xlu1 %5671, %v5390_v27   ;;  %v1316_v23 = vadd.f32 1.0, %v5811_v1  ;;  %v5813_v55 = vpop.eup %5812 }
 0x1f3   :  { %5816 = vrcp.f32 %v1310_v7  ;;  %v5815_v24 = vpop.eup %5814  ;;  %v1323_v47 = vadd.f32 1.0, %v5813_v55  ;;  %v7680_v7 = vpop.permute.xlu0 %1606 }
 0x1f4   :  { %5818 = vrcp.f32 %v1316_v23  ;;  %vm1608_vm1 = vcmp.eq.s32.totalorder %v7680_v7, 1 }
 0x1f5   :  { %5820 = vrcp.f32 %v1323_v47  ;;  %vm1620_vm2 = vmpackc.low %vm1608_vm1, %vm1608_vm1 }
 0x1f7   :  { %v7859_v16 = vpop.permute.xlu0 %1614 }
 0x1f8   :  { %vm1616_vm3 = vcmp.eq.s32.totalorder %v7859_v16, 1 }
 0x1f9   :  { %vm1627_vm4 = vmpackc.low %vm1616_vm3, %vm1616_vm3 }
 0x1fd   :  { %v5817_v52 = vpop.eup %5816 }
 0x1fe   :  { %v5819_v42 = vpop.eup %5818  ;;  %v1327_v51 = vmul.f32 %v5817_v52, %v5815_v24 }
 0x1ff   :  { %v1326_v41 = vmul.f32 %v5819_v42, %v7668_v6  ;;  %v5821_v29 = vpop.eup %5820 }
 0x201   :  { %v7677_v46 = vadd.f32 %v1327_v51, %v1326_v41  ;;  %v1530_v49 = vpop.f32.mrb[68].mxu0  ;;  %v1571_v28 = vpop.f32.mrb[68].mxu1 }
 0x202   :  { %v1531_v10 = vadd.f32 %v1530_v49, %v866_v45  ;;  %v1572_v20 = vadd.f32 %v1571_v28, %v979_v48  ;;  %v1532_v25 = vpop.f32.mrb[69].mxu0  ;;  %v1573_v27 = vpop.f32.mrb[69].mxu1  ;;  %v7698_v45 = vld [vmem:[%s10722_s8] ss:$16 sps:$4 sm:$0xff]   ;;  %v7704_v48 = vld [vmem:[%s10722_s8 + $0x8] ss:$16 sps:$4 sm:$0xff]  }
 0x203   :  { %5822 = vtanh.f32 %v7677_v46  ;;  %v1533_v36 = vadd.f32 %v1532_v25, %v868_v22  ;;  %v1574_v21 = vadd.f32 %v1573_v27, %v981_v50  ;;  %v1534_v34 = vpop.f32.mrb[70].mxu0  ;;  %v1575_v1 = vpop.f32.mrb[70].mxu1  ;;  %v7716_v22 = vld [vmem:[%s10722_s8 + $0x2c] ss:$16 sps:$4 sm:$0xff]   ;;  %v7724_v50 = vld [vmem:[%s10722_s8 + $0x20] ss:$16 sps:$4 sm:$0xff]  }
 0x204   :  { %v5557_v5 = vmul.f32 -1.442695, %v1531_v10  ;;  %v1535_v32 = vpop.f32.mrb[71].mxu0  ;;  %v1576_v37 = vpop.f32.mrb[71].mxu1  ;;  %v7730_v49 = vld [vmem:[%s10722_s8 + $0x28] ss:$16 sps:$4 sm:$0xff]  }
 0x205   :  { %v5558_v30 = vmul.f32 -1.442695, %v1533_v36  ;;  %v5559_v23 = vmul.f32 -1.442695, %v1574_v21  ;;  %v7736_v28 = vld [vmem:[%s10722_s8 + $0x44] ss:$16 sps:$4 sm:$0xff]  }
 0x206   :  { %5824 = vpow2.f32 %v5557_v5  ;;  %v7742_v10 = vld [vmem:[%s10722_s8 + $0x4c] ss:$16 sps:$4 sm:$0xff]   ;;  %v7750_v36 = vld [vmem:[%s10722_s8 + $0x40] ss:$16 sps:$4 sm:$0xff]   ;;  %v7756_v21 = vld [vmem:[%s10722_s8 + $0x48] ss:$16 sps:$4 sm:$0xff]  }
 0x207   :  { %5826 = vpow2.f32 %v5558_v30  ;;  %v7745_v27 = vld [vmem:[#allocation7] sm:$0xff]  ;;  %v7762_v1 = vld [vmem:[%s10722_s8 + $0x64] ss:$16 sps:$4 sm:$0xff]  }
 0x208   :  { %5828 = vpow2.f32 %v5559_v23  ;;  %v7768_v5 = vld [vmem:[%s10722_s8 + $0x6c] ss:$16 sps:$4 sm:$0xff]   ;;  %v7781_v23 = vld [vmem:[%s10722_s8 + $0x68] ss:$16 sps:$4 sm:$0xff]  }
 0x209   :  { %5830 = vtanh.f32 %v1572_v20 }
 0x20d   :  { %v5823_v33 = vpop.eup %5822 }
 0x20e   :  { %v7683_v55 = vmul.f32 %v5823_v33, %v5821_v29  ;;  %v7775_v33 = vld [vmem:[%s10722_s8 + $0x60] ss:$16 sps:$4 sm:$0xff]  }
 0x210   :  { %v5825_v24 = vpop.eup %5824  ;;  %v1619_v52 = vpack.c.bf16 %v7683_v55, %v7683_v55 }
 0x211   :  { %v5827_v42 = vpop.eup %5826  ;;  %v1581_v51 = vadd.f32 1.0, %v5825_v24 }
 0x212   :  { %v1587_v47 = vadd.f32 1.0, %v5827_v42  ;;  %v7691_v41 = vsel %vm1620_vm2, %v1619_v52, %v7050_v26  ;;  %v7710_v26 = vld [vmem:[%s10722_s8 + $0x24] ss:$16 sps:$4 sm:$0xff]   ;;  %v5829_v20 = vpop.eup %5828  ;;  %v7795_v42 = vld [vmem:[%s10722_s8 + $0x8c] ss:$16 sps:$4 sm:$0xff]  }
 0x213   :  { %5832 = vrcp.f32 %v1581_v51  ;;  %1669 = vmatmul.mubr.bf16.vlgmr.msra.gmra.mrb[72].mxu0 %v7691_v41  ;;  %1710 = vmatmul.mubr.bf16.vlgmr.msra.gmra.mrb[72].mxu1 %v7691_v41  ;;  %v5831_v25 = vpop.eup %5830  ;;  %v1594_v30 = vadd.f32 1.0, %v5829_v20  ;;  %v7789_v52 = vld [vmem:[%s10722_s8 + $0x84] ss:$16 sps:$4 sm:$0xff]   ;;  %v7802_v51 = vld [vmem:[%s10722_s8 + $0x80] ss:$16 sps:$4 sm:$0xff]  }
 0x214   :  { %5834 = vrcp.f32 %v1587_v47  ;;  %1748 = vmatpush1.bf16.msra.mxu0 %v7698_v45  ;;  %1789 = vmatpush1.bf16.msra.mxu1 %v7704_v48  ;;  %v7808_v47 = vld [vmem:[%s10722_s8 + $0x88] ss:$16 sps:$4 sm:$0xff]   ;;  %v7814_v20 = vld [vmem:[%s10722_s8 + $0xa4] ss:$16 sps:$4 sm:$0xff]  }
 0x215   :  { %1749 = vmatprep.subr.bf16.mxu0 %v7710_v26  ;;  %1790 = vmatprep.subr.bf16.mxu1 %v7716_v22  ;;  %5836 = vrcp.f32 %v1594_v30  ;;  %v7844_v30 = vld [vmem:[%s10722_s8 + $0xcc] ss:$16 sps:$4 sm:$0xff]  }
 0x216   :  { %1779 = vmatprep.mubr.bf16.mxu0 %v11041_v43  ;;  %1820 = vmatprep.mubr.bf16.mxu1 %v11041_v43 }
 0x218   :  { %1750 = vmatpush1.bf16.msra.mxu0 %v7724_v50  ;;  %1791 = vmatpush1.bf16.msra.mxu1 %v7730_v49 }
 0x219   :  { %1751 = vmatprep.subr.bf16.mxu0 %v7736_v28  ;;  %1792 = vmatprep.subr.bf16.mxu1 %v7742_v10 }
 0x21c   :  { %1752 = vmatpush1.bf16.msra.mxu0 %v7750_v36  ;;  %1793 = vmatpush1.bf16.msra.mxu1 %v7756_v21 }
 0x21d   :  { %v5833_v34 = vpop.eup %5832  ;;  %1753 = vmatprep.subr.bf16.mxu0 %v7762_v1  ;;  %1794 = vmatprep.subr.bf16.mxu1 %v7768_v5 }
 0x21e   :  { %v5835_v32 = vpop.eup %5834  ;;  %v1598_v37 = vmul.f32 %v5833_v34, %v5831_v25  ;;  %v7820_v25 = vld [vmem:[%s10722_s8 + $0xac] ss:$16 sps:$4 sm:$0xff]   ;;  %v7826_v34 = vld [vmem:[%s10722_s8 + $0xa0] ss:$16 sps:$4 sm:$0xff]  }
 0x21f   :  { %v1597_v29 = vmul.f32 %v5835_v32, %v7745_v27  ;;  %v7832_v32 = vld [vmem:[%s10722_s8 + $0xa8] ss:$16 sps:$4 sm:$0xff]  }
 0x220   :  { %1754 = vmatpush1.bf16.msra.mxu0 %v7775_v33  ;;  %1795 = vmatpush1.bf16.msra.mxu1 %v7781_v23 }
 0x221   :  { %v7784_v24 = vadd.f32 %v1598_v37, %v1597_v29  ;;  %1755 = vmatprep.subr.bf16.mxu0 %v7789_v52  ;;  %1796 = vmatprep.subr.bf16.mxu1 %v7795_v42  ;;  %v7838_v37 = vld [vmem:[%s10722_s8 + $0xc4] ss:$16 sps:$4 sm:$0xff]   ;;  %v5837_v29 = vpop.eup %5836 }
 0x223   :  { %5838 = vtanh.f32 %v7784_v24 }
 0x224   :  { %1756 = vmatpush1.bf16.msra.mxu0 %v7802_v51  ;;  %1797 = vmatpush1.bf16.msra.mxu1 %v7808_v47 }
 0x225   :  { %1757 = vmatprep.subr.bf16.mxu0 %v7814_v20  ;;  %1798 = vmatprep.subr.bf16.mxu1 %v7820_v25 }
 0x228   :  { %1758 = vmatpush1.bf16.msra.mxu0 %v7826_v34  ;;  %1799 = vmatpush1.bf16.msra.mxu1 %v7832_v32 }
 0x229   :  { %1759 = vmatprep.subr.bf16.mxu0 %v7838_v37  ;;  %1800 = vmatprep.subr.bf16.mxu1 %v7844_v30 }
 0x22c   :  { %1760 = vmatpush1.bf16.msra.mxu0 %v7850_v15  ;;  %1801 = vmatpush1.bf16.msra.mxu1 %v7856_v19 }
 0x22d   :  { %v5839_v18 = vpop.eup %5838  ;;  %1761 = vmatprep.subr.bf16.mxu0 %v7864_v14  ;;  %1802 = vmatprep.subr.bf16.mxu1 %v7870_v12 }
 0x22e   :  { %v7874_v57 = vmul.f32 %v5839_v18, %v5837_v29  ;;  %v7896_v18 = vld [vmem:[%s10721_s7 + $0x4] ss:$16 sps:$4 sm:$0xff]   ;;  %v7902_v29 = vld [vmem:[%s10721_s7 + $0xc] ss:$16 sps:$4 sm:$0xff]  }
 0x22f   :  { %11077 = vst [vmem:[#allocation123_spill] sm:$0xff] %v7896_v18  ;;  %11078 = vst [vmem:[#allocation124_spill] sm:$0xff] %v7902_v29 }
 0x230   :  { %1762 = vmatpush1.bf16.msra.mxu0 %v7879_v62  ;;  %1803 = vmatpush1.bf16.msra.mxu1 %v7885_v53  ;;  %v1626_v13 = vpack.c.bf16 %v7874_v57, %v7874_v57 }
 0x231   :  { %1888 = vmatprep.subr.bf16.mxu0 %v7896_v18  ;;  %1929 = vmatprep.subr.bf16.mxu1 %v7902_v29 }
 0x232   :  { %v7906_v63 = vsel %vm1627_vm4, %v1626_v13, %v7152_v39  ;;  %v7925_v39 = vld [vmem:[%s10721_s7 + $0x24] ss:$16 sps:$4 sm:$0xff]   ;;  %v7931_v13 = vld [vmem:[%s10721_s7 + $0x2c] ss:$16 sps:$4 sm:$0xff]  }
 0x233   :  { %11079 = vst [vmem:[#allocation125_spill] sm:$0xff] %v7906_v63  ;;  %1780 = vmatmul.mubr.bf16.vlgmr.msra.gmra.mrb[76].mxu0 %v7906_v63  ;;  %1821 = vmatmul.mubr.bf16.vlgmr.msra.gmra.mrb[76].mxu1 %v7906_v63  ;;  %11082 = vst [vmem:[#allocation128_spill] sm:$0xff] %v7925_v39 }
 0x234   :  { %1889 = vmatpush1.bf16.msra.mxu0 %v7913_v60  ;;  %1930 = vmatpush1.bf16.msra.mxu1 %v7919_v44  ;;  %11083 = vst [vmem:[#allocation129_spill] sm:$0xff] %v7931_v13 }
 0x235   :  { %1890 = vmatprep.subr.bf16.mxu0 %v7925_v39  ;;  %1931 = vmatprep.subr.bf16.mxu1 %v7931_v13 }
 0x236   :  { %1920 = vmatprep.mubr.bf16.mxu0 %v11041_v43  ;;  %1961 = vmatprep.mubr.bf16.mxu1 %v11041_v43 }
 0x238   :  { %1891 = vmatpush1.bf16.msra.mxu0 %v7939_v11  ;;  %1932 = vmatpush1.bf16.msra.mxu1 %v7945_v61 }
 0x239   :  { %1892 = vmatprep.subr.bf16.mxu0 %v7951_v3  ;;  %1933 = vmatprep.subr.bf16.mxu1 %v7957_v40 }
 0x23c   :  { %1893 = vmatpush1.bf16.msra.mxu0 %v7963_v17  ;;  %1934 = vmatpush1.bf16.msra.mxu1 %v7969_v8  ;;  %v7993_v8 = vld [vmem:[%s10721_s7 + $0x68] ss:$16 sps:$4 sm:$0xff]  }
 0x23d   :  { %1894 = vmatprep.subr.bf16.mxu0 %v7975_v4  ;;  %1935 = vmatprep.subr.bf16.mxu1 %v7981_v2  ;;  %11093 = vst [vmem:[#allocation139_spill] sm:$0xff] %v7993_v8  ;;  %v7999_v4 = vld [vmem:[%s10721_s7 + $0x84] ss:$16 sps:$4 sm:$0xff]   ;;  %v8005_v2 = vld [vmem:[%s10721_s7 + $0x8c] ss:$16 sps:$4 sm:$0xff]  }
 0x23e   :  { %11094 = vst [vmem:[#allocation140_spill] sm:$0xff] %v7999_v4  ;;  %11095 = vst [vmem:[#allocation141_spill] sm:$0xff] %v8005_v2 }
 0x240   :  { %1895 = vmatpush1.bf16.msra.mxu0 %v7987_v0  ;;  %1936 = vmatpush1.bf16.msra.mxu1 %v7993_v8  ;;  %v8011_v0 = vld [vmem:[%s10721_s7 + $0x80] ss:$16 sps:$4 sm:$0xff]   ;;  %v8017_v8 = vld [vmem:[%s10721_s7 + $0x88] ss:$16 sps:$4 sm:$0xff]  }
 0x241   :  { %1896 = vmatprep.subr.bf16.mxu0 %v7999_v4  ;;  %1937 = vmatprep.subr.bf16.mxu1 %v8005_v2  ;;  %11096 = vst [vmem:[#allocation142_spill] sm:$0xff] %v8011_v0  ;;  %11097 = vst [vmem:[#allocation143_spill] sm:$0xff] %v8017_v8  ;;  %v8023_v4 = vld [vmem:[%s10721_s7 + $0xa4] ss:$16 sps:$4 sm:$0xff]   ;;  %v8029_v2 = vld [vmem:[%s10721_s7 + $0xac] ss:$16 sps:$4 sm:$0xff]  }
 0x242   :  { %11098 = vst [vmem:[#allocation144_spill] sm:$0xff] %v8023_v4  ;;  %11099 = vst [vmem:[#allocation145_spill] sm:$0xff] %v8029_v2 }
 0x244   :  { %1897 = vmatpush1.bf16.msra.mxu0 %v8011_v0  ;;  %1938 = vmatpush1.bf16.msra.mxu1 %v8017_v8  ;;  %v8035_v0 = vld [vmem:[%s10721_s7 + $0xa0] ss:$16 sps:$4 sm:$0xff]   ;;  %v8041_v8 = vld [vmem:[%s10721_s7 + $0xa8] ss:$16 sps:$4 sm:$0xff]  }
 0x245   :  { %1898 = vmatprep.subr.bf16.mxu0 %v8023_v4  ;;  %1939 = vmatprep.subr.bf16.mxu1 %v8029_v2  ;;  %11100 = vst [vmem:[#allocation146_spill] sm:$0xff] %v8035_v0  ;;  %11101 = vst [vmem:[#allocation147_spill] sm:$0xff] %v8041_v8  ;;  %v8047_v4 = vld [vmem:[%s10721_s7 + $0xc4] ss:$16 sps:$4 sm:$0xff]   ;;  %v8053_v2 = vld [vmem:[%s10721_s7 + $0xcc] ss:$16 sps:$4 sm:$0xff]  }
 0x246   :  { %11102 = vst [vmem:[#allocation148_spill] sm:$0xff] %v8047_v4  ;;  %11103 = vst [vmem:[#allocation149_spill] sm:$0xff] %v8053_v2 }
 0x248   :  { %1899 = vmatpush1.bf16.msra.mxu0 %v8035_v0  ;;  %1940 = vmatpush1.bf16.msra.mxu1 %v8041_v8  ;;  %v8059_v0 = vld [vmem:[%s10721_s7 + $0xc0] ss:$16 sps:$4 sm:$0xff]   ;;  %v8065_v8 = vld [vmem:[%s10721_s7 + $0xc8] ss:$16 sps:$4 sm:$0xff]  }
 0x249   :  { %1900 = vmatprep.subr.bf16.mxu0 %v8047_v4  ;;  %1941 = vmatprep.subr.bf16.mxu1 %v8053_v2  ;;  %11104 = vst [vmem:[#allocation150_spill] sm:$0xff] %v8059_v0  ;;  %11105 = vst [vmem:[#allocation151_spill] sm:$0xff] %v8065_v8  ;;  %v8071_v4 = vld [vmem:[%s10721_s7 + $0xe4] ss:$16 sps:$4 sm:$0xff]   ;;  %v8077_v2 = vld [vmem:[%s10721_s7 + $0xec] ss:$16 sps:$4 sm:$0xff]  }
 0x24a   :  { %11106 = vst [vmem:[#allocation152_spill] sm:$0xff] %v8071_v4  ;;  %11107 = vst [vmem:[#allocation153_spill] sm:$0xff] %v8077_v2 }
 0x24c   :  { %1901 = vmatpush1.bf16.msra.mxu0 %v8059_v0  ;;  %1942 = vmatpush1.bf16.msra.mxu1 %v8065_v8  ;;  %v8083_v0 = vld [vmem:[%s10721_s7 + $0xe0] ss:$16 sps:$4 sm:$0xff]   ;;  %v8089_v8 = vld [vmem:[%s10721_s7 + $0xe8] ss:$16 sps:$4 sm:$0xff]  }
 0x24d   :  { %1902 = vmatprep.subr.bf16.mxu0 %v8071_v4  ;;  %1943 = vmatprep.subr.bf16.mxu1 %v8077_v2  ;;  %11108 = vst [vmem:[#allocation154_spill] sm:$0xff] %v8083_v0  ;;  %11109 = vst [vmem:[#allocation155_spill] sm:$0xff] %v8089_v8  ;;  %v8095_v4 = vld [vmem:[%s10722_s8 + $0x4] ss:$16 sps:$4 sm:$0xff]   ;;  %v8101_v2 = vld [vmem:[%s10722_s8 + $0xc] ss:$16 sps:$4 sm:$0xff]  }
 0x24e   :  { %11110 = vst [vmem:[#allocation156_spill] sm:$0xff] %v8095_v4  ;;  %11111 = vst [vmem:[#allocation157_spill] sm:$0xff] %v8101_v2 }
 0x250   :  { %1903 = vmatpush1.bf16.msra.mxu0 %v8083_v0  ;;  %1944 = vmatpush1.bf16.msra.mxu1 %v8089_v8 }
 0x251   :  { %1999 = vmatprep.subr.bf16.mxu0 %v8095_v4  ;;  %2040 = vmatprep.subr.bf16.mxu1 %v8101_v2 }
 0x2e6   :  { %v1670_v0 = vpop.f32.mrb[72].mxu0  ;;  %v1711_v17 = vpop.f32.mrb[72].mxu1 }
 0x2e7   :  { %v1671_v40 = vadd.f32 %v1670_v0, %v7226_v54  ;;  %v1712_v8 = vadd.f32 %v1711_v17, %v7229_v56  ;;  %v1672_v3 = vpop.f32.mrb[73].mxu0  ;;  %v1713_v61 = vpop.f32.mrb[73].mxu1 }
 0x2e8   :  { %v1673_v11 = vadd.f32 %v1672_v3, %v7232_v58  ;;  %v1714_v13 = vadd.f32 %v1713_v61, %v7235_v59  ;;  %v1674_v4 = vpop.f32.mrb[74].mxu0  ;;  %v1715_v39 = vpop.f32.mrb[74].mxu1 }
 0x2e9   :  { %v5561_v44 = vmul.f32 -1.442695, %v1671_v40  ;;  %v1675_v60 = vpop.f32.mrb[75].mxu0  ;;  %v1716_v63 = vpop.f32.mrb[75].mxu1 }
 0x2ea   :  { %v5562_v29 = vmul.f32 -1.442695, %v1673_v11  ;;  %v5563_v2 = vmul.f32 -1.442695, %v1714_v13  ;;  %v1618_v11 = vsel %vm1608_vm1, %v7677_v46, %v7668_v6  ;;  %v1859_v60 = vpop.permute.xlu1 %1858 }
 0x2eb   :  { %5840 = vpow2.f32 %v5561_v44  ;;  %vm1860_vm5 = vcmp.eq.s32.totalorder %v1859_v60, 1 }
 0x2ec   :  { %5842 = vpow2.f32 %v5562_v29  ;;  %vm1872_vm6 = vmpackc.low %vm1860_vm5, %vm1860_vm5 }
 0x2ed   :  { %5844 = vpow2.f32 %v5563_v2 }
 0x2ee   :  { %5846 = vtanh.f32 %v1712_v8 }
 0x2f5   :  { %v5841_v18 = vpop.eup %5840 }
 0x2f6   :  { %v5843_v53 = vpop.eup %5842  ;;  %v1721_v54 = vadd.f32 1.0, %v5841_v18 }
 0x2f7   :  { %v1727_v56 = vadd.f32 1.0, %v5843_v53  ;;  %v5845_v58 = vpop.eup %5844 }
 0x2f8   :  { %5848 = vrcp.f32 %v1721_v54  ;;  %v5847_v0 = vpop.eup %5846  ;;  %v1734_v44 = vadd.f32 1.0, %v5845_v58 }
 0x2f9   :  { %5850 = vrcp.f32 %v1727_v56 }
 0x2fa   :  { %5852 = vrcp.f32 %v1734_v44 }
 0x302   :  { %v5849_v59 = vpop.eup %5848 }
 0x303   :  { %v5851_v4 = vpop.eup %5850  ;;  %v1738_v61 = vmul.f32 %v5849_v59, %v5847_v0 }
 0x304   :  { %v1737_v63 = vmul.f32 %v5851_v4, %v1618_v11 }
 0x306   :  { %v1739_v40 = vadd.f32 %v1738_v61, %v1737_v63  ;;  %v1781_v2 = vpop.f32.mrb[76].mxu0  ;;  %v1822_v8 = vpop.f32.mrb[76].mxu1  ;;  %v6385_v61 = vld [vmem:[#allocation4] sm:$0xff] }
 0x307   :  { %v1782_v53 = vadd.f32 %v1781_v2, %v7631_v9  ;;  %v1823_v17 = vadd.f32 %v1822_v8, %v7634_v38  ;;  %v1783_v3 = vpop.f32.mrb[77].mxu0  ;;  %v1824_v18 = vpop.f32.mrb[77].mxu1  ;;  %v1059_v38 = vld [vmem:[%s10726_s11] sm:$0xff] }
 0x308   :  { %5854 = vtanh.f32 %v1739_v40  ;;  %v1784_v29 = vadd.f32 %v1783_v3, %v7638_v35  ;;  %v1825_v39 = vadd.f32 %v1824_v18, %v7643_v31  ;;  %v1785_v6 = vpop.f32.mrb[78].mxu0  ;;  %v1826_v46 = vpop.f32.mrb[78].mxu1  ;;  %v8117_v13 = vsel %vm1860_vm5, %v1739_v40, %v1618_v11 }
 0x309   :  { %v5564_v54 = vmul.f32 -1.442695, %v1782_v53  ;;  %v1786_v56 = vpop.f32.mrb[79].mxu0  ;;  %v1827_v58 = vpop.f32.mrb[79].mxu1  ;;  %v1622_v9 = vmax.f32 %v1059_v38, %v7683_v55  ;;  %v1617_v11 = vsel %vm1608_vm1, %v7683_v55, %v6385_v61  ;;  %v1625_v6 = vsel %vm1616_vm3, %v7784_v24, %v7745_v27  ;;  %v1060_v27 = vld [vmem:[%s10726_s11 + $0x8] sm:$0xff]  ;;  %v11112_v61 = vld [vmem:[#allocation122_spill] sm:$0xff] }
 0x30a   :  { %v5565_v0 = vmul.f32 -1.442695, %v1784_v29  ;;  %v5853_v35 = vpop.eup %5852  ;;  %v5566_v31 = vmul.f32 -1.442695, %v1825_v39  ;;  %v1867_v56 = vpop.permute.xlu1 %1866  ;;  %v1629_v24 = vmax.f32 %v1060_v27, %v7874_v57 }
 0x30b   :  { %5856 = vpow2.f32 %v5564_v54  ;;  %v1623_v44 = vsel %vm1608_vm1, %v1622_v9, %v1059_v38  ;;  %vm1868_vm7 = vcmp.eq.s32.totalorder %v1867_v56, 1  ;;  %v11126_v56 = vld [vmem:[#allocation136_spill] sm:$0xff] }
 0x30c   :  { %5858 = vpow2.f32 %v5565_v0  ;;  %vm1879_vm8 = vmpackc.low %vm1868_vm7, %vm1868_vm7 }
 0x30d   :  { %5860 = vpow2.f32 %v5566_v31 }
 0x30e   :  { %5862 = vtanh.f32 %v1823_v17 }
 0x312   :  { %v5855_v59 = vpop.eup %5854 }
 0x313   :  { %v1741_v4 = vmul.f32 %v5855_v59, %v5853_v35  ;;  %v6386_v59 = vld [vmem:[#allocation6] sm:$0xff] }
 0x314   :  { %v1624_v31 = vsel %vm1616_vm3, %v7874_v57, %v6386_v59  ;;  %v11115_v57 = vld [vmem:[#allocation125_spill] sm:$0xff]  ;;  %v11133_v59 = vld [vmem:[#allocation143_spill] sm:$0xff] }
 0x315   :  { %v5857_v63 = vpop.eup %5856  ;;  %v8131_v40 = vsel %vm1860_vm5, %v1741_v4, %v1617_v11  ;;  %v1871_v2 = vpack.c.bf16 %v1741_v4, %v1741_v4  ;;  %v1874_v8 = vmax.f32 %v1623_v44, %v1741_v4  ;;  %v1630_v4 = vsel %vm1616_vm3, %v1629_v24, %v1060_v27  ;;  %v11128_v27 = vld [vmem:[#allocation138_spill] sm:$0xff]  ;;  %v11129_v24 = vld [vmem:[#allocation139_spill] sm:$0xff] }
 0x316   :  { %v5859_v53 = vpop.eup %5858  ;;  %v1832_v3 = vadd.f32 1.0, %v5857_v63 }
 0x317   :  { %v1838_v18 = vadd.f32 1.0, %v5859_v53  ;;  %v8134_v29 = vsel %vm1872_vm6, %v1871_v2, %v7691_v41  ;;  %v8137_v55 = vsel %vm1860_vm5, %v1874_v8, %v1623_v44  ;;  %v5861_v7 = vpop.eup %5860  ;;  %v11113_v2 = vld [vmem:[#allocation123_spill] sm:$0xff]  ;;  %v11114_v8 = vld [vmem:[#allocation124_spill] sm:$0xff] }
 0x318   :  { %5864 = vrcp.f32 %v1832_v3  ;;  %1921 = vmatmul.mubr.bf16.vlgmr.msra.gmra.mrb[80].mxu0 %v8134_v29  ;;  %1962 = vmatmul.mubr.bf16.vlgmr.msra.gmra.mrb[80].mxu1 %v8134_v29  ;;  %v5863_v41 = vpop.eup %5862  ;;  %v1845_v46 = vadd.f32 1.0, %v5861_v7  ;;  %v11116_v3 = vld [vmem:[#allocation126_spill] sm:$0xff]  ;;  %v11118_v7 = vld [vmem:[#allocation128_spill] sm:$0xff] }
 0x319   :  { %5866 = vrcp.f32 %v1838_v18  ;;  %2000 = vmatpush1.bf16.msra.mxu0 %v7698_v45  ;;  %2041 = vmatpush1.bf16.msra.mxu1 %v7704_v48  ;;  %v11117_v18 = vld [vmem:[#allocation127_spill] sm:$0xff] }
 0x31a   :  { %2001 = vmatprep.subr.bf16.mxu0 %v7710_v26  ;;  %2042 = vmatprep.subr.bf16.mxu1 %v7716_v22  ;;  %5868 = vrcp.f32 %v1845_v46  ;;  %v11124_v46 = vld [vmem:[#allocation134_spill] sm:$0xff] }
 0x31b   :  { %2031 = vmatprep.mubr.bf16.mxu0 %v11041_v43  ;;  %2072 = vmatprep.mubr.bf16.mxu1 %v11041_v43 }
 0x31d   :  { %2002 = vmatpush1.bf16.msra.mxu0 %v7724_v50  ;;  %2043 = vmatpush1.bf16.msra.mxu1 %v7730_v49 }
 0x31e   :  { %2003 = vmatprep.subr.bf16.mxu0 %v7736_v28  ;;  %2044 = vmatprep.subr.bf16.mxu1 %v7742_v10 }
 0x321   :  { %2004 = vmatpush1.bf16.msra.mxu0 %v7750_v36  ;;  %2045 = vmatpush1.bf16.msra.mxu1 %v7756_v21 }
 0x322   :  { %v5865_v60 = vpop.eup %5864  ;;  %2005 = vmatprep.subr.bf16.mxu0 %v7762_v1  ;;  %2046 = vmatprep.subr.bf16.mxu1 %v7768_v5 }
 0x323   :  { %v5867_v17 = vpop.eup %5866  ;;  %v1849_v39 = vmul.f32 %v5865_v60, %v5863_v41  ;;  %v11119_v41 = vld [vmem:[#allocation129_spill] sm:$0xff]  ;;  %v11120_v60 = vld [vmem:[#allocation130_spill] sm:$0xff] }
 0x324   :  { %v1848_v54 = vmul.f32 %v5867_v17, %v1625_v6  ;;  %v5869_v38 = vpop.eup %5868  ;;  %v11121_v17 = vld [vmem:[#allocation131_spill] sm:$0xff] }
 0x325   :  { %2006 = vmatpush1.bf16.msra.mxu0 %v7775_v33  ;;  %2047 = vmatpush1.bf16.msra.mxu1 %v7781_v23 }
 0x326   :  { %v1850_v58 = vadd.f32 %v1849_v39, %v1848_v54  ;;  %2007 = vmatprep.subr.bf16.mxu0 %v7789_v52  ;;  %2048 = vmatprep.subr.bf16.mxu1 %v7795_v42  ;;  %v11122_v39 = vld [vmem:[#allocation132_spill] sm:$0xff]  ;;  %v11125_v54 = vld [vmem:[#allocation135_spill] sm:$0xff] }
 0x328   :  { %5870 = vtanh.f32 %v1850_v58  ;;  %v8164_v0 = vsel %vm1868_vm7, %v1850_v58, %v1625_v6  ;;  %v11123_v6 = vld [vmem:[#allocation133_spill] sm:$0xff] }
 0x329   :  { %2008 = vmatpush1.bf16.msra.mxu0 %v7802_v51  ;;  %2049 = vmatpush1.bf16.msra.mxu1 %v7808_v47  ;;  %v11127_v58 = vld [vmem:[#allocation137_spill] sm:$0xff] }
 0x32a   :  { %2009 = vmatprep.subr.bf16.mxu0 %v7814_v20  ;;  %2050 = vmatprep.subr.bf16.mxu1 %v7820_v25 }
 0x32d   :  { %2010 = vmatpush1.bf16.msra.mxu0 %v7826_v34  ;;  %2051 = vmatpush1.bf16.msra.mxu1 %v7832_v32 }
 0x32e   :  { %2011 = vmatprep.subr.bf16.mxu0 %v7838_v37  ;;  %2052 = vmatprep.subr.bf16.mxu1 %v7844_v30 }
 0x331   :  { %2012 = vmatpush1.bf16.msra.mxu0 %v7850_v15  ;;  %2053 = vmatpush1.bf16.msra.mxu1 %v7856_v19 }
 0x332   :  { %v5871_v9 = vpop.eup %5870  ;;  %2013 = vmatprep.subr.bf16.mxu0 %v7864_v14  ;;  %2054 = vmatprep.subr.bf16.mxu1 %v7870_v12 }
 0x333   :  { %v1852_v35 = vmul.f32 %v5871_v9, %v5869_v38  ;;  %v11130_v38 = vld [vmem:[#allocation140_spill] sm:$0xff]  ;;  %v11131_v9 = vld [vmem:[#allocation141_spill] sm:$0xff] }
 0x335   :  { %2014 = vmatpush1.bf16.msra.mxu0 %v7879_v62  ;;  %2055 = vmatpush1.bf16.msra.mxu1 %v11112_v61  ;;  %v8190_v11 = vsel %vm1868_vm7, %v1852_v35, %v1624_v31  ;;  %v1878_v44 = vpack.c.bf16 %v1852_v35, %v1852_v35  ;;  %v1881_v63 = vmax.f32 %v1630_v4, %v1852_v35  ;;  %v11132_v35 = vld [vmem:[#allocation142_spill] sm:$0xff]  ;;  %v11134_v31 = vld [vmem:[#allocation144_spill] sm:$0xff] }
 0x336   :  { %2140 = vmatprep.subr.bf16.mxu0 %v11113_v2  ;;  %2181 = vmatprep.subr.bf16.mxu1 %v11114_v8 }
 0x337   :  { %v8197_v53 = vsel %vm1879_vm8, %v1878_v44, %v11115_v57  ;;  %v8200_v16 = vsel %vm1868_vm7, %v1881_v63, %v1630_v4  ;;  %v11135_v4 = vld [vmem:[#allocation145_spill] sm:$0xff]  ;;  %v11136_v44 = vld [vmem:[#allocation146_spill] sm:$0xff]  ;;  %v11137_v63 = vld [vmem:[#allocation147_spill] sm:$0xff] }
 0x338   :  { %2032 = vmatmul.mubr.bf16.vlgmr.msra.gmra.mrb[84].mxu0 %v8197_v53  ;;  %2073 = vmatmul.mubr.bf16.vlgmr.msra.gmra.mrb[84].mxu1 %v8197_v53  ;;  %v11138_v57 = vld [vmem:[#allocation148_spill] sm:$0xff] }
 0x339   :  { %2141 = vmatpush1.bf16.msra.mxu0 %v11116_v3  ;;  %2182 = vmatpush1.bf16.msra.mxu1 %v11117_v18 }
 0x33a   :  { %2142 = vmatprep.subr.bf16.mxu0 %v11118_v7  ;;  %2183 = vmatprep.subr.bf16.mxu1 %v11119_v41 }
 0x33b   :  { %2172 = vmatprep.mubr.bf16.mxu0 %v11041_v43  ;;  %2213 = vmatprep.mubr.bf16.mxu1 %v11041_v43 }
 0x33d   :  { %2143 = vmatpush1.bf16.msra.mxu0 %v11120_v60  ;;  %2184 = vmatpush1.bf16.msra.mxu1 %v11121_v17 }
 0x33e   :  { %2144 = vmatprep.subr.bf16.mxu0 %v11122_v39  ;;  %2185 = vmatprep.subr.bf16.mxu1 %v11123_v6  ;;  %v11151_v6 = vld [vmem:[#allocation13_spill] sm:$0xff] }
 0x341   :  { %2145 = vmatpush1.bf16.msra.mxu0 %v11124_v46  ;;  %2186 = vmatpush1.bf16.msra.mxu1 %v11125_v54  ;;  %v11150_v46 = vld [vmem:[#allocation12_spill] sm:$0xff] }
 0x342   :  { %2146 = vmatprep.subr.bf16.mxu0 %v11126_v56  ;;  %2187 = vmatprep.subr.bf16.mxu1 %v11127_v58  ;;  %v11148_v58 = vld [vmem:[#allocation10_spill] sm:$0xff]  ;;  %v11149_v56 = vld [vmem:[#allocation11_spill] sm:$0xff] }
 0x345   :  { %2147 = vmatpush1.bf16.msra.mxu0 %v11128_v27  ;;  %2188 = vmatpush1.bf16.msra.mxu1 %v11129_v24  ;;  %v11139_v27 = vld [vmem:[#allocation149_spill] sm:$0xff]  ;;  %v11140_v24 = vld [vmem:[#allocation150_spill] sm:$0xff] }
 0x346   :  { %2148 = vmatprep.subr.bf16.mxu0 %v11130_v38  ;;  %2189 = vmatprep.subr.bf16.mxu1 %v11131_v9  ;;  %v11141_v38 = vld [vmem:[#allocation151_spill] sm:$0xff]  ;;  %v11142_v9 = vld [vmem:[#allocation152_spill] sm:$0xff] }
 0x349   :  { %2149 = vmatpush1.bf16.msra.mxu0 %v11132_v35  ;;  %2190 = vmatpush1.bf16.msra.mxu1 %v11133_v59  ;;  %v11143_v35 = vld [vmem:[#allocation153_spill] sm:$0xff]  ;;  %v11144_v59 = vld [vmem:[#allocation154_spill] sm:$0xff] }
 0x34a   :  { %2150 = vmatprep.subr.bf16.mxu0 %v11134_v31  ;;  %2191 = vmatprep.subr.bf16.mxu1 %v11135_v4  ;;  %v11145_v31 = vld [vmem:[#allocation155_spill] sm:$0xff]  ;;  %v11146_v4 = vld [vmem:[#allocation156_spill] sm:$0xff] }
 0x34d   :  { %2151 = vmatpush1.bf16.msra.mxu0 %v11136_v44  ;;  %2192 = vmatpush1.bf16.msra.mxu1 %v11137_v63  ;;  %v11147_v44 = vld [vmem:[#allocation157_spill] sm:$0xff] }
 0x34e   :  { %2152 = vmatprep.subr.bf16.mxu0 %v11138_v57  ;;  %2193 = vmatprep.subr.bf16.mxu1 %v11139_v27 }
 0x351   :  { %2153 = vmatpush1.bf16.msra.mxu0 %v11140_v24  ;;  %2194 = vmatpush1.bf16.msra.mxu1 %v11141_v38 }
 0x352   :  { %2154 = vmatprep.subr.bf16.mxu0 %v11142_v9  ;;  %2195 = vmatprep.subr.bf16.mxu1 %v11143_v35 }
 0x355   :  { %2155 = vmatpush1.bf16.msra.mxu0 %v11144_v59  ;;  %2196 = vmatpush1.bf16.msra.mxu1 %v11145_v31 }
 0x356   :  { %2251 = vmatprep.subr.bf16.mxu0 %v11146_v4  ;;  %2292 = vmatprep.subr.bf16.mxu1 %v11147_v44 }
 0x3eb   :  { %v1922_v63 = vpop.f32.mrb[80].mxu0  ;;  %v1963_v57 = vpop.f32.mrb[80].mxu1 }
 0x3ec   :  { %v1923_v27 = vadd.f32 %v1922_v63, %v11148_v58  ;;  %v1964_v24 = vadd.f32 %v1963_v57, %v11149_v56  ;;  %v1924_v54 = vpop.f32.mrb[81].mxu0  ;;  %v1965_v38 = vpop.f32.mrb[81].mxu1  ;;  %v11154_v63 = vld [vmem:[#allocation120_spill] sm:$0xff] }
 0x3ed   :  { %v1925_v9 = vadd.f32 %v1924_v54, %v11150_v46  ;;  %v1966_v35 = vadd.f32 %v1965_v38, %v11151_v6  ;;  %v1926_v39 = vpop.f32.mrb[82].mxu0  ;;  %v1967_v59 = vpop.f32.mrb[82].mxu1 }
 0x3ee   :  { %v5568_v17 = vmul.f32 -1.442695, %v1923_v27  ;;  %v1927_v31 = vpop.f32.mrb[83].mxu0  ;;  %v1968_v60 = vpop.f32.mrb[83].mxu1 }
 0x3ef   :  { %v5569_v4 = vmul.f32 -1.442695, %v1925_v9  ;;  %v5570_v44 = vmul.f32 -1.442695, %v1966_v35  ;;  %v2111_v9 = vpop.permute.xlu0 %2110 }
 0x3f0   :  { %5872 = vpow2.f32 %v5568_v17  ;;  %vm2112_vm9 = vcmp.eq.s32.totalorder %v2111_v9, 1 }
 0x3f1   :  { %5874 = vpow2.f32 %v5569_v4  ;;  %vm2124_vm10 = vmpackc.low %vm2112_vm9, %vm2112_vm9 }
 0x3f2   :  { %5876 = vpow2.f32 %v5570_v44 }
 0x3f3   :  { %5878 = vtanh.f32 %v1964_v24  ;;  %v11153_v24 = vld [vmem:[#allocation119_spill] sm:$0xff] }
 0x3fa   :  { %v5873_v41 = vpop.eup %5872 }
 0x3fb   :  { %v5875_v7 = vpop.eup %5874  ;;  %v1973_v58 = vadd.f32 1.0, %v5873_v41  ;;  %v11152_v41 = vld [vmem:[#allocation118_spill] sm:$0xff] }
 0x3fc   :  { %v1979_v56 = vadd.f32 1.0, %v5875_v7  ;;  %v5877_v46 = vpop.eup %5876 }
 0x3fd   :  { %5880 = vrcp.f32 %v1973_v58  ;;  %v5879_v54 = vpop.eup %5878  ;;  %v1986_v27 = vadd.f32 1.0, %v5877_v46  ;;  %v11155_v58 = vld [vmem:[#allocation121_spill] sm:$0xff] }
 0x3fe   :  { %5882 = vrcp.f32 %v1979_v56 }
 0x3ff   :  { %5884 = vrcp.f32 %v1986_v27 }
 0x407   :  { %v5881_v6 = vpop.eup %5880 }
 0x408   :  { %v5883_v39 = vpop.eup %5882  ;;  %v1990_v38 = vmul.f32 %v5881_v6, %v5879_v54 }
 0x409   :  { %v1989_v60 = vmul.f32 %v5883_v39, %v8117_v13 }
 0x40b   :  { %v1991_v17 = vadd.f32 %v1990_v38, %v1989_v60  ;;  %v2033_v59 = vpop.f32.mrb[84].mxu0  ;;  %v2074_v35 = vpop.f32.mrb[84].mxu1 }
 0x40c   :  { %v2034_v31 = vadd.f32 %v2033_v59, %v11152_v41  ;;  %v2075_v7 = vadd.f32 %v2074_v35, %v11153_v24  ;;  %v2035_v4 = vpop.f32.mrb[85].mxu0  ;;  %v2076_v44 = vpop.f32.mrb[85].mxu1 }
 0x40d   :  { %5886 = vtanh.f32 %v1991_v17  ;;  %v2036_v57 = vadd.f32 %v2035_v4, %v11154_v63  ;;  %v2077_v56 = vadd.f32 %v2076_v44, %v11155_v58  ;;  %v2037_v46 = vpop.f32.mrb[86].mxu0  ;;  %v2078_v54 = vpop.f32.mrb[86].mxu1  ;;  %v8249_v6 = vsel %vm2112_vm9, %v1991_v17, %v8117_v13 }
 0x40e   :  { %v5571_v39 = vmul.f32 -1.442695, %v2034_v31  ;;  %v2038_v38 = vpop.f32.mrb[87].mxu0  ;;  %v2079_v27 = vpop.f32.mrb[87].mxu1 }
 0x40f   :  { %v5572_v60 = vmul.f32 -1.442695, %v2036_v57  ;;  %v5885_v59 = vpop.eup %5884  ;;  %v5573_v41 = vmul.f32 -1.442695, %v2077_v56  ;;  %v2119_v46 = vpop.permute.xlu1 %2118 }
 0x410   :  { %5888 = vpow2.f32 %v5571_v39  ;;  %vm2120_vm11 = vcmp.eq.s32.totalorder %v2119_v46, 1  ;;  %v11171_v46 = vld [vmem:[#allocation142_spill] sm:$0xff] }
 0x411   :  { %5890 = vpow2.f32 %v5572_v60  ;;  %vm2131_vm12 = vmpackc.low %vm2120_vm11, %vm2120_vm11 }
 0x412   :  { %5892 = vpow2.f32 %v5573_v41 }
 0x413   :  { %5894 = vtanh.f32 %v2075_v7 }
 0x417   :  { %v5887_v35 = vpop.eup %5886 }
 0x418   :  { %v1993_v24 = vmul.f32 %v5887_v35, %v5885_v59 }
 0x41a   :  { %v5889_v18 = vpop.eup %5888  ;;  %v8253_v4 = vsel %vm2112_vm9, %v1993_v24, %v8131_v40  ;;  %v2123_v44 = vpack.c.bf16 %v1993_v24, %v1993_v24  ;;  %v2126_v63 = vmax.f32 %v8137_v55, %v1993_v24 }
 0x41b   :  { %v5891_v13 = vpop.eup %5890  ;;  %v2084_v17 = vadd.f32 1.0, %v5889_v18 }
 0x41c   :  { %v2090_v31 = vadd.f32 1.0, %v5891_v13  ;;  %v8259_v57 = vsel %vm2124_vm10, %v2123_v44, %v8134_v29  ;;  %v8263_v58 = vsel %vm2112_vm9, %v2126_v63, %v8137_v55  ;;  %v5893_v40 = vpop.eup %5892  ;;  %v11157_v44 = vld [vmem:[#allocation128_spill] sm:$0xff]  ;;  %v11158_v63 = vld [vmem:[#allocation129_spill] sm:$0xff] }
 0x41d   :  { %5896 = vrcp.f32 %v2084_v17  ;;  %2173 = vmatmul.mubr.bf16.vlgmr.msra.gmra.mrb[88].mxu0 %v8259_v57  ;;  %2214 = vmatmul.mubr.bf16.vlgmr.msra.gmra.mrb[88].mxu1 %v8259_v57  ;;  %v5895_v29 = vpop.eup %5894  ;;  %v2097_v7 = vadd.f32 1.0, %v5893_v40  ;;  %v11161_v13 = vld [vmem:[#allocation132_spill] sm:$0xff]  ;;  %v11162_v17 = vld [vmem:[#allocation133_spill] sm:$0xff]  ;;  %v11164_v40 = vld [vmem:[#allocation135_spill] sm:$0xff] }
 0x41e   :  { %5898 = vrcp.f32 %v2090_v31  ;;  %2252 = vmatpush1.bf16.msra.mxu0 %v7698_v45  ;;  %2293 = vmatpush1.bf16.msra.mxu1 %v7704_v48  ;;  %v11163_v31 = vld [vmem:[#allocation134_spill] sm:$0xff] }
 0x41f   :  { %2253 = vmatprep.subr.bf16.mxu0 %v7710_v26  ;;  %2294 = vmatprep.subr.bf16.mxu1 %v7716_v22  ;;  %5900 = vrcp.f32 %v2097_v7  ;;  %v11169_v7 = vld [vmem:[#allocation140_spill] sm:$0xff] }
 0x420   :  { %2283 = vmatprep.mubr.bf16.mxu0 %v11041_v43  ;;  %2324 = vmatprep.mubr.bf16.mxu1 %v11041_v43 }
 0x422   :  { %2254 = vmatpush1.bf16.msra.mxu0 %v7724_v50  ;;  %2295 = vmatpush1.bf16.msra.mxu1 %v7730_v49 }
 0x423   :  { %2255 = vmatprep.subr.bf16.mxu0 %v7736_v28  ;;  %2296 = vmatprep.subr.bf16.mxu1 %v7742_v10 }
 0x426   :  { %2256 = vmatpush1.bf16.msra.mxu0 %v7750_v36  ;;  %2297 = vmatpush1.bf16.msra.mxu1 %v7756_v21 }
 0x427   :  { %v5897_v55 = vpop.eup %5896  ;;  %2257 = vmatprep.subr.bf16.mxu0 %v7762_v1  ;;  %2298 = vmatprep.subr.bf16.mxu1 %v7768_v5 }
 0x428   :  { %v5899_v18 = vpop.eup %5898  ;;  %v2101_v9 = vmul.f32 %v5897_v55, %v5895_v29  ;;  %v11165_v29 = vld [vmem:[#allocation136_spill] sm:$0xff]  ;;  %v11166_v55 = vld [vmem:[#allocation137_spill] sm:$0xff] }
 0x429   :  { %v2100_v56 = vmul.f32 %v5899_v18, %v8164_v0  ;;  %v5901_v38 = vpop.eup %5900  ;;  %v11167_v18 = vld [vmem:[#allocation138_spill] sm:$0xff] }
 0x42a   :  { %2258 = vmatpush1.bf16.msra.mxu0 %v7775_v33  ;;  %2299 = vmatpush1.bf16.msra.mxu1 %v7781_v23 }
 0x42b   :  { %v2102_v54 = vadd.f32 %v2101_v9, %v2100_v56  ;;  %2259 = vmatprep.subr.bf16.mxu0 %v7789_v52  ;;  %2300 = vmatprep.subr.bf16.mxu1 %v7795_v42  ;;  %v11168_v9 = vld [vmem:[#allocation139_spill] sm:$0xff]  ;;  %v11170_v56 = vld [vmem:[#allocation141_spill] sm:$0xff] }
 0x42d   :  { %5902 = vtanh.f32 %v2102_v54  ;;  %v8288_v39 = vsel %vm2120_vm11, %v2102_v54, %v8164_v0  ;;  %v11172_v54 = vld [vmem:[#allocation143_spill] sm:$0xff] }
 0x42e   :  { %2260 = vmatpush1.bf16.msra.mxu0 %v7802_v51  ;;  %2301 = vmatpush1.bf16.msra.mxu1 %v7808_v47 }
 0x42f   :  { %2261 = vmatprep.subr.bf16.mxu0 %v7814_v20  ;;  %2302 = vmatprep.subr.bf16.mxu1 %v7820_v25 }
 0x432   :  { %2262 = vmatpush1.bf16.msra.mxu0 %v7826_v34  ;;  %2303 = vmatpush1.bf16.msra.mxu1 %v7832_v32 }
 0x433   :  { %2263 = vmatprep.subr.bf16.mxu0 %v7838_v37  ;;  %2304 = vmatprep.subr.bf16.mxu1 %v7844_v30 }
 0x436   :  { %2264 = vmatpush1.bf16.msra.mxu0 %v7850_v15  ;;  %2305 = vmatpush1.bf16.msra.mxu1 %v7856_v19 }
 0x437   :  { %v5903_v0 = vpop.eup %5902  ;;  %2265 = vmatprep.subr.bf16.mxu0 %v7864_v14  ;;  %2306 = vmatprep.subr.bf16.mxu1 %v7870_v12 }
 0x438   :  { %v2104_v27 = vmul.f32 %v5903_v0, %v5901_v38  ;;  %v11173_v38 = vld [vmem:[#allocation144_spill] sm:$0xff]  ;;  %v11174_v0 = vld [vmem:[#allocation145_spill] sm:$0xff] }
 0x43a   :  { %2266 = vmatpush1.bf16.msra.mxu0 %v7879_v62  ;;  %2307 = vmatpush1.bf16.msra.mxu1 %v11112_v61  ;;  %v8306_v60 = vsel %vm2120_vm11, %v2104_v27, %v8190_v11  ;;  %v2130_v59 = vpack.c.bf16 %v2104_v27, %v2104_v27  ;;  %v2133_v35 = vmax.f32 %v8200_v16, %v2104_v27  ;;  %v11156_v11 = vld [vmem:[#allocation127_spill] sm:$0xff]  ;;  %v11175_v27 = vld [vmem:[#allocation146_spill] sm:$0xff] }
 0x43b   :  { %2392 = vmatprep.subr.bf16.mxu0 %v11113_v2  ;;  %2433 = vmatprep.subr.bf16.mxu1 %v11114_v8 }
 0x43c   :  { %v8314_v41 = vsel %vm2131_vm12, %v2130_v59, %v8197_v53  ;;  %v8318_v24 = vsel %vm2120_vm11, %v2133_v35, %v8200_v16  ;;  %v11159_v53 = vld [vmem:[#allocation130_spill] sm:$0xff]  ;;  %v11160_v16 = vld [vmem:[#allocation131_spill] sm:$0xff]  ;;  %v11177_v35 = vld [vmem:[#allocation148_spill] sm:$0xff] }
 0x43d   :  { %2284 = vmatmul.mubr.bf16.vlgmr.msra.gmra.mrb[92].mxu0 %v8314_v41  ;;  %2325 = vmatmul.mubr.bf16.vlgmr.msra.gmra.mrb[92].mxu1 %v8314_v41  ;;  %v11176_v59 = vld [vmem:[#allocation147_spill] sm:$0xff] }
 0x43e   :  { %2393 = vmatpush1.bf16.msra.mxu0 %v11116_v3  ;;  %2434 = vmatpush1.bf16.msra.mxu1 %v11156_v11 }
 0x43f   :  { %2394 = vmatprep.subr.bf16.mxu0 %v11157_v44  ;;  %2435 = vmatprep.subr.bf16.mxu1 %v11158_v63 }
 0x440   :  { %2424 = vmatprep.mubr.bf16.mxu0 %v11041_v43  ;;  %2465 = vmatprep.mubr.bf16.mxu1 %v11041_v43 }
 0x442   :  { %2395 = vmatpush1.bf16.msra.mxu0 %v11159_v53  ;;  %2436 = vmatpush1.bf16.msra.mxu1 %v11160_v16 }
 0x443   :  { %2396 = vmatprep.subr.bf16.mxu0 %v11161_v13  ;;  %2437 = vmatprep.subr.bf16.mxu1 %v11162_v17  ;;  %v11190_v17 = vld [vmem:[#allocation17_spill] sm:$0xff] }
 0x446   :  { %2397 = vmatpush1.bf16.msra.mxu0 %v11163_v31  ;;  %2438 = vmatpush1.bf16.msra.mxu1 %v11164_v40  ;;  %v11189_v31 = vld [vmem:[#allocation16_spill] sm:$0xff] }
 0x447   :  { %2398 = vmatprep.subr.bf16.mxu0 %v11165_v29  ;;  %2439 = vmatprep.subr.bf16.mxu1 %v11166_v55  ;;  %v11187_v55 = vld [vmem:[#allocation14_spill] sm:$0xff]  ;;  %v11188_v29 = vld [vmem:[#allocation15_spill] sm:$0xff] }
 0x44a   :  { %2399 = vmatpush1.bf16.msra.mxu0 %v11167_v18  ;;  %2440 = vmatpush1.bf16.msra.mxu1 %v11168_v9  ;;  %v11178_v18 = vld [vmem:[#allocation149_spill] sm:$0xff]  ;;  %v11179_v9 = vld [vmem:[#allocation150_spill] sm:$0xff] }
 0x44b   :  { %2400 = vmatprep.subr.bf16.mxu0 %v11169_v7  ;;  %2441 = vmatprep.subr.bf16.mxu1 %v11170_v56  ;;  %v11180_v7 = vld [vmem:[#allocation151_spill] sm:$0xff]  ;;  %v11181_v56 = vld [vmem:[#allocation152_spill] sm:$0xff] }
 0x44e   :  { %2401 = vmatpush1.bf16.msra.mxu0 %v11171_v46  ;;  %2442 = vmatpush1.bf16.msra.mxu1 %v11172_v54  ;;  %v11182_v46 = vld [vmem:[#allocation153_spill] sm:$0xff]  ;;  %v11183_v54 = vld [vmem:[#allocation154_spill] sm:$0xff] }
 0x44f   :  { %2402 = vmatprep.subr.bf16.mxu0 %v11173_v38  ;;  %2443 = vmatprep.subr.bf16.mxu1 %v11174_v0  ;;  %v11184_v38 = vld [vmem:[#allocation155_spill] sm:$0xff]  ;;  %v11185_v0 = vld [vmem:[#allocation156_spill] sm:$0xff] }
 0x452   :  { %2403 = vmatpush1.bf16.msra.mxu0 %v11175_v27  ;;  %2444 = vmatpush1.bf16.msra.mxu1 %v11176_v59  ;;  %v11186_v27 = vld [vmem:[#allocation157_spill] sm:$0xff] }
 0x453   :  { %2404 = vmatprep.subr.bf16.mxu0 %v11177_v35  ;;  %2445 = vmatprep.subr.bf16.mxu1 %v11178_v18 }
 0x456   :  { %2405 = vmatpush1.bf16.msra.mxu0 %v11179_v9  ;;  %2446 = vmatpush1.bf16.msra.mxu1 %v11180_v7 }
 0x457   :  { %2406 = vmatprep.subr.bf16.mxu0 %v11181_v56  ;;  %2447 = vmatprep.subr.bf16.mxu1 %v11182_v46 }
 0x45a   :  { %2407 = vmatpush1.bf16.msra.mxu0 %v11183_v54  ;;  %2448 = vmatpush1.bf16.msra.mxu1 %v11184_v38 }
 0x45b   :  { %2503 = vmatprep.subr.bf16.mxu0 %v11185_v0  ;;  %2544 = vmatprep.subr.bf16.mxu1 %v11186_v27 }
 0x4f0   :  { %v2174_v59 = vpop.f32.mrb[88].mxu0  ;;  %v2215_v35 = vpop.f32.mrb[88].mxu1 }
 0x4f1   :  { %v2175_v18 = vadd.f32 %v2174_v59, %v11187_v55  ;;  %v2216_v9 = vadd.f32 %v2215_v35, %v11188_v29  ;;  %v2176_v40 = vpop.f32.mrb[89].mxu0  ;;  %v2217_v7 = vpop.f32.mrb[89].mxu1  ;;  %v11193_v59 = vld [vmem:[#allocation116_spill] sm:$0xff] }
 0x4f2   :  { %v2177_v56 = vadd.f32 %v2176_v40, %v11189_v31  ;;  %v2218_v46 = vadd.f32 %v2217_v7, %v11190_v17  ;;  %v2178_v13 = vpop.f32.mrb[90].mxu0  ;;  %v2219_v54 = vpop.f32.mrb[90].mxu1 }
 0x4f3   :  { %v5575_v16 = vmul.f32 -1.442695, %v2175_v18  ;;  %v2179_v38 = vpop.f32.mrb[91].mxu0  ;;  %v2220_v53 = vpop.f32.mrb[91].mxu1 }
 0x4f4   :  { %v5576_v0 = vmul.f32 -1.442695, %v2177_v56  ;;  %v5577_v27 = vmul.f32 -1.442695, %v2218_v46  ;;  %v2363_v56 = vpop.permute.xlu0 %2362 }
 0x4f5   :  { %5904 = vpow2.f32 %v5575_v16  ;;  %vm2364_vm13 = vcmp.eq.s32.totalorder %v2363_v56, 1  ;;  %v11218_v56 = vld [vmem:[#allocation150_spill] sm:$0xff] }
 0x4f6   :  { %5906 = vpow2.f32 %v5576_v0  ;;  %vm2376_vm14 = vmpackc.low %vm2364_vm13, %vm2364_vm13 }
 0x4f7   :  { %5908 = vpow2.f32 %v5577_v27 }
 0x4f8   :  { %5910 = vtanh.f32 %v2216_v9  ;;  %v11192_v9 = vld [vmem:[#allocation115_spill] sm:$0xff] }
 0x4ff   :  { %v5905_v63 = vpop.eup %5904 }
 0x500   :  { %v5907_v44 = vpop.eup %5906  ;;  %v2225_v55 = vadd.f32 1.0, %v5905_v63  ;;  %v11191_v63 = vld [vmem:[#allocation114_spill] sm:$0xff] }
 0x501   :  { %v2231_v29 = vadd.f32 1.0, %v5907_v44  ;;  %v5909_v31 = vpop.eup %5908 }
 0x502   :  { %5912 = vrcp.f32 %v2225_v55  ;;  %v5911_v40 = vpop.eup %5910  ;;  %v2238_v18 = vadd.f32 1.0, %v5909_v31  ;;  %v11194_v55 = vld [vmem:[#allocation117_spill] sm:$0xff] }
 0x503   :  { %5914 = vrcp.f32 %v2231_v29 }
 0x504   :  { %5916 = vrcp.f32 %v2238_v18 }
 0x50c   :  { %v5913_v17 = vpop.eup %5912 }
 0x50d   :  { %v5915_v13 = vpop.eup %5914  ;;  %v2242_v7 = vmul.f32 %v5913_v17, %v5911_v40 }
 0x50e   :  { %v2241_v53 = vmul.f32 %v5915_v13, %v8249_v6 }
 0x510   :  { %v2243_v16 = vadd.f32 %v2242_v7, %v2241_v53  ;;  %v2285_v54 = vpop.f32.mrb[92].mxu0  ;;  %v2326_v46 = vpop.f32.mrb[92].mxu1 }
 0x511   :  { %v2286_v38 = vadd.f32 %v2285_v54, %v11191_v63  ;;  %v2327_v44 = vadd.f32 %v2326_v46, %v11192_v9  ;;  %v2287_v0 = vpop.f32.mrb[93].mxu0  ;;  %v2328_v27 = vpop.f32.mrb[93].mxu1 }
 0x512   :  { %5918 = vtanh.f32 %v2243_v16  ;;  %v2288_v35 = vadd.f32 %v2287_v0, %v11193_v59  ;;  %v2329_v29 = vadd.f32 %v2328_v27, %v11194_v55  ;;  %v2289_v31 = vpop.f32.mrb[94].mxu0  ;;  %v2330_v40 = vpop.f32.mrb[94].mxu1  ;;  %v8367_v17 = vsel %vm2364_vm13, %v2243_v16, %v8249_v6 }
 0x513   :  { %v5578_v13 = vmul.f32 -1.442695, %v2286_v38  ;;  %v2290_v7 = vpop.f32.mrb[95].mxu0  ;;  %v2331_v18 = vpop.f32.mrb[95].mxu1  ;;  %v11221_v31 = vld [vmem:[#allocation153_spill] sm:$0xff]  ;;  %v11222_v40 = vld [vmem:[#allocation154_spill] sm:$0xff] }
 0x514   :  { %v5579_v53 = vmul.f32 -1.442695, %v2288_v35  ;;  %v5917_v54 = vpop.eup %5916  ;;  %v5580_v63 = vmul.f32 -1.442695, %v2329_v29  ;;  %v11220_v29 = vld [vmem:[#allocation152_spill] sm:$0xff]  ;;  %v11225_v18 = vld [vmem:[#allocation157_spill] sm:$0xff] }
 0x515   :  { %5920 = vpow2.f32 %v5578_v13  ;;  %v11223_v13 = vld [vmem:[#allocation155_spill] sm:$0xff]  ;;  %v11224_v7 = vld [vmem:[#allocation156_spill] sm:$0xff] }
 0x516   :  { %5922 = vpow2.f32 %v5579_v53 }
 0x517   :  { %5924 = vpow2.f32 %v5580_v63 }
 0x518   :  { %5926 = vtanh.f32 %v2327_v44  ;;  %v11219_v44 = vld [vmem:[#allocation151_spill] sm:$0xff] }
 0x51c   :  { %v5919_v46 = vpop.eup %5918 }
 0x51d   :  { %v2245_v9 = vmul.f32 %v5919_v46, %v5917_v54  ;;  %v11226_v46 = vld [vmem:[#allocation18_spill] sm:$0xff] }
 0x51f   :  { %v5921_v11 = vpop.eup %5920  ;;  %v8371_v0 = vsel %vm2364_vm13, %v2245_v9, %v8253_v4  ;;  %v2375_v27 = vpack.c.bf16 %v2245_v9, %v2245_v9  ;;  %v2378_v59 = vmax.f32 %v8263_v58, %v2245_v9  ;;  %v11227_v9 = vld [vmem:[#allocation19_spill] sm:$0xff] }
 0x520   :  { %v5923_v6 = vpop.eup %5922  ;;  %v2336_v16 = vadd.f32 1.0, %v5921_v11  ;;  %v11217_v11 = vld [vmem:[#allocation149_spill] sm:$0xff] }
 0x521   :  { %v2342_v38 = vadd.f32 1.0, %v5923_v6  ;;  %v8377_v35 = vsel %vm2376_vm14, %v2375_v27, %v8259_v57  ;;  %v8381_v55 = vsel %vm2364_vm13, %v2378_v59, %v8263_v58  ;;  %v5925_v4 = vpop.eup %5924  ;;  %v11211_v57 = vld [vmem:[#allocation143_spill] sm:$0xff]  ;;  %v11212_v58 = vld [vmem:[#allocation144_spill] sm:$0xff] }
 0x522   :  { %5928 = vrcp.f32 %v2336_v16  ;;  %2425 = vmatmul.mubr.bf16.vlgmr.msra.gmra.mrb[96].mxu0 %v8377_v35  ;;  %2466 = vmatmul.mubr.bf16.vlgmr.msra.gmra.mrb[96].mxu1 %v8377_v35  ;;  %v11228_v16 = vld [vmem:[#allocation20_spill] sm:$0xff] }
 0x523   :  { %5930 = vrcp.f32 %v2342_v38  ;;  %2504 = vmatpush1.bf16.msra.mxu0 %v7698_v45  ;;  %2545 = vmatpush1.bf16.msra.mxu1 %v7704_v48  ;;  %v5927_v45 = vpop.eup %5926 }
 0x524   :  { %2505 = vmatprep.subr.bf16.mxu0 %v7710_v26  ;;  %2546 = vmatprep.subr.bf16.mxu1 %v7716_v22 }
 0x525   :  { %2535 = vmatprep.mubr.bf16.mxu0 %v11041_v43  ;;  %2576 = vmatprep.mubr.bf16.mxu1 %v11041_v43 }
 0x527   :  { %2506 = vmatpush1.bf16.msra.mxu0 %v7724_v50  ;;  %2547 = vmatpush1.bf16.msra.mxu1 %v7730_v49  ;;  %v2349_v50 = vadd.f32 1.0, %v5925_v4  ;;  %v11229_v4 = vld [vmem:[#allocation21_spill] sm:$0xff] }
 0x528   :  { %2507 = vmatprep.subr.bf16.mxu0 %v7736_v28  ;;  %2548 = vmatprep.subr.bf16.mxu1 %v7742_v10  ;;  %v2371_v28 = vpop.permute.xlu1 %2370 }
 0x529   :  { %vm2372_vm15 = vcmp.eq.s32.totalorder %v2371_v28, 1  ;;  %5932 = vrcp.f32 %v2349_v50 }
 0x52a   :  { %vm2383_vm0 = vmpackc.low %vm2372_vm15, %vm2372_vm15 }
 0x52b   :  { %2508 = vmatpush1.bf16.msra.mxu0 %v7750_v36  ;;  %2549 = vmatpush1.bf16.msra.mxu1 %v7756_v21 }
 0x52c   :  { %v5929_v48 = vpop.eup %5928  ;;  %2509 = vmatprep.subr.bf16.mxu0 %v7762_v1  ;;  %2550 = vmatprep.subr.bf16.mxu1 %v7768_v5 }
 0x52d   :  { %v5931_v26 = vpop.eup %5930  ;;  %v2353_v22 = vmul.f32 %v5929_v48, %v5927_v45 }
 0x52e   :  { %v2352_v49 = vmul.f32 %v5931_v26, %v8288_v39 }
 0x52f   :  { %2510 = vmatpush1.bf16.msra.mxu0 %v7775_v33  ;;  %2551 = vmatpush1.bf16.msra.mxu1 %v7781_v23 }
 0x530   :  { %v2354_v10 = vadd.f32 %v2353_v22, %v2352_v49  ;;  %2511 = vmatprep.subr.bf16.mxu0 %v7789_v52  ;;  %2552 = vmatprep.subr.bf16.mxu1 %v7795_v42  ;;  %v11198_v42 = vld [vmem:[#allocation130_spill] sm:$0xff] }
 0x532   :  { %5934 = vtanh.f32 %v2354_v10  ;;  %v8406_v36 = vsel %vm2372_vm15, %v2354_v10, %v8288_v39  ;;  %v11213_v39 = vld [vmem:[#allocation145_spill] sm:$0xff] }
 0x533   :  { %2512 = vmatpush1.bf16.msra.mxu0 %v7802_v51  ;;  %2553 = vmatpush1.bf16.msra.mxu1 %v7808_v47  ;;  %v5933_v21 = vpop.eup %5932  ;;  %v11199_v51 = vld [vmem:[#allocation131_spill] sm:$0xff]  ;;  %v11200_v47 = vld [vmem:[#allocation132_spill] sm:$0xff] }
 0x534   :  { %2513 = vmatprep.subr.bf16.mxu0 %v7814_v20  ;;  %2554 = vmatprep.subr.bf16.mxu1 %v7820_v25  ;;  %v11201_v20 = vld [vmem:[#allocation133_spill] sm:$0xff]  ;;  %v11202_v25 = vld [vmem:[#allocation134_spill] sm:$0xff] }
 0x537   :  { %2514 = vmatpush1.bf16.msra.mxu0 %v7826_v34  ;;  %2555 = vmatpush1.bf16.msra.mxu1 %v7832_v32  ;;  %v11203_v34 = vld [vmem:[#allocation135_spill] sm:$0xff]  ;;  %v11204_v32 = vld [vmem:[#allocation136_spill] sm:$0xff] }
 0x538   :  { %2515 = vmatprep.subr.bf16.mxu0 %v7838_v37  ;;  %2556 = vmatprep.subr.bf16.mxu1 %v7844_v30  ;;  %v11205_v37 = vld [vmem:[#allocation137_spill] sm:$0xff]  ;;  %v11206_v30 = vld [vmem:[#allocation138_spill] sm:$0xff] }
 0x53b   :  { %2516 = vmatpush1.bf16.msra.mxu0 %v7850_v15  ;;  %2557 = vmatpush1.bf16.msra.mxu1 %v7856_v19  ;;  %v11196_v19 = vld [vmem:[#allocation128_spill] sm:$0xff]  ;;  %v11197_v15 = vld [vmem:[#allocation129_spill] sm:$0xff] }
 0x53c   :  { %v5935_v1 = vpop.eup %5934  ;;  %2517 = vmatprep.subr.bf16.mxu0 %v7864_v14  ;;  %2558 = vmatprep.subr.bf16.mxu1 %v7870_v12 }
 0x53d   :  { %v2356_v5 = vmul.f32 %v5935_v1, %v5933_v21 }
 0x53f   :  { %2518 = vmatpush1.bf16.msra.mxu0 %v7879_v62  ;;  %2559 = vmatpush1.bf16.msra.mxu1 %v11112_v61  ;;  %v8424_v33 = vsel %vm2372_vm15, %v2356_v5, %v8306_v60  ;;  %v2382_v23 = vpack.c.bf16 %v2356_v5, %v2356_v5  ;;  %v2385_v52 = vmax.f32 %v8318_v24, %v2356_v5  ;;  %v11195_v62 = vld [vmem:[#allocation127_spill] sm:$0xff]  ;;  %v11214_v60 = vld [vmem:[#allocation146_spill] sm:$0xff] }
 0x540   :  { %2644 = vmatprep.subr.bf16.mxu0 %v11113_v2  ;;  %2685 = vmatprep.subr.bf16.mxu1 %v11114_v8  ;;  %v11207_v61 = vld [vmem:[#allocation139_spill] sm:$0xff]  ;;  %v11208_v2 = vld [vmem:[#allocation140_spill] sm:$0xff]  ;;  %v11209_v8 = vld [vmem:[#allocation141_spill] sm:$0xff] }
 0x541   :  { %v8432_v12 = vsel %vm2383_vm0, %v2382_v23, %v8314_v41  ;;  %v8436_v14 = vsel %vm2372_vm15, %v2385_v52, %v8318_v24  ;;  %v11215_v41 = vld [vmem:[#allocation147_spill] sm:$0xff]  ;;  %v11216_v24 = vld [vmem:[#allocation148_spill] sm:$0xff] }
 0x542   :  { %2536 = vmatmul.mubr.bf16.vlgmr.msra.gmra.mrb[100].mxu0 %v8432_v12  ;;  %2577 = vmatmul.mubr.bf16.vlgmr.msra.gmra.mrb[100].mxu1 %v8432_v12 }
 0x543   :  { %2645 = vmatpush1.bf16.msra.mxu0 %v11116_v3  ;;  %2686 = vmatpush1.bf16.msra.mxu1 %v11195_v62  ;;  %v11210_v3 = vld [vmem:[#allocation142_spill] sm:$0xff] }
 0x544   :  { %2646 = vmatprep.subr.bf16.mxu0 %v11196_v19  ;;  %2687 = vmatprep.subr.bf16.mxu1 %v11197_v15 }
 0x545   :  { %2676 = vmatprep.mubr.bf16.mxu0 %v11041_v43  ;;  %2717 = vmatprep.mubr.bf16.mxu1 %v11041_v43 }
 0x547   :  { %2647 = vmatpush1.bf16.msra.mxu0 %v11198_v42  ;;  %2688 = vmatpush1.bf16.msra.mxu1 %v11199_v51 }
 0x548   :  { %2648 = vmatprep.subr.bf16.mxu0 %v11200_v47  ;;  %2689 = vmatprep.subr.bf16.mxu1 %v11201_v20  ;;  %v2615_v20 = vpop.permute.xlu0 %2614 }
 0x549   :  { %vm2616_vm1 = vcmp.eq.s32.totalorder %v2615_v20, 1 }
 0x54a   :  { %vm2628_vm2 = vmpackc.low %vm2616_vm1, %vm2616_vm1 }
 0x54b   :  { %2649 = vmatpush1.bf16.msra.mxu0 %v11202_v25  ;;  %2690 = vmatpush1.bf16.msra.mxu1 %v11203_v34 }
 0x54c   :  { %2650 = vmatprep.subr.bf16.mxu0 %v11204_v32  ;;  %2691 = vmatprep.subr.bf16.mxu1 %v11205_v37  ;;  %v11230_v37 = vld [vmem:[#allocation110_spill] sm:$0xff] }
 0x54f   :  { %2651 = vmatpush1.bf16.msra.mxu0 %v11206_v30  ;;  %2692 = vmatpush1.bf16.msra.mxu1 %v11207_v61  ;;  %v11231_v61 = vld [vmem:[#allocation111_spill] sm:$0xff] }
 0x550   :  { %2652 = vmatprep.subr.bf16.mxu0 %v11208_v2  ;;  %2693 = vmatprep.subr.bf16.mxu1 %v11209_v8 }
 0x553   :  { %2653 = vmatpush1.bf16.msra.mxu0 %v11210_v3  ;;  %2694 = vmatpush1.bf16.msra.mxu1 %v11211_v57  ;;  %v11232_v57 = vld [vmem:[#allocation112_spill] sm:$0xff] }
 0x554   :  { %2654 = vmatprep.subr.bf16.mxu0 %v11212_v58  ;;  %2695 = vmatprep.subr.bf16.mxu1 %v11213_v39  ;;  %v11233_v39 = vld [vmem:[#allocation113_spill] sm:$0xff] }
 0x557   :  { %2655 = vmatpush1.bf16.msra.mxu0 %v11214_v60  ;;  %2696 = vmatpush1.bf16.msra.mxu1 %v11215_v41 }
 0x558   :  { %2656 = vmatprep.subr.bf16.mxu0 %v11216_v24  ;;  %2697 = vmatprep.subr.bf16.mxu1 %v11217_v11 }
 0x55b   :  { %2657 = vmatpush1.bf16.msra.mxu0 %v11218_v56  ;;  %2698 = vmatpush1.bf16.msra.mxu1 %v11219_v44 }
 0x55c   :  { %2658 = vmatprep.subr.bf16.mxu0 %v11220_v29  ;;  %2699 = vmatprep.subr.bf16.mxu1 %v11221_v31 }
 0x55f   :  { %2659 = vmatpush1.bf16.msra.mxu0 %v11222_v40  ;;  %2700 = vmatpush1.bf16.msra.mxu1 %v11223_v13 }
 0x560   :  { %2755 = vmatprep.subr.bf16.mxu0 %v11224_v7  ;;  %2796 = vmatprep.subr.bf16.mxu1 %v11225_v18 }
 0x5f5   :  { %v2426_v53 = vpop.f32.mrb[96].mxu0  ;;  %v2467_v54 = vpop.f32.mrb[96].mxu1 }
 0x5f6   :  { %v2427_v63 = vadd.f32 %v2426_v53, %v11226_v46  ;;  %v2468_v27 = vadd.f32 %v2467_v54, %v11227_v9  ;;  %v2428_v59 = vpop.f32.mrb[97].mxu0  ;;  %v2469_v6 = vpop.f32.mrb[97].mxu1 }
 0x5f7   :  { %v2429_v38 = vadd.f32 %v2428_v59, %v11228_v16  ;;  %v2470_v45 = vadd.f32 %v2469_v6, %v11229_v4  ;;  %v2430_v48 = vpop.f32.mrb[98].mxu0  ;;  %v2471_v26 = vpop.f32.mrb[98].mxu1  ;;  %v8524_v16 = vld [vmem:[%s10722_s8 + $0x2c] ss:$16 sps:$4 sm:$0xff]   ;;  %v8538_v4 = vld [vmem:[%s10722_s8 + $0x28] ss:$16 sps:$4 sm:$0xff]  }
 0x5f8   :  { %v5582_v22 = vmul.f32 -1.442695, %v2427_v63  ;;  %v2431_v50 = vpop.f32.mrb[99].mxu0  ;;  %v2472_v49 = vpop.f32.mrb[99].mxu1  ;;  %v8550_v48 = vld [vmem:[%s10722_s8 + $0x4c] ss:$16 sps:$4 sm:$0xff]  }
 0x5f9   :  { %v5583_v28 = vmul.f32 -1.442695, %v2429_v38  ;;  %v5584_v10 = vmul.f32 -1.442695, %v2470_v45  ;;  %v8532_v38 = vld [vmem:[%s10722_s8 + $0x20] ss:$16 sps:$4 sm:$0xff]  }
 0x5fa   :  { %5936 = vpow2.f32 %v5582_v22  ;;  %v8544_v45 = vld [vmem:[%s10722_s8 + $0x44] ss:$16 sps:$4 sm:$0xff]   ;;  %v8556_v50 = vld [vmem:[%s10722_s8 + $0x40] ss:$16 sps:$4 sm:$0xff]   ;;  %v8562_v49 = vld [vmem:[%s10722_s8 + $0x48] ss:$16 sps:$4 sm:$0xff]  }
 0x5fb   :  { %5938 = vpow2.f32 %v5583_v28 }
 0x5fc   :  { %5940 = vpow2.f32 %v5584_v10  ;;  %v8568_v10 = vld [vmem:[%s10722_s8 + $0x64] ss:$16 sps:$4 sm:$0xff]  }
 0x5fd   :  { %5942 = vtanh.f32 %v2468_v27 }
 0x604   :  { %v5937_v21 = vpop.eup %5936 }
 0x605   :  { %v5939_v1 = vpop.eup %5938  ;;  %v2477_v5 = vadd.f32 1.0, %v5937_v21  ;;  %v8574_v21 = vld [vmem:[%s10722_s8 + $0x6c] ss:$16 sps:$4 sm:$0xff]  }
 0x606   :  { %v2483_v23 = vadd.f32 1.0, %v5939_v1  ;;  %v5941_v52 = vpop.eup %5940 }
 0x607   :  { %5944 = vrcp.f32 %v2477_v5  ;;  %v5943_v62 = vpop.eup %5942  ;;  %v2490_v51 = vadd.f32 1.0, %v5941_v52 }
 0x608   :  { %5946 = vrcp.f32 %v2483_v23 }
 0x609   :  { %5948 = vrcp.f32 %v2490_v51  ;;  %v8593_v51 = vld [vmem:[%s10722_s8 + $0x84] ss:$16 sps:$4 sm:$0xff]  }
 0x611   :  { %v5945_v19 = vpop.eup %5944 }
 0x612   :  { %v5947_v15 = vpop.eup %5946  ;;  %v2494_v42 = vmul.f32 %v5945_v19, %v5943_v62  ;;  %v8581_v62 = vld [vmem:[%s10722_s8 + $0x60] ss:$16 sps:$4 sm:$0xff]   ;;  %v8587_v19 = vld [vmem:[%s10722_s8 + $0x68] ss:$16 sps:$4 sm:$0xff]  }
 0x613   :  { %v2493_v47 = vmul.f32 %v5947_v15, %v8367_v17  ;;  %v5949_v40 = vpop.eup %5948  ;;  %v2623_v15 = vpop.permute.xlu1 %2622 }
 0x614   :  { %vm2624_vm3 = vcmp.eq.s32.totalorder %v2623_v15, 1  ;;  %v8819_v15 = vld [vmem:[%s10721_s7 + $0x80] ss:$16 sps:$4 sm:$0xff]  }
 0x615   :  { %v2495_v25 = vadd.f32 %v2494_v42, %v2493_v47  ;;  %v2537_v34 = vpop.f32.mrb[100].mxu0  ;;  %v2578_v32 = vpop.f32.mrb[100].mxu1  ;;  %v8599_v47 = vld [vmem:[%s10722_s8 + $0x8c] ss:$16 sps:$4 sm:$0xff]   ;;  %vm2635_vm4 = vmpackc.low %vm2624_vm3, %vm2624_vm3  ;;  %11249 = vst [vmem:[#allocation16_spill] sm:$0xff] %v8819_v15 }
 0x616   :  { %v2538_v30 = vadd.f32 %v2537_v34, %v11230_v37  ;;  %v2579_v2 = vadd.f32 %v2578_v32, %v11231_v61  ;;  %v2539_v8 = vpop.f32.mrb[101].mxu0  ;;  %v2580_v3 = vpop.f32.mrb[101].mxu1  ;;  %v8615_v34 = vld [vmem:[%s10722_s8 + $0x88] ss:$16 sps:$4 sm:$0xff]   ;;  %v8621_v32 = vld [vmem:[%s10722_s8 + $0xa4] ss:$16 sps:$4 sm:$0xff]  }
 0x617   :  { %5950 = vtanh.f32 %v2495_v25  ;;  %v2540_v58 = vadd.f32 %v2539_v8, %v11232_v57  ;;  %v2581_v60 = vadd.f32 %v2580_v3, %v11233_v39  ;;  %v2541_v41 = vpop.f32.mrb[102].mxu0  ;;  %v2582_v24 = vpop.f32.mrb[102].mxu1  ;;  %v8485_v11 = vsel %vm2616_vm1, %v2495_v25, %v8367_v17  ;;  %v8609_v25 = vld [vmem:[%s10722_s8 + $0x80] ss:$16 sps:$4 sm:$0xff]   ;;  %v8645_v61 = vld [vmem:[%s10722_s8 + $0xc4] ss:$16 sps:$4 sm:$0xff]  }
 0x618   :  { %v5585_v56 = vmul.f32 -1.442695, %v2538_v30  ;;  %v2542_v44 = vpop.f32.mrb[103].mxu0  ;;  %v2583_v29 = vpop.f32.mrb[103].mxu1  ;;  %v8633_v37 = vld [vmem:[%s10722_s8 + $0xa0] ss:$16 sps:$4 sm:$0xff]  }
 0x619   :  { %v5586_v31 = vmul.f32 -1.442695, %v2540_v58  ;;  %v5587_v7 = vmul.f32 -1.442695, %v2581_v60  ;;  %v8639_v30 = vld [vmem:[%s10722_s8 + $0xa8] ss:$16 sps:$4 sm:$0xff]  }
 0x61a   :  { %5952 = vpow2.f32 %v5585_v56  ;;  %v8657_v3 = vld [vmem:[%s10722_s8 + $0xc0] ss:$16 sps:$4 sm:$0xff]   ;;  %v8663_v57 = vld [vmem:[%s10722_s8 + $0xc8] ss:$16 sps:$4 sm:$0xff]   ;;  %v8669_v39 = vld [vmem:[%s10722_s8 + $0xe4] ss:$16 sps:$4 sm:$0xff]  }
 0x61b   :  { %5954 = vpow2.f32 %v5586_v31  ;;  %v8675_v60 = vld [vmem:[%s10722_s8 + $0xec] ss:$16 sps:$4 sm:$0xff]   ;;  %v8681_v24 = vld [vmem:[%s10722_s8 + $0xe0] ss:$16 sps:$4 sm:$0xff]   ;;  %v8687_v56 = vld [vmem:[%s10722_s8 + $0xe8] ss:$16 sps:$4 sm:$0xff]  }
 0x61c   :  { %5956 = vpow2.f32 %v5587_v7 }
 0x61d   :  { %5958 = vtanh.f32 %v2579_v2  ;;  %v8651_v2 = vld [vmem:[%s10722_s8 + $0xcc] ss:$16 sps:$4 sm:$0xff]  }
 0x621   :  { %v5951_v13 = vpop.eup %5950 }
 0x622   :  { %v2497_v18 = vmul.f32 %v5951_v13, %v5949_v40  ;;  %v8700_v40 = vld [vmem:[%s10721_s7 + $0x4] ss:$16 sps:$4 sm:$0xff]   ;;  %v8706_v13 = vld [vmem:[%s10721_s7 + $0xc] ss:$16 sps:$4 sm:$0xff]  }
 0x624   :  { %v5953_v53 = vpop.eup %5952  ;;  %v8489_v54 = vsel %vm2616_vm1, %v2497_v18, %v8371_v0  ;;  %v2627_v46 = vpack.c.bf16 %v2497_v18, %v2497_v18  ;;  %v2630_v63 = vmax.f32 %v8381_v55, %v2497_v18  ;;  %v8506_v0 = vld [vmem:[%s10722_s8] ss:$16 sps:$4 sm:$0xff]  }
 0x625   :  { %v5955_v17 = vpop.eup %5954  ;;  %v2588_v9 = vadd.f32 1.0, %v5953_v53  ;;  %v8721_v18 = vld [vmem:[%s10721_s7] ss:$16 sps:$4 sm:$0xff]   ;;  %v8739_v53 = vld [vmem:[%s10721_s7 + $0x2c] ss:$16 sps:$4 sm:$0xff]  }
 0x626   :  { %v2594_v27 = vadd.f32 1.0, %v5955_v17  ;;  %v8495_v59 = vsel %vm2628_vm2, %v2627_v46, %v8377_v35  ;;  %v8499_v6 = vsel %vm2616_vm1, %v2630_v63, %v8381_v55  ;;  %v8512_v35 = vld [vmem:[%s10722_s8 + $0x8] ss:$16 sps:$4 sm:$0xff]   ;;  %v8518_v55 = vld [vmem:[%s10722_s8 + $0x24] ss:$16 sps:$4 sm:$0xff]   ;;  %v5957_v26 = vpop.eup %5956  ;;  %11236 = vst [vmem:[#allocation124_spill] sm:$0xff] %v8739_v53 }
 0x627   :  { %5960 = vrcp.f32 %v2588_v9  ;;  %2677 = vmatmul.mubr.bf16.vlgmr.msra.gmra.mrb[104].mxu0 %v8495_v59  ;;  %2718 = vmatmul.mubr.bf16.vlgmr.msra.gmra.mrb[104].mxu1 %v8495_v59  ;;  %v5959_v22 = vpop.eup %5958  ;;  %v2601_v23 = vadd.f32 1.0, %v5957_v26  ;;  %v8747_v46 = vld [vmem:[%s10721_s7 + $0x20] ss:$16 sps:$4 sm:$0xff]   ;;  %v8753_v63 = vld [vmem:[%s10721_s7 + $0x28] ss:$16 sps:$4 sm:$0xff]  }
 0x628   :  { %5962 = vrcp.f32 %v2594_v27  ;;  %2756 = vmatpush1.bf16.msra.mxu0 %v8506_v0  ;;  %2797 = vmatpush1.bf16.msra.mxu1 %v8512_v35  ;;  %11237 = vst [vmem:[#allocation125_spill] sm:$0xff] %v8747_v46  ;;  %11238 = vst [vmem:[#allocation126_spill] sm:$0xff] %v8753_v63  ;;  %v8759_v17 = vld [vmem:[%s10721_s7 + $0x44] ss:$16 sps:$4 sm:$0xff]   ;;  %v8765_v9 = vld [vmem:[%s10721_s7 + $0x4c] ss:$16 sps:$4 sm:$0xff]  }
 0x629   :  { %2757 = vmatprep.subr.bf16.mxu0 %v8518_v55  ;;  %2798 = vmatprep.subr.bf16.mxu1 %v8524_v16  ;;  %5964 = vrcp.f32 %v2601_v23  ;;  %11239 = vst [vmem:[#allocation10_spill] sm:$0xff] %v8759_v17  ;;  %11240 = vst [vmem:[#allocation11_spill] sm:$0xff] %v8765_v9  ;;  %v8771_v27 = vld [vmem:[%s10721_s7 + $0x40] ss:$16 sps:$4 sm:$0xff]   ;;  %v8777_v26 = vld [vmem:[%s10721_s7 + $0x48] ss:$16 sps:$4 sm:$0xff]  }
 0x62a   :  { %2787 = vmatprep.mubr.bf16.mxu0 %v11041_v43  ;;  %2828 = vmatprep.mubr.bf16.mxu1 %v11041_v43  ;;  %11241 = vst [vmem:[#allocation12_spill] sm:$0xff] %v8771_v27  ;;  %11242 = vst [vmem:[#allocation13_spill] sm:$0xff] %v8777_v26  ;;  %v8807_v23 = vld [vmem:[%s10721_s7 + $0x84] ss:$16 sps:$4 sm:$0xff]  }
 0x62b   :  { %11247 = vst [vmem:[#allocation14_spill] sm:$0xff] %v8807_v23 }
 0x62c   :  { %2758 = vmatpush1.bf16.msra.mxu0 %v8532_v38  ;;  %2799 = vmatpush1.bf16.msra.mxu1 %v8538_v4 }
 0x62d   :  { %2759 = vmatprep.subr.bf16.mxu0 %v8544_v45  ;;  %2800 = vmatprep.subr.bf16.mxu1 %v8550_v48 }
 0x630   :  { %2760 = vmatpush1.bf16.msra.mxu0 %v8556_v50  ;;  %2801 = vmatpush1.bf16.msra.mxu1 %v8562_v49 }
 0x631   :  { %v5961_v28 = vpop.eup %5960  ;;  %2761 = vmatprep.subr.bf16.mxu0 %v8568_v10  ;;  %2802 = vmatprep.subr.bf16.mxu1 %v8574_v21 }
 0x632   :  { %v5963_v1 = vpop.eup %5962  ;;  %v2605_v5 = vmul.f32 %v5961_v28, %v5959_v22  ;;  %v8783_v22 = vld [vmem:[%s10721_s7 + $0x64] ss:$16 sps:$4 sm:$0xff]   ;;  %v8789_v28 = vld [vmem:[%s10721_s7 + $0x6c] ss:$16 sps:$4 sm:$0xff]  }
 0x633   :  { %v2604_v52 = vmul.f32 %v5963_v1, %v8406_v36  ;;  %v5965_v8 = vpop.eup %5964  ;;  %11243 = vst [vmem:[#allocation118_spill] sm:$0xff] %v8783_v22  ;;  %11244 = vst [vmem:[#allocation119_spill] sm:$0xff] %v8789_v28  ;;  %v8795_v1 = vld [vmem:[%s10721_s7 + $0x60] ss:$16 sps:$4 sm:$0xff]  }
 0x634   :  { %2762 = vmatpush1.bf16.msra.mxu0 %v8581_v62  ;;  %2803 = vmatpush1.bf16.msra.mxu1 %v8587_v19  ;;  %11245 = vst [vmem:[#allocation120_spill] sm:$0xff] %v8795_v1 }
 0x635   :  { %v2606_v42 = vadd.f32 %v2605_v5, %v2604_v52  ;;  %2763 = vmatprep.subr.bf16.mxu0 %v8593_v51  ;;  %2804 = vmatprep.subr.bf16.mxu1 %v8599_v47  ;;  %v8801_v5 = vld [vmem:[%s10721_s7 + $0x68] ss:$16 sps:$4 sm:$0xff]   ;;  %v8813_v52 = vld [vmem:[%s10721_s7 + $0x8c] ss:$16 sps:$4 sm:$0xff]  }
 0x636   :  { %11246 = vst [vmem:[#allocation121_spill] sm:$0xff] %v8801_v5  ;;  %11248 = vst [vmem:[#allocation15_spill] sm:$0xff] %v8813_v52 }
 0x637   :  { %5966 = vtanh.f32 %v2606_v42  ;;  %v8604_v20 = vsel %vm2624_vm3, %v2606_v42, %v8406_v36  ;;  %v8627_v36 = vld [vmem:[%s10722_s8 + $0xac] ss:$16 sps:$4 sm:$0xff]   ;;  %v8825_v42 = vld [vmem:[%s10721_s7 + $0x88] ss:$16 sps:$4 sm:$0xff]  }
 0x638   :  { %2764 = vmatpush1.bf16.msra.mxu0 %v8609_v25  ;;  %2805 = vmatpush1.bf16.msra.mxu1 %v8615_v34  ;;  %11250 = vst [vmem:[#allocation17_spill] sm:$0xff] %v8825_v42 }
 0x639   :  { %2765 = vmatprep.subr.bf16.mxu0 %v8621_v32  ;;  %2806 = vmatprep.subr.bf16.mxu1 %v8627_v36 }
 0x63c   :  { %2766 = vmatpush1.bf16.msra.mxu0 %v8633_v37  ;;  %2807 = vmatpush1.bf16.msra.mxu1 %v8639_v30 }
 0x63d   :  { %2767 = vmatprep.subr.bf16.mxu0 %v8645_v61  ;;  %2808 = vmatprep.subr.bf16.mxu1 %v8651_v2 }
 0x640   :  { %2768 = vmatpush1.bf16.msra.mxu0 %v8657_v3  ;;  %2809 = vmatpush1.bf16.msra.mxu1 %v8663_v57 }
 0x641   :  { %v5967_v58 = vpop.eup %5966  ;;  %2769 = vmatprep.subr.bf16.mxu0 %v8669_v39  ;;  %2810 = vmatprep.subr.bf16.mxu1 %v8675_v60 }
 0x642   :  { %v2608_v41 = vmul.f32 %v5967_v58, %v5965_v8  ;;  %v8831_v8 = vld [vmem:[%s10721_s7 + $0xa4] ss:$16 sps:$4 sm:$0xff]   ;;  %v8837_v58 = vld [vmem:[%s10721_s7 + $0xac] ss:$16 sps:$4 sm:$0xff]  }
 0x643   :  { %11251 = vst [vmem:[#allocation114_spill] sm:$0xff] %v8831_v8  ;;  %11252 = vst [vmem:[#allocation115_spill] sm:$0xff] %v8837_v58 }
 0x644   :  { %2770 = vmatpush1.bf16.msra.mxu0 %v8681_v24  ;;  %2811 = vmatpush1.bf16.msra.mxu1 %v8687_v56  ;;  %v8692_v44 = vsel %vm2624_vm3, %v2608_v41, %v8424_v33  ;;  %v2634_v29 = vpack.c.bf16 %v2608_v41, %v2608_v41  ;;  %v2637_v31 = vmax.f32 %v8436_v14, %v2608_v41  ;;  %v8843_v41 = vld [vmem:[%s10721_s7 + $0xa0] ss:$16 sps:$4 sm:$0xff]  }
 0x645   :  { %2896 = vmatprep.subr.bf16.mxu0 %v8700_v40  ;;  %2937 = vmatprep.subr.bf16.mxu1 %v8706_v13  ;;  %11253 = vst [vmem:[#allocation116_spill] sm:$0xff] %v8843_v41 }
 0x646   :  { %v8710_v33 = vsel %vm2635_vm4, %v2634_v29, %v8432_v12  ;;  %v8714_v7 = vsel %vm2624_vm3, %v2637_v31, %v8436_v14  ;;  %v8727_v12 = vld [vmem:[%s10721_s7 + $0x8] ss:$16 sps:$4 sm:$0xff]   ;;  %v8733_v14 = vld [vmem:[%s10721_s7 + $0x24] ss:$16 sps:$4 sm:$0xff]  }
 0x647   :  { %2788 = vmatmul.mubr.bf16.vlgmr.msra.gmra.mrb[108].mxu0 %v8710_v33  ;;  %2829 = vmatmul.mubr.bf16.vlgmr.msra.gmra.mrb[108].mxu1 %v8710_v33  ;;  %11234 = vst [vmem:[#allocation122_spill] sm:$0xff] %v8727_v12  ;;  %11235 = vst [vmem:[#allocation123_spill] sm:$0xff] %v8733_v14  ;;  %v8849_v29 = vld [vmem:[%s10721_s7 + $0xa8] ss:$16 sps:$4 sm:$0xff]   ;;  %v8855_v31 = vld [vmem:[%s10721_s7 + $0xc4] ss:$16 sps:$4 sm:$0xff]  }
 0x648   :  { %2897 = vmatpush1.bf16.msra.mxu0 %v8721_v18  ;;  %2938 = vmatpush1.bf16.msra.mxu1 %v8727_v12  ;;  %11254 = vst [vmem:[#allocation117_spill] sm:$0xff] %v8849_v29  ;;  %11255 = vst [vmem:[#allocation127_spill] sm:$0xff] %v8855_v31 }
 0x649   :  { %2898 = vmatprep.subr.bf16.mxu0 %v8733_v14  ;;  %2939 = vmatprep.subr.bf16.mxu1 %v8739_v53 }
 0x64a   :  { %2928 = vmatprep.mubr.bf16.mxu0 %v11041_v43  ;;  %2969 = vmatprep.mubr.bf16.mxu1 %v11041_v43 }
 0x64c   :  { %2899 = vmatpush1.bf16.msra.mxu0 %v8747_v46  ;;  %2940 = vmatpush1.bf16.msra.mxu1 %v8753_v63 }
 0x64d   :  { %2900 = vmatprep.subr.bf16.mxu0 %v8759_v17  ;;  %2941 = vmatprep.subr.bf16.mxu1 %v8765_v9 }
 0x650   :  { %2901 = vmatpush1.bf16.msra.mxu0 %v8771_v27  ;;  %2942 = vmatpush1.bf16.msra.mxu1 %v8777_v26 }
 0x651   :  { %2902 = vmatprep.subr.bf16.mxu0 %v8783_v22  ;;  %2943 = vmatprep.subr.bf16.mxu1 %v8789_v28  ;;  %v11268_v22 = vld [vmem:[#allocation25_spill] sm:$0xff] }
 0x654   :  { %2903 = vmatpush1.bf16.msra.mxu0 %v8795_v1  ;;  %2944 = vmatpush1.bf16.msra.mxu1 %v8801_v5  ;;  %v11267_v1 = vld [vmem:[#allocation24_spill] sm:$0xff] }
 0x655   :  { %2904 = vmatprep.subr.bf16.mxu0 %v8807_v23  ;;  %2945 = vmatprep.subr.bf16.mxu1 %v8813_v52  ;;  %v11266_v52 = vld [vmem:[#allocation23_spill] sm:$0xff] }
 0x658   :  { %2905 = vmatpush1.bf16.msra.mxu0 %v8819_v15  ;;  %2946 = vmatpush1.bf16.msra.mxu1 %v8825_v42  ;;  %v11265_v42 = vld [vmem:[#allocation22_spill] sm:$0xff] }
 0x659   :  { %2906 = vmatprep.subr.bf16.mxu0 %v8831_v8  ;;  %2947 = vmatprep.subr.bf16.mxu1 %v8837_v58  ;;  %v8861_v58 = vld [vmem:[%s10721_s7 + $0xcc] ss:$16 sps:$4 sm:$0xff]  }
 0x65a   :  { %11256 = vst [vmem:[#allocation128_spill] sm:$0xff] %v8861_v58 }
 0x65c   :  { %2907 = vmatpush1.bf16.msra.mxu0 %v8843_v41  ;;  %2948 = vmatpush1.bf16.msra.mxu1 %v8849_v29  ;;  %v8867_v41 = vld [vmem:[%s10721_s7 + $0xc0] ss:$16 sps:$4 sm:$0xff]   ;;  %v8873_v29 = vld [vmem:[%s10721_s7 + $0xc8] ss:$16 sps:$4 sm:$0xff]  }
 0x65d   :  { %2908 = vmatprep.subr.bf16.mxu0 %v8855_v31  ;;  %2949 = vmatprep.subr.bf16.mxu1 %v8861_v58  ;;  %11257 = vst [vmem:[#allocation129_spill] sm:$0xff] %v8867_v41  ;;  %11258 = vst [vmem:[#allocation130_spill] sm:$0xff] %v8873_v29  ;;  %v8879_v31 = vld [vmem:[%s10721_s7 + $0xe4] ss:$16 sps:$4 sm:$0xff]   ;;  %v8885_v58 = vld [vmem:[%s10721_s7 + $0xec] ss:$16 sps:$4 sm:$0xff]  }
 0x65e   :  { %11259 = vst [vmem:[#allocation131_spill] sm:$0xff] %v8879_v31  ;;  %11260 = vst [vmem:[#allocation132_spill] sm:$0xff] %v8885_v58 }
 0x660   :  { %2909 = vmatpush1.bf16.msra.mxu0 %v8867_v41  ;;  %2950 = vmatpush1.bf16.msra.mxu1 %v8873_v29  ;;  %v8891_v41 = vld [vmem:[%s10721_s7 + $0xe0] ss:$16 sps:$4 sm:$0xff]   ;;  %v8897_v29 = vld [vmem:[%s10721_s7 + $0xe8] ss:$16 sps:$4 sm:$0xff]  }
 0x661   :  { %2910 = vmatprep.subr.bf16.mxu0 %v8879_v31  ;;  %2951 = vmatprep.subr.bf16.mxu1 %v8885_v58  ;;  %11261 = vst [vmem:[#allocation133_spill] sm:$0xff] %v8891_v41  ;;  %11262 = vst [vmem:[#allocation134_spill] sm:$0xff] %v8897_v29  ;;  %v8903_v31 = vld [vmem:[%s10722_s8 + $0x4] ss:$16 sps:$4 sm:$0xff]   ;;  %v8909_v58 = vld [vmem:[%s10722_s8 + $0xc] ss:$16 sps:$4 sm:$0xff]  }
 0x662   :  { %11263 = vst [vmem:[#allocation135_spill] sm:$0xff] %v8903_v31  ;;  %11264 = vst [vmem:[#allocation136_spill] sm:$0xff] %v8909_v58 }
 0x664   :  { %2911 = vmatpush1.bf16.msra.mxu0 %v8891_v41  ;;  %2952 = vmatpush1.bf16.msra.mxu1 %v8897_v29 }
 0x665   :  { %3007 = vmatprep.subr.bf16.mxu0 %v8903_v31  ;;  %3048 = vmatprep.subr.bf16.mxu1 %v8909_v58 }
 0x6fa   :  { %v2678_v41 = vpop.f32.mrb[104].mxu0  ;;  %v2719_v8 = vpop.f32.mrb[104].mxu1 }
 0x6fb   :  { %v2679_v15 = vadd.f32 %v2678_v41, %v11265_v42  ;;  %v2720_v29 = vadd.f32 %v2719_v8, %v11266_v52  ;;  %v2680_v23 = vpop.f32.mrb[105].mxu0  ;;  %v2721_v5 = vpop.f32.mrb[105].mxu1  ;;  %v11270_v8 = vld [vmem:[#allocation107_spill] sm:$0xff] }
 0x6fc   :  { %v2681_v28 = vadd.f32 %v2680_v23, %v11267_v1  ;;  %v2722_v26 = vadd.f32 %v2721_v5, %v11268_v22  ;;  %v2682_v31 = vpop.f32.mrb[106].mxu0  ;;  %v2723_v27 = vpop.f32.mrb[106].mxu1 }
 0x6fd   :  { %v5589_v9 = vmul.f32 -1.442695, %v2679_v15  ;;  %v2683_v17 = vpop.f32.mrb[107].mxu0  ;;  %v2724_v63 = vpop.f32.mrb[107].mxu1 }
 0x6fe   :  { %v5590_v46 = vmul.f32 -1.442695, %v2681_v28  ;;  %v5591_v58 = vmul.f32 -1.442695, %v2722_v26  ;;  %v2867_v17 = vpop.permute.xlu0 %2866 }
 0x6ff   :  { %5968 = vpow2.f32 %v5589_v9  ;;  %vm2868_vm5 = vcmp.eq.s32.totalorder %v2867_v17, 1 }
 0x700   :  { %5970 = vpow2.f32 %v5590_v46  ;;  %vm2880_vm6 = vmpackc.low %vm2868_vm5, %vm2868_vm5 }
 0x701   :  { %5972 = vpow2.f32 %v5591_v58 }
 0x702   :  { %5974 = vtanh.f32 %v2720_v29  ;;  %v11271_v29 = vld [vmem:[#allocation108_spill] sm:$0xff] }
 0x709   :  { %v5969_v53 = vpop.eup %5968 }
 0x70a   :  { %v5971_v14 = vpop.eup %5970  ;;  %v2729_v42 = vadd.f32 1.0, %v5969_v53  ;;  %v11269_v53 = vld [vmem:[#allocation106_spill] sm:$0xff] }
 0x70b   :  { %v2735_v52 = vadd.f32 1.0, %v5971_v14  ;;  %v5973_v1 = vpop.eup %5972 }
 0x70c   :  { %5976 = vrcp.f32 %v2729_v42  ;;  %v5975_v23 = vpop.eup %5974  ;;  %v2742_v15 = vadd.f32 1.0, %v5973_v1  ;;  %v11272_v42 = vld [vmem:[#allocation109_spill] sm:$0xff] }
 0x70d   :  { %5978 = vrcp.f32 %v2735_v52 }
 0x70e   :  { %5980 = vrcp.f32 %v2742_v15 }
 0x716   :  { %v5977_v22 = vpop.eup %5976 }
 0x717   :  { %v5979_v5 = vpop.eup %5978  ;;  %v2746_v27 = vmul.f32 %v5977_v22, %v5975_v23 }
 0x718   :  { %v2745_v63 = vmul.f32 %v5979_v5, %v8485_v11 }
 0x71a   :  { %v2747_v9 = vadd.f32 %v2746_v27, %v2745_v63  ;;  %v2789_v46 = vpop.f32.mrb[108].mxu0  ;;  %v2830_v26 = vpop.f32.mrb[108].mxu1 }
 0x71b   :  { %v2790_v28 = vadd.f32 %v2789_v46, %v11269_v53  ;;  %v2831_v14 = vadd.f32 %v2830_v26, %v11270_v8  ;;  %v2791_v58 = vpop.f32.mrb[109].mxu0  ;;  %v2832_v41 = vpop.f32.mrb[109].mxu1 }
 0x71c   :  { %5982 = vtanh.f32 %v2747_v9  ;;  %v2792_v31 = vadd.f32 %v2791_v58, %v11271_v29  ;;  %v2833_v52 = vadd.f32 %v2832_v41, %v11272_v42  ;;  %v2793_v1 = vpop.f32.mrb[110].mxu0  ;;  %v2834_v23 = vpop.f32.mrb[110].mxu1  ;;  %v8923_v22 = vsel %vm2868_vm5, %v2747_v9, %v8485_v11 }
 0x71d   :  { %v5592_v5 = vmul.f32 -1.442695, %v2790_v28  ;;  %v2794_v27 = vpop.f32.mrb[111].mxu0  ;;  %v2835_v15 = vpop.f32.mrb[111].mxu1 }
 0x71e   :  { %v5593_v63 = vmul.f32 -1.442695, %v2792_v31  ;;  %v5981_v46 = vpop.eup %5980  ;;  %v5594_v53 = vmul.f32 -1.442695, %v2833_v52  ;;  %v2875_v1 = vpop.permute.xlu1 %2874 }
 0x71f   :  { %5984 = vpow2.f32 %v5592_v5  ;;  %vm2876_vm7 = vcmp.eq.s32.totalorder %v2875_v1, 1  ;;  %v11288_v1 = vld [vmem:[#allocation16_spill] sm:$0xff] }
 0x720   :  { %5986 = vpow2.f32 %v5593_v63  ;;  %vm2887_vm8 = vmpackc.low %vm2876_vm7, %vm2876_vm7 }
 0x721   :  { %5988 = vpow2.f32 %v5594_v53 }
 0x722   :  { %5990 = vtanh.f32 %v2831_v14 }
 0x726   :  { %v5983_v26 = vpop.eup %5982 }
 0x727   :  { %v2749_v8 = vmul.f32 %v5983_v26, %v5981_v46 }
 0x729   :  { %v5985_v12 = vpop.eup %5984  ;;  %v8927_v58 = vsel %vm2868_vm5, %v2749_v8, %v8489_v54  ;;  %v2879_v41 = vpack.c.bf16 %v2749_v8, %v2749_v8  ;;  %v2882_v29 = vmax.f32 %v8499_v6, %v2749_v8 }
 0x72a   :  { %v5987_v11 = vpop.eup %5986  ;;  %v2840_v9 = vadd.f32 1.0, %v5985_v12 }
 0x72b   :  { %v2846_v28 = vadd.f32 1.0, %v5987_v11  ;;  %v8933_v31 = vsel %vm2880_vm6, %v2879_v41, %v8495_v59  ;;  %v8937_v42 = vsel %vm2868_vm5, %v2882_v29, %v8499_v6  ;;  %v5989_v54 = vpop.eup %5988  ;;  %v11274_v41 = vld [vmem:[#allocation123_spill] sm:$0xff]  ;;  %v11275_v29 = vld [vmem:[#allocation124_spill] sm:$0xff]  ;;  %v11278_v11 = vld [vmem:[#allocation10_spill] sm:$0xff] }
 0x72c   :  { %5992 = vrcp.f32 %v2840_v9  ;;  %2929 = vmatmul.mubr.bf16.vlgmr.msra.gmra.mrb[112].mxu0 %v8933_v31  ;;  %2970 = vmatmul.mubr.bf16.vlgmr.msra.gmra.mrb[112].mxu1 %v8933_v31  ;;  %v5991_v59 = vpop.eup %5990  ;;  %v2853_v14 = vadd.f32 1.0, %v5989_v54  ;;  %v11279_v9 = vld [vmem:[#allocation11_spill] sm:$0xff]  ;;  %v11281_v54 = vld [vmem:[#allocation13_spill] sm:$0xff] }
 0x72d   :  { %5994 = vrcp.f32 %v2846_v28  ;;  %3008 = vmatpush1.bf16.msra.mxu0 %v8506_v0  ;;  %3049 = vmatpush1.bf16.msra.mxu1 %v8512_v35  ;;  %v11280_v28 = vld [vmem:[#allocation12_spill] sm:$0xff] }
 0x72e   :  { %3009 = vmatprep.subr.bf16.mxu0 %v8518_v55  ;;  %3050 = vmatprep.subr.bf16.mxu1 %v8524_v16  ;;  %5996 = vrcp.f32 %v2853_v14  ;;  %v11286_v14 = vld [vmem:[#allocation14_spill] sm:$0xff] }
 0x72f   :  { %3039 = vmatprep.mubr.bf16.mxu0 %v11041_v43  ;;  %3080 = vmatprep.mubr.bf16.mxu1 %v11041_v43 }
 0x731   :  { %3010 = vmatpush1.bf16.msra.mxu0 %v8532_v38  ;;  %3051 = vmatpush1.bf16.msra.mxu1 %v8538_v4 }
 0x732   :  { %3011 = vmatprep.subr.bf16.mxu0 %v8544_v45  ;;  %3052 = vmatprep.subr.bf16.mxu1 %v8550_v48 }
 0x735   :  { %3012 = vmatpush1.bf16.msra.mxu0 %v8556_v50  ;;  %3053 = vmatpush1.bf16.msra.mxu1 %v8562_v49 }
 0x736   :  { %v5993_v6 = vpop.eup %5992  ;;  %3013 = vmatprep.subr.bf16.mxu0 %v8568_v10  ;;  %3054 = vmatprep.subr.bf16.mxu1 %v8574_v21 }
 0x737   :  { %v5995_v12 = vpop.eup %5994  ;;  %v2857_v17 = vmul.f32 %v5993_v6, %v5991_v59  ;;  %v11282_v59 = vld [vmem:[#allocation118_spill] sm:$0xff]  ;;  %v11283_v6 = vld [vmem:[#allocation119_spill] sm:$0xff] }
 0x738   :  { %v2856_v52 = vmul.f32 %v5995_v12, %v8604_v20  ;;  %v5997_v27 = vpop.eup %5996  ;;  %v11284_v12 = vld [vmem:[#allocation120_spill] sm:$0xff] }
 0x739   :  { %3014 = vmatpush1.bf16.msra.mxu0 %v8581_v62  ;;  %3055 = vmatpush1.bf16.msra.mxu1 %v8587_v19 }
 0x73a   :  { %v2858_v23 = vadd.f32 %v2857_v17, %v2856_v52  ;;  %3015 = vmatprep.subr.bf16.mxu0 %v8593_v51  ;;  %3056 = vmatprep.subr.bf16.mxu1 %v8599_v47  ;;  %v11285_v17 = vld [vmem:[#allocation121_spill] sm:$0xff]  ;;  %v11287_v52 = vld [vmem:[#allocation15_spill] sm:$0xff] }
 0x73c   :  { %5998 = vtanh.f32 %v2858_v23  ;;  %v8962_v5 = vsel %vm2876_vm7, %v2858_v23, %v8604_v20  ;;  %v11289_v23 = vld [vmem:[#allocation17_spill] sm:$0xff] }
 0x73d   :  { %3016 = vmatpush1.bf16.msra.mxu0 %v8609_v25  ;;  %3057 = vmatpush1.bf16.msra.mxu1 %v8615_v34 }
 0x73e   :  { %3017 = vmatprep.subr.bf16.mxu0 %v8621_v32  ;;  %3058 = vmatprep.subr.bf16.mxu1 %v8627_v36 }
 0x741   :  { %3018 = vmatpush1.bf16.msra.mxu0 %v8633_v37  ;;  %3059 = vmatpush1.bf16.msra.mxu1 %v8639_v30 }
 0x742   :  { %3019 = vmatprep.subr.bf16.mxu0 %v8645_v61  ;;  %3060 = vmatprep.subr.bf16.mxu1 %v8651_v2 }
 0x745   :  { %3020 = vmatpush1.bf16.msra.mxu0 %v8657_v3  ;;  %3061 = vmatpush1.bf16.msra.mxu1 %v8663_v57 }
 0x746   :  { %v5999_v20 = vpop.eup %5998  ;;  %3021 = vmatprep.subr.bf16.mxu0 %v8669_v39  ;;  %3062 = vmatprep.subr.bf16.mxu1 %v8675_v60 }
 0x747   :  { %v2860_v15 = vmul.f32 %v5999_v20, %v5997_v27  ;;  %v11290_v27 = vld [vmem:[#allocation114_spill] sm:$0xff]  ;;  %v11291_v20 = vld [vmem:[#allocation115_spill] sm:$0xff] }
 0x749   :  { %3022 = vmatpush1.bf16.msra.mxu0 %v8681_v24  ;;  %3063 = vmatpush1.bf16.msra.mxu1 %v8687_v56  ;;  %v8980_v63 = vsel %vm2876_vm7, %v2860_v15, %v8692_v44  ;;  %v2886_v46 = vpack.c.bf16 %v2860_v15, %v2860_v15  ;;  %v2889_v26 = vmax.f32 %v8714_v7, %v2860_v15  ;;  %v11273_v44 = vld [vmem:[#allocation122_spill] sm:$0xff]  ;;  %v11292_v15 = vld [vmem:[#allocation116_spill] sm:$0xff] }
 0x74a   :  { %3148 = vmatprep.subr.bf16.mxu0 %v8700_v40  ;;  %3189 = vmatprep.subr.bf16.mxu1 %v8706_v13 }
 0x74b   :  { %v8988_v53 = vsel %vm2887_vm8, %v2886_v46, %v8710_v33  ;;  %v8992_v8 = vsel %vm2876_vm7, %v2889_v26, %v8714_v7  ;;  %v11276_v33 = vld [vmem:[#allocation125_spill] sm:$0xff]  ;;  %v11277_v7 = vld [vmem:[#allocation126_spill] sm:$0xff]  ;;  %v11294_v26 = vld [vmem:[#allocation127_spill] sm:$0xff] }
 0x74c   :  { %3040 = vmatmul.mubr.bf16.vlgmr.msra.gmra.mrb[116].mxu0 %v8988_v53  ;;  %3081 = vmatmul.mubr.bf16.vlgmr.msra.gmra.mrb[116].mxu1 %v8988_v53  ;;  %v11293_v46 = vld [vmem:[#allocation117_spill] sm:$0xff] }
 0x74d   :  { %3149 = vmatpush1.bf16.msra.mxu0 %v8721_v18  ;;  %3190 = vmatpush1.bf16.msra.mxu1 %v11273_v44 }
 0x74e   :  { %3150 = vmatprep.subr.bf16.mxu0 %v11274_v41  ;;  %3191 = vmatprep.subr.bf16.mxu1 %v11275_v29 }
 0x74f   :  { %3180 = vmatprep.mubr.bf16.mxu0 %v11041_v43  ;;  %3221 = vmatprep.mubr.bf16.mxu1 %v11041_v43 }
 0x751   :  { %3151 = vmatpush1.bf16.msra.mxu0 %v11276_v33  ;;  %3192 = vmatpush1.bf16.msra.mxu1 %v11277_v7 }
 0x752   :  { %3152 = vmatprep.subr.bf16.mxu0 %v11278_v11  ;;  %3193 = vmatprep.subr.bf16.mxu1 %v11279_v9  ;;  %v11307_v9 = vld [vmem:[#allocation29_spill] sm:$0xff] }
 0x755   :  { %3153 = vmatpush1.bf16.msra.mxu0 %v11280_v28  ;;  %3194 = vmatpush1.bf16.msra.mxu1 %v11281_v54  ;;  %v11306_v28 = vld [vmem:[#allocation28_spill] sm:$0xff] }
 0x756   :  { %3154 = vmatprep.subr.bf16.mxu0 %v11282_v59  ;;  %3195 = vmatprep.subr.bf16.mxu1 %v11283_v6  ;;  %v11304_v6 = vld [vmem:[#allocation26_spill] sm:$0xff]  ;;  %v11305_v59 = vld [vmem:[#allocation27_spill] sm:$0xff] }
 0x759   :  { %3155 = vmatpush1.bf16.msra.mxu0 %v11284_v12  ;;  %3196 = vmatpush1.bf16.msra.mxu1 %v11285_v17  ;;  %v11295_v12 = vld [vmem:[#allocation128_spill] sm:$0xff]  ;;  %v11296_v17 = vld [vmem:[#allocation129_spill] sm:$0xff] }
 0x75a   :  { %3156 = vmatprep.subr.bf16.mxu0 %v11286_v14  ;;  %3197 = vmatprep.subr.bf16.mxu1 %v11287_v52  ;;  %v11297_v14 = vld [vmem:[#allocation130_spill] sm:$0xff]  ;;  %v11298_v52 = vld [vmem:[#allocation131_spill] sm:$0xff] }
 0x75d   :  { %3157 = vmatpush1.bf16.msra.mxu0 %v11288_v1  ;;  %3198 = vmatpush1.bf16.msra.mxu1 %v11289_v23  ;;  %v11299_v1 = vld [vmem:[#allocation132_spill] sm:$0xff]  ;;  %v11300_v23 = vld [vmem:[#allocation133_spill] sm:$0xff] }
 0x75e   :  { %3158 = vmatprep.subr.bf16.mxu0 %v11290_v27  ;;  %3199 = vmatprep.subr.bf16.mxu1 %v11291_v20  ;;  %v11301_v27 = vld [vmem:[#allocation134_spill] sm:$0xff]  ;;  %v11302_v20 = vld [vmem:[#allocation135_spill] sm:$0xff] }
 0x761   :  { %3159 = vmatpush1.bf16.msra.mxu0 %v11292_v15  ;;  %3200 = vmatpush1.bf16.msra.mxu1 %v11293_v46  ;;  %v11303_v15 = vld [vmem:[#allocation136_spill] sm:$0xff] }
 0x762   :  { %3160 = vmatprep.subr.bf16.mxu0 %v11294_v26  ;;  %3201 = vmatprep.subr.bf16.mxu1 %v11295_v12 }
 0x765   :  { %3161 = vmatpush1.bf16.msra.mxu0 %v11296_v17  ;;  %3202 = vmatpush1.bf16.msra.mxu1 %v11297_v14 }
 0x766   :  { %3162 = vmatprep.subr.bf16.mxu0 %v11298_v52  ;;  %3203 = vmatprep.subr.bf16.mxu1 %v11299_v1 }
 0x769   :  { %3163 = vmatpush1.bf16.msra.mxu0 %v11300_v23  ;;  %3204 = vmatpush1.bf16.msra.mxu1 %v11301_v27 }
 0x76a   :  { %3259 = vmatprep.subr.bf16.mxu0 %v11302_v20  ;;  %3300 = vmatprep.subr.bf16.mxu1 %v11303_v15 }
 0x7ff   :  { %v2930_v46 = vpop.f32.mrb[112].mxu0  ;;  %v2971_v26 = vpop.f32.mrb[112].mxu1 }
 0x800   :  { %v2931_v12 = vadd.f32 %v2930_v46, %v11304_v6  ;;  %v2972_v17 = vadd.f32 %v2971_v26, %v11305_v59  ;;  %v2932_v54 = vpop.f32.mrb[113].mxu0  ;;  %v2973_v14 = vpop.f32.mrb[113].mxu1  ;;  %v11310_v46 = vld [vmem:[#allocation104_spill] sm:$0xff] }
 0x801   :  { %v2933_v52 = vadd.f32 %v2932_v54, %v11306_v28  ;;  %v2974_v1 = vadd.f32 %v2973_v14, %v11307_v9  ;;  %v2934_v11 = vpop.f32.mrb[114].mxu0  ;;  %v2975_v23 = vpop.f32.mrb[114].mxu1 }
 0x802   :  { %v5596_v7 = vmul.f32 -1.442695, %v2931_v12  ;;  %v2935_v27 = vpop.f32.mrb[115].mxu0  ;;  %v2976_v33 = vpop.f32.mrb[115].mxu1 }
 0x803   :  { %v5597_v20 = vmul.f32 -1.442695, %v2933_v52  ;;  %v5598_v15 = vmul.f32 -1.442695, %v2974_v1  ;;  %v3119_v52 = vpop.permute.xlu0 %3118 }
 0x804   :  { %6000 = vpow2.f32 %v5596_v7  ;;  %vm3120_vm9 = vcmp.eq.s32.totalorder %v3119_v52, 1 }
 0x805   :  { %6002 = vpow2.f32 %v5597_v20  ;;  %vm3132_vm10 = vmpackc.low %vm3120_vm9, %vm3120_vm9 }
 0x806   :  { %6004 = vpow2.f32 %v5598_v15 }
 0x807   :  { %6006 = vtanh.f32 %v2972_v17  ;;  %v11309_v17 = vld [vmem:[#allocation103_spill] sm:$0xff] }
 0x80e   :  { %v6001_v29 = vpop.eup %6000 }
 0x80f   :  { %v6003_v41 = vpop.eup %6002  ;;  %v2981_v6 = vadd.f32 1.0, %v6001_v29  ;;  %v11308_v29 = vld [vmem:[#allocation102_spill] sm:$0xff] }
 0x810   :  { %v2987_v59 = vadd.f32 1.0, %v6003_v41  ;;  %v6005_v28 = vpop.eup %6004 }
 0x811   :  { %6008 = vrcp.f32 %v2981_v6  ;;  %v6007_v54 = vpop.eup %6006  ;;  %v2994_v12 = vadd.f32 1.0, %v6005_v28  ;;  %v11311_v6 = vld [vmem:[#allocation105_spill] sm:$0xff] }
 0x812   :  { %6010 = vrcp.f32 %v2987_v59 }
 0x813   :  { %6012 = vrcp.f32 %v2994_v12 }
 0x81b   :  { %v6009_v9 = vpop.eup %6008 }
 0x81c   :  { %v6011_v11 = vpop.eup %6010  ;;  %v2998_v14 = vmul.f32 %v6009_v9, %v6007_v54 }
 0x81d   :  { %v2997_v33 = vmul.f32 %v6011_v11, %v8923_v22 }
 0x81f   :  { %v2999_v7 = vadd.f32 %v2998_v14, %v2997_v33  ;;  %v3041_v23 = vpop.f32.mrb[116].mxu0  ;;  %v3082_v1 = vpop.f32.mrb[116].mxu1 }
 0x820   :  { %v3042_v27 = vadd.f32 %v3041_v23, %v11308_v29  ;;  %v3083_v41 = vadd.f32 %v3082_v1, %v11309_v17  ;;  %v3043_v20 = vpop.f32.mrb[117].mxu0  ;;  %v3084_v15 = vpop.f32.mrb[117].mxu1 }
 0x821   :  { %6014 = vtanh.f32 %v2999_v7  ;;  %v3044_v26 = vadd.f32 %v3043_v20, %v11310_v46  ;;  %v3085_v59 = vadd.f32 %v3084_v15, %v11311_v6  ;;  %v3045_v28 = vpop.f32.mrb[118].mxu0  ;;  %v3086_v54 = vpop.f32.mrb[118].mxu1  ;;  %v9041_v9 = vsel %vm3120_vm9, %v2999_v7, %v8923_v22 }
 0x822   :  { %v5599_v11 = vmul.f32 -1.442695, %v3042_v27  ;;  %v3046_v14 = vpop.f32.mrb[119].mxu0  ;;  %v3087_v12 = vpop.f32.mrb[119].mxu1 }
 0x823   :  { %v5600_v33 = vmul.f32 -1.442695, %v3044_v26  ;;  %v6013_v23 = vpop.eup %6012  ;;  %v5601_v29 = vmul.f32 -1.442695, %v3085_v59  ;;  %v3127_v28 = vpop.permute.xlu1 %3126 }
 0x824   :  { %6016 = vpow2.f32 %v5599_v11  ;;  %vm3128_vm11 = vcmp.eq.s32.totalorder %v3127_v28, 1  ;;  %v11327_v28 = vld [vmem:[#allocation16_spill] sm:$0xff] }
 0x825   :  { %6018 = vpow2.f32 %v5600_v33  ;;  %vm3139_vm12 = vmpackc.low %vm3128_vm11, %vm3128_vm11 }
 0x826   :  { %6020 = vpow2.f32 %v5601_v29 }
 0x827   :  { %6022 = vtanh.f32 %v3083_v41 }
 0x82b   :  { %v6015_v1 = vpop.eup %6014 }
 0x82c   :  { %v3001_v17 = vmul.f32 %v6015_v1, %v6013_v23 }
 0x82e   :  { %v6017_v44 = vpop.eup %6016  ;;  %v9045_v20 = vsel %vm3120_vm9, %v3001_v17, %v8927_v58  ;;  %v3131_v15 = vpack.c.bf16 %v3001_v17, %v3001_v17  ;;  %v3134_v46 = vmax.f32 %v8937_v42, %v3001_v17 }
 0x82f   :  { %v6019_v22 = vpop.eup %6018  ;;  %v3092_v7 = vadd.f32 1.0, %v6017_v44 }
 0x830   :  { %v3098_v27 = vadd.f32 1.0, %v6019_v22  ;;  %v9051_v26 = vsel %vm3132_vm10, %v3131_v15, %v8933_v31  ;;  %v9055_v6 = vsel %vm3120_vm9, %v3134_v46, %v8937_v42  ;;  %v6021_v58 = vpop.eup %6020  ;;  %v11313_v15 = vld [vmem:[#allocation123_spill] sm:$0xff]  ;;  %v11314_v46 = vld [vmem:[#allocation124_spill] sm:$0xff]  ;;  %v11317_v22 = vld [vmem:[#allocation10_spill] sm:$0xff] }
 0x831   :  { %6024 = vrcp.f32 %v3092_v7  ;;  %3181 = vmatmul.mubr.bf16.vlgmr.msra.gmra.mrb[120].mxu0 %v9051_v26  ;;  %3222 = vmatmul.mubr.bf16.vlgmr.msra.gmra.mrb[120].mxu1 %v9051_v26  ;;  %v6023_v31 = vpop.eup %6022  ;;  %v3105_v41 = vadd.f32 1.0, %v6021_v58  ;;  %v11318_v7 = vld [vmem:[#allocation11_spill] sm:$0xff]  ;;  %v11320_v58 = vld [vmem:[#allocation13_spill] sm:$0xff] }
 0x832   :  { %6026 = vrcp.f32 %v3098_v27  ;;  %3260 = vmatpush1.bf16.msra.mxu0 %v8506_v0  ;;  %3301 = vmatpush1.bf16.msra.mxu1 %v8512_v35  ;;  %v11319_v27 = vld [vmem:[#allocation12_spill] sm:$0xff] }
 0x833   :  { %3261 = vmatprep.subr.bf16.mxu0 %v8518_v55  ;;  %3302 = vmatprep.subr.bf16.mxu1 %v8524_v16  ;;  %6028 = vrcp.f32 %v3105_v41  ;;  %v11325_v41 = vld [vmem:[#allocation14_spill] sm:$0xff] }
 0x834   :  { %3291 = vmatprep.mubr.bf16.mxu0 %v11041_v43  ;;  %3332 = vmatprep.mubr.bf16.mxu1 %v11041_v43 }
 0x836   :  { %3262 = vmatpush1.bf16.msra.mxu0 %v8532_v38  ;;  %3303 = vmatpush1.bf16.msra.mxu1 %v8538_v4 }
 0x837   :  { %3263 = vmatprep.subr.bf16.mxu0 %v8544_v45  ;;  %3304 = vmatprep.subr.bf16.mxu1 %v8550_v48 }
 0x83a   :  { %3264 = vmatpush1.bf16.msra.mxu0 %v8556_v50  ;;  %3305 = vmatpush1.bf16.msra.mxu1 %v8562_v49 }
 0x83b   :  { %v6025_v42 = vpop.eup %6024  ;;  %3265 = vmatprep.subr.bf16.mxu0 %v8568_v10  ;;  %3306 = vmatprep.subr.bf16.mxu1 %v8574_v21 }
 0x83c   :  { %v6027_v44 = vpop.eup %6026  ;;  %v3109_v52 = vmul.f32 %v6025_v42, %v6023_v31  ;;  %v11321_v31 = vld [vmem:[#allocation118_spill] sm:$0xff]  ;;  %v11322_v42 = vld [vmem:[#allocation119_spill] sm:$0xff] }
 0x83d   :  { %v3108_v59 = vmul.f32 %v6027_v44, %v8962_v5  ;;  %v6029_v14 = vpop.eup %6028  ;;  %v11323_v44 = vld [vmem:[#allocation120_spill] sm:$0xff] }
 0x83e   :  { %3266 = vmatpush1.bf16.msra.mxu0 %v8581_v62  ;;  %3307 = vmatpush1.bf16.msra.mxu1 %v8587_v19 }
 0x83f   :  { %v3110_v54 = vadd.f32 %v3109_v52, %v3108_v59  ;;  %3267 = vmatprep.subr.bf16.mxu0 %v8593_v51  ;;  %3308 = vmatprep.subr.bf16.mxu1 %v8599_v47  ;;  %v11324_v52 = vld [vmem:[#allocation121_spill] sm:$0xff]  ;;  %v11326_v59 = vld [vmem:[#allocation15_spill] sm:$0xff] }
 0x841   :  { %6030 = vtanh.f32 %v3110_v54  ;;  %v9080_v11 = vsel %vm3128_vm11, %v3110_v54, %v8962_v5  ;;  %v11328_v54 = vld [vmem:[#allocation17_spill] sm:$0xff] }
 0x842   :  { %3268 = vmatpush1.bf16.msra.mxu0 %v8609_v25  ;;  %3309 = vmatpush1.bf16.msra.mxu1 %v8615_v34 }
 0x843   :  { %3269 = vmatprep.subr.bf16.mxu0 %v8621_v32  ;;  %3310 = vmatprep.subr.bf16.mxu1 %v8627_v36 }
 0x846   :  { %3270 = vmatpush1.bf16.msra.mxu0 %v8633_v37  ;;  %3311 = vmatpush1.bf16.msra.mxu1 %v8639_v30 }
 0x847   :  { %3271 = vmatprep.subr.bf16.mxu0 %v8645_v61  ;;  %3312 = vmatprep.subr.bf16.mxu1 %v8651_v2 }
 0x84a   :  { %3272 = vmatpush1.bf16.msra.mxu0 %v8657_v3  ;;  %3313 = vmatpush1.bf16.msra.mxu1 %v8663_v57 }
 0x84b   :  { %v6031_v5 = vpop.eup %6030  ;;  %3273 = vmatprep.subr.bf16.mxu0 %v8669_v39  ;;  %3314 = vmatprep.subr.bf16.mxu1 %v8675_v60 }
 0x84c   :  { %v3112_v12 = vmul.f32 %v6031_v5, %v6029_v14  ;;  %v11329_v14 = vld [vmem:[#allocation114_spill] sm:$0xff]  ;;  %v11330_v5 = vld [vmem:[#allocation115_spill] sm:$0xff] }
 0x84e   :  { %3274 = vmatpush1.bf16.msra.mxu0 %v8681_v24  ;;  %3315 = vmatpush1.bf16.msra.mxu1 %v8687_v56  ;;  %v9098_v33 = vsel %vm3128_vm11, %v3112_v12, %v8980_v63  ;;  %v3138_v23 = vpack.c.bf16 %v3112_v12, %v3112_v12  ;;  %v3141_v1 = vmax.f32 %v8992_v8, %v3112_v12  ;;  %v11312_v63 = vld [vmem:[#allocation122_spill] sm:$0xff]  ;;  %v11331_v12 = vld [vmem:[#allocation116_spill] sm:$0xff] }
 0x84f   :  { %3400 = vmatprep.subr.bf16.mxu0 %v8700_v40  ;;  %3441 = vmatprep.subr.bf16.mxu1 %v8706_v13 }
 0x850   :  { %v9106_v29 = vsel %vm3139_vm12, %v3138_v23, %v8988_v53  ;;  %v9110_v17 = vsel %vm3128_vm11, %v3141_v1, %v8992_v8  ;;  %v11315_v53 = vld [vmem:[#allocation125_spill] sm:$0xff]  ;;  %v11316_v8 = vld [vmem:[#allocation126_spill] sm:$0xff]  ;;  %v11333_v1 = vld [vmem:[#allocation127_spill] sm:$0xff] }
 0x851   :  { %3292 = vmatmul.mubr.bf16.vlgmr.msra.gmra.mrb[124].mxu0 %v9106_v29  ;;  %3333 = vmatmul.mubr.bf16.vlgmr.msra.gmra.mrb[124].mxu1 %v9106_v29  ;;  %v11332_v23 = vld [vmem:[#allocation117_spill] sm:$0xff] }
 0x852   :  { %3401 = vmatpush1.bf16.msra.mxu0 %v8721_v18  ;;  %3442 = vmatpush1.bf16.msra.mxu1 %v11312_v63 }
 0x853   :  { %3402 = vmatprep.subr.bf16.mxu0 %v11313_v15  ;;  %3443 = vmatprep.subr.bf16.mxu1 %v11314_v46 }
 0x854   :  { %3432 = vmatprep.mubr.bf16.mxu0 %v11041_v43  ;;  %3473 = vmatprep.mubr.bf16.mxu1 %v11041_v43 }
 0x856   :  { %3403 = vmatpush1.bf16.msra.mxu0 %v11315_v53  ;;  %3444 = vmatpush1.bf16.msra.mxu1 %v11316_v8 }
 0x857   :  { %3404 = vmatprep.subr.bf16.mxu0 %v11317_v22  ;;  %3445 = vmatprep.subr.bf16.mxu1 %v11318_v7  ;;  %v11346_v7 = vld [vmem:[#allocation33_spill] sm:$0xff] }
 0x85a   :  { %3405 = vmatpush1.bf16.msra.mxu0 %v11319_v27  ;;  %3446 = vmatpush1.bf16.msra.mxu1 %v11320_v58  ;;  %v11345_v27 = vld [vmem:[#allocation32_spill] sm:$0xff] }
 0x85b   :  { %3406 = vmatprep.subr.bf16.mxu0 %v11321_v31  ;;  %3447 = vmatprep.subr.bf16.mxu1 %v11322_v42  ;;  %v11343_v42 = vld [vmem:[#allocation30_spill] sm:$0xff]  ;;  %v11344_v31 = vld [vmem:[#allocation31_spill] sm:$0xff] }
 0x85e   :  { %3407 = vmatpush1.bf16.msra.mxu0 %v11323_v44  ;;  %3448 = vmatpush1.bf16.msra.mxu1 %v11324_v52  ;;  %v11334_v44 = vld [vmem:[#allocation128_spill] sm:$0xff]  ;;  %v11335_v52 = vld [vmem:[#allocation129_spill] sm:$0xff] }
 0x85f   :  { %3408 = vmatprep.subr.bf16.mxu0 %v11325_v41  ;;  %3449 = vmatprep.subr.bf16.mxu1 %v11326_v59  ;;  %v11336_v41 = vld [vmem:[#allocation130_spill] sm:$0xff]  ;;  %v11337_v59 = vld [vmem:[#allocation131_spill] sm:$0xff] }
 0x862   :  { %3409 = vmatpush1.bf16.msra.mxu0 %v11327_v28  ;;  %3450 = vmatpush1.bf16.msra.mxu1 %v11328_v54  ;;  %v11338_v28 = vld [vmem:[#allocation132_spill] sm:$0xff]  ;;  %v11339_v54 = vld [vmem:[#allocation133_spill] sm:$0xff] }
 0x863   :  { %3410 = vmatprep.subr.bf16.mxu0 %v11329_v14  ;;  %3451 = vmatprep.subr.bf16.mxu1 %v11330_v5  ;;  %v11340_v14 = vld [vmem:[#allocation134_spill] sm:$0xff]  ;;  %v11341_v5 = vld [vmem:[#allocation135_spill] sm:$0xff] }
 0x866   :  { %3411 = vmatpush1.bf16.msra.mxu0 %v11331_v12  ;;  %3452 = vmatpush1.bf16.msra.mxu1 %v11332_v23  ;;  %v11342_v12 = vld [vmem:[#allocation136_spill] sm:$0xff] }
 0x867   :  { %3412 = vmatprep.subr.bf16.mxu0 %v11333_v1  ;;  %3453 = vmatprep.subr.bf16.mxu1 %v11334_v44 }
 0x86a   :  { %3413 = vmatpush1.bf16.msra.mxu0 %v11335_v52  ;;  %3454 = vmatpush1.bf16.msra.mxu1 %v11336_v41 }
 0x86b   :  { %3414 = vmatprep.subr.bf16.mxu0 %v11337_v59  ;;  %3455 = vmatprep.subr.bf16.mxu1 %v11338_v28 }
 0x86e   :  { %3415 = vmatpush1.bf16.msra.mxu0 %v11339_v54  ;;  %3456 = vmatpush1.bf16.msra.mxu1 %v11340_v14 }
 0x86f   :  { %3511 = vmatprep.subr.bf16.mxu0 %v11341_v5  ;;  %3552 = vmatprep.subr.bf16.mxu1 %v11342_v12 }
 0x904   :  { %v3182_v23 = vpop.f32.mrb[120].mxu0  ;;  %v3223_v1 = vpop.f32.mrb[120].mxu1 }
 0x905   :  { %v3183_v44 = vadd.f32 %v3182_v23, %v11343_v42  ;;  %v3224_v52 = vadd.f32 %v3223_v1, %v11344_v31  ;;  %v3184_v58 = vpop.f32.mrb[121].mxu0  ;;  %v3225_v41 = vpop.f32.mrb[121].mxu1  ;;  %v11349_v23 = vld [vmem:[#allocation100_spill] sm:$0xff] }
 0x906   :  { %v3185_v59 = vadd.f32 %v3184_v58, %v11345_v27  ;;  %v3226_v28 = vadd.f32 %v3225_v41, %v11346_v7  ;;  %v3186_v22 = vpop.f32.mrb[122].mxu0  ;;  %v3227_v54 = vpop.f32.mrb[122].mxu1 }
 0x907   :  { %v5603_v8 = vmul.f32 -1.442695, %v3183_v44  ;;  %v3187_v14 = vpop.f32.mrb[123].mxu0  ;;  %v3228_v53 = vpop.f32.mrb[123].mxu1 }
 0x908   :  { %v5604_v5 = vmul.f32 -1.442695, %v3185_v59  ;;  %v5605_v12 = vmul.f32 -1.442695, %v3226_v28  ;;  %v3371_v59 = vpop.permute.xlu0 %3370 }
 0x909   :  { %6032 = vpow2.f32 %v5603_v8  ;;  %vm3372_vm13 = vcmp.eq.s32.totalorder %v3371_v59, 1  ;;  %v11374_v59 = vld [vmem:[#allocation129_spill] sm:$0xff] }
 0x90a   :  { %6034 = vpow2.f32 %v5604_v5  ;;  %vm3384_vm14 = vmpackc.low %vm3372_vm13, %vm3372_vm13 }
 0x90b   :  { %6036 = vpow2.f32 %v5605_v12 }
 0x90c   :  { %6038 = vtanh.f32 %v3224_v52  ;;  %v11348_v52 = vld [vmem:[#allocation99_spill] sm:$0xff] }
 0x913   :  { %v6033_v46 = vpop.eup %6032 }
 0x914   :  { %v6035_v15 = vpop.eup %6034  ;;  %v3233_v42 = vadd.f32 1.0, %v6033_v46  ;;  %v11347_v46 = vld [vmem:[#allocation98_spill] sm:$0xff] }
 0x915   :  { %v3239_v31 = vadd.f32 1.0, %v6035_v15  ;;  %v6037_v27 = vpop.eup %6036 }
 0x916   :  { %6040 = vrcp.f32 %v3233_v42  ;;  %v6039_v58 = vpop.eup %6038  ;;  %v3246_v44 = vadd.f32 1.0, %v6037_v27  ;;  %v11350_v42 = vld [vmem:[#allocation101_spill] sm:$0xff] }
 0x917   :  { %6042 = vrcp.f32 %v3239_v31 }
 0x918   :  { %6044 = vrcp.f32 %v3246_v44 }
 0x920   :  { %v6041_v7 = vpop.eup %6040 }
 0x921   :  { %v6043_v22 = vpop.eup %6042  ;;  %v3250_v41 = vmul.f32 %v6041_v7, %v6039_v58 }
 0x922   :  { %v3249_v53 = vmul.f32 %v6043_v22, %v9041_v9 }
 0x924   :  { %v3251_v8 = vadd.f32 %v3250_v41, %v3249_v53  ;;  %v3293_v54 = vpop.f32.mrb[124].mxu0  ;;  %v3334_v28 = vpop.f32.mrb[124].mxu1 }
 0x925   :  { %v3294_v14 = vadd.f32 %v3293_v54, %v11347_v46  ;;  %v3335_v15 = vadd.f32 %v3334_v28, %v11348_v52  ;;  %v3295_v5 = vpop.f32.mrb[125].mxu0  ;;  %v3336_v12 = vpop.f32.mrb[125].mxu1 }
 0x926   :  { %6046 = vtanh.f32 %v3251_v8  ;;  %v3296_v1 = vadd.f32 %v3295_v5, %v11349_v23  ;;  %v3337_v31 = vadd.f32 %v3336_v12, %v11350_v42  ;;  %v3297_v27 = vpop.f32.mrb[126].mxu0  ;;  %v3338_v58 = vpop.f32.mrb[126].mxu1  ;;  %v9159_v7 = vsel %vm3372_vm13, %v3251_v8, %v9041_v9 }
 0x927   :  { %v5606_v22 = vmul.f32 -1.442695, %v3294_v14  ;;  %v3298_v41 = vpop.f32.mrb[127].mxu0  ;;  %v3339_v44 = vpop.f32.mrb[127].mxu1  ;;  %v11377_v27 = vld [vmem:[#allocation132_spill] sm:$0xff]  ;;  %v11378_v58 = vld [vmem:[#allocation133_spill] sm:$0xff] }
 0x928   :  { %v5607_v53 = vmul.f32 -1.442695, %v3296_v1  ;;  %v6045_v54 = vpop.eup %6044  ;;  %v5608_v46 = vmul.f32 -1.442695, %v3337_v31  ;;  %v11376_v31 = vld [vmem:[#allocation131_spill] sm:$0xff]  ;;  %v11381_v44 = vld [vmem:[#allocation136_spill] sm:$0xff] }
 0x929   :  { %6048 = vpow2.f32 %v5606_v22  ;;  %v11379_v22 = vld [vmem:[#allocation134_spill] sm:$0xff]  ;;  %v11380_v41 = vld [vmem:[#allocation135_spill] sm:$0xff] }
 0x92a   :  { %6050 = vpow2.f32 %v5607_v53 }
 0x92b   :  { %6052 = vpow2.f32 %v5608_v46 }
 0x92c   :  { %6054 = vtanh.f32 %v3335_v15  ;;  %v11375_v15 = vld [vmem:[#allocation130_spill] sm:$0xff] }
 0x930   :  { %v6047_v28 = vpop.eup %6046 }
 0x931   :  { %v3253_v52 = vmul.f32 %v6047_v28, %v6045_v54  ;;  %v11382_v28 = vld [vmem:[#allocation34_spill] sm:$0xff] }
 0x933   :  { %v6049_v63 = vpop.eup %6048  ;;  %v9163_v5 = vsel %vm3372_vm13, %v3253_v52, %v9045_v20  ;;  %v3383_v12 = vpack.c.bf16 %v3253_v52, %v3253_v52  ;;  %v3386_v23 = vmax.f32 %v9055_v6, %v3253_v52  ;;  %v11383_v52 = vld [vmem:[#allocation35_spill] sm:$0xff] }
 0x934   :  { %v6051_v9 = vpop.eup %6050  ;;  %v3344_v8 = vadd.f32 1.0, %v6049_v63  ;;  %v11373_v63 = vld [vmem:[#allocation128_spill] sm:$0xff] }
 0x935   :  { %v3350_v14 = vadd.f32 1.0, %v6051_v9  ;;  %v9169_v1 = vsel %vm3384_vm14, %v3383_v12, %v9051_v26  ;;  %v9173_v42 = vsel %vm3372_vm13, %v3386_v23, %v9055_v6  ;;  %v6053_v20 = vpop.eup %6052  ;;  %v11367_v26 = vld [vmem:[#allocation17_spill] sm:$0xff]  ;;  %v11368_v6 = vld [vmem:[#allocation114_spill] sm:$0xff] }
 0x936   :  { %6056 = vrcp.f32 %v3344_v8  ;;  %3433 = vmatmul.mubr.bf16.vlgmr.msra.gmra.mrb[128].mxu0 %v9169_v1  ;;  %3474 = vmatmul.mubr.bf16.vlgmr.msra.gmra.mrb[128].mxu1 %v9169_v1  ;;  %v11384_v8 = vld [vmem:[#allocation36_spill] sm:$0xff] }
 0x937   :  { %6058 = vrcp.f32 %v3350_v14  ;;  %3512 = vmatpush1.bf16.msra.mxu0 %v8506_v0  ;;  %3553 = vmatpush1.bf16.msra.mxu1 %v8512_v35  ;;  %v6055_v0 = vpop.eup %6054 }
 0x938   :  { %3513 = vmatprep.subr.bf16.mxu0 %v8518_v55  ;;  %3554 = vmatprep.subr.bf16.mxu1 %v8524_v16 }
 0x939   :  { %3543 = vmatprep.mubr.bf16.mxu0 %v11041_v43  ;;  %3584 = vmatprep.mubr.bf16.mxu1 %v11041_v43 }
 0x93b   :  { %3514 = vmatpush1.bf16.msra.mxu0 %v8532_v38  ;;  %3555 = vmatpush1.bf16.msra.mxu1 %v8538_v4  ;;  %v3357_v38 = vadd.f32 1.0, %v6053_v20  ;;  %v11385_v20 = vld [vmem:[#allocation37_spill] sm:$0xff] }
 0x93c   :  { %3515 = vmatprep.subr.bf16.mxu0 %v8544_v45  ;;  %3556 = vmatprep.subr.bf16.mxu1 %v8550_v48  ;;  %v3379_v45 = vpop.permute.xlu1 %3378 }
 0x93d   :  { %vm3380_vm15 = vcmp.eq.s32.totalorder %v3379_v45, 1  ;;  %6060 = vrcp.f32 %v3357_v38 }
 0x93e   :  { %vm3391_vm0 = vmpackc.low %vm3380_vm15, %vm3380_vm15 }
 0x93f   :  { %3516 = vmatpush1.bf16.msra.mxu0 %v8556_v50  ;;  %3557 = vmatpush1.bf16.msra.mxu1 %v8562_v49 }
 0x940   :  { %v6057_v35 = vpop.eup %6056  ;;  %3517 = vmatprep.subr.bf16.mxu0 %v8568_v10  ;;  %3558 = vmatprep.subr.bf16.mxu1 %v8574_v21 }
 0x941   :  { %v6059_v55 = vpop.eup %6058  ;;  %v3361_v16 = vmul.f32 %v6057_v35, %v6055_v0 }
 0x942   :  { %v3360_v4 = vmul.f32 %v6059_v55, %v9080_v11 }
 0x943   :  { %3518 = vmatpush1.bf16.msra.mxu0 %v8581_v62  ;;  %3559 = vmatpush1.bf16.msra.mxu1 %v8587_v19 }
 0x944   :  { %v3362_v48 = vadd.f32 %v3361_v16, %v3360_v4  ;;  %3519 = vmatprep.subr.bf16.mxu0 %v8593_v51  ;;  %3560 = vmatprep.subr.bf16.mxu1 %v8599_v47 }
 0x946   :  { %6062 = vtanh.f32 %v3362_v48  ;;  %v9198_v50 = vsel %vm3380_vm15, %v3362_v48, %v9080_v11  ;;  %v11369_v11 = vld [vmem:[#allocation115_spill] sm:$0xff] }
 0x947   :  { %3520 = vmatpush1.bf16.msra.mxu0 %v8609_v25  ;;  %3561 = vmatpush1.bf16.msra.mxu1 %v8615_v34  ;;  %v6061_v49 = vpop.eup %6060  ;;  %v11351_v34 = vld [vmem:[#allocation122_spill] sm:$0xff] }
 0x948   :  { %3521 = vmatprep.subr.bf16.mxu0 %v8621_v32  ;;  %3562 = vmatprep.subr.bf16.mxu1 %v8627_v36  ;;  %v11352_v32 = vld [vmem:[#allocation123_spill] sm:$0xff]  ;;  %v11353_v36 = vld [vmem:[#allocation124_spill] sm:$0xff] }
 0x94b   :  { %3522 = vmatpush1.bf16.msra.mxu0 %v8633_v37  ;;  %3563 = vmatpush1.bf16.msra.mxu1 %v8639_v30  ;;  %v11354_v37 = vld [vmem:[#allocation125_spill] sm:$0xff]  ;;  %v11355_v30 = vld [vmem:[#allocation126_spill] sm:$0xff] }
 0x94c   :  { %3523 = vmatprep.subr.bf16.mxu0 %v8645_v61  ;;  %3564 = vmatprep.subr.bf16.mxu1 %v8651_v2  ;;  %v11356_v61 = vld [vmem:[#allocation10_spill] sm:$0xff]  ;;  %v11357_v2 = vld [vmem:[#allocation11_spill] sm:$0xff] }
 0x94f   :  { %3524 = vmatpush1.bf16.msra.mxu0 %v8657_v3  ;;  %3565 = vmatpush1.bf16.msra.mxu1 %v8663_v57  ;;  %v11358_v3 = vld [vmem:[#allocation12_spill] sm:$0xff]  ;;  %v11359_v57 = vld [vmem:[#allocation13_spill] sm:$0xff] }
 0x950   :  { %v6063_v10 = vpop.eup %6062  ;;  %3525 = vmatprep.subr.bf16.mxu0 %v8669_v39  ;;  %3566 = vmatprep.subr.bf16.mxu1 %v8675_v60  ;;  %v11360_v39 = vld [vmem:[#allocation118_spill] sm:$0xff]  ;;  %v11361_v60 = vld [vmem:[#allocation119_spill] sm:$0xff] }
 0x951   :  { %v3364_v21 = vmul.f32 %v6063_v10, %v6061_v49 }
 0x953   :  { %3526 = vmatpush1.bf16.msra.mxu0 %v8681_v24  ;;  %3567 = vmatpush1.bf16.msra.mxu1 %v8687_v56  ;;  %v9216_v62 = vsel %vm3380_vm15, %v3364_v21, %v9098_v33  ;;  %v3390_v19 = vpack.c.bf16 %v3364_v21, %v3364_v21  ;;  %v3393_v51 = vmax.f32 %v9110_v17, %v3364_v21  ;;  %v11362_v24 = vld [vmem:[#allocation120_spill] sm:$0xff]  ;;  %v11363_v56 = vld [vmem:[#allocation121_spill] sm:$0xff] }
 0x954   :  { %3652 = vmatprep.subr.bf16.mxu0 %v8700_v40  ;;  %3693 = vmatprep.subr.bf16.mxu1 %v8706_v13  ;;  %v11364_v40 = vld [vmem:[#allocation14_spill] sm:$0xff]  ;;  %v11365_v13 = vld [vmem:[#allocation15_spill] sm:$0xff]  ;;  %v11370_v33 = vld [vmem:[#allocation116_spill] sm:$0xff] }
 0x955   :  { %v9224_v47 = vsel %vm3391_vm0, %v3390_v19, %v9106_v29  ;;  %v9228_v25 = vsel %vm3380_vm15, %v3393_v51, %v9110_v17  ;;  %v11371_v29 = vld [vmem:[#allocation117_spill] sm:$0xff]  ;;  %v11372_v17 = vld [vmem:[#allocation127_spill] sm:$0xff] }
 0x956   :  { %3544 = vmatmul.mubr.bf16.vlgmr.msra.gmra.mrb[132].mxu0 %v9224_v47  ;;  %3585 = vmatmul.mubr.bf16.vlgmr.msra.gmra.mrb[132].mxu1 %v9224_v47 }
 0x957   :  { %3653 = vmatpush1.bf16.msra.mxu0 %v8721_v18  ;;  %3694 = vmatpush1.bf16.msra.mxu1 %v11351_v34  ;;  %v11366_v18 = vld [vmem:[#allocation16_spill] sm:$0xff] }
 0x958   :  { %3654 = vmatprep.subr.bf16.mxu0 %v11352_v32  ;;  %3695 = vmatprep.subr.bf16.mxu1 %v11353_v36 }
 0x959   :  { %3684 = vmatprep.mubr.bf16.mxu0 %v11041_v43  ;;  %3725 = vmatprep.mubr.bf16.mxu1 %v11041_v43 }
 0x95b   :  { %3655 = vmatpush1.bf16.msra.mxu0 %v11354_v37  ;;  %3696 = vmatpush1.bf16.msra.mxu1 %v11355_v30 }
 0x95c   :  { %3656 = vmatprep.subr.bf16.mxu0 %v11356_v61  ;;  %3697 = vmatprep.subr.bf16.mxu1 %v11357_v2  ;;  %v3623_v2 = vpop.permute.xlu0 %3622 }
 0x95d   :  { %vm3624_vm1 = vcmp.eq.s32.totalorder %v3623_v2, 1 }
 0x95e   :  { %vm3636_vm2 = vmpackc.low %vm3624_vm1, %vm3624_vm1 }
 0x95f   :  { %3657 = vmatpush1.bf16.msra.mxu0 %v11358_v3  ;;  %3698 = vmatpush1.bf16.msra.mxu1 %v11359_v57 }
 0x960   :  { %3658 = vmatprep.subr.bf16.mxu0 %v11360_v39  ;;  %3699 = vmatprep.subr.bf16.mxu1 %v11361_v60  ;;  %v11386_v60 = vld [vmem:[#allocation94_spill] sm:$0xff] }
 0x963   :  { %3659 = vmatpush1.bf16.msra.mxu0 %v11362_v24  ;;  %3700 = vmatpush1.bf16.msra.mxu1 %v11363_v56  ;;  %v11387_v56 = vld [vmem:[#allocation95_spill] sm:$0xff] }
 0x964   :  { %3660 = vmatprep.subr.bf16.mxu0 %v11364_v40  ;;  %3701 = vmatprep.subr.bf16.mxu1 %v11365_v13 }
 0x967   :  { %3661 = vmatpush1.bf16.msra.mxu0 %v11366_v18  ;;  %3702 = vmatpush1.bf16.msra.mxu1 %v11367_v26  ;;  %v11388_v26 = vld [vmem:[#allocation96_spill] sm:$0xff] }
 0x968   :  { %3662 = vmatprep.subr.bf16.mxu0 %v11368_v6  ;;  %3703 = vmatprep.subr.bf16.mxu1 %v11369_v11  ;;  %v11389_v11 = vld [vmem:[#allocation97_spill] sm:$0xff] }
 0x96b   :  { %3663 = vmatpush1.bf16.msra.mxu0 %v11370_v33  ;;  %3704 = vmatpush1.bf16.msra.mxu1 %v11371_v29 }
 0x96c   :  { %3664 = vmatprep.subr.bf16.mxu0 %v11372_v17  ;;  %3705 = vmatprep.subr.bf16.mxu1 %v11373_v63 }
 0x96f   :  { %3665 = vmatpush1.bf16.msra.mxu0 %v11374_v59  ;;  %3706 = vmatpush1.bf16.msra.mxu1 %v11375_v15 }
 0x970   :  { %3666 = vmatprep.subr.bf16.mxu0 %v11376_v31  ;;  %3707 = vmatprep.subr.bf16.mxu1 %v11377_v27 }
 0x973   :  { %3667 = vmatpush1.bf16.msra.mxu0 %v11378_v58  ;;  %3708 = vmatpush1.bf16.msra.mxu1 %v11379_v22 }
 0x974   :  { %3763 = vmatprep.subr.bf16.mxu0 %v11380_v41  ;;  %3804 = vmatprep.subr.bf16.mxu1 %v11381_v44 }
 0xa09   :  { %v3434_v53 = vpop.f32.mrb[128].mxu0  ;;  %v3475_v54 = vpop.f32.mrb[128].mxu1 }
 0xa0a   :  { %v3435_v46 = vadd.f32 %v3434_v53, %v11382_v28  ;;  %v3476_v12 = vadd.f32 %v3475_v54, %v11383_v52  ;;  %v3436_v23 = vpop.f32.mrb[129].mxu0  ;;  %v3477_v9 = vpop.f32.mrb[129].mxu1 }
 0xa0b   :  { %v3437_v14 = vadd.f32 %v3436_v23, %v11384_v8  ;;  %v3478_v0 = vadd.f32 %v3477_v9, %v11385_v20  ;;  %v3438_v35 = vpop.f32.mrb[130].mxu0  ;;  %v3479_v55 = vpop.f32.mrb[130].mxu1  ;;  %v9316_v8 = vld [vmem:[%s10722_s8 + $0x2c] ss:$16 sps:$4 sm:$0xff]   ;;  %v9330_v20 = vld [vmem:[%s10722_s8 + $0x28] ss:$16 sps:$4 sm:$0xff]  }
 0xa0c   :  { %v5610_v16 = vmul.f32 -1.442695, %v3435_v46  ;;  %v3439_v38 = vpop.f32.mrb[131].mxu0  ;;  %v3480_v4 = vpop.f32.mrb[131].mxu1  ;;  %v9342_v35 = vld [vmem:[%s10722_s8 + $0x4c] ss:$16 sps:$4 sm:$0xff]  }
 0xa0d   :  { %v5611_v45 = vmul.f32 -1.442695, %v3437_v14  ;;  %v5612_v48 = vmul.f32 -1.442695, %v3478_v0  ;;  %v9324_v14 = vld [vmem:[%s10722_s8 + $0x20] ss:$16 sps:$4 sm:$0xff]  }
 0xa0e   :  { %6064 = vpow2.f32 %v5610_v16  ;;  %v9336_v0 = vld [vmem:[%s10722_s8 + $0x44] ss:$16 sps:$4 sm:$0xff]   ;;  %v9348_v38 = vld [vmem:[%s10722_s8 + $0x40] ss:$16 sps:$4 sm:$0xff]   ;;  %v9354_v4 = vld [vmem:[%s10722_s8 + $0x48] ss:$16 sps:$4 sm:$0xff]  }
 0xa0f   :  { %6066 = vpow2.f32 %v5611_v45 }
 0xa10   :  { %6068 = vpow2.f32 %v5612_v48  ;;  %v9360_v48 = vld [vmem:[%s10722_s8 + $0x64] ss:$16 sps:$4 sm:$0xff]  }
 0xa11   :  { %6070 = vtanh.f32 %v3476_v12 }
 0xa18   :  { %v6065_v49 = vpop.eup %6064 }
 0xa19   :  { %v6067_v10 = vpop.eup %6066  ;;  %v3485_v21 = vadd.f32 1.0, %v6065_v49  ;;  %v9366_v49 = vld [vmem:[%s10722_s8 + $0x6c] ss:$16 sps:$4 sm:$0xff]  }
 0xa1a   :  { %v3491_v19 = vadd.f32 1.0, %v6067_v10  ;;  %v6069_v51 = vpop.eup %6068 }
 0xa1b   :  { %6072 = vrcp.f32 %v3485_v21  ;;  %v6071_v34 = vpop.eup %6070  ;;  %v3498_v30 = vadd.f32 1.0, %v6069_v51 }
 0xa1c   :  { %6074 = vrcp.f32 %v3491_v19 }
 0xa1d   :  { %6076 = vrcp.f32 %v3498_v30  ;;  %v9385_v30 = vld [vmem:[%s10722_s8 + $0x84] ss:$16 sps:$4 sm:$0xff]  }
 0xa25   :  { %v6073_v32 = vpop.eup %6072 }
 0xa26   :  { %v6075_v36 = vpop.eup %6074  ;;  %v3502_v37 = vmul.f32 %v6073_v32, %v6071_v34  ;;  %v9373_v34 = vld [vmem:[%s10722_s8 + $0x60] ss:$16 sps:$4 sm:$0xff]   ;;  %v9379_v32 = vld [vmem:[%s10722_s8 + $0x68] ss:$16 sps:$4 sm:$0xff]  }
 0xa27   :  { %v3501_v61 = vmul.f32 %v6075_v36, %v9159_v7  ;;  %v6077_v58 = vpop.eup %6076  ;;  %v3631_v36 = vpop.permute.xlu1 %3630 }
 0xa28   :  { %vm3632_vm3 = vcmp.eq.s32.totalorder %v3631_v36, 1  ;;  %v9611_v36 = vld [vmem:[%s10721_s7 + $0x80] ss:$16 sps:$4 sm:$0xff]  }
 0xa29   :  { %v3503_v3 = vadd.f32 %v3502_v37, %v3501_v61  ;;  %v3545_v57 = vpop.f32.mrb[132].mxu0  ;;  %v3586_v39 = vpop.f32.mrb[132].mxu1  ;;  %v9391_v61 = vld [vmem:[%s10722_s8 + $0x8c] ss:$16 sps:$4 sm:$0xff]   ;;  %vm3643_vm4 = vmpackc.low %vm3632_vm3, %vm3632_vm3  ;;  %11405 = vst [vmem:[#allocation152_spill] sm:$0xff] %v9611_v36 }
 0xa2a   :  { %v3546_v24 = vadd.f32 %v3545_v57, %v11386_v60  ;;  %v3587_v40 = vadd.f32 %v3586_v39, %v11387_v56  ;;  %v3547_v13 = vpop.f32.mrb[133].mxu0  ;;  %v3588_v18 = vpop.f32.mrb[133].mxu1  ;;  %v9407_v57 = vld [vmem:[%s10722_s8 + $0x88] ss:$16 sps:$4 sm:$0xff]   ;;  %v9413_v39 = vld [vmem:[%s10722_s8 + $0xa4] ss:$16 sps:$4 sm:$0xff]  }
 0xa2b   :  { %6078 = vtanh.f32 %v3503_v3  ;;  %v3548_v6 = vadd.f32 %v3547_v13, %v11388_v26  ;;  %v3589_v33 = vadd.f32 %v3588_v18, %v11389_v11  ;;  %v3549_v29 = vpop.f32.mrb[134].mxu0  ;;  %v3590_v17 = vpop.f32.mrb[134].mxu1  ;;  %v9277_v63 = vsel %vm3624_vm1, %v3503_v3, %v9159_v7  ;;  %v9401_v3 = vld [vmem:[%s10722_s8 + $0x80] ss:$16 sps:$4 sm:$0xff]   ;;  %v9437_v56 = vld [vmem:[%s10722_s8 + $0xc4] ss:$16 sps:$4 sm:$0xff]  }
 0xa2c   :  { %v5613_v59 = vmul.f32 -1.442695, %v3546_v24  ;;  %v3550_v15 = vpop.f32.mrb[135].mxu0  ;;  %v3591_v31 = vpop.f32.mrb[135].mxu1  ;;  %v9425_v60 = vld [vmem:[%s10722_s8 + $0xa0] ss:$16 sps:$4 sm:$0xff]  }
 0xa2d   :  { %v5614_v27 = vmul.f32 -1.442695, %v3548_v6  ;;  %v5615_v41 = vmul.f32 -1.442695, %v3589_v33  ;;  %v9431_v24 = vld [vmem:[%s10722_s8 + $0xa8] ss:$16 sps:$4 sm:$0xff]  }
 0xa2e   :  { %6080 = vpow2.f32 %v5613_v59  ;;  %v9449_v18 = vld [vmem:[%s10722_s8 + $0xc0] ss:$16 sps:$4 sm:$0xff]   ;;  %v9455_v26 = vld [vmem:[%s10722_s8 + $0xc8] ss:$16 sps:$4 sm:$0xff]   ;;  %v9461_v11 = vld [vmem:[%s10722_s8 + $0xe4] ss:$16 sps:$4 sm:$0xff]  }
 0xa2f   :  { %6082 = vpow2.f32 %v5614_v27  ;;  %v9467_v33 = vld [vmem:[%s10722_s8 + $0xec] ss:$16 sps:$4 sm:$0xff]   ;;  %v9473_v17 = vld [vmem:[%s10722_s8 + $0xe0] ss:$16 sps:$4 sm:$0xff]   ;;  %v9479_v59 = vld [vmem:[%s10722_s8 + $0xe8] ss:$16 sps:$4 sm:$0xff]  }
 0xa30   :  { %6084 = vpow2.f32 %v5615_v41 }
 0xa31   :  { %6086 = vtanh.f32 %v3587_v40  ;;  %v9443_v40 = vld [vmem:[%s10722_s8 + $0xcc] ss:$16 sps:$4 sm:$0xff]  }
 0xa35   :  { %v6079_v22 = vpop.eup %6078 }
 0xa36   :  { %v3505_v44 = vmul.f32 %v6079_v22, %v6077_v58  ;;  %v9492_v58 = vld [vmem:[%s10721_s7 + $0x4] ss:$16 sps:$4 sm:$0xff]   ;;  %v9498_v22 = vld [vmem:[%s10721_s7 + $0xc] ss:$16 sps:$4 sm:$0xff]  }
 0xa38   :  { %v6081_v53 = vpop.eup %6080  ;;  %v9281_v54 = vsel %vm3624_vm1, %v3505_v44, %v9163_v5  ;;  %v3635_v28 = vpack.c.bf16 %v3505_v44, %v3505_v44  ;;  %v3638_v46 = vmax.f32 %v9173_v42, %v3505_v44  ;;  %v9298_v5 = vld [vmem:[%s10722_s8] ss:$16 sps:$4 sm:$0xff]  }
 0xa39   :  { %v6083_v7 = vpop.eup %6082  ;;  %v3596_v52 = vadd.f32 1.0, %v6081_v53  ;;  %v9513_v44 = vld [vmem:[%s10721_s7] ss:$16 sps:$4 sm:$0xff]   ;;  %v9531_v53 = vld [vmem:[%s10721_s7 + $0x2c] ss:$16 sps:$4 sm:$0xff]  }
 0xa3a   :  { %v3602_v12 = vadd.f32 1.0, %v6083_v7  ;;  %v9287_v23 = vsel %vm3636_vm2, %v3635_v28, %v9169_v1  ;;  %v9291_v9 = vsel %vm3624_vm1, %v3638_v46, %v9173_v42  ;;  %v9304_v1 = vld [vmem:[%s10722_s8 + $0x8] ss:$16 sps:$4 sm:$0xff]   ;;  %v9310_v42 = vld [vmem:[%s10722_s8 + $0x24] ss:$16 sps:$4 sm:$0xff]   ;;  %v6085_v55 = vpop.eup %6084  ;;  %11392 = vst [vmem:[#allocation139_spill] sm:$0xff] %v9531_v53 }
 0xa3b   :  { %6088 = vrcp.f32 %v3596_v52  ;;  %3685 = vmatmul.mubr.bf16.vlgmr.msra.gmra.mrb[136].mxu0 %v9287_v23  ;;  %3726 = vmatmul.mubr.bf16.vlgmr.msra.gmra.mrb[136].mxu1 %v9287_v23  ;;  %v6087_v16 = vpop.eup %6086  ;;  %v3609_v19 = vadd.f32 1.0, %v6085_v55  ;;  %v9539_v28 = vld [vmem:[%s10721_s7 + $0x20] ss:$16 sps:$4 sm:$0xff]   ;;  %v9545_v46 = vld [vmem:[%s10721_s7 + $0x28] ss:$16 sps:$4 sm:$0xff]  }
 0xa3c   :  { %6090 = vrcp.f32 %v3602_v12  ;;  %3764 = vmatpush1.bf16.msra.mxu0 %v9298_v5  ;;  %3805 = vmatpush1.bf16.msra.mxu1 %v9304_v1  ;;  %11393 = vst [vmem:[#allocation140_spill] sm:$0xff] %v9539_v28  ;;  %11394 = vst [vmem:[#allocation141_spill] sm:$0xff] %v9545_v46  ;;  %v9551_v7 = vld [vmem:[%s10721_s7 + $0x44] ss:$16 sps:$4 sm:$0xff]   ;;  %v9557_v52 = vld [vmem:[%s10721_s7 + $0x4c] ss:$16 sps:$4 sm:$0xff]  }
 0xa3d   :  { %3765 = vmatprep.subr.bf16.mxu0 %v9310_v42  ;;  %3806 = vmatprep.subr.bf16.mxu1 %v9316_v8  ;;  %6092 = vrcp.f32 %v3609_v19  ;;  %11395 = vst [vmem:[#allocation142_spill] sm:$0xff] %v9551_v7  ;;  %11396 = vst [vmem:[#allocation143_spill] sm:$0xff] %v9557_v52  ;;  %v9563_v12 = vld [vmem:[%s10721_s7 + $0x40] ss:$16 sps:$4 sm:$0xff]   ;;  %v9569_v55 = vld [vmem:[%s10721_s7 + $0x48] ss:$16 sps:$4 sm:$0xff]  }
 0xa3e   :  { %3795 = vmatprep.mubr.bf16.mxu0 %v11041_v43  ;;  %3836 = vmatprep.mubr.bf16.mxu1 %v11041_v43  ;;  %11397 = vst [vmem:[#allocation144_spill] sm:$0xff] %v9563_v12  ;;  %11398 = vst [vmem:[#allocation145_spill] sm:$0xff] %v9569_v55  ;;  %v9599_v19 = vld [vmem:[%s10721_s7 + $0x84] ss:$16 sps:$4 sm:$0xff]  }
 0xa3f   :  { %11403 = vst [vmem:[#allocation150_spill] sm:$0xff] %v9599_v19 }
 0xa40   :  { %3766 = vmatpush1.bf16.msra.mxu0 %v9324_v14  ;;  %3807 = vmatpush1.bf16.msra.mxu1 %v9330_v20 }
 0xa41   :  { %3767 = vmatprep.subr.bf16.mxu0 %v9336_v0  ;;  %3808 = vmatprep.subr.bf16.mxu1 %v9342_v35 }
 0xa44   :  { %3768 = vmatpush1.bf16.msra.mxu0 %v9348_v38  ;;  %3809 = vmatpush1.bf16.msra.mxu1 %v9354_v4 }
 0xa45   :  { %v6089_v45 = vpop.eup %6088  ;;  %3769 = vmatprep.subr.bf16.mxu0 %v9360_v48  ;;  %3810 = vmatprep.subr.bf16.mxu1 %v9366_v49 }
 0xa46   :  { %v6091_v10 = vpop.eup %6090  ;;  %v3613_v21 = vmul.f32 %v6089_v45, %v6087_v16  ;;  %v9575_v16 = vld [vmem:[%s10721_s7 + $0x64] ss:$16 sps:$4 sm:$0xff]   ;;  %v9581_v45 = vld [vmem:[%s10721_s7 + $0x6c] ss:$16 sps:$4 sm:$0xff]  }
 0xa47   :  { %v3612_v51 = vmul.f32 %v6091_v10, %v9198_v50  ;;  %v6093_v13 = vpop.eup %6092  ;;  %11399 = vst [vmem:[#allocation146_spill] sm:$0xff] %v9575_v16  ;;  %11400 = vst [vmem:[#allocation147_spill] sm:$0xff] %v9581_v45  ;;  %v9587_v10 = vld [vmem:[%s10721_s7 + $0x60] ss:$16 sps:$4 sm:$0xff]  }
 0xa48   :  { %3770 = vmatpush1.bf16.msra.mxu0 %v9373_v34  ;;  %3811 = vmatpush1.bf16.msra.mxu1 %v9379_v32  ;;  %11401 = vst [vmem:[#allocation148_spill] sm:$0xff] %v9587_v10 }
 0xa49   :  { %v3614_v37 = vadd.f32 %v3613_v21, %v3612_v51  ;;  %3771 = vmatprep.subr.bf16.mxu0 %v9385_v30  ;;  %3812 = vmatprep.subr.bf16.mxu1 %v9391_v61  ;;  %v9593_v21 = vld [vmem:[%s10721_s7 + $0x68] ss:$16 sps:$4 sm:$0xff]   ;;  %v9605_v51 = vld [vmem:[%s10721_s7 + $0x8c] ss:$16 sps:$4 sm:$0xff]  }
 0xa4a   :  { %11402 = vst [vmem:[#allocation149_spill] sm:$0xff] %v9593_v21  ;;  %11404 = vst [vmem:[#allocation151_spill] sm:$0xff] %v9605_v51 }
 0xa4b   :  { %6094 = vtanh.f32 %v3614_v37  ;;  %v9396_v2 = vsel %vm3632_vm3, %v3614_v37, %v9198_v50  ;;  %v9419_v50 = vld [vmem:[%s10722_s8 + $0xac] ss:$16 sps:$4 sm:$0xff]   ;;  %v9617_v37 = vld [vmem:[%s10721_s7 + $0x88] ss:$16 sps:$4 sm:$0xff]  }
 0xa4c   :  { %3772 = vmatpush1.bf16.msra.mxu0 %v9401_v3  ;;  %3813 = vmatpush1.bf16.msra.mxu1 %v9407_v57  ;;  %11406 = vst [vmem:[#allocation153_spill] sm:$0xff] %v9617_v37 }
 0xa4d   :  { %3773 = vmatprep.subr.bf16.mxu0 %v9413_v39  ;;  %3814 = vmatprep.subr.bf16.mxu1 %v9419_v50 }
 0xa50   :  { %3774 = vmatpush1.bf16.msra.mxu0 %v9425_v60  ;;  %3815 = vmatpush1.bf16.msra.mxu1 %v9431_v24 }
 0xa51   :  { %3775 = vmatprep.subr.bf16.mxu0 %v9437_v56  ;;  %3816 = vmatprep.subr.bf16.mxu1 %v9443_v40 }
 0xa54   :  { %3776 = vmatpush1.bf16.msra.mxu0 %v9449_v18  ;;  %3817 = vmatpush1.bf16.msra.mxu1 %v9455_v26 }
 0xa55   :  { %v6095_v6 = vpop.eup %6094  ;;  %3777 = vmatprep.subr.bf16.mxu0 %v9461_v11  ;;  %3818 = vmatprep.subr.bf16.mxu1 %v9467_v33 }
 0xa56   :  { %v3616_v29 = vmul.f32 %v6095_v6, %v6093_v13  ;;  %v9623_v13 = vld [vmem:[%s10721_s7 + $0xa4] ss:$16 sps:$4 sm:$0xff]   ;;  %v9629_v6 = vld [vmem:[%s10721_s7 + $0xac] ss:$16 sps:$4 sm:$0xff]  }
 0xa57   :  { %11407 = vst [vmem:[#allocation154_spill] sm:$0xff] %v9623_v13  ;;  %11408 = vst [vmem:[#allocation155_spill] sm:$0xff] %v9629_v6 }
 0xa58   :  { %3778 = vmatpush1.bf16.msra.mxu0 %v9473_v17  ;;  %3819 = vmatpush1.bf16.msra.mxu1 %v9479_v59  ;;  %v9484_v15 = vsel %vm3632_vm3, %v3616_v29, %v9216_v62  ;;  %v3642_v31 = vpack.c.bf16 %v3616_v29, %v3616_v29  ;;  %v3645_v27 = vmax.f32 %v9228_v25, %v3616_v29  ;;  %v9635_v29 = vld [vmem:[%s10721_s7 + $0xa0] ss:$16 sps:$4 sm:$0xff]  }
 0xa59   :  { %3904 = vmatprep.subr.bf16.mxu0 %v9492_v58  ;;  %3945 = vmatprep.subr.bf16.mxu1 %v9498_v22  ;;  %11409 = vst [vmem:[#allocation156_spill] sm:$0xff] %v9635_v29 }
 0xa5a   :  { %v9502_v62 = vsel %vm3643_vm4, %v3642_v31, %v9224_v47  ;;  %v9506_v41 = vsel %vm3632_vm3, %v3645_v27, %v9228_v25  ;;  %v9519_v47 = vld [vmem:[%s10721_s7 + $0x8] ss:$16 sps:$4 sm:$0xff]   ;;  %v9525_v25 = vld [vmem:[%s10721_s7 + $0x24] ss:$16 sps:$4 sm:$0xff]  }
 0xa5b   :  { %3796 = vmatmul.mubr.bf16.vlgmr.msra.gmra.mrb[140].mxu0 %v9502_v62  ;;  %3837 = vmatmul.mubr.bf16.vlgmr.msra.gmra.mrb[140].mxu1 %v9502_v62  ;;  %11390 = vst [vmem:[#allocation137_spill] sm:$0xff] %v9519_v47  ;;  %11391 = vst [vmem:[#allocation138_spill] sm:$0xff] %v9525_v25  ;;  %v9641_v31 = vld [vmem:[%s10721_s7 + $0xa8] ss:$16 sps:$4 sm:$0xff]   ;;  %v9647_v27 = vld [vmem:[%s10721_s7 + $0xc4] ss:$16 sps:$4 sm:$0xff]  }
 0xa5c   :  { %3905 = vmatpush1.bf16.msra.mxu0 %v9513_v44  ;;  %3946 = vmatpush1.bf16.msra.mxu1 %v9519_v47  ;;  %11410 = vst [vmem:[#allocation157_spill] sm:$0xff] %v9641_v31  ;;  %11411 = vst [vmem:[#allocation18_spill] sm:$0xff] %v9647_v27 }
 0xa5d   :  { %3906 = vmatprep.subr.bf16.mxu0 %v9525_v25  ;;  %3947 = vmatprep.subr.bf16.mxu1 %v9531_v53 }
 0xa5e   :  { %3936 = vmatprep.mubr.bf16.mxu0 %v11041_v43  ;;  %3977 = vmatprep.mubr.bf16.mxu1 %v11041_v43 }
 0xa60   :  { %3907 = vmatpush1.bf16.msra.mxu0 %v9539_v28  ;;  %3948 = vmatpush1.bf16.msra.mxu1 %v9545_v46 }
 0xa61   :  { %3908 = vmatprep.subr.bf16.mxu0 %v9551_v7  ;;  %3949 = vmatprep.subr.bf16.mxu1 %v9557_v52 }
 0xa64   :  { %3909 = vmatpush1.bf16.msra.mxu0 %v9563_v12  ;;  %3950 = vmatpush1.bf16.msra.mxu1 %v9569_v55 }
 0xa65   :  { %3910 = vmatprep.subr.bf16.mxu0 %v9575_v16  ;;  %3951 = vmatprep.subr.bf16.mxu1 %v9581_v45  ;;  %v11424_v16 = vld [vmem:[#allocation41_spill] sm:$0xff] }
 0xa68   :  { %3911 = vmatpush1.bf16.msra.mxu0 %v9587_v10  ;;  %3952 = vmatpush1.bf16.msra.mxu1 %v9593_v21  ;;  %v11423_v10 = vld [vmem:[#allocation40_spill] sm:$0xff] }
 0xa69   :  { %3912 = vmatprep.subr.bf16.mxu0 %v9599_v19  ;;  %3953 = vmatprep.subr.bf16.mxu1 %v9605_v51  ;;  %v11422_v51 = vld [vmem:[#allocation39_spill] sm:$0xff] }
 0xa6c   :  { %3913 = vmatpush1.bf16.msra.mxu0 %v9611_v36  ;;  %3954 = vmatpush1.bf16.msra.mxu1 %v9617_v37  ;;  %v11421_v37 = vld [vmem:[#allocation38_spill] sm:$0xff] }
 0xa6d   :  { %3914 = vmatprep.subr.bf16.mxu0 %v9623_v13  ;;  %3955 = vmatprep.subr.bf16.mxu1 %v9629_v6  ;;  %v9653_v6 = vld [vmem:[%s10721_s7 + $0xcc] ss:$16 sps:$4 sm:$0xff]  }
 0xa6e   :  { %11412 = vst [vmem:[#allocation19_spill] sm:$0xff] %v9653_v6 }
 0xa70   :  { %3915 = vmatpush1.bf16.msra.mxu0 %v9635_v29  ;;  %3956 = vmatpush1.bf16.msra.mxu1 %v9641_v31  ;;  %v9659_v29 = vld [vmem:[%s10721_s7 + $0xc0] ss:$16 sps:$4 sm:$0xff]   ;;  %v9665_v31 = vld [vmem:[%s10721_s7 + $0xc8] ss:$16 sps:$4 sm:$0xff]  }
 0xa71   :  { %3916 = vmatprep.subr.bf16.mxu0 %v9647_v27  ;;  %3957 = vmatprep.subr.bf16.mxu1 %v9653_v6  ;;  %11413 = vst [vmem:[#allocation20_spill] sm:$0xff] %v9659_v29  ;;  %11414 = vst [vmem:[#allocation21_spill] sm:$0xff] %v9665_v31  ;;  %v9671_v27 = vld [vmem:[%s10721_s7 + $0xe4] ss:$16 sps:$4 sm:$0xff]   ;;  %v9677_v6 = vld [vmem:[%s10721_s7 + $0xec] ss:$16 sps:$4 sm:$0xff]  }
 0xa72   :  { %11415 = vst [vmem:[#allocation110_spill] sm:$0xff] %v9671_v27  ;;  %11416 = vst [vmem:[#allocation111_spill] sm:$0xff] %v9677_v6 }
 0xa74   :  { %3917 = vmatpush1.bf16.msra.mxu0 %v9659_v29  ;;  %3958 = vmatpush1.bf16.msra.mxu1 %v9665_v31  ;;  %v9683_v29 = vld [vmem:[%s10721_s7 + $0xe0] ss:$16 sps:$4 sm:$0xff]   ;;  %v9689_v31 = vld [vmem:[%s10721_s7 + $0xe8] ss:$16 sps:$4 sm:$0xff]  }
 0xa75   :  { %3918 = vmatprep.subr.bf16.mxu0 %v9671_v27  ;;  %3959 = vmatprep.subr.bf16.mxu1 %v9677_v6  ;;  %11417 = vst [vmem:[#allocation112_spill] sm:$0xff] %v9683_v29  ;;  %11418 = vst [vmem:[#allocation113_spill] sm:$0xff] %v9689_v31  ;;  %v9695_v27 = vld [vmem:[%s10722_s8 + $0x4] ss:$16 sps:$4 sm:$0xff]   ;;  %v9701_v6 = vld [vmem:[%s10722_s8 + $0xc] ss:$16 sps:$4 sm:$0xff]  }
 0xa76   :  { %11419 = vst [vmem:[#allocation22_spill] sm:$0xff] %v9695_v27  ;;  %11420 = vst [vmem:[#allocation23_spill] sm:$0xff] %v9701_v6 }
 0xa78   :  { %3919 = vmatpush1.bf16.msra.mxu0 %v9683_v29  ;;  %3960 = vmatpush1.bf16.msra.mxu1 %v9689_v31 }
 0xa79   :  { %4015 = vmatprep.subr.bf16.mxu0 %v9695_v27  ;;  %4056 = vmatprep.subr.bf16.mxu1 %v9701_v6 }
 0xb0e   :  { %v3686_v29 = vpop.f32.mrb[136].mxu0  ;;  %v3727_v13 = vpop.f32.mrb[136].mxu1 }
 0xb0f   :  { %v3687_v36 = vadd.f32 %v3686_v29, %v11421_v37  ;;  %v3728_v31 = vadd.f32 %v3727_v13, %v11422_v51  ;;  %v3688_v19 = vpop.f32.mrb[137].mxu0  ;;  %v3729_v21 = vpop.f32.mrb[137].mxu1  ;;  %v11426_v13 = vld [vmem:[#allocation91_spill] sm:$0xff] }
 0xb10   :  { %v3689_v45 = vadd.f32 %v3688_v19, %v11423_v10  ;;  %v3730_v55 = vadd.f32 %v3729_v21, %v11424_v16  ;;  %v3690_v27 = vpop.f32.mrb[138].mxu0  ;;  %v3731_v12 = vpop.f32.mrb[138].mxu1 }
 0xb11   :  { %v5617_v52 = vmul.f32 -1.442695, %v3687_v36  ;;  %v3691_v7 = vpop.f32.mrb[139].mxu0  ;;  %v3732_v46 = vpop.f32.mrb[139].mxu1 }
 0xb12   :  { %v5618_v28 = vmul.f32 -1.442695, %v3689_v45  ;;  %v5619_v6 = vmul.f32 -1.442695, %v3730_v55  ;;  %v3875_v7 = vpop.permute.xlu0 %3874 }
 0xb13   :  { %6096 = vpow2.f32 %v5617_v52  ;;  %vm3876_vm5 = vcmp.eq.s32.totalorder %v3875_v7, 1 }
 0xb14   :  { %6098 = vpow2.f32 %v5618_v28  ;;  %vm3888_vm6 = vmpackc.low %vm3876_vm5, %vm3876_vm5 }
 0xb15   :  { %6100 = vpow2.f32 %v5619_v6 }
 0xb16   :  { %6102 = vtanh.f32 %v3728_v31  ;;  %v11427_v31 = vld [vmem:[#allocation92_spill] sm:$0xff] }
 0xb1d   :  { %v6097_v53 = vpop.eup %6096 }
 0xb1e   :  { %v6099_v25 = vpop.eup %6098  ;;  %v3737_v37 = vadd.f32 1.0, %v6097_v53  ;;  %v11425_v53 = vld [vmem:[#allocation90_spill] sm:$0xff] }
 0xb1f   :  { %v3743_v51 = vadd.f32 1.0, %v6099_v25  ;;  %v6101_v10 = vpop.eup %6100 }
 0xb20   :  { %6104 = vrcp.f32 %v3737_v37  ;;  %v6103_v19 = vpop.eup %6102  ;;  %v3750_v36 = vadd.f32 1.0, %v6101_v10  ;;  %v11428_v37 = vld [vmem:[#allocation93_spill] sm:$0xff] }
 0xb21   :  { %6106 = vrcp.f32 %v3743_v51 }
 0xb22   :  { %6108 = vrcp.f32 %v3750_v36 }
 0xb2a   :  { %v6105_v16 = vpop.eup %6104 }
 0xb2b   :  { %v6107_v21 = vpop.eup %6106  ;;  %v3754_v12 = vmul.f32 %v6105_v16, %v6103_v19 }
 0xb2c   :  { %v3753_v46 = vmul.f32 %v6107_v21, %v9277_v63 }
 0xb2e   :  { %v3755_v52 = vadd.f32 %v3754_v12, %v3753_v46  ;;  %v3797_v28 = vpop.f32.mrb[140].mxu0  ;;  %v3838_v55 = vpop.f32.mrb[140].mxu1 }
 0xb2f   :  { %v3798_v45 = vadd.f32 %v3797_v28, %v11425_v53  ;;  %v3839_v25 = vadd.f32 %v3838_v55, %v11426_v13  ;;  %v3799_v6 = vpop.f32.mrb[141].mxu0  ;;  %v3840_v29 = vpop.f32.mrb[141].mxu1 }
 0xb30   :  { %6110 = vtanh.f32 %v3755_v52  ;;  %v3800_v27 = vadd.f32 %v3799_v6, %v11427_v31  ;;  %v3841_v51 = vadd.f32 %v3840_v29, %v11428_v37  ;;  %v3801_v10 = vpop.f32.mrb[142].mxu0  ;;  %v3842_v19 = vpop.f32.mrb[142].mxu1  ;;  %v9715_v16 = vsel %vm3876_vm5, %v3755_v52, %v9277_v63 }
 0xb31   :  { %v5620_v21 = vmul.f32 -1.442695, %v3798_v45  ;;  %v3802_v12 = vpop.f32.mrb[143].mxu0  ;;  %v3843_v36 = vpop.f32.mrb[143].mxu1 }
 0xb32   :  { %v5621_v46 = vmul.f32 -1.442695, %v3800_v27  ;;  %v6109_v28 = vpop.eup %6108  ;;  %v5622_v53 = vmul.f32 -1.442695, %v3841_v51  ;;  %v3883_v10 = vpop.permute.xlu1 %3882 }
 0xb33   :  { %6112 = vpow2.f32 %v5620_v21  ;;  %vm3884_vm7 = vcmp.eq.s32.totalorder %v3883_v10, 1  ;;  %v11444_v10 = vld [vmem:[#allocation152_spill] sm:$0xff] }
 0xb34   :  { %6114 = vpow2.f32 %v5621_v46  ;;  %vm3895_vm8 = vmpackc.low %vm3884_vm7, %vm3884_vm7 }
 0xb35   :  { %6116 = vpow2.f32 %v5622_v53 }
 0xb36   :  { %6118 = vtanh.f32 %v3839_v25 }
 0xb3a   :  { %v6111_v55 = vpop.eup %6110 }
 0xb3b   :  { %v3757_v13 = vmul.f32 %v6111_v55, %v6109_v28 }
 0xb3d   :  { %v6113_v47 = vpop.eup %6112  ;;  %v9719_v6 = vsel %vm3876_vm5, %v3757_v13, %v9281_v54  ;;  %v3887_v29 = vpack.c.bf16 %v3757_v13, %v3757_v13  ;;  %v3890_v31 = vmax.f32 %v9291_v9, %v3757_v13 }
 0xb3e   :  { %v6115_v63 = vpop.eup %6114  ;;  %v3848_v52 = vadd.f32 1.0, %v6113_v47 }
 0xb3f   :  { %v3854_v45 = vadd.f32 1.0, %v6115_v63  ;;  %v9725_v27 = vsel %vm3888_vm6, %v3887_v29, %v9287_v23  ;;  %v9729_v37 = vsel %vm3876_vm5, %v3890_v31, %v9291_v9  ;;  %v6117_v54 = vpop.eup %6116  ;;  %v11430_v29 = vld [vmem:[#allocation138_spill] sm:$0xff]  ;;  %v11431_v31 = vld [vmem:[#allocation139_spill] sm:$0xff] }
 0xb40   :  { %6120 = vrcp.f32 %v3848_v52  ;;  %3937 = vmatmul.mubr.bf16.vlgmr.msra.gmra.mrb[144].mxu0 %v9725_v27  ;;  %3978 = vmatmul.mubr.bf16.vlgmr.msra.gmra.mrb[144].mxu1 %v9725_v27  ;;  %v6119_v23 = vpop.eup %6118  ;;  %v3861_v25 = vadd.f32 1.0, %v6117_v54  ;;  %v11434_v63 = vld [vmem:[#allocation142_spill] sm:$0xff]  ;;  %v11435_v52 = vld [vmem:[#allocation143_spill] sm:$0xff]  ;;  %v11437_v54 = vld [vmem:[#allocation145_spill] sm:$0xff] }
 0xb41   :  { %6122 = vrcp.f32 %v3854_v45  ;;  %4016 = vmatpush1.bf16.msra.mxu0 %v9298_v5  ;;  %4057 = vmatpush1.bf16.msra.mxu1 %v9304_v1  ;;  %v11436_v45 = vld [vmem:[#allocation144_spill] sm:$0xff] }
 0xb42   :  { %4017 = vmatprep.subr.bf16.mxu0 %v9310_v42  ;;  %4058 = vmatprep.subr.bf16.mxu1 %v9316_v8  ;;  %6124 = vrcp.f32 %v3861_v25  ;;  %v11442_v25 = vld [vmem:[#allocation150_spill] sm:$0xff] }
 0xb43   :  { %4047 = vmatprep.mubr.bf16.mxu0 %v11041_v43  ;;  %4088 = vmatprep.mubr.bf16.mxu1 %v11041_v43 }
 0xb45   :  { %4018 = vmatpush1.bf16.msra.mxu0 %v9324_v14  ;;  %4059 = vmatpush1.bf16.msra.mxu1 %v9330_v20 }
 0xb46   :  { %4019 = vmatprep.subr.bf16.mxu0 %v9336_v0  ;;  %4060 = vmatprep.subr.bf16.mxu1 %v9342_v35 }
 0xb49   :  { %4020 = vmatpush1.bf16.msra.mxu0 %v9348_v38  ;;  %4061 = vmatpush1.bf16.msra.mxu1 %v9354_v4 }
 0xb4a   :  { %v6121_v9 = vpop.eup %6120  ;;  %4021 = vmatprep.subr.bf16.mxu0 %v9360_v48  ;;  %4062 = vmatprep.subr.bf16.mxu1 %v9366_v49 }
 0xb4b   :  { %v6123_v47 = vpop.eup %6122  ;;  %v3865_v7 = vmul.f32 %v6121_v9, %v6119_v23  ;;  %v11438_v23 = vld [vmem:[#allocation146_spill] sm:$0xff]  ;;  %v11439_v9 = vld [vmem:[#allocation147_spill] sm:$0xff] }
 0xb4c   :  { %v3864_v51 = vmul.f32 %v6123_v47, %v9396_v2  ;;  %v6125_v12 = vpop.eup %6124  ;;  %v11440_v47 = vld [vmem:[#allocation148_spill] sm:$0xff] }
 0xb4d   :  { %4022 = vmatpush1.bf16.msra.mxu0 %v9373_v34  ;;  %4063 = vmatpush1.bf16.msra.mxu1 %v9379_v32 }
 0xb4e   :  { %v3866_v19 = vadd.f32 %v3865_v7, %v3864_v51  ;;  %4023 = vmatprep.subr.bf16.mxu0 %v9385_v30  ;;  %4064 = vmatprep.subr.bf16.mxu1 %v9391_v61  ;;  %v11441_v7 = vld [vmem:[#allocation149_spill] sm:$0xff]  ;;  %v11443_v51 = vld [vmem:[#allocation151_spill] sm:$0xff] }
 0xb50   :  { %6126 = vtanh.f32 %v3866_v19  ;;  %v9754_v21 = vsel %vm3884_vm7, %v3866_v19, %v9396_v2  ;;  %v11445_v19 = vld [vmem:[#allocation153_spill] sm:$0xff] }
 0xb51   :  { %4024 = vmatpush1.bf16.msra.mxu0 %v9401_v3  ;;  %4065 = vmatpush1.bf16.msra.mxu1 %v9407_v57 }
 0xb52   :  { %4025 = vmatprep.subr.bf16.mxu0 %v9413_v39  ;;  %4066 = vmatprep.subr.bf16.mxu1 %v9419_v50 }
 0xb55   :  { %4026 = vmatpush1.bf16.msra.mxu0 %v9425_v60  ;;  %4067 = vmatpush1.bf16.msra.mxu1 %v9431_v24 }
 0xb56   :  { %4027 = vmatprep.subr.bf16.mxu0 %v9437_v56  ;;  %4068 = vmatprep.subr.bf16.mxu1 %v9443_v40 }
 0xb59   :  { %4028 = vmatpush1.bf16.msra.mxu0 %v9449_v18  ;;  %4069 = vmatpush1.bf16.msra.mxu1 %v9455_v26 }
 0xb5a   :  { %v6127_v2 = vpop.eup %6126  ;;  %4029 = vmatprep.subr.bf16.mxu0 %v9461_v11  ;;  %4070 = vmatprep.subr.bf16.mxu1 %v9467_v33 }
 0xb5b   :  { %v3868_v36 = vmul.f32 %v6127_v2, %v6125_v12  ;;  %v11446_v12 = vld [vmem:[#allocation154_spill] sm:$0xff]  ;;  %v11447_v2 = vld [vmem:[#allocation155_spill] sm:$0xff] }
 0xb5d   :  { %4030 = vmatpush1.bf16.msra.mxu0 %v9473_v17  ;;  %4071 = vmatpush1.bf16.msra.mxu1 %v9479_v59  ;;  %v9772_v46 = vsel %vm3884_vm7, %v3868_v36, %v9484_v15  ;;  %v3894_v28 = vpack.c.bf16 %v3868_v36, %v3868_v36  ;;  %v3897_v55 = vmax.f32 %v9506_v41, %v3868_v36  ;;  %v11429_v15 = vld [vmem:[#allocation137_spill] sm:$0xff]  ;;  %v11448_v36 = vld [vmem:[#allocation156_spill] sm:$0xff] }
 0xb5e   :  { %4156 = vmatprep.subr.bf16.mxu0 %v9492_v58  ;;  %4197 = vmatprep.subr.bf16.mxu1 %v9498_v22 }
 0xb5f   :  { %v9780_v53 = vsel %vm3895_vm8, %v3894_v28, %v9502_v62  ;;  %v9784_v13 = vsel %vm3884_vm7, %v3897_v55, %v9506_v41  ;;  %v11432_v62 = vld [vmem:[#allocation140_spill] sm:$0xff]  ;;  %v11433_v41 = vld [vmem:[#allocation141_spill] sm:$0xff]  ;;  %v11450_v55 = vld [vmem:[#allocation18_spill] sm:$0xff] }
 0xb60   :  { %4048 = vmatmul.mubr.bf16.vlgmr.msra.gmra.mrb[148].mxu0 %v9780_v53  ;;  %4089 = vmatmul.mubr.bf16.vlgmr.msra.gmra.mrb[148].mxu1 %v9780_v53  ;;  %v11449_v28 = vld [vmem:[#allocation157_spill] sm:$0xff] }
 0xb61   :  { %4157 = vmatpush1.bf16.msra.mxu0 %v9513_v44  ;;  %4198 = vmatpush1.bf16.msra.mxu1 %v11429_v15 }
 0xb62   :  { %4158 = vmatprep.subr.bf16.mxu0 %v11430_v29  ;;  %4199 = vmatprep.subr.bf16.mxu1 %v11431_v31 }
 0xb63   :  { %4188 = vmatprep.mubr.bf16.mxu0 %v11041_v43  ;;  %4229 = vmatprep.mubr.bf16.mxu1 %v11041_v43 }
 0xb65   :  { %4159 = vmatpush1.bf16.msra.mxu0 %v11432_v62  ;;  %4200 = vmatpush1.bf16.msra.mxu1 %v11433_v41 }
 0xb66   :  { %4160 = vmatprep.subr.bf16.mxu0 %v11434_v63  ;;  %4201 = vmatprep.subr.bf16.mxu1 %v11435_v52  ;;  %v11463_v52 = vld [vmem:[#allocation45_spill] sm:$0xff] }
 0xb69   :  { %4161 = vmatpush1.bf16.msra.mxu0 %v11436_v45  ;;  %4202 = vmatpush1.bf16.msra.mxu1 %v11437_v54  ;;  %v11462_v45 = vld [vmem:[#allocation44_spill] sm:$0xff] }
 0xb6a   :  { %4162 = vmatprep.subr.bf16.mxu0 %v11438_v23  ;;  %4203 = vmatprep.subr.bf16.mxu1 %v11439_v9  ;;  %v11460_v9 = vld [vmem:[#allocation42_spill] sm:$0xff]  ;;  %v11461_v23 = vld [vmem:[#allocation43_spill] sm:$0xff] }
 0xb6d   :  { %4163 = vmatpush1.bf16.msra.mxu0 %v11440_v47  ;;  %4204 = vmatpush1.bf16.msra.mxu1 %v11441_v7  ;;  %v11451_v47 = vld [vmem:[#allocation19_spill] sm:$0xff]  ;;  %v11452_v7 = vld [vmem:[#allocation20_spill] sm:$0xff] }
 0xb6e   :  { %4164 = vmatprep.subr.bf16.mxu0 %v11442_v25  ;;  %4205 = vmatprep.subr.bf16.mxu1 %v11443_v51  ;;  %v11453_v25 = vld [vmem:[#allocation21_spill] sm:$0xff]  ;;  %v11454_v51 = vld [vmem:[#allocation110_spill] sm:$0xff] }
 0xb71   :  { %4165 = vmatpush1.bf16.msra.mxu0 %v11444_v10  ;;  %4206 = vmatpush1.bf16.msra.mxu1 %v11445_v19  ;;  %v11455_v10 = vld [vmem:[#allocation111_spill] sm:$0xff]  ;;  %v11456_v19 = vld [vmem:[#allocation112_spill] sm:$0xff] }
 0xb72   :  { %4166 = vmatprep.subr.bf16.mxu0 %v11446_v12  ;;  %4207 = vmatprep.subr.bf16.mxu1 %v11447_v2  ;;  %v11457_v12 = vld [vmem:[#allocation113_spill] sm:$0xff]  ;;  %v11458_v2 = vld [vmem:[#allocation22_spill] sm:$0xff] }
 0xb75   :  { %4167 = vmatpush1.bf16.msra.mxu0 %v11448_v36  ;;  %4208 = vmatpush1.bf16.msra.mxu1 %v11449_v28  ;;  %v11459_v36 = vld [vmem:[#allocation23_spill] sm:$0xff] }
 0xb76   :  { %4168 = vmatprep.subr.bf16.mxu0 %v11450_v55  ;;  %4209 = vmatprep.subr.bf16.mxu1 %v11451_v47 }
 0xb79   :  { %4169 = vmatpush1.bf16.msra.mxu0 %v11452_v7  ;;  %4210 = vmatpush1.bf16.msra.mxu1 %v11453_v25 }
 0xb7a   :  { %4170 = vmatprep.subr.bf16.mxu0 %v11454_v51  ;;  %4211 = vmatprep.subr.bf16.mxu1 %v11455_v10 }
 0xb7d   :  { %4171 = vmatpush1.bf16.msra.mxu0 %v11456_v19  ;;  %4212 = vmatpush1.bf16.msra.mxu1 %v11457_v12 }
 0xb7e   :  { %4267 = vmatprep.subr.bf16.mxu0 %v11458_v2  ;;  %4308 = vmatprep.subr.bf16.mxu1 %v11459_v36 }
 0xc13   :  { %v3938_v28 = vpop.f32.mrb[144].mxu0  ;;  %v3979_v55 = vpop.f32.mrb[144].mxu1 }
 0xc14   :  { %v3939_v47 = vadd.f32 %v3938_v28, %v11460_v9  ;;  %v3980_v7 = vadd.f32 %v3979_v55, %v11461_v23  ;;  %v3940_v54 = vpop.f32.mrb[145].mxu0  ;;  %v3981_v25 = vpop.f32.mrb[145].mxu1  ;;  %v11466_v28 = vld [vmem:[#allocation88_spill] sm:$0xff] }
 0xc15   :  { %v3941_v51 = vadd.f32 %v3940_v54, %v11462_v45  ;;  %v3982_v10 = vadd.f32 %v3981_v25, %v11463_v52  ;;  %v3942_v63 = vpop.f32.mrb[146].mxu0  ;;  %v3983_v19 = vpop.f32.mrb[146].mxu1 }
 0xc16   :  { %v5624_v41 = vmul.f32 -1.442695, %v3939_v47  ;;  %v3943_v12 = vpop.f32.mrb[147].mxu0  ;;  %v3984_v62 = vpop.f32.mrb[147].mxu1 }
 0xc17   :  { %v5625_v2 = vmul.f32 -1.442695, %v3941_v51  ;;  %v5626_v36 = vmul.f32 -1.442695, %v3982_v10  ;;  %v4127_v51 = vpop.permute.xlu0 %4126 }
 0xc18   :  { %6128 = vpow2.f32 %v5624_v41  ;;  %vm4128_vm9 = vcmp.eq.s32.totalorder %v4127_v51, 1 }
 0xc19   :  { %6130 = vpow2.f32 %v5625_v2  ;;  %vm4140_vm10 = vmpackc.low %vm4128_vm9, %vm4128_vm9 }
 0xc1a   :  { %6132 = vpow2.f32 %v5626_v36 }
 0xc1b   :  { %6134 = vtanh.f32 %v3980_v7  ;;  %v11465_v7 = vld [vmem:[#allocation87_spill] sm:$0xff] }
 0xc22   :  { %v6129_v31 = vpop.eup %6128 }
 0xc23   :  { %v6131_v29 = vpop.eup %6130  ;;  %v3989_v9 = vadd.f32 1.0, %v6129_v31  ;;  %v11464_v31 = vld [vmem:[#allocation86_spill] sm:$0xff] }
 0xc24   :  { %v3995_v23 = vadd.f32 1.0, %v6131_v29  ;;  %v6133_v45 = vpop.eup %6132 }
 0xc25   :  { %6136 = vrcp.f32 %v3989_v9  ;;  %v6135_v54 = vpop.eup %6134  ;;  %v4002_v47 = vadd.f32 1.0, %v6133_v45  ;;  %v11467_v9 = vld [vmem:[#allocation89_spill] sm:$0xff] }
 0xc26   :  { %6138 = vrcp.f32 %v3995_v23 }
 0xc27   :  { %6140 = vrcp.f32 %v4002_v47 }
 0xc2f   :  { %v6137_v52 = vpop.eup %6136 }
 0xc30   :  { %v6139_v63 = vpop.eup %6138  ;;  %v4006_v25 = vmul.f32 %v6137_v52, %v6135_v54 }
 0xc31   :  { %v4005_v62 = vmul.f32 %v6139_v63, %v9715_v16 }
 0xc33   :  { %v4007_v41 = vadd.f32 %v4006_v25, %v4005_v62  ;;  %v4049_v19 = vpop.f32.mrb[148].mxu0  ;;  %v4090_v10 = vpop.f32.mrb[148].mxu1 }
 0xc34   :  { %v4050_v12 = vadd.f32 %v4049_v19, %v11464_v31  ;;  %v4091_v29 = vadd.f32 %v4090_v10, %v11465_v7  ;;  %v4051_v2 = vpop.f32.mrb[149].mxu0  ;;  %v4092_v36 = vpop.f32.mrb[149].mxu1 }
 0xc35   :  { %6142 = vtanh.f32 %v4007_v41  ;;  %v4052_v55 = vadd.f32 %v4051_v2, %v11466_v28  ;;  %v4093_v23 = vadd.f32 %v4092_v36, %v11467_v9  ;;  %v4053_v45 = vpop.f32.mrb[150].mxu0  ;;  %v4094_v54 = vpop.f32.mrb[150].mxu1  ;;  %v9833_v52 = vsel %vm4128_vm9, %v4007_v41, %v9715_v16 }
 0xc36   :  { %v5627_v63 = vmul.f32 -1.442695, %v4050_v12  ;;  %v4054_v25 = vpop.f32.mrb[151].mxu0  ;;  %v4095_v47 = vpop.f32.mrb[151].mxu1 }
 0xc37   :  { %v5628_v62 = vmul.f32 -1.442695, %v4052_v55  ;;  %v6141_v19 = vpop.eup %6140  ;;  %v5629_v31 = vmul.f32 -1.442695, %v4093_v23  ;;  %v4135_v45 = vpop.permute.xlu1 %4134 }
 0xc38   :  { %6144 = vpow2.f32 %v5627_v63  ;;  %vm4136_vm11 = vcmp.eq.s32.totalorder %v4135_v45, 1  ;;  %v11483_v45 = vld [vmem:[#allocation152_spill] sm:$0xff] }
 0xc39   :  { %6146 = vpow2.f32 %v5628_v62  ;;  %vm4147_vm12 = vmpackc.low %vm4136_vm11, %vm4136_vm11 }
 0xc3a   :  { %6148 = vpow2.f32 %v5629_v31 }
 0xc3b   :  { %6150 = vtanh.f32 %v4091_v29 }
 0xc3f   :  { %v6143_v10 = vpop.eup %6142 }
 0xc40   :  { %v4009_v7 = vmul.f32 %v6143_v10, %v6141_v19 }
 0xc42   :  { %v6145_v15 = vpop.eup %6144  ;;  %v9837_v2 = vsel %vm4128_vm9, %v4009_v7, %v9719_v6  ;;  %v4139_v36 = vpack.c.bf16 %v4009_v7, %v4009_v7  ;;  %v4142_v28 = vmax.f32 %v9729_v37, %v4009_v7 }
 0xc43   :  { %v6147_v16 = vpop.eup %6146  ;;  %v4100_v41 = vadd.f32 1.0, %v6145_v15 }
 0xc44   :  { %v4106_v12 = vadd.f32 1.0, %v6147_v16  ;;  %v9843_v55 = vsel %vm4140_vm10, %v4139_v36, %v9725_v27  ;;  %v9847_v9 = vsel %vm4128_vm9, %v4142_v28, %v9729_v37  ;;  %v6149_v6 = vpop.eup %6148  ;;  %v11469_v36 = vld [vmem:[#allocation138_spill] sm:$0xff]  ;;  %v11470_v28 = vld [vmem:[#allocation139_spill] sm:$0xff] }
 0xc45   :  { %6152 = vrcp.f32 %v4100_v41  ;;  %4189 = vmatmul.mubr.bf16.vlgmr.msra.gmra.mrb[152].mxu0 %v9843_v55  ;;  %4230 = vmatmul.mubr.bf16.vlgmr.msra.gmra.mrb[152].mxu1 %v9843_v55  ;;  %v6151_v27 = vpop.eup %6150  ;;  %v4113_v29 = vadd.f32 1.0, %v6149_v6  ;;  %v11473_v16 = vld [vmem:[#allocation142_spill] sm:$0xff]  ;;  %v11474_v41 = vld [vmem:[#allocation143_spill] sm:$0xff]  ;;  %v11476_v6 = vld [vmem:[#allocation145_spill] sm:$0xff] }
 0xc46   :  { %6154 = vrcp.f32 %v4106_v12  ;;  %4268 = vmatpush1.bf16.msra.mxu0 %v9298_v5  ;;  %4309 = vmatpush1.bf16.msra.mxu1 %v9304_v1  ;;  %v11475_v12 = vld [vmem:[#allocation144_spill] sm:$0xff] }
 0xc47   :  { %4269 = vmatprep.subr.bf16.mxu0 %v9310_v42  ;;  %4310 = vmatprep.subr.bf16.mxu1 %v9316_v8  ;;  %6156 = vrcp.f32 %v4113_v29  ;;  %v11481_v29 = vld [vmem:[#allocation150_spill] sm:$0xff] }
 0xc48   :  { %4299 = vmatprep.mubr.bf16.mxu0 %v11041_v43  ;;  %4340 = vmatprep.mubr.bf16.mxu1 %v11041_v43 }
 0xc4a   :  { %4270 = vmatpush1.bf16.msra.mxu0 %v9324_v14  ;;  %4311 = vmatpush1.bf16.msra.mxu1 %v9330_v20 }
 0xc4b   :  { %4271 = vmatprep.subr.bf16.mxu0 %v9336_v0  ;;  %4312 = vmatprep.subr.bf16.mxu1 %v9342_v35 }
 0xc4e   :  { %4272 = vmatpush1.bf16.msra.mxu0 %v9348_v38  ;;  %4313 = vmatpush1.bf16.msra.mxu1 %v9354_v4 }
 0xc4f   :  { %v6153_v37 = vpop.eup %6152  ;;  %4273 = vmatprep.subr.bf16.mxu0 %v9360_v48  ;;  %4314 = vmatprep.subr.bf16.mxu1 %v9366_v49 }
 0xc50   :  { %v6155_v15 = vpop.eup %6154  ;;  %v4117_v51 = vmul.f32 %v6153_v37, %v6151_v27  ;;  %v11477_v27 = vld [vmem:[#allocation146_spill] sm:$0xff]  ;;  %v11478_v37 = vld [vmem:[#allocation147_spill] sm:$0xff] }
 0xc51   :  { %v4116_v23 = vmul.f32 %v6155_v15, %v9754_v21  ;;  %v6157_v25 = vpop.eup %6156  ;;  %v11479_v15 = vld [vmem:[#allocation148_spill] sm:$0xff] }
 0xc52   :  { %4274 = vmatpush1.bf16.msra.mxu0 %v9373_v34  ;;  %4315 = vmatpush1.bf16.msra.mxu1 %v9379_v32 }
 0xc53   :  { %v4118_v54 = vadd.f32 %v4117_v51, %v4116_v23  ;;  %4275 = vmatprep.subr.bf16.mxu0 %v9385_v30  ;;  %4316 = vmatprep.subr.bf16.mxu1 %v9391_v61  ;;  %v11480_v51 = vld [vmem:[#allocation149_spill] sm:$0xff]  ;;  %v11482_v23 = vld [vmem:[#allocation151_spill] sm:$0xff] }
 0xc55   :  { %6158 = vtanh.f32 %v4118_v54  ;;  %v9872_v63 = vsel %vm4136_vm11, %v4118_v54, %v9754_v21  ;;  %v11484_v54 = vld [vmem:[#allocation153_spill] sm:$0xff] }
 0xc56   :  { %4276 = vmatpush1.bf16.msra.mxu0 %v9401_v3  ;;  %4317 = vmatpush1.bf16.msra.mxu1 %v9407_v57 }
 0xc57   :  { %4277 = vmatprep.subr.bf16.mxu0 %v9413_v39  ;;  %4318 = vmatprep.subr.bf16.mxu1 %v9419_v50 }
 0xc5a   :  { %4278 = vmatpush1.bf16.msra.mxu0 %v9425_v60  ;;  %4319 = vmatpush1.bf16.msra.mxu1 %v9431_v24 }
 0xc5b   :  { %4279 = vmatprep.subr.bf16.mxu0 %v9437_v56  ;;  %4320 = vmatprep.subr.bf16.mxu1 %v9443_v40 }
 0xc5e   :  { %4280 = vmatpush1.bf16.msra.mxu0 %v9449_v18  ;;  %4321 = vmatpush1.bf16.msra.mxu1 %v9455_v26 }
 0xc5f   :  { %v6159_v21 = vpop.eup %6158  ;;  %4281 = vmatprep.subr.bf16.mxu0 %v9461_v11  ;;  %4322 = vmatprep.subr.bf16.mxu1 %v9467_v33 }
 0xc60   :  { %v4120_v47 = vmul.f32 %v6159_v21, %v6157_v25  ;;  %v11485_v25 = vld [vmem:[#allocation154_spill] sm:$0xff]  ;;  %v11486_v21 = vld [vmem:[#allocation155_spill] sm:$0xff] }
 0xc62   :  { %4282 = vmatpush1.bf16.msra.mxu0 %v9473_v17  ;;  %4323 = vmatpush1.bf16.msra.mxu1 %v9479_v59  ;;  %v9890_v62 = vsel %vm4136_vm11, %v4120_v47, %v9772_v46  ;;  %v4146_v19 = vpack.c.bf16 %v4120_v47, %v4120_v47  ;;  %v4149_v10 = vmax.f32 %v9784_v13, %v4120_v47  ;;  %v11468_v46 = vld [vmem:[#allocation137_spill] sm:$0xff]  ;;  %v11487_v47 = vld [vmem:[#allocation156_spill] sm:$0xff] }
 0xc63   :  { %4408 = vmatprep.subr.bf16.mxu0 %v9492_v58  ;;  %4449 = vmatprep.subr.bf16.mxu1 %v9498_v22 }
 0xc64   :  { %v9898_v31 = vsel %vm4147_vm12, %v4146_v19, %v9780_v53  ;;  %v9902_v7 = vsel %vm4136_vm11, %v4149_v10, %v9784_v13  ;;  %v11471_v53 = vld [vmem:[#allocation140_spill] sm:$0xff]  ;;  %v11472_v13 = vld [vmem:[#allocation141_spill] sm:$0xff]  ;;  %v11489_v10 = vld [vmem:[#allocation18_spill] sm:$0xff] }
 0xc65   :  { %4300 = vmatmul.mubr.bf16.vlgmr.msra.gmra.mrb[156].mxu0 %v9898_v31  ;;  %4341 = vmatmul.mubr.bf16.vlgmr.msra.gmra.mrb[156].mxu1 %v9898_v31  ;;  %v11488_v19 = vld [vmem:[#allocation157_spill] sm:$0xff] }
 0xc66   :  { %4409 = vmatpush1.bf16.msra.mxu0 %v9513_v44  ;;  %4450 = vmatpush1.bf16.msra.mxu1 %v11468_v46 }
 0xc67   :  { %4410 = vmatprep.subr.bf16.mxu0 %v11469_v36  ;;  %4451 = vmatprep.subr.bf16.mxu1 %v11470_v28 }
 0xc68   :  { %4440 = vmatprep.mubr.bf16.mxu0 %v11041_v43  ;;  %4481 = vmatprep.mubr.bf16.mxu1 %v11041_v43 }
 0xc6a   :  { %4411 = vmatpush1.bf16.msra.mxu0 %v11471_v53  ;;  %4452 = vmatpush1.bf16.msra.mxu1 %v11472_v13 }
 0xc6b   :  { %4412 = vmatprep.subr.bf16.mxu0 %v11473_v16  ;;  %4453 = vmatprep.subr.bf16.mxu1 %v11474_v41  ;;  %v11502_v41 = vld [vmem:[#allocation49_spill] sm:$0xff] }
 0xc6e   :  { %4413 = vmatpush1.bf16.msra.mxu0 %v11475_v12  ;;  %4454 = vmatpush1.bf16.msra.mxu1 %v11476_v6  ;;  %v11501_v12 = vld [vmem:[#allocation48_spill] sm:$0xff] }
 0xc6f   :  { %4414 = vmatprep.subr.bf16.mxu0 %v11477_v27  ;;  %4455 = vmatprep.subr.bf16.mxu1 %v11478_v37  ;;  %v11499_v37 = vld [vmem:[#allocation46_spill] sm:$0xff]  ;;  %v11500_v27 = vld [vmem:[#allocation47_spill] sm:$0xff] }
 0xc72   :  { %4415 = vmatpush1.bf16.msra.mxu0 %v11479_v15  ;;  %4456 = vmatpush1.bf16.msra.mxu1 %v11480_v51  ;;  %v11490_v15 = vld [vmem:[#allocation19_spill] sm:$0xff]  ;;  %v11491_v51 = vld [vmem:[#allocation20_spill] sm:$0xff] }
 0xc73   :  { %4416 = vmatprep.subr.bf16.mxu0 %v11481_v29  ;;  %4457 = vmatprep.subr.bf16.mxu1 %v11482_v23  ;;  %v11492_v29 = vld [vmem:[#allocation21_spill] sm:$0xff]  ;;  %v11493_v23 = vld [vmem:[#allocation110_spill] sm:$0xff] }
 0xc76   :  { %4417 = vmatpush1.bf16.msra.mxu0 %v11483_v45  ;;  %4458 = vmatpush1.bf16.msra.mxu1 %v11484_v54  ;;  %v11494_v45 = vld [vmem:[#allocation111_spill] sm:$0xff]  ;;  %v11495_v54 = vld [vmem:[#allocation112_spill] sm:$0xff] }
 0xc77   :  { %4418 = vmatprep.subr.bf16.mxu0 %v11485_v25  ;;  %4459 = vmatprep.subr.bf16.mxu1 %v11486_v21  ;;  %v11496_v25 = vld [vmem:[#allocation113_spill] sm:$0xff]  ;;  %v11497_v21 = vld [vmem:[#allocation22_spill] sm:$0xff] }
 0xc7a   :  { %4419 = vmatpush1.bf16.msra.mxu0 %v11487_v47  ;;  %4460 = vmatpush1.bf16.msra.mxu1 %v11488_v19  ;;  %v11498_v47 = vld [vmem:[#allocation23_spill] sm:$0xff] }
 0xc7b   :  { %4420 = vmatprep.subr.bf16.mxu0 %v11489_v10  ;;  %4461 = vmatprep.subr.bf16.mxu1 %v11490_v15 }
 0xc7e   :  { %4421 = vmatpush1.bf16.msra.mxu0 %v11491_v51  ;;  %4462 = vmatpush1.bf16.msra.mxu1 %v11492_v29 }
 0xc7f   :  { %4422 = vmatprep.subr.bf16.mxu0 %v11493_v23  ;;  %4463 = vmatprep.subr.bf16.mxu1 %v11494_v45 }
 0xc82   :  { %4423 = vmatpush1.bf16.msra.mxu0 %v11495_v54  ;;  %4464 = vmatpush1.bf16.msra.mxu1 %v11496_v25 }
 0xc83   :  { %4519 = vmatprep.subr.bf16.mxu0 %v11497_v21  ;;  %4560 = vmatprep.subr.bf16.mxu1 %v11498_v47 }
 0xd18   :  { %v4190_v19 = vpop.f32.mrb[152].mxu0  ;;  %v4231_v10 = vpop.f32.mrb[152].mxu1 }
 0xd19   :  { %v4191_v15 = vadd.f32 %v4190_v19, %v11499_v37  ;;  %v4232_v51 = vadd.f32 %v4231_v10, %v11500_v27  ;;  %v4192_v6 = vpop.f32.mrb[153].mxu0  ;;  %v4233_v29 = vpop.f32.mrb[153].mxu1  ;;  %v11505_v19 = vld [vmem:[#allocation84_spill] sm:$0xff] }
 0xd1a   :  { %v4193_v23 = vadd.f32 %v4192_v6, %v11501_v12  ;;  %v4234_v45 = vadd.f32 %v4233_v29, %v11502_v41  ;;  %v4194_v16 = vpop.f32.mrb[154].mxu0  ;;  %v4235_v54 = vpop.f32.mrb[154].mxu1 }
 0xd1b   :  { %v5631_v13 = vmul.f32 -1.442695, %v4191_v15  ;;  %v4195_v25 = vpop.f32.mrb[155].mxu0  ;;  %v4236_v53 = vpop.f32.mrb[155].mxu1 }
 0xd1c   :  { %v5632_v21 = vmul.f32 -1.442695, %v4193_v23  ;;  %v5633_v47 = vmul.f32 -1.442695, %v4234_v45  ;;  %v4379_v23 = vpop.permute.xlu0 %4378 }
 0xd1d   :  { %6160 = vpow2.f32 %v5631_v13  ;;  %vm4380_vm13 = vcmp.eq.s32.totalorder %v4379_v23, 1  ;;  %v11530_v23 = vld [vmem:[#allocation20_spill] sm:$0xff] }
 0xd1e   :  { %6162 = vpow2.f32 %v5632_v21  ;;  %vm4392_vm14 = vmpackc.low %vm4380_vm13, %vm4380_vm13 }
 0xd1f   :  { %6164 = vpow2.f32 %v5633_v47 }
 0xd20   :  { %6166 = vtanh.f32 %v4232_v51  ;;  %v11504_v51 = vld [vmem:[#allocation83_spill] sm:$0xff] }
 0xd27   :  { %v6161_v28 = vpop.eup %6160 }
 0xd28   :  { %v6163_v36 = vpop.eup %6162  ;;  %v4241_v37 = vadd.f32 1.0, %v6161_v28  ;;  %v11503_v28 = vld [vmem:[#allocation82_spill] sm:$0xff] }
 0xd29   :  { %v4247_v27 = vadd.f32 1.0, %v6163_v36  ;;  %v6165_v12 = vpop.eup %6164 }
 0xd2a   :  { %6168 = vrcp.f32 %v4241_v37  ;;  %v6167_v6 = vpop.eup %6166  ;;  %v4254_v15 = vadd.f32 1.0, %v6165_v12  ;;  %v11506_v37 = vld [vmem:[#allocation85_spill] sm:$0xff] }
 0xd2b   :  { %6170 = vrcp.f32 %v4247_v27 }
 0xd2c   :  { %6172 = vrcp.f32 %v4254_v15 }
 0xd34   :  { %v6169_v41 = vpop.eup %6168 }
 0xd35   :  { %v6171_v16 = vpop.eup %6170  ;;  %v4258_v29 = vmul.f32 %v6169_v41, %v6167_v6 }
 0xd36   :  { %v4257_v53 = vmul.f32 %v6171_v16, %v9833_v52 }
 0xd38   :  { %v4259_v13 = vadd.f32 %v4258_v29, %v4257_v53  ;;  %v4301_v54 = vpop.f32.mrb[156].mxu0  ;;  %v4342_v45 = vpop.f32.mrb[156].mxu1 }
 0xd39   :  { %v4302_v25 = vadd.f32 %v4301_v54, %v11503_v28  ;;  %v4343_v36 = vadd.f32 %v4342_v45, %v11504_v51  ;;  %v4303_v21 = vpop.f32.mrb[157].mxu0  ;;  %v4344_v47 = vpop.f32.mrb[157].mxu1 }
 0xd3a   :  { %6174 = vtanh.f32 %v4259_v13  ;;  %v4304_v10 = vadd.f32 %v4303_v21, %v11505_v19  ;;  %v4345_v27 = vadd.f32 %v4344_v47, %v11506_v37  ;;  %v4305_v12 = vpop.f32.mrb[158].mxu0  ;;  %v4346_v6 = vpop.f32.mrb[158].mxu1  ;;  %v9951_v41 = vsel %vm4380_vm13, %v4259_v13, %v9833_v52 }
 0xd3b   :  { %v5634_v16 = vmul.f32 -1.442695, %v4302_v25  ;;  %v4306_v29 = vpop.f32.mrb[159].mxu0  ;;  %v4347_v15 = vpop.f32.mrb[159].mxu1  ;;  %v11533_v12 = vld [vmem:[#allocation111_spill] sm:$0xff]  ;;  %v11534_v6 = vld [vmem:[#allocation112_spill] sm:$0xff] }
 0xd3c   :  { %v5635_v53 = vmul.f32 -1.442695, %v4304_v10  ;;  %v6173_v54 = vpop.eup %6172  ;;  %v5636_v28 = vmul.f32 -1.442695, %v4345_v27  ;;  %v11532_v27 = vld [vmem:[#allocation110_spill] sm:$0xff]  ;;  %v11537_v15 = vld [vmem:[#allocation23_spill] sm:$0xff] }
 0xd3d   :  { %6176 = vpow2.f32 %v5634_v16  ;;  %v11535_v16 = vld [vmem:[#allocation113_spill] sm:$0xff]  ;;  %v11536_v29 = vld [vmem:[#allocation22_spill] sm:$0xff] }
 0xd3e   :  { %6178 = vpow2.f32 %v5635_v53 }
 0xd3f   :  { %6180 = vpow2.f32 %v5636_v28 }
 0xd40   :  { %6182 = vtanh.f32 %v4343_v36  ;;  %v11531_v36 = vld [vmem:[#allocation21_spill] sm:$0xff] }
 0xd44   :  { %v6175_v45 = vpop.eup %6174 }
 0xd45   :  { %v4261_v51 = vmul.f32 %v6175_v45, %v6173_v54  ;;  %v11538_v45 = vld [vmem:[#allocation50_spill] sm:$0xff] }
 0xd47   :  { %v6177_v46 = vpop.eup %6176  ;;  %v9955_v21 = vsel %vm4380_vm13, %v4261_v51, %v9837_v2  ;;  %v4391_v47 = vpack.c.bf16 %v4261_v51, %v4261_v51  ;;  %v4394_v19 = vmax.f32 %v9847_v9, %v4261_v51  ;;  %v11539_v51 = vld [vmem:[#allocation51_spill] sm:$0xff] }
 0xd48   :  { %v6179_v52 = vpop.eup %6178  ;;  %v4352_v13 = vadd.f32 1.0, %v6177_v46  ;;  %v11529_v46 = vld [vmem:[#allocation19_spill] sm:$0xff] }
 0xd49   :  { %v4358_v25 = vadd.f32 1.0, %v6179_v52  ;;  %v9961_v10 = vsel %vm4392_vm14, %v4391_v47, %v9843_v55  ;;  %v9965_v37 = vsel %vm4380_vm13, %v4394_v19, %v9847_v9  ;;  %v6181_v2 = vpop.eup %6180  ;;  %v11523_v55 = vld [vmem:[#allocation153_spill] sm:$0xff]  ;;  %v11524_v9 = vld [vmem:[#allocation154_spill] sm:$0xff] }
 0xd4a   :  { %6184 = vrcp.f32 %v4352_v13  ;;  %4441 = vmatmul.mubr.bf16.vlgmr.msra.gmra.mrb[160].mxu0 %v9961_v10  ;;  %4482 = vmatmul.mubr.bf16.vlgmr.msra.gmra.mrb[160].mxu1 %v9961_v10  ;;  %v11540_v13 = vld [vmem:[#allocation52_spill] sm:$0xff] }
 0xd4b   :  { %6186 = vrcp.f32 %v4358_v25  ;;  %4520 = vmatpush1.bf16.msra.mxu0 %v9298_v5  ;;  %4561 = vmatpush1.bf16.msra.mxu1 %v9304_v1  ;;  %v6183_v5 = vpop.eup %6182 }
 0xd4c   :  { %4521 = vmatprep.subr.bf16.mxu0 %v9310_v42  ;;  %4562 = vmatprep.subr.bf16.mxu1 %v9316_v8 }
 0xd4d   :  { %4551 = vmatprep.mubr.bf16.mxu0 %v11041_v43  ;;  %4592 = vmatprep.mubr.bf16.mxu1 %v11041_v43 }
 0xd4f   :  { %4522 = vmatpush1.bf16.msra.mxu0 %v9324_v14  ;;  %4563 = vmatpush1.bf16.msra.mxu1 %v9330_v20  ;;  %v4365_v14 = vadd.f32 1.0, %v6181_v2  ;;  %v11541_v2 = vld [vmem:[#allocation53_spill] sm:$0xff] }
 0xd50   :  { %4523 = vmatprep.subr.bf16.mxu0 %v9336_v0  ;;  %4564 = vmatprep.subr.bf16.mxu1 %v9342_v35  ;;  %v4387_v0 = vpop.permute.xlu1 %4386 }
 0xd51   :  { %vm4388_vm15 = vcmp.eq.s32.totalorder %v4387_v0, 1  ;;  %6188 = vrcp.f32 %v4365_v14 }
 0xd52   :  { %vm4399_vm0 = vmpackc.low %vm4388_vm15, %vm4388_vm15 }
 0xd53   :  { %4524 = vmatpush1.bf16.msra.mxu0 %v9348_v38  ;;  %4565 = vmatpush1.bf16.msra.mxu1 %v9354_v4 }
 0xd54   :  { %v6185_v1 = vpop.eup %6184  ;;  %4525 = vmatprep.subr.bf16.mxu0 %v9360_v48  ;;  %4566 = vmatprep.subr.bf16.mxu1 %v9366_v49 }
 0xd55   :  { %v6187_v42 = vpop.eup %6186  ;;  %v4369_v8 = vmul.f32 %v6185_v1, %v6183_v5 }
 0xd56   :  { %v4368_v20 = vmul.f32 %v6187_v42, %v9872_v63 }
 0xd57   :  { %4526 = vmatpush1.bf16.msra.mxu0 %v9373_v34  ;;  %4567 = vmatpush1.bf16.msra.mxu1 %v9379_v32 }
 0xd58   :  { %v4370_v35 = vadd.f32 %v4369_v8, %v4368_v20  ;;  %4527 = vmatprep.subr.bf16.mxu0 %v9385_v30  ;;  %4568 = vmatprep.subr.bf16.mxu1 %v9391_v61 }
 0xd5a   :  { %6190 = vtanh.f32 %v4370_v35  ;;  %v9990_v38 = vsel %vm4388_vm15, %v4370_v35, %v9872_v63  ;;  %v11525_v63 = vld [vmem:[#allocation155_spill] sm:$0xff] }
 0xd5b   :  { %4528 = vmatpush1.bf16.msra.mxu0 %v9401_v3  ;;  %4569 = vmatpush1.bf16.msra.mxu1 %v9407_v57  ;;  %v6189_v4 = vpop.eup %6188  ;;  %v11507_v57 = vld [vmem:[#allocation137_spill] sm:$0xff] }
 0xd5c   :  { %4529 = vmatprep.subr.bf16.mxu0 %v9413_v39  ;;  %4570 = vmatprep.subr.bf16.mxu1 %v9419_v50  ;;  %v11508_v39 = vld [vmem:[#allocation138_spill] sm:$0xff]  ;;  %v11509_v50 = vld [vmem:[#allocation139_spill] sm:$0xff] }
 0xd5f   :  { %4530 = vmatpush1.bf16.msra.mxu0 %v9425_v60  ;;  %4571 = vmatpush1.bf16.msra.mxu1 %v9431_v24  ;;  %v11510_v60 = vld [vmem:[#allocation140_spill] sm:$0xff]  ;;  %v11511_v24 = vld [vmem:[#allocation141_spill] sm:$0xff] }
 0xd60   :  { %4531 = vmatprep.subr.bf16.mxu0 %v9437_v56  ;;  %4572 = vmatprep.subr.bf16.mxu1 %v9443_v40  ;;  %v11512_v56 = vld [vmem:[#allocation142_spill] sm:$0xff]  ;;  %v11513_v40 = vld [vmem:[#allocation143_spill] sm:$0xff] }
 0xd63   :  { %4532 = vmatpush1.bf16.msra.mxu0 %v9449_v18  ;;  %4573 = vmatpush1.bf16.msra.mxu1 %v9455_v26  ;;  %v11514_v18 = vld [vmem:[#allocation144_spill] sm:$0xff]  ;;  %v11515_v26 = vld [vmem:[#allocation145_spill] sm:$0xff] }
 0xd64   :  { %v6191_v48 = vpop.eup %6190  ;;  %4533 = vmatprep.subr.bf16.mxu0 %v9461_v11  ;;  %4574 = vmatprep.subr.bf16.mxu1 %v9467_v33  ;;  %v11516_v11 = vld [vmem:[#allocation146_spill] sm:$0xff]  ;;  %v11517_v33 = vld [vmem:[#allocation147_spill] sm:$0xff] }
 0xd65   :  { %v4372_v49 = vmul.f32 %v6191_v48, %v6189_v4 }
 0xd67   :  { %4534 = vmatpush1.bf16.msra.mxu0 %v9473_v17  ;;  %4575 = vmatpush1.bf16.msra.mxu1 %v9479_v59  ;;  %v10008_v34 = vsel %vm4388_vm15, %v4372_v49, %v9890_v62  ;;  %v4398_v32 = vpack.c.bf16 %v4372_v49, %v4372_v49  ;;  %v4401_v30 = vmax.f32 %v9902_v7, %v4372_v49  ;;  %v11518_v17 = vld [vmem:[#allocation148_spill] sm:$0xff]  ;;  %v11519_v59 = vld [vmem:[#allocation149_spill] sm:$0xff] }
 0xd68   :  { %4660 = vmatprep.subr.bf16.mxu0 %v9492_v58  ;;  %4701 = vmatprep.subr.bf16.mxu1 %v9498_v22  ;;  %v11520_v58 = vld [vmem:[#allocation150_spill] sm:$0xff]  ;;  %v11521_v22 = vld [vmem:[#allocation151_spill] sm:$0xff]  ;;  %v11526_v62 = vld [vmem:[#allocation156_spill] sm:$0xff] }
 0xd69   :  { %v10016_v61 = vsel %vm4399_vm0, %v4398_v32, %v9898_v31  ;;  %v10020_v3 = vsel %vm4388_vm15, %v4401_v30, %v9902_v7  ;;  %v11527_v31 = vld [vmem:[#allocation157_spill] sm:$0xff]  ;;  %v11528_v7 = vld [vmem:[#allocation18_spill] sm:$0xff] }
 0xd6a   :  { %4552 = vmatmul.mubr.bf16.vlgmr.msra.gmra.mrb[164].mxu0 %v10016_v61  ;;  %4593 = vmatmul.mubr.bf16.vlgmr.msra.gmra.mrb[164].mxu1 %v10016_v61 }
 0xd6b   :  { %4661 = vmatpush1.bf16.msra.mxu0 %v9513_v44  ;;  %4702 = vmatpush1.bf16.msra.mxu1 %v11507_v57  ;;  %v11522_v44 = vld [vmem:[#allocation152_spill] sm:$0xff] }
 0xd6c   :  { %4662 = vmatprep.subr.bf16.mxu0 %v11508_v39  ;;  %4703 = vmatprep.subr.bf16.mxu1 %v11509_v50 }
 0xd6d   :  { %4692 = vmatprep.mubr.bf16.mxu0 %v11041_v43  ;;  %4733 = vmatprep.mubr.bf16.mxu1 %v11041_v43 }
 0xd6f   :  { %4663 = vmatpush1.bf16.msra.mxu0 %v11510_v60  ;;  %4704 = vmatpush1.bf16.msra.mxu1 %v11511_v24 }
 0xd70   :  { %4664 = vmatprep.subr.bf16.mxu0 %v11512_v56  ;;  %4705 = vmatprep.subr.bf16.mxu1 %v11513_v40  ;;  %v4631_v40 = vpop.permute.xlu0 %4630 }
 0xd71   :  { %vm4632_vm1 = vcmp.eq.s32.totalorder %v4631_v40, 1 }
 0xd72   :  { %vm4644_vm2 = vmpackc.low %vm4632_vm1, %vm4632_vm1 }
 0xd73   :  { %4665 = vmatpush1.bf16.msra.mxu0 %v11514_v18  ;;  %4706 = vmatpush1.bf16.msra.mxu1 %v11515_v26 }
 0xd74   :  { %4666 = vmatprep.subr.bf16.mxu0 %v11516_v11  ;;  %4707 = vmatprep.subr.bf16.mxu1 %v11517_v33  ;;  %v11542_v33 = vld [vmem:[#allocation78_spill] sm:$0xff] }
 0xd77   :  { %4667 = vmatpush1.bf16.msra.mxu0 %v11518_v17  ;;  %4708 = vmatpush1.bf16.msra.mxu1 %v11519_v59  ;;  %v11543_v59 = vld [vmem:[#allocation79_spill] sm:$0xff] }
 0xd78   :  { %4668 = vmatprep.subr.bf16.mxu0 %v11520_v58  ;;  %4709 = vmatprep.subr.bf16.mxu1 %v11521_v22 }
 0xd7b   :  { %4669 = vmatpush1.bf16.msra.mxu0 %v11522_v44  ;;  %4710 = vmatpush1.bf16.msra.mxu1 %v11523_v55  ;;  %v11544_v55 = vld [vmem:[#allocation80_spill] sm:$0xff] }
 0xd7c   :  { %4670 = vmatprep.subr.bf16.mxu0 %v11524_v9  ;;  %4711 = vmatprep.subr.bf16.mxu1 %v11525_v63  ;;  %v11545_v63 = vld [vmem:[#allocation81_spill] sm:$0xff] }
 0xd7f   :  { %4671 = vmatpush1.bf16.msra.mxu0 %v11526_v62  ;;  %4712 = vmatpush1.bf16.msra.mxu1 %v11527_v31 }
 0xd80   :  { %4672 = vmatprep.subr.bf16.mxu0 %v11528_v7  ;;  %4713 = vmatprep.subr.bf16.mxu1 %v11529_v46 }
 0xd83   :  { %4673 = vmatpush1.bf16.msra.mxu0 %v11530_v23  ;;  %4714 = vmatpush1.bf16.msra.mxu1 %v11531_v36 }
 0xd84   :  { %4674 = vmatprep.subr.bf16.mxu0 %v11532_v27  ;;  %4715 = vmatprep.subr.bf16.mxu1 %v11533_v12 }
 0xd87   :  { %4675 = vmatpush1.bf16.msra.mxu0 %v11534_v6  ;;  %4716 = vmatpush1.bf16.msra.mxu1 %v11535_v16 }
 0xd88   :  { %4771 = vmatprep.subr.bf16.mxu0 %v11536_v29  ;;  %4812 = vmatprep.subr.bf16.mxu1 %v11537_v15 }
 0xe1d   :  { %v4442_v53 = vpop.f32.mrb[160].mxu0  ;;  %v4483_v54 = vpop.f32.mrb[160].mxu1 }
 0xe1e   :  { %v4443_v28 = vadd.f32 %v4442_v53, %v11538_v45  ;;  %v4484_v47 = vadd.f32 %v4483_v54, %v11539_v51  ;;  %v4444_v19 = vpop.f32.mrb[161].mxu0  ;;  %v4485_v52 = vpop.f32.mrb[161].mxu1 }
 0xe1f   :  { %v4445_v25 = vadd.f32 %v4444_v19, %v11540_v13  ;;  %v4486_v5 = vadd.f32 %v4485_v52, %v11541_v2  ;;  %v4446_v1 = vpop.f32.mrb[162].mxu0  ;;  %v4487_v42 = vpop.f32.mrb[162].mxu1  ;;  %v10108_v13 = vld [vmem:[%s10722_s8 + $0x2c] ss:$16 sps:$4 sm:$0xff]   ;;  %v10122_v2 = vld [vmem:[%s10722_s8 + $0x28] ss:$16 sps:$4 sm:$0xff]  }
 0xe20   :  { %v5638_v8 = vmul.f32 -1.442695, %v4443_v28  ;;  %v4447_v14 = vpop.f32.mrb[163].mxu0  ;;  %v4488_v20 = vpop.f32.mrb[163].mxu1  ;;  %v10134_v1 = vld [vmem:[%s10722_s8 + $0x4c] ss:$16 sps:$4 sm:$0xff]  }
 0xe21   :  { %v5639_v0 = vmul.f32 -1.442695, %v4445_v25  ;;  %v5640_v35 = vmul.f32 -1.442695, %v4486_v5  ;;  %v10116_v25 = vld [vmem:[%s10722_s8 + $0x20] ss:$16 sps:$4 sm:$0xff]  }
 0xe22   :  { %6192 = vpow2.f32 %v5638_v8  ;;  %v10128_v5 = vld [vmem:[%s10722_s8 + $0x44] ss:$16 sps:$4 sm:$0xff]   ;;  %v10140_v14 = vld [vmem:[%s10722_s8 + $0x40] ss:$16 sps:$4 sm:$0xff]   ;;  %v10146_v20 = vld [vmem:[%s10722_s8 + $0x48] ss:$16 sps:$4 sm:$0xff]  }
 0xe23   :  { %6194 = vpow2.f32 %v5639_v0 }
 0xe24   :  { %6196 = vpow2.f32 %v5640_v35  ;;  %v10152_v35 = vld [vmem:[%s10722_s8 + $0x64] ss:$16 sps:$4 sm:$0xff]  }
 0xe25   :  { %6198 = vtanh.f32 %v4484_v47 }
 0xe2c   :  { %v6193_v4 = vpop.eup %6192 }
 0xe2d   :  { %v6195_v48 = vpop.eup %6194  ;;  %v4493_v49 = vadd.f32 1.0, %v6193_v4  ;;  %v10158_v4 = vld [vmem:[%s10722_s8 + $0x6c] ss:$16 sps:$4 sm:$0xff]  }
 0xe2e   :  { %v4499_v32 = vadd.f32 1.0, %v6195_v48  ;;  %v6197_v30 = vpop.eup %6196 }
 0xe2f   :  { %6200 = vrcp.f32 %v4493_v49  ;;  %v6199_v57 = vpop.eup %6198  ;;  %v4506_v24 = vadd.f32 1.0, %v6197_v30 }
 0xe30   :  { %6202 = vrcp.f32 %v4499_v32 }
 0xe31   :  { %6204 = vrcp.f32 %v4506_v24  ;;  %v10177_v24 = vld [vmem:[%s10722_s8 + $0x84] ss:$16 sps:$4 sm:$0xff]  }
 0xe39   :  { %v6201_v39 = vpop.eup %6200 }
 0xe3a   :  { %v6203_v50 = vpop.eup %6202  ;;  %v4510_v60 = vmul.f32 %v6201_v39, %v6199_v57  ;;  %v10165_v57 = vld [vmem:[%s10722_s8 + $0x60] ss:$16 sps:$4 sm:$0xff]   ;;  %v10171_v39 = vld [vmem:[%s10722_s8 + $0x68] ss:$16 sps:$4 sm:$0xff]  }
 0xe3b   :  { %v4509_v56 = vmul.f32 %v6203_v50, %v9951_v41  ;;  %v6205_v6 = vpop.eup %6204  ;;  %v4639_v50 = vpop.permute.xlu1 %4638 }
 0xe3c   :  { %vm4640_vm3 = vcmp.eq.s32.totalorder %v4639_v50, 1  ;;  %v10403_v50 = vld [vmem:[%s10721_s7 + $0x80] ss:$16 sps:$4 sm:$0xff]  }
 0xe3d   :  { %v4511_v18 = vadd.f32 %v4510_v60, %v4509_v56  ;;  %v4553_v26 = vpop.f32.mrb[164].mxu0  ;;  %v4594_v11 = vpop.f32.mrb[164].mxu1  ;;  %v10183_v56 = vld [vmem:[%s10722_s8 + $0x8c] ss:$16 sps:$4 sm:$0xff]   ;;  %vm4651_vm4 = vmpackc.low %vm4640_vm3, %vm4640_vm3  ;;  %11561 = vst [vmem:[#allocation31_spill] sm:$0xff] %v10403_v50 }
 0xe3e   :  { %v4554_v17 = vadd.f32 %v4553_v26, %v11542_v33  ;;  %v4595_v58 = vadd.f32 %v4594_v11, %v11543_v59  ;;  %v4555_v22 = vpop.f32.mrb[165].mxu0  ;;  %v4596_v44 = vpop.f32.mrb[165].mxu1  ;;  %v10199_v26 = vld [vmem:[%s10722_s8 + $0x88] ss:$16 sps:$4 sm:$0xff]   ;;  %v10205_v11 = vld [vmem:[%s10722_s8 + $0xa4] ss:$16 sps:$4 sm:$0xff]  }
 0xe3f   :  { %6206 = vtanh.f32 %v4511_v18  ;;  %v4556_v9 = vadd.f32 %v4555_v22, %v11544_v55  ;;  %v4597_v62 = vadd.f32 %v4596_v44, %v11545_v63  ;;  %v4557_v31 = vpop.f32.mrb[166].mxu0  ;;  %v4598_v7 = vpop.f32.mrb[166].mxu1  ;;  %v10069_v46 = vsel %vm4632_vm1, %v4511_v18, %v9951_v41  ;;  %v10193_v18 = vld [vmem:[%s10722_s8 + $0x80] ss:$16 sps:$4 sm:$0xff]   ;;  %v10229_v59 = vld [vmem:[%s10722_s8 + $0xc4] ss:$16 sps:$4 sm:$0xff]  }
 0xe40   :  { %v5641_v23 = vmul.f32 -1.442695, %v4554_v17  ;;  %v4558_v36 = vpop.f32.mrb[167].mxu0  ;;  %v4599_v27 = vpop.f32.mrb[167].mxu1  ;;  %v10217_v33 = vld [vmem:[%s10722_s8 + $0xa0] ss:$16 sps:$4 sm:$0xff]  }
 0xe41   :  { %v5642_v12 = vmul.f32 -1.442695, %v4556_v9  ;;  %v5643_v29 = vmul.f32 -1.442695, %v4597_v62  ;;  %v10223_v17 = vld [vmem:[%s10722_s8 + $0xa8] ss:$16 sps:$4 sm:$0xff]  }
 0xe42   :  { %6208 = vpow2.f32 %v5641_v23  ;;  %v10241_v44 = vld [vmem:[%s10722_s8 + $0xc0] ss:$16 sps:$4 sm:$0xff]   ;;  %v10247_v55 = vld [vmem:[%s10722_s8 + $0xc8] ss:$16 sps:$4 sm:$0xff]   ;;  %v10253_v63 = vld [vmem:[%s10722_s8 + $0xe4] ss:$16 sps:$4 sm:$0xff]  }
 0xe43   :  { %6210 = vpow2.f32 %v5642_v12  ;;  %v10259_v62 = vld [vmem:[%s10722_s8 + $0xec] ss:$16 sps:$4 sm:$0xff]   ;;  %v10265_v7 = vld [vmem:[%s10722_s8 + $0xe0] ss:$16 sps:$4 sm:$0xff]   ;;  %v10271_v23 = vld [vmem:[%s10722_s8 + $0xe8] ss:$16 sps:$4 sm:$0xff]  }
 0xe44   :  { %6212 = vpow2.f32 %v5643_v29 }
 0xe45   :  { %6214 = vtanh.f32 %v4595_v58  ;;  %v10235_v58 = vld [vmem:[%s10722_s8 + $0xcc] ss:$16 sps:$4 sm:$0xff]  }
 0xe49   :  { %v6207_v16 = vpop.eup %6206 }
 0xe4a   :  { %v4513_v15 = vmul.f32 %v6207_v16, %v6205_v6  ;;  %v10284_v6 = vld [vmem:[%s10721_s7 + $0x4] ss:$16 sps:$4 sm:$0xff]   ;;  %v10290_v16 = vld [vmem:[%s10721_s7 + $0xc] ss:$16 sps:$4 sm:$0xff]  }
 0xe4c   :  { %v6209_v53 = vpop.eup %6208  ;;  %v10073_v54 = vsel %vm4632_vm1, %v4513_v15, %v9955_v21  ;;  %v4643_v45 = vpack.c.bf16 %v4513_v15, %v4513_v15  ;;  %v4646_v28 = vmax.f32 %v9965_v37, %v4513_v15  ;;  %v10090_v21 = vld [vmem:[%s10722_s8] ss:$16 sps:$4 sm:$0xff]  }
 0xe4d   :  { %v6211_v41 = vpop.eup %6210  ;;  %v4604_v51 = vadd.f32 1.0, %v6209_v53  ;;  %v10305_v15 = vld [vmem:[%s10721_s7] ss:$16 sps:$4 sm:$0xff]   ;;  %v10323_v53 = vld [vmem:[%s10721_s7 + $0x2c] ss:$16 sps:$4 sm:$0xff]  }
 0xe4e   :  { %v4610_v47 = vadd.f32 1.0, %v6211_v41  ;;  %v10079_v19 = vsel %vm4644_vm2, %v4643_v45, %v9961_v10  ;;  %v10083_v52 = vsel %vm4632_vm1, %v4646_v28, %v9965_v37  ;;  %v10096_v10 = vld [vmem:[%s10722_s8 + $0x8] ss:$16 sps:$4 sm:$0xff]   ;;  %v10102_v37 = vld [vmem:[%s10722_s8 + $0x24] ss:$16 sps:$4 sm:$0xff]   ;;  %v6213_v42 = vpop.eup %6212  ;;  %11548 = vst [vmem:[#allocation106_spill] sm:$0xff] %v10323_v53 }
 0xe4f   :  { %6216 = vrcp.f32 %v4604_v51  ;;  %4693 = vmatmul.mubr.bf16.vlgmr.msra.gmra.mrb[168].mxu0 %v10079_v19  ;;  %4734 = vmatmul.mubr.bf16.vlgmr.msra.gmra.mrb[168].mxu1 %v10079_v19  ;;  %v6215_v8 = vpop.eup %6214  ;;  %v4617_v32 = vadd.f32 1.0, %v6213_v42  ;;  %v10331_v45 = vld [vmem:[%s10721_s7 + $0x20] ss:$16 sps:$4 sm:$0xff]   ;;  %v10337_v28 = vld [vmem:[%s10721_s7 + $0x28] ss:$16 sps:$4 sm:$0xff]  }
 0xe50   :  { %6218 = vrcp.f32 %v4610_v47  ;;  %4772 = vmatpush1.bf16.msra.mxu0 %v10090_v21  ;;  %4813 = vmatpush1.bf16.msra.mxu1 %v10096_v10  ;;  %11549 = vst [vmem:[#allocation107_spill] sm:$0xff] %v10331_v45  ;;  %11550 = vst [vmem:[#allocation108_spill] sm:$0xff] %v10337_v28  ;;  %v10343_v41 = vld [vmem:[%s10721_s7 + $0x44] ss:$16 sps:$4 sm:$0xff]   ;;  %v10349_v51 = vld [vmem:[%s10721_s7 + $0x4c] ss:$16 sps:$4 sm:$0xff]  }
 0xe51   :  { %4773 = vmatprep.subr.bf16.mxu0 %v10102_v37  ;;  %4814 = vmatprep.subr.bf16.mxu1 %v10108_v13  ;;  %6220 = vrcp.f32 %v4617_v32  ;;  %11551 = vst [vmem:[#allocation109_spill] sm:$0xff] %v10343_v41  ;;  %11552 = vst [vmem:[#allocation26_spill] sm:$0xff] %v10349_v51  ;;  %v10355_v47 = vld [vmem:[%s10721_s7 + $0x40] ss:$16 sps:$4 sm:$0xff]   ;;  %v10361_v42 = vld [vmem:[%s10721_s7 + $0x48] ss:$16 sps:$4 sm:$0xff]  }
 0xe52   :  { %4803 = vmatprep.mubr.bf16.mxu0 %v11041_v43  ;;  %4844 = vmatprep.mubr.bf16.mxu1 %v11041_v43  ;;  %11553 = vst [vmem:[#allocation27_spill] sm:$0xff] %v10355_v47  ;;  %11554 = vst [vmem:[#allocation28_spill] sm:$0xff] %v10361_v42  ;;  %v10391_v32 = vld [vmem:[%s10721_s7 + $0x84] ss:$16 sps:$4 sm:$0xff]  }
 0xe53   :  { %11559 = vst [vmem:[#allocation105_spill] sm:$0xff] %v10391_v32 }
 0xe54   :  { %4774 = vmatpush1.bf16.msra.mxu0 %v10116_v25  ;;  %4815 = vmatpush1.bf16.msra.mxu1 %v10122_v2 }
 0xe55   :  { %4775 = vmatprep.subr.bf16.mxu0 %v10128_v5  ;;  %4816 = vmatprep.subr.bf16.mxu1 %v10134_v1 }
 0xe58   :  { %4776 = vmatpush1.bf16.msra.mxu0 %v10140_v14  ;;  %4817 = vmatpush1.bf16.msra.mxu1 %v10146_v20 }
 0xe59   :  { %v6217_v0 = vpop.eup %6216  ;;  %4777 = vmatprep.subr.bf16.mxu0 %v10152_v35  ;;  %4818 = vmatprep.subr.bf16.mxu1 %v10158_v4 }
 0xe5a   :  { %v6219_v48 = vpop.eup %6218  ;;  %v4621_v49 = vmul.f32 %v6217_v0, %v6215_v8  ;;  %v10367_v8 = vld [vmem:[%s10721_s7 + $0x64] ss:$16 sps:$4 sm:$0xff]   ;;  %v10373_v0 = vld [vmem:[%s10721_s7 + $0x6c] ss:$16 sps:$4 sm:$0xff]  }
 0xe5b   :  { %v4620_v30 = vmul.f32 %v6219_v48, %v9990_v38  ;;  %v6221_v22 = vpop.eup %6220  ;;  %11555 = vst [vmem:[#allocation29_spill] sm:$0xff] %v10367_v8  ;;  %11556 = vst [vmem:[#allocation102_spill] sm:$0xff] %v10373_v0  ;;  %v10379_v48 = vld [vmem:[%s10721_s7 + $0x60] ss:$16 sps:$4 sm:$0xff]  }
 0xe5c   :  { %4778 = vmatpush1.bf16.msra.mxu0 %v10165_v57  ;;  %4819 = vmatpush1.bf16.msra.mxu1 %v10171_v39  ;;  %11557 = vst [vmem:[#allocation103_spill] sm:$0xff] %v10379_v48 }
 0xe5d   :  { %v4622_v60 = vadd.f32 %v4621_v49, %v4620_v30  ;;  %4779 = vmatprep.subr.bf16.mxu0 %v10177_v24  ;;  %4820 = vmatprep.subr.bf16.mxu1 %v10183_v56  ;;  %v10385_v49 = vld [vmem:[%s10721_s7 + $0x68] ss:$16 sps:$4 sm:$0xff]   ;;  %v10397_v30 = vld [vmem:[%s10721_s7 + $0x8c] ss:$16 sps:$4 sm:$0xff]  }
 0xe5e   :  { %11558 = vst [vmem:[#allocation104_spill] sm:$0xff] %v10385_v49  ;;  %11560 = vst [vmem:[#allocation30_spill] sm:$0xff] %v10397_v30 }
 0xe5f   :  { %6222 = vtanh.f32 %v4622_v60  ;;  %v10188_v40 = vsel %vm4640_vm3, %v4622_v60, %v9990_v38  ;;  %v10211_v38 = vld [vmem:[%s10722_s8 + $0xac] ss:$16 sps:$4 sm:$0xff]   ;;  %v10409_v60 = vld [vmem:[%s10721_s7 + $0x88] ss:$16 sps:$4 sm:$0xff]  }
 0xe60   :  { %4780 = vmatpush1.bf16.msra.mxu0 %v10193_v18  ;;  %4821 = vmatpush1.bf16.msra.mxu1 %v10199_v26  ;;  %11562 = vst [vmem:[#allocation32_spill] sm:$0xff] %v10409_v60 }
 0xe61   :  { %4781 = vmatprep.subr.bf16.mxu0 %v10205_v11  ;;  %4822 = vmatprep.subr.bf16.mxu1 %v10211_v38 }
 0xe64   :  { %4782 = vmatpush1.bf16.msra.mxu0 %v10217_v33  ;;  %4823 = vmatpush1.bf16.msra.mxu1 %v10223_v17 }
 0xe65   :  { %4783 = vmatprep.subr.bf16.mxu0 %v10229_v59  ;;  %4824 = vmatprep.subr.bf16.mxu1 %v10235_v58 }
 0xe68   :  { %4784 = vmatpush1.bf16.msra.mxu0 %v10241_v44  ;;  %4825 = vmatpush1.bf16.msra.mxu1 %v10247_v55 }
 0xe69   :  { %v6223_v9 = vpop.eup %6222  ;;  %4785 = vmatprep.subr.bf16.mxu0 %v10253_v63  ;;  %4826 = vmatprep.subr.bf16.mxu1 %v10259_v62 }
 0xe6a   :  { %v4624_v31 = vmul.f32 %v6223_v9, %v6221_v22  ;;  %v10415_v22 = vld [vmem:[%s10721_s7 + $0xa4] ss:$16 sps:$4 sm:$0xff]   ;;  %v10421_v9 = vld [vmem:[%s10721_s7 + $0xac] ss:$16 sps:$4 sm:$0xff]  }
 0xe6b   :  { %11563 = vst [vmem:[#allocation33_spill] sm:$0xff] %v10415_v22  ;;  %11564 = vst [vmem:[#allocation98_spill] sm:$0xff] %v10421_v9 }
 0xe6c   :  { %4786 = vmatpush1.bf16.msra.mxu0 %v10265_v7  ;;  %4827 = vmatpush1.bf16.msra.mxu1 %v10271_v23  ;;  %v10276_v36 = vsel %vm4640_vm3, %v4624_v31, %v10008_v34  ;;  %v4650_v27 = vpack.c.bf16 %v4624_v31, %v4624_v31  ;;  %v4653_v12 = vmax.f32 %v10020_v3, %v4624_v31  ;;  %v10427_v31 = vld [vmem:[%s10721_s7 + $0xa0] ss:$16 sps:$4 sm:$0xff]  }
 0xe6d   :  { %4912 = vmatprep.subr.bf16.mxu0 %v10284_v6  ;;  %4953 = vmatprep.subr.bf16.mxu1 %v10290_v16  ;;  %11565 = vst [vmem:[#allocation99_spill] sm:$0xff] %v10427_v31 }
 0xe6e   :  { %v10294_v34 = vsel %vm4651_vm4, %v4650_v27, %v10016_v61  ;;  %v10298_v29 = vsel %vm4640_vm3, %v4653_v12, %v10020_v3  ;;  %v10311_v61 = vld [vmem:[%s10721_s7 + $0x8] ss:$16 sps:$4 sm:$0xff]   ;;  %v10317_v3 = vld [vmem:[%s10721_s7 + $0x24] ss:$16 sps:$4 sm:$0xff]  }
 0xe6f   :  { %4804 = vmatmul.mubr.bf16.vlgmr.msra.gmra.mrb[172].mxu0 %v10294_v34  ;;  %4845 = vmatmul.mubr.bf16.vlgmr.msra.gmra.mrb[172].mxu1 %v10294_v34  ;;  %11546 = vst [vmem:[#allocation24_spill] sm:$0xff] %v10311_v61  ;;  %11547 = vst [vmem:[#allocation25_spill] sm:$0xff] %v10317_v3  ;;  %v10433_v27 = vld [vmem:[%s10721_s7 + $0xa8] ss:$16 sps:$4 sm:$0xff]   ;;  %v10439_v12 = vld [vmem:[%s10721_s7 + $0xc4] ss:$16 sps:$4 sm:$0xff]  }
 0xe70   :  { %4913 = vmatpush1.bf16.msra.mxu0 %v10305_v15  ;;  %4954 = vmatpush1.bf16.msra.mxu1 %v10311_v61  ;;  %11566 = vst [vmem:[#allocation100_spill] sm:$0xff] %v10433_v27  ;;  %11567 = vst [vmem:[#allocation101_spill] sm:$0xff] %v10439_v12 }
 0xe71   :  { %4914 = vmatprep.subr.bf16.mxu0 %v10317_v3  ;;  %4955 = vmatprep.subr.bf16.mxu1 %v10323_v53 }
 0xe72   :  { %4944 = vmatprep.mubr.bf16.mxu0 %v11041_v43  ;;  %4985 = vmatprep.mubr.bf16.mxu1 %v11041_v43 }
 0xe74   :  { %4915 = vmatpush1.bf16.msra.mxu0 %v10331_v45  ;;  %4956 = vmatpush1.bf16.msra.mxu1 %v10337_v28 }
 0xe75   :  { %4916 = vmatprep.subr.bf16.mxu0 %v10343_v41  ;;  %4957 = vmatprep.subr.bf16.mxu1 %v10349_v51 }
 0xe78   :  { %4917 = vmatpush1.bf16.msra.mxu0 %v10355_v47  ;;  %4958 = vmatpush1.bf16.msra.mxu1 %v10361_v42 }
 0xe79   :  { %4918 = vmatprep.subr.bf16.mxu0 %v10367_v8  ;;  %4959 = vmatprep.subr.bf16.mxu1 %v10373_v0  ;;  %v11580_v8 = vld [vmem:[#allocation57_spill] sm:$0xff] }
 0xe7c   :  { %4919 = vmatpush1.bf16.msra.mxu0 %v10379_v48  ;;  %4960 = vmatpush1.bf16.msra.mxu1 %v10385_v49  ;;  %v11579_v48 = vld [vmem:[#allocation56_spill] sm:$0xff] }
 0xe7d   :  { %4920 = vmatprep.subr.bf16.mxu0 %v10391_v32  ;;  %4961 = vmatprep.subr.bf16.mxu1 %v10397_v30  ;;  %v11578_v30 = vld [vmem:[#allocation55_spill] sm:$0xff] }
 0xe80   :  { %4921 = vmatpush1.bf16.msra.mxu0 %v10403_v50  ;;  %4962 = vmatpush1.bf16.msra.mxu1 %v10409_v60  ;;  %v11577_v60 = vld [vmem:[#allocation54_spill] sm:$0xff] }
 0xe81   :  { %4922 = vmatprep.subr.bf16.mxu0 %v10415_v22  ;;  %4963 = vmatprep.subr.bf16.mxu1 %v10421_v9  ;;  %v10445_v9 = vld [vmem:[%s10721_s7 + $0xcc] ss:$16 sps:$4 sm:$0xff]  }
 0xe82   :  { %11568 = vst [vmem:[#allocation122_spill] sm:$0xff] %v10445_v9 }
 0xe84   :  { %4923 = vmatpush1.bf16.msra.mxu0 %v10427_v31  ;;  %4964 = vmatpush1.bf16.msra.mxu1 %v10433_v27  ;;  %v10451_v31 = vld [vmem:[%s10721_s7 + $0xc0] ss:$16 sps:$4 sm:$0xff]   ;;  %v10457_v27 = vld [vmem:[%s10721_s7 + $0xc8] ss:$16 sps:$4 sm:$0xff]  }
 0xe85   :  { %4924 = vmatprep.subr.bf16.mxu0 %v10439_v12  ;;  %4965 = vmatprep.subr.bf16.mxu1 %v10445_v9  ;;  %11569 = vst [vmem:[#allocation123_spill] sm:$0xff] %v10451_v31  ;;  %11570 = vst [vmem:[#allocation124_spill] sm:$0xff] %v10457_v27  ;;  %v10463_v12 = vld [vmem:[%s10721_s7 + $0xe4] ss:$16 sps:$4 sm:$0xff]   ;;  %v10469_v9 = vld [vmem:[%s10721_s7 + $0xec] ss:$16 sps:$4 sm:$0xff]  }
 0xe86   :  { %11571 = vst [vmem:[#allocation125_spill] sm:$0xff] %v10463_v12  ;;  %11572 = vst [vmem:[#allocation126_spill] sm:$0xff] %v10469_v9 }
 0xe88   :  { %4925 = vmatpush1.bf16.msra.mxu0 %v10451_v31  ;;  %4966 = vmatpush1.bf16.msra.mxu1 %v10457_v27  ;;  %v10475_v31 = vld [vmem:[%s10721_s7 + $0xe0] ss:$16 sps:$4 sm:$0xff]   ;;  %v10481_v27 = vld [vmem:[%s10721_s7 + $0xe8] ss:$16 sps:$4 sm:$0xff]  }
 0xe89   :  { %4926 = vmatprep.subr.bf16.mxu0 %v10463_v12  ;;  %4967 = vmatprep.subr.bf16.mxu1 %v10469_v9  ;;  %11573 = vst [vmem:[#allocation10_spill] sm:$0xff] %v10475_v31  ;;  %11574 = vst [vmem:[#allocation11_spill] sm:$0xff] %v10481_v27  ;;  %v10487_v12 = vld [vmem:[%s10722_s8 + $0x4] ss:$16 sps:$4 sm:$0xff]   ;;  %v10493_v9 = vld [vmem:[%s10722_s8 + $0xc] ss:$16 sps:$4 sm:$0xff]  }
 0xe8a   :  { %11575 = vst [vmem:[#allocation12_spill] sm:$0xff] %v10487_v12  ;;  %11576 = vst [vmem:[#allocation13_spill] sm:$0xff] %v10493_v9 }
 0xe8c   :  { %4927 = vmatpush1.bf16.msra.mxu0 %v10475_v31  ;;  %4968 = vmatpush1.bf16.msra.mxu1 %v10481_v27 }
 0xe8d   :  { %5023 = vmatprep.subr.bf16.mxu0 %v10487_v12  ;;  %5064 = vmatprep.subr.bf16.mxu1 %v10493_v9 }
 0xf22   :  { %v4694_v31 = vpop.f32.mrb[168].mxu0  ;;  %v4735_v22 = vpop.f32.mrb[168].mxu1 }
 0xf23   :  { %v4695_v50 = vadd.f32 %v4694_v31, %v11577_v60  ;;  %v4736_v27 = vadd.f32 %v4735_v22, %v11578_v30  ;;  %v4696_v32 = vpop.f32.mrb[169].mxu0  ;;  %v4737_v49 = vpop.f32.mrb[169].mxu1  ;;  %v11582_v22 = vld [vmem:[#allocation75_spill] sm:$0xff] }
 0xf24   :  { %v4697_v0 = vadd.f32 %v4696_v32, %v11579_v48  ;;  %v4738_v42 = vadd.f32 %v4737_v49, %v11580_v8  ;;  %v4698_v12 = vpop.f32.mrb[170].mxu0  ;;  %v4739_v47 = vpop.f32.mrb[170].mxu1 }
 0xf25   :  { %v5645_v51 = vmul.f32 -1.442695, %v4695_v50  ;;  %v4699_v41 = vpop.f32.mrb[171].mxu0  ;;  %v4740_v28 = vpop.f32.mrb[171].mxu1 }
 0xf26   :  { %v5646_v45 = vmul.f32 -1.442695, %v4697_v0  ;;  %v5647_v9 = vmul.f32 -1.442695, %v4738_v42  ;;  %v4883_v41 = vpop.permute.xlu0 %4882 }
 0xf27   :  { %6224 = vpow2.f32 %v5645_v51  ;;  %vm4884_vm5 = vcmp.eq.s32.totalorder %v4883_v41, 1 }
 0xf28   :  { %6226 = vpow2.f32 %v5646_v45  ;;  %vm4896_vm6 = vmpackc.low %vm4884_vm5, %vm4884_vm5 }
 0xf29   :  { %6228 = vpow2.f32 %v5647_v9 }
 0xf2a   :  { %6230 = vtanh.f32 %v4736_v27  ;;  %v11583_v27 = vld [vmem:[#allocation76_spill] sm:$0xff] }
 0xf31   :  { %v6225_v53 = vpop.eup %6224 }
 0xf32   :  { %v6227_v3 = vpop.eup %6226  ;;  %v4745_v60 = vadd.f32 1.0, %v6225_v53  ;;  %v11581_v53 = vld [vmem:[#allocation74_spill] sm:$0xff] }
 0xf33   :  { %v4751_v30 = vadd.f32 1.0, %v6227_v3  ;;  %v6229_v48 = vpop.eup %6228 }
 0xf34   :  { %6232 = vrcp.f32 %v4745_v60  ;;  %v6231_v32 = vpop.eup %6230  ;;  %v4758_v50 = vadd.f32 1.0, %v6229_v48  ;;  %v11584_v60 = vld [vmem:[#allocation77_spill] sm:$0xff] }
 0xf35   :  { %6234 = vrcp.f32 %v4751_v30 }
 0xf36   :  { %6236 = vrcp.f32 %v4758_v50 }
 0xf3e   :  { %v6233_v8 = vpop.eup %6232 }
 0xf3f   :  { %v6235_v49 = vpop.eup %6234  ;;  %v4762_v47 = vmul.f32 %v6233_v8, %v6231_v32 }
 0xf40   :  { %v4761_v28 = vmul.f32 %v6235_v49, %v10069_v46 }
 0xf42   :  { %v4763_v51 = vadd.f32 %v4762_v47, %v4761_v28  ;;  %v4805_v45 = vpop.f32.mrb[172].mxu0  ;;  %v4846_v42 = vpop.f32.mrb[172].mxu1 }
 0xf43   :  { %v4806_v0 = vadd.f32 %v4805_v45, %v11581_v53  ;;  %v4847_v3 = vadd.f32 %v4846_v42, %v11582_v22  ;;  %v4807_v9 = vpop.f32.mrb[173].mxu0  ;;  %v4848_v31 = vpop.f32.mrb[173].mxu1 }
 0xf44   :  { %6238 = vtanh.f32 %v4763_v51  ;;  %v4808_v12 = vadd.f32 %v4807_v9, %v11583_v27  ;;  %v4849_v30 = vadd.f32 %v4848_v31, %v11584_v60  ;;  %v4809_v48 = vpop.f32.mrb[174].mxu0  ;;  %v4850_v32 = vpop.f32.mrb[174].mxu1  ;;  %v10507_v8 = vsel %vm4884_vm5, %v4763_v51, %v10069_v46 }
 0xf45   :  { %v5648_v49 = vmul.f32 -1.442695, %v4806_v0  ;;  %v4810_v47 = vpop.f32.mrb[175].mxu0  ;;  %v4851_v50 = vpop.f32.mrb[175].mxu1 }
 0xf46   :  { %v5649_v28 = vmul.f32 -1.442695, %v4808_v12  ;;  %v6237_v45 = vpop.eup %6236  ;;  %v5650_v53 = vmul.f32 -1.442695, %v4849_v30  ;;  %v4891_v48 = vpop.permute.xlu1 %4890 }
 0xf47   :  { %6240 = vpow2.f32 %v5648_v49  ;;  %vm4892_vm7 = vcmp.eq.s32.totalorder %v4891_v48, 1  ;;  %v11603_v48 = vld [vmem:[#allocation98_spill] sm:$0xff] }
 0xf48   :  { %6242 = vpow2.f32 %v5649_v28  ;;  %vm4903_vm8 = vmpackc.low %vm4892_vm7, %vm4892_vm7 }
 0xf49   :  { %6244 = vpow2.f32 %v5650_v53 }
 0xf4a   :  { %6246 = vtanh.f32 %v4847_v3 }
 0xf4e   :  { %v6239_v42 = vpop.eup %6238 }
 0xf4f   :  { %v4765_v22 = vmul.f32 %v6239_v42, %v6237_v45 }
 0xf51   :  { %v6241_v61 = vpop.eup %6240  ;;  %v10511_v9 = vsel %vm4884_vm5, %v4765_v22, %v10073_v54  ;;  %v4895_v31 = vpack.c.bf16 %v4765_v22, %v4765_v22  ;;  %v4898_v27 = vmax.f32 %v10083_v52, %v4765_v22 }
 0xf52   :  { %v6243_v46 = vpop.eup %6242  ;;  %v4856_v51 = vadd.f32 1.0, %v6241_v61 }
 0xf53   :  { %v4862_v0 = vadd.f32 1.0, %v6243_v46  ;;  %v10517_v12 = vsel %vm4896_vm6, %v4895_v31, %v10079_v19  ;;  %v10521_v60 = vsel %vm4884_vm5, %v4898_v27, %v10083_v52  ;;  %v6245_v54 = vpop.eup %6244  ;;  %v11586_v31 = vld [vmem:[#allocation25_spill] sm:$0xff]  ;;  %v11591_v27 = vld [vmem:[#allocation26_spill] sm:$0xff]  ;;  %v11592_v46 = vld [vmem:[#allocation27_spill] sm:$0xff] }
 0xf54   :  { %6248 = vrcp.f32 %v4856_v51  ;;  %4945 = vmatmul.mubr.bf16.vlgmr.msra.gmra.mrb[176].mxu0 %v10517_v12  ;;  %4986 = vmatmul.mubr.bf16.vlgmr.msra.gmra.mrb[176].mxu1 %v10517_v12  ;;  %v6247_v19 = vpop.eup %6246  ;;  %v4869_v3 = vadd.f32 1.0, %v6245_v54  ;;  %v11594_v51 = vld [vmem:[#allocation29_spill] sm:$0xff]  ;;  %v11596_v54 = vld [vmem:[#allocation103_spill] sm:$0xff] }
 0xf55   :  { %6250 = vrcp.f32 %v4862_v0  ;;  %5024 = vmatpush1.bf16.msra.mxu0 %v10090_v21  ;;  %5065 = vmatpush1.bf16.msra.mxu1 %v10096_v10  ;;  %v11595_v0 = vld [vmem:[#allocation102_spill] sm:$0xff] }
 0xf56   :  { %5025 = vmatprep.subr.bf16.mxu0 %v10102_v37  ;;  %5066 = vmatprep.subr.bf16.mxu1 %v10108_v13  ;;  %6252 = vrcp.f32 %v4869_v3  ;;  %v11601_v3 = vld [vmem:[#allocation32_spill] sm:$0xff] }
 0xf57   :  { %5055 = vmatprep.mubr.bf16.mxu0 %v11041_v43  ;;  %5096 = vmatprep.mubr.bf16.mxu1 %v11041_v43 }
 0xf59   :  { %5026 = vmatpush1.bf16.msra.mxu0 %v10116_v25  ;;  %5067 = vmatpush1.bf16.msra.mxu1 %v10122_v2 }
 0xf5a   :  { %5027 = vmatprep.subr.bf16.mxu0 %v10128_v5  ;;  %5068 = vmatprep.subr.bf16.mxu1 %v10134_v1 }
 0xf5d   :  { %5028 = vmatpush1.bf16.msra.mxu0 %v10140_v14  ;;  %5069 = vmatpush1.bf16.msra.mxu1 %v10146_v20 }
 0xf5e   :  { %v6249_v52 = vpop.eup %6248  ;;  %5029 = vmatprep.subr.bf16.mxu0 %v10152_v35  ;;  %5070 = vmatprep.subr.bf16.mxu1 %v10158_v4 }
 0xf5f   :  { %v6251_v61 = vpop.eup %6250  ;;  %v4873_v41 = vmul.f32 %v6249_v52, %v6247_v19  ;;  %v11597_v19 = vld [vmem:[#allocation104_spill] sm:$0xff]  ;;  %v11598_v52 = vld [vmem:[#allocation105_spill] sm:$0xff] }
 0xf60   :  { %v4872_v30 = vmul.f32 %v6251_v61, %v10188_v40  ;;  %v6253_v47 = vpop.eup %6252  ;;  %v11599_v61 = vld [vmem:[#allocation30_spill] sm:$0xff] }
 0xf61   :  { %5030 = vmatpush1.bf16.msra.mxu0 %v10165_v57  ;;  %5071 = vmatpush1.bf16.msra.mxu1 %v10171_v39 }
 0xf62   :  { %v4874_v32 = vadd.f32 %v4873_v41, %v4872_v30  ;;  %5031 = vmatprep.subr.bf16.mxu0 %v10177_v24  ;;  %5072 = vmatprep.subr.bf16.mxu1 %v10183_v56  ;;  %v11600_v41 = vld [vmem:[#allocation31_spill] sm:$0xff]  ;;  %v11602_v30 = vld [vmem:[#allocation33_spill] sm:$0xff] }
 0xf64   :  { %6254 = vtanh.f32 %v4874_v32  ;;  %v10546_v49 = vsel %vm4892_vm7, %v4874_v32, %v10188_v40  ;;  %v11604_v32 = vld [vmem:[#allocation99_spill] sm:$0xff] }
 0xf65   :  { %5032 = vmatpush1.bf16.msra.mxu0 %v10193_v18  ;;  %5073 = vmatpush1.bf16.msra.mxu1 %v10199_v26 }
 0xf66   :  { %5033 = vmatprep.subr.bf16.mxu0 %v10205_v11  ;;  %5074 = vmatprep.subr.bf16.mxu1 %v10211_v38 }
 0xf69   :  { %5034 = vmatpush1.bf16.msra.mxu0 %v10217_v33  ;;  %5075 = vmatpush1.bf16.msra.mxu1 %v10223_v17 }
 0xf6a   :  { %5035 = vmatprep.subr.bf16.mxu0 %v10229_v59  ;;  %5076 = vmatprep.subr.bf16.mxu1 %v10235_v58 }
 0xf6d   :  { %5036 = vmatpush1.bf16.msra.mxu0 %v10241_v44  ;;  %5077 = vmatpush1.bf16.msra.mxu1 %v10247_v55 }
 0xf6e   :  { %v6255_v40 = vpop.eup %6254  ;;  %5037 = vmatprep.subr.bf16.mxu0 %v10253_v63  ;;  %5078 = vmatprep.subr.bf16.mxu1 %v10259_v62 }
 0xf6f   :  { %v4876_v50 = vmul.f32 %v6255_v40, %v6253_v47  ;;  %v11605_v47 = vld [vmem:[#allocation100_spill] sm:$0xff]  ;;  %v11606_v40 = vld [vmem:[#allocation101_spill] sm:$0xff] }
 0xf71   :  { %5038 = vmatpush1.bf16.msra.mxu0 %v10265_v7  ;;  %5079 = vmatpush1.bf16.msra.mxu1 %v10271_v23  ;;  %v10564_v28 = vsel %vm4892_vm7, %v4876_v50, %v10276_v36  ;;  %v4902_v45 = vpack.c.bf16 %v4876_v50, %v4876_v50  ;;  %v4905_v42 = vmax.f32 %v10298_v29, %v4876_v50  ;;  %v11585_v36 = vld [vmem:[#allocation24_spill] sm:$0xff]  ;;  %v11607_v50 = vld [vmem:[#allocation122_spill] sm:$0xff] }
 0xf72   :  { %5164 = vmatprep.subr.bf16.mxu0 %v10284_v6  ;;  %5205 = vmatprep.subr.bf16.mxu1 %v10290_v16  ;;  %v11587_v6 = vld [vmem:[#allocation106_spill] sm:$0xff]  ;;  %v11588_v16 = vld [vmem:[#allocation107_spill] sm:$0xff] }
 0xf73   :  { %v10572_v53 = vsel %vm4903_vm8, %v4902_v45, %v10294_v34  ;;  %v10576_v22 = vsel %vm4892_vm7, %v4905_v42, %v10298_v29  ;;  %v11589_v34 = vld [vmem:[#allocation108_spill] sm:$0xff]  ;;  %v11590_v29 = vld [vmem:[#allocation109_spill] sm:$0xff]  ;;  %v11608_v45 = vld [vmem:[#allocation123_spill] sm:$0xff] }
 0xf74   :  { %5056 = vmatmul.mubr.bf16.vlgmr.msra.gmra.mrb[180].mxu0 %v10572_v53  ;;  %5097 = vmatmul.mubr.bf16.vlgmr.msra.gmra.mrb[180].mxu1 %v10572_v53  ;;  %v11609_v42 = vld [vmem:[#allocation124_spill] sm:$0xff] }
 0xf75   :  { %5165 = vmatpush1.bf16.msra.mxu0 %v10305_v15  ;;  %5206 = vmatpush1.bf16.msra.mxu1 %v11585_v36  ;;  %v11593_v15 = vld [vmem:[#allocation28_spill] sm:$0xff]  ;;  %v11610_v36 = vld [vmem:[#allocation125_spill] sm:$0xff] }
 0xf76   :  { %5166 = vmatprep.subr.bf16.mxu0 %v11586_v31  ;;  %5207 = vmatprep.subr.bf16.mxu1 %v11587_v6  ;;  %v11611_v31 = vld [vmem:[#allocation126_spill] sm:$0xff] }
 0xf77   :  { %5196 = vmatprep.mubr.bf16.mxu0 %v11041_v43  ;;  %5237 = vmatprep.mubr.bf16.mxu1 %v11041_v43  ;;  %v11612_v6 = vld [vmem:[#allocation10_spill] sm:$0xff] }
 0xf79   :  { %5167 = vmatpush1.bf16.msra.mxu0 %v11588_v16  ;;  %5208 = vmatpush1.bf16.msra.mxu1 %v11589_v34  ;;  %v11613_v16 = vld [vmem:[#allocation11_spill] sm:$0xff]  ;;  %v11614_v34 = vld [vmem:[#allocation12_spill] sm:$0xff] }
 0xf7a   :  { %5168 = vmatprep.subr.bf16.mxu0 %v11590_v29  ;;  %5209 = vmatprep.subr.bf16.mxu1 %v11591_v27  ;;  %v11615_v29 = vld [vmem:[#allocation13_spill] sm:$0xff] }
 0xf7d   :  { %5169 = vmatpush1.bf16.msra.mxu0 %v11592_v46  ;;  %5210 = vmatpush1.bf16.msra.mxu1 %v11593_v15  ;;  %v11616_v15 = vld [vmem:[#allocation58_spill] sm:$0xff] }
 0xf7e   :  { %5170 = vmatprep.subr.bf16.mxu0 %v11594_v51  ;;  %5211 = vmatprep.subr.bf16.mxu1 %v11595_v0  ;;  %v11617_v0 = vld [vmem:[#allocation59_spill] sm:$0xff] }
 0xf81   :  { %5171 = vmatpush1.bf16.msra.mxu0 %v11596_v54  ;;  %5212 = vmatpush1.bf16.msra.mxu1 %v11597_v19 }
 0xf82   :  { %5172 = vmatprep.subr.bf16.mxu0 %v11598_v52  ;;  %5213 = vmatprep.subr.bf16.mxu1 %v11599_v61  ;;  %v11618_v61 = vld [vmem:[#allocation60_spill] sm:$0xff] }
 0xf85   :  { %5173 = vmatpush1.bf16.msra.mxu0 %v11600_v41  ;;  %5214 = vmatpush1.bf16.msra.mxu1 %v11601_v3  ;;  %v11619_v3 = vld [vmem:[#allocation61_spill] sm:$0xff] }
 0xf86   :  { %5174 = vmatprep.subr.bf16.mxu0 %v11602_v30  ;;  %5215 = vmatprep.subr.bf16.mxu1 %v11603_v48 }
 0xf89   :  { %5175 = vmatpush1.bf16.msra.mxu0 %v11604_v32  ;;  %5216 = vmatpush1.bf16.msra.mxu1 %v11605_v47 }
 0xf8a   :  { %5176 = vmatprep.subr.bf16.mxu0 %v11606_v40  ;;  %5217 = vmatprep.subr.bf16.mxu1 %v11607_v50 }
 0xf8d   :  { %5177 = vmatpush1.bf16.msra.mxu0 %v11608_v45  ;;  %5218 = vmatpush1.bf16.msra.mxu1 %v11609_v42 }
 0xf8e   :  { %5178 = vmatprep.subr.bf16.mxu0 %v11610_v36  ;;  %5219 = vmatprep.subr.bf16.mxu1 %v11611_v31 }
 0xf91   :  { %5179 = vmatpush1.bf16.msra.mxu0 %v11612_v6  ;;  %5220 = vmatpush1.bf16.msra.mxu1 %v11613_v16 }
 0xf92   :  { %5274 = vmatprep.subr.bf16.mxu0 %v11614_v34  ;;  %5315 = vmatprep.subr.bf16.mxu1 %v11615_v29 }
0x1027   :  { %v4946_v27 = vpop.f32.mrb[176].mxu0  ;;  %v4987_v46 = vpop.f32.mrb[176].mxu1 }
0x1028   :  { %v4947_v51 = vadd.f32 %v4946_v27, %v11616_v15  ;;  %v4988_v54 = vadd.f32 %v4987_v46, %v11617_v0  ;;  %v4948_v19 = vpop.f32.mrb[177].mxu0  ;;  %v4989_v52 = vpop.f32.mrb[177].mxu1 }
0x1029   :  { %v4949_v41 = vadd.f32 %v4948_v19, %v11618_v61  ;;  %v4990_v30 = vadd.f32 %v4989_v52, %v11619_v3  ;;  %v4950_v48 = vpop.f32.mrb[178].mxu0  ;;  %v4991_v32 = vpop.f32.mrb[178].mxu1  ;;  %v11620_v3 = vld [vmem:[#allocation70_spill] sm:$0xff] }
0x102a   :  { %v5652_v47 = vmul.f32 -1.442695, %v4947_v51  ;;  %v4951_v40 = vpop.f32.mrb[179].mxu0  ;;  %v4992_v50 = vpop.f32.mrb[179].mxu1 }
0x102b   :  { %v5653_v45 = vmul.f32 -1.442695, %v4949_v41  ;;  %v5654_v42 = vmul.f32 -1.442695, %v4990_v30  ;;  %v5135_v19 = vpop.permute.xlu0 %5134  ;;  %v11622_v40 = vld [vmem:[#allocation72_spill] sm:$0xff] }
0x102c   :  { %6256 = vpow2.f32 %v5652_v47  ;;  %vm5136_vm9 = vcmp.eq.s32.totalorder %v5135_v19, 1 }
0x102d   :  { %6258 = vpow2.f32 %v5653_v45  ;;  %v11623_v45 = vld [vmem:[#allocation73_spill] sm:$0xff]  ;;  %vm5148_vm10 = vmpackc.low %vm5136_vm9, %vm5136_vm9 }
0x102e   :  { %6260 = vpow2.f32 %v5654_v42 }
0x102f   :  { %6262 = vtanh.f32 %v4988_v54  ;;  %v11621_v54 = vld [vmem:[#allocation71_spill] sm:$0xff] }
0x1036   :  { %v6257_v36 = vpop.eup %6256 }
0x1037   :  { %v6259_v31 = vpop.eup %6258  ;;  %v4997_v6 = vadd.f32 1.0, %v6257_v36 }
0x1038   :  { %v5003_v16 = vadd.f32 1.0, %v6259_v31  ;;  %v6261_v34 = vpop.eup %6260 }
0x1039   :  { %6264 = vrcp.f32 %v4997_v6  ;;  %v6263_v29 = vpop.eup %6262  ;;  %v5010_v51 = vadd.f32 1.0, %v6261_v34 }
0x103a   :  { %6266 = vrcp.f32 %v5003_v16 }
0x103b   :  { %6268 = vrcp.f32 %v5010_v51 }
0x1043   :  { %v6265_v27 = vpop.eup %6264 }
0x1044   :  { %v6267_v46 = vpop.eup %6266  ;;  %v5014_v15 = vmul.f32 %v6265_v27, %v6263_v29 }
0x1045   :  { %v5013_v0 = vmul.f32 %v6267_v46, %v10507_v8  ;;  %v6269_v46 = vpop.eup %6268 }
0x1047   :  { %v5015_v52 = vadd.f32 %v5014_v15, %v5013_v0  ;;  %v5057_v61 = vpop.f32.mrb[180].mxu0  ;;  %v5098_v41 = vpop.f32.mrb[180].mxu1 }
0x1048   :  { %v5058_v30 = vadd.f32 %v5057_v61, %v11620_v3  ;;  %v5099_v48 = vadd.f32 %v5098_v41, %v11621_v54  ;;  %v5059_v32 = vpop.f32.mrb[181].mxu0  ;;  %v5100_v47 = vpop.f32.mrb[181].mxu1 }
0x1049   :  { %6270 = vtanh.f32 %v5015_v52  ;;  %v5060_v50 = vadd.f32 %v5059_v32, %v11622_v40  ;;  %v5101_v42 = vadd.f32 %v5100_v47, %v11623_v45  ;;  %v5061_v36 = vpop.f32.mrb[182].mxu0  ;;  %v5102_v31 = vpop.f32.mrb[182].mxu1  ;;  %v10625_v6 = vsel %vm5136_vm9, %v5015_v52, %v10507_v8 }
0x104a   :  { %v5655_v16 = vmul.f32 -1.442695, %v5058_v30  ;;  %v5062_v34 = vpop.f32.mrb[183].mxu0  ;;  %v5103_v29 = vpop.f32.mrb[183].mxu1 }
0x104b   :  { %v5656_v27 = vmul.f32 -1.442695, %v5060_v50  ;;  %v5657_v51 = vmul.f32 -1.442695, %v5101_v42  ;;  %v5386_v34 = vpop.permute.xlu0 %5385 }
0x104c   :  { %6272 = vpow2.f32 %v5655_v16  ;;  %vm5387_vm13 = vcmp.eq.s32.totalorder %v5386_v34, 1 }
0x104d   :  { %6274 = vpow2.f32 %v5656_v27 }
0x104e   :  { %6276 = vpow2.f32 %v5657_v51  ;;  %v11628_v51 = vld [vmem:[#allocation66_spill] sm:$0xff] }
0x104f   :  { %6278 = vtanh.f32 %v5099_v48 }
0x1053   :  { %v6271_v15 = vpop.eup %6270 }
0x1054   :  { %v5017_v0 = vmul.f32 %v6271_v15, %v6269_v46 }
0x1056   :  { %v6273_v61 = vpop.eup %6272  ;;  %v10629_v41 = vsel %vm5136_vm9, %v5017_v0, %v10511_v9  ;;  %v5147_v3 = vpack.c.bf16 %v5017_v0, %v5017_v0  ;;  %v5150_v54 = vmax.f32 %v10521_v60, %v5017_v0 }
0x1057   :  { %v6275_v8 = vpop.eup %6274  ;;  %v5108_v52 = vadd.f32 1.0, %v6273_v61  ;;  %v11629_v61 = vld [vmem:[#allocation67_spill] sm:$0xff] }
0x1058   :  { %v5114_v30 = vadd.f32 1.0, %v6275_v8  ;;  %v5149_v32 = vsel %vm5148_vm10, %v5147_v3, %v10517_v12  ;;  %v10637_v47 = vsel %vm5136_vm9, %v5150_v54, %v10521_v60  ;;  %v6277_v9 = vpop.eup %6276 }
0x1059   :  { %6280 = vrcp.f32 %v5108_v52  ;;  %5197 = vmatmul.mubr.bf16.vlgmr.msra.gmra.mrb[184].mxu0 %v5149_v32  ;;  %5238 = vmatmul.mubr.bf16.vlgmr.msra.gmra.mrb[184].mxu1 %v5149_v32 }
0x105a   :  { %6282 = vrcp.f32 %v5114_v30  ;;  %5275 = vmatpush1.bf16.msra.mxu0 %v10090_v21  ;;  %5316 = vmatpush1.bf16.msra.mxu1 %v10096_v10  ;;  %v6279_v21 = vpop.eup %6278  ;;  %v11630_v30 = vld [vmem:[#allocation68_spill] sm:$0xff] }
0x105b   :  { %5276 = vmatprep.subr.bf16.mxu0 %v10102_v37  ;;  %5317 = vmatprep.subr.bf16.mxu1 %v10108_v13  ;;  %v5121_v13 = vadd.f32 1.0, %v6277_v9  ;;  %v11631_v9 = vld [vmem:[#allocation69_spill] sm:$0xff] }
0x105c   :  { %5306 = vmatprep.mubr.bf16.mxu0 %v11041_v43  ;;  %5347 = vmatprep.mubr.bf16.mxu1 %v11041_v43 }
0x105d   :  { %6284 = vrcp.f32 %v5121_v13 }
0x105e   :  { %5277 = vmatpush1.bf16.msra.mxu0 %v10116_v25  ;;  %5318 = vmatpush1.bf16.msra.mxu1 %v10122_v2  ;;  %v5143_v2 = vpop.permute.xlu1 %5142 }
0x105f   :  { %5278 = vmatprep.subr.bf16.mxu0 %v10128_v5  ;;  %5319 = vmatprep.subr.bf16.mxu1 %v10134_v1  ;;  %vm5144_vm11 = vcmp.eq.s32.totalorder %v5143_v2, 1 }
0x1060   :  { %vm5155_vm12 = vmpackc.low %vm5144_vm11, %vm5144_vm11 }
0x1062   :  { %5279 = vmatpush1.bf16.msra.mxu0 %v10140_v14  ;;  %5320 = vmatpush1.bf16.msra.mxu1 %v10146_v20 }
0x1063   :  { %v6281_v10 = vpop.eup %6280  ;;  %5280 = vmatprep.subr.bf16.mxu0 %v10152_v35  ;;  %5321 = vmatprep.subr.bf16.mxu1 %v10158_v4 }
0x1064   :  { %v6283_v43 = vpop.eup %6282  ;;  %v5125_v37 = vmul.f32 %v6281_v10, %v6279_v21 }
0x1065   :  { %v5124_v25 = vmul.f32 %v6283_v43, %v10546_v49 }
0x1066   :  { %5281 = vmatpush1.bf16.msra.mxu0 %v10165_v57  ;;  %5322 = vmatpush1.bf16.msra.mxu1 %v10171_v39 }
0x1067   :  { %v5126_v5 = vadd.f32 %v5125_v37, %v5124_v25  ;;  %5282 = vmatprep.subr.bf16.mxu0 %v10177_v24  ;;  %5323 = vmatprep.subr.bf16.mxu1 %v10183_v56  ;;  %v6285_v14 = vpop.eup %6284 }
0x1069   :  { %6286 = vtanh.f32 %v5126_v5  ;;  %v10660_v1 = vsel %vm5144_vm11, %v5126_v5, %v10546_v49 }
0x106a   :  { %5283 = vmatpush1.bf16.msra.mxu0 %v10193_v18  ;;  %5324 = vmatpush1.bf16.msra.mxu1 %v10199_v26 }
0x106b   :  { %5284 = vmatprep.subr.bf16.mxu0 %v10205_v11  ;;  %5325 = vmatprep.subr.bf16.mxu1 %v10211_v38  ;;  %v11624_v11 = vld [vmem:[#allocation62_spill] sm:$0xff] }
0x106e   :  { %5285 = vmatpush1.bf16.msra.mxu0 %v10217_v33  ;;  %5326 = vmatpush1.bf16.msra.mxu1 %v10223_v17  ;;  %v11625_v33 = vld [vmem:[#allocation63_spill] sm:$0xff] }
0x106f   :  { %5286 = vmatprep.subr.bf16.mxu0 %v10229_v59  ;;  %5327 = vmatprep.subr.bf16.mxu1 %v10235_v58 }
0x1072   :  { %5287 = vmatpush1.bf16.msra.mxu0 %v10241_v44  ;;  %5328 = vmatpush1.bf16.msra.mxu1 %v10247_v55  ;;  %v11626_v44 = vld [vmem:[#allocation64_spill] sm:$0xff] }
0x1073   :  { %v6287_v20 = vpop.eup %6286  ;;  %5288 = vmatprep.subr.bf16.mxu0 %v10253_v63  ;;  %5329 = vmatprep.subr.bf16.mxu1 %v10259_v62  ;;  %v11627_v63 = vld [vmem:[#allocation65_spill] sm:$0xff] }
0x1074   :  { %v5128_v35 = vmul.f32 %v6287_v20, %v6285_v14 }
0x1076   :  { %5289 = vmatpush1.bf16.msra.mxu0 %v10265_v7  ;;  %5330 = vmatpush1.bf16.msra.mxu1 %v10271_v23  ;;  %v10678_v4 = vsel %vm5144_vm11, %v5128_v35, %v10564_v28  ;;  %v5154_v57 = vpack.c.bf16 %v5128_v35, %v5128_v35  ;;  %v5157_v39 = vmax.f32 %v10576_v22, %v5128_v35 }
0x1078   :  { %v5156_v24 = vsel %vm5155_vm12, %v5154_v57, %v10572_v53  ;;  %v10686_v56 = vsel %vm5144_vm11, %v5157_v39, %v10576_v22 }
0x1079   :  { %5307 = vmatmul.mubr.bf16.vlgmr.msra.gmra.mrb[188].mxu0 %v5156_v24  ;;  %5348 = vmatmul.mubr.bf16.vlgmr.msra.gmra.mrb[188].mxu1 %v5156_v24 }
0x112c   :  { %v5198_v18 = vpop.f32.mrb[184].mxu0  ;;  %v5239_v26 = vpop.f32.mrb[184].mxu1 }
0x112d   :  { %v5199_v38 = vadd.f32 %v5198_v18, %v11624_v11  ;;  %v5240_v17 = vadd.f32 %v5239_v26, %v11625_v33  ;;  %v5200_v59 = vpop.f32.mrb[185].mxu0  ;;  %v5241_v58 = vpop.f32.mrb[185].mxu1 }
0x112e   :  { %v5201_v55 = vadd.f32 %v5200_v59, %v11626_v44  ;;  %v5242_v62 = vadd.f32 %v5241_v58, %v11627_v63  ;;  %v5202_v7 = vpop.f32.mrb[186].mxu0  ;;  %v5243_v23 = vpop.f32.mrb[186].mxu1 }
0x112f   :  { %v5659_v12 = vmul.f32 -1.442695, %v5199_v38  ;;  %v5203_v60 = vpop.f32.mrb[187].mxu0  ;;  %v5244_v49 = vpop.f32.mrb[187].mxu1 }
0x1130   :  { %v5660_v28 = vmul.f32 -1.442695, %v5201_v55  ;;  %v5661_v53 = vmul.f32 -1.442695, %v5242_v62  ;;  %v5393_v44 = vpop.permute.xlu1 %5392 }
0x1131   :  { %6288 = vpow2.f32 %v5659_v12  ;;  %vm5394_vm14 = vcmp.eq.s32.totalorder %v5393_v44, 1 }
0x1132   :  { %6290 = vpow2.f32 %v5660_v28 }
0x1133   :  { %6292 = vpow2.f32 %v5661_v53 }
0x1134   :  { %6294 = vtanh.f32 %v5240_v17 }
0x113b   :  { %v6289_v22 = vpop.eup %6288 }
0x113c   :  { %v6291_v19 = vpop.eup %6290  ;;  %v5249_v48 = vadd.f32 1.0, %v6289_v22 }
0x113d   :  { %v5255_v40 = vadd.f32 1.0, %v6291_v19  ;;  %v6293_v50 = vpop.eup %6292 }
0x113e   :  { %6296 = vrcp.f32 %v5249_v48  ;;  %v6295_v45 = vpop.eup %6294  ;;  %v5262_v16 = vadd.f32 1.0, %v6293_v50 }
0x113f   :  { %6298 = vrcp.f32 %v5255_v40 }
0x1140   :  { %6300 = vrcp.f32 %v5262_v16 }
0x1148   :  { %v6297_v42 = vpop.eup %6296 }
0x1149   :  { %v6299_v36 = vpop.eup %6298  ;;  %v5266_v31 = vmul.f32 %v6297_v42, %v6295_v45 }
0x114a   :  { %v5265_v29 = vmul.f32 %v6299_v36, %v10625_v6  ;;  %v6301_v5 = vpop.eup %6300 }
0x114c   :  { %v5267_v27 = vadd.f32 %v5266_v31, %v5265_v29  ;;  %v5308_v46 = vpop.f32.mrb[188].mxu0  ;;  %v5349_v15 = vpop.f32.mrb[188].mxu1 }
0x114d   :  { %v5309_v0 = vadd.f32 %v5308_v46, %v11628_v51  ;;  %v5350_v3 = vadd.f32 %v5349_v15, %v11629_v61  ;;  %v5310_v54 = vpop.f32.mrb[189].mxu0  ;;  %v5351_v8 = vpop.f32.mrb[189].mxu1 }
0x114e   :  { %6302 = vtanh.f32 %v5267_v27  ;;  %v5396_v52 = vsel %vm5387_vm13, %v5267_v27, %v10625_v6  ;;  %v5311_v32 = vadd.f32 %v5310_v54, %v11630_v30  ;;  %v5352_v21 = vadd.f32 %v5351_v8, %v11631_v9  ;;  %v5312_v10 = vpop.f32.mrb[190].mxu0  ;;  %v5353_v43 = vpop.f32.mrb[190].mxu1 }
0x114f   :  { %5404 = vst [vmem:[#allocation5] sm:$0xff] %v5396_v52  ;;  %v5662_v37 = vmul.f32 -1.442695, %v5309_v0  ;;  %v5313_v13 = vpop.f32.mrb[191].mxu0  ;;  %v5354_v25 = vpop.f32.mrb[191].mxu1 }
0x1150   :  { %v5663_v2 = vmul.f32 -1.442695, %v5311_v32  ;;  %v5664_v20 = vmul.f32 -1.442695, %v5352_v21 }
0x1151   :  { %6304 = vpow2.f32 %v5662_v37 }
0x1152   :  { %6306 = vpow2.f32 %v5663_v2 }
0x1153   :  { %6308 = vpow2.f32 %v5664_v20 }
0x1154   :  { %6310 = vtanh.f32 %v5350_v3 }
0x1158   :  { %v6303_v14 = vpop.eup %6302 }
0x1159   :  { %v5269_v35 = vmul.f32 %v6303_v14, %v6301_v5 }
0x115b   :  { %v6305_v57 = vpop.eup %6304  ;;  %v5395_v6 = vsel %vm5387_vm13, %v5269_v35, %v10629_v41  ;;  %v5397_v39 = vmax.f32 %v10637_v47, %v5269_v35 }
0x115c   :  { %v6307_v24 = vpop.eup %6306  ;;  %5403 = vst [vmem:[#allocation4] sm:$0xff] %v5395_v6  ;;  %v5359_v18 = vadd.f32 1.0, %v6305_v57 }
0x115d   :  { %v5398_v26 = vsel %vm5387_vm13, %v5397_v39, %v10637_v47  ;;  %v5365_v11 = vadd.f32 1.0, %v6307_v24  ;;  %v6309_v38 = vpop.eup %6308 }
0x115e   :  { %5407 = vst [vmem:[%s10726_s11] sm:$0xff] %v5398_v26  ;;  %6312 = vrcp.f32 %v5359_v18  ;;  %v6311_v33 = vpop.eup %6310  ;;  %v5372_v58 = vadd.f32 1.0, %v6309_v38 }
0x115f   :  { %6314 = vrcp.f32 %v5365_v11 }
0x1160   :  { %6316 = vrcp.f32 %v5372_v58 }
0x1168   :  { %v6313_v41 = vpop.eup %6312 }
0x1169   :  { %v6315_v17 = vpop.eup %6314  ;;  %v5376_v59 = vmul.f32 %v6313_v41, %v6311_v33 }
0x116a   :  { %v5375_v55 = vmul.f32 %v6315_v17, %v10660_v1  ;;  %v6317_v62 = vpop.eup %6316 }
0x116c   :  { %v5377_v63 = vadd.f32 %v5376_v59, %v5375_v55 }
0x116e   :  { %6318 = vtanh.f32 %v5377_v63  ;;  %v5400_v47 = vsel %vm5394_vm14, %v5377_v63, %v10660_v1 }
0x116f   :  { %5406 = vst [vmem:[#allocation7] sm:$0xff] %v5400_v47 }
0x1178   :  { %v6319_v7 = vpop.eup %6318 }
0x1179   :  { %v5379_v23 = vmul.f32 %v6319_v7, %v6317_v62 }
0x117b   :  { %v5399_v12 = vsel %vm5394_vm14, %v5379_v23, %v10678_v4  ;;  %v5401_v60 = vmax.f32 %v10686_v56, %v5379_v23 }
0x117c   :  { %5405 = vst [vmem:[#allocation6] sm:$0xff] %v5399_v12 }
0x117d   :  { %v5402_v49 = vsel %vm5394_vm14, %v5401_v60, %v10686_v56 }
0x117e   :  { %5408 = vst [vmem:[%s10726_s11 + $0x8] sm:$0xff] %v5402_v49 }
0x117f PF:  {}

</bundles_post_ra>
